<compile_context>
chip_gen: v7x
topology: tpu7x:2x2x1
jax: 0.10.0
libtpu: 0.0.40
codegen_flags: <defaults>
</compile_context>

<pallas_src>
import functools

import jax
import jax.numpy as jnp
from jax.experimental import pallas as pl
from jax.experimental.pallas import tpu as pltpu


def _round_up(v, m):
    return (v + m - 1) // m * m


def _conv3x3_bias_relu_kernel(xp_ref, w_ref, b_ref, o_ref, *, H, W, Wp, input_relu):
    """One (batch element, Cout tile) per grid step.

    xp_ref: (1, H+3, Wp, Cin)  zero-padded NHWC input tile (bf16), Wp % 8 == 0
    w_ref : (3, 3, Cin, CT)    HWIO weight tile (bf16)
    b_ref : (1, CT)            bias tile (f32)
    o_ref : (1, H, W, CT)      output tile
    """
    Cin = xp_ref.shape[-1]
    CT = o_ref.shape[-1]

    x = xp_ref[0]                              # (H+3, Wp, Cin)
    if input_relu:                             # fused leading ReLU (relu7); relu(0)=0
        x = jnp.maximum(x, 0)

    # Layout-preserving flatten: Wp % 8 == 0 keeps the (8,128) tiles intact.
    x_flat = x.reshape((H + 3) * Wp, Cin)
    rows = H * Wp

    # Hoist the two width-shifted copies (dw = 1, 2) once; dw = 0 is x_flat.
    # After this every tap slice starts at a multiple of Wp (multiple of 8),
    # i.e. it is a cheap aligned view instead of a relayout copy.
    shifted = [x_flat[dw:dw + (H + 2) * Wp, :] for dw in range(3)]

    # f32 accumulator over the padded-width output grid, initialized with bias.
    acc = jnp.broadcast_to(b_ref[...], (rows, CT)).astype(jnp.float32)

    # 3x3 conv as 9 shifted (rows, Cin) x (Cin, CT) MXU matmuls, f32 accumulate.
    for dh in range(3):
        for dw in range(3):
            patch = shifted[dw][dh * Wp: dh * Wp + rows, :]
            acc = acc + jnp.dot(patch, w_ref[dh, dw],
                                preferred_element_type=jnp.float32)

    acc = jnp.maximum(acc, 0.0)                    # fused trailing ReLU
    acc = acc.reshape(H, Wp, CT)                   # view (Wp % 8 == 0)
    o_ref[0] = acc[:, :W, :].astype(o_ref.dtype)   # drop the width padding


def conv3x3_bias_relu(x_nhwc, w_hwio, b, *, input_relu, cout_tile=None,
                      out_dtype=jnp.bfloat16):
    """(optional input ReLU) -> 3x3 SAME conv -> bias -> ReLU, NHWC layout."""
    N, H, W, Cin = x_nhwc.shape
    Cout = w_hwio.shape[-1]

    if cout_tile is None:
        # 256 matches the v6e/v7x MXU width; fall back to 128 (v5e width) / full.
        for t in (256, 128):
            if Cout % t == 0:
                cout_tile = t
                break
        else:
            cout_tile = Cout
    assert Cout % cout_tile == 0
    n_cout = Cout // cout_tile

    Wp = _round_up(W + 2, 8)                    # aligned padded width
    Hp = H + 3                                  # 1 top + 1 bottom + 1 slack row

    xp = jnp.pad(x_nhwc.astype(jnp.bfloat16),
                 ((0, 0), (1, 2), (1, Wp - W - 1), (0, 0)))
    w = w_hwio.astype(jnp.bfloat16)
    b2 = b.reshape(1, Cout).astype(jnp.float32)

    kern = functools.partial(_conv3x3_bias_relu_kernel,
                             H=H, W=W, Wp=Wp, input_relu=input_relu)

    return pl.pallas_call(
        kern,
        out_shape=jax.ShapeDtypeStruct((N, H, W, Cout), out_dtype),
        grid_spec=pltpu.PrefetchScalarGridSpec(
            num_scalar_prefetch=0,
            grid=(N, n_cout),
            in_specs=[
                # Input: revisited across the cout axis -> fetched once per n.
                pl.BlockSpec((1, Hp, Wp, Cin), lambda n, j: (n, 0, 0, 0)),
                # Weights: change every step -> double-buffered / pipelined DMA.
                pl.BlockSpec((3, 3, Cin, cout_tile), lambda n, j: (0, 0, 0, j)),
                pl.BlockSpec((1, cout_tile), lambda n, j: (0, j)),
            ],
            out_specs=pl.BlockSpec((1, H, W, cout_tile),
                                   lambda n, j: (n, 0, 0, j)),
        ),
        compiler_params=pltpu.CompilerParams(
            dimension_semantics=("parallel", "parallel")),
    )(xp, w, b2)


def forward(x_nchw, params, *, cout_tile=None):
    """Equivalent of M.forward: relu7 -> conv2d8 -> relu8 -> conv2d9 -> relu9."""
    (w1, b1), (w2, b2) = params
    x = jnp.transpose(x_nchw, (0, 2, 3, 1))                       # NCHW -> NHWC
    x = conv3x3_bias_relu(x, w1, b1, input_relu=True,
                          cout_tile=cout_tile)                    # relu7+conv8+relu8
    x = conv3x3_bias_relu(x, w2, b2, input_relu=False,
                          cout_tile=cout_tile,
                          out_dtype=jnp.float32)                  # conv9+relu9
    return jnp.transpose(x, (0, 3, 1, 2))                         # NHWC -> NCHW


def ref_forward(x_nchw, params):
    """Pure-JAX reference with the same precision policy (bf16 in, f32 accum)."""
    (w1, b1), (w2, b2) = params
    dn = ('NHWC', 'HWIO', 'NHWC')
    x = jnp.transpose(x_nchw, (0, 2, 3, 1)).astype(jnp.bfloat16)
    x = jnp.maximum(x, 0)
    y = jax.lax.conv_general_dilated(x, w1.astype(jnp.bfloat16), (1, 1), 'SAME',
                                     dimension_numbers=dn,
                                     preferred_element_type=jnp.float32)
    y = jnp.maximum(y + b1, 0).astype(jnp.bfloat16)
    z = jax.lax.conv_general_dilated(y, w2.astype(jnp.bfloat16), (1, 1), 'SAME',
                                     dimension_numbers=dn,
                                     preferred_element_type=jnp.float32)
    z = jnp.maximum(z + b2, 0)
    return jnp.transpose(z, (0, 3, 1, 2))


if __name__ == "__main__":
    # Small shapes consistent with the module (original: N=1, C=512, 28x28).
    # cout_tile=128 is forced so the test exercises the (N, Cout-tile) grid.
    N, C, H, W = 2, 256, 16, 16

    key = jax.random.PRNGKey(0)
    kx, kw1, kb1, kw2, kb2 = jax.random.split(key, 5)

    x = jax.random.normal(kx, (N, C, H, W), dtype=jnp.float32)      # NCHW like PyTorch
    w1 = jax.random.normal(kw1, (3, 3, C, C), dtype=jnp.float32) * 0.05   # HWIO
    b1 = jax.random.normal(kb1, (C,), dtype=jnp.float32) * 0.05
    w2 = jax.random.normal(kw2, (3, 3, C, C), dtype=jnp.float32) * 0.05
    b2 = jax.random.normal(kb2, (C,), dtype=jnp.float32) * 0.05
    params = ((w1, b1), (w2, b2))

    run = jax.jit(functools.partial(forward, cout_tile=128))
    out = jax.block_until_ready(run(x, params))

    ref = jax.block_until_ready(ref_forward(x, params))
    assert out.shape == (N, C, H, W), out.shape
    max_diff = jnp.max(jnp.abs(out - ref))
    assert jnp.allclose(out, ref, rtol=2e-2, atol=2e-2), \
        f"max abs diff {max_diff}"

    print("KERNEL_OK")
</pallas_src>

<mosaic_0001>
module attributes {stable_mosaic.version = 11 : i64} {
  func.func @_conv3x3_bias_relu_kernel(%arg0: i32, %arg1: i32, %arg2: memref<1x19x24x256xbf16, #tpu.memory_space<vmem>>, %arg3: memref<3x3x256x128xbf16, #tpu.memory_space<vmem>>, %arg4: memref<1x128xf32, #tpu.memory_space<vmem>>, %arg5: memref<1x16x16x128xbf16, #tpu.memory_space<vmem>>) attributes {dimension_semantics = [#tpu.dimension_semantics<parallel>, #tpu.dimension_semantics<parallel>], iteration_bounds = array<i64: 2, 2>, scalar_prefetch = 0 : i64, scratch_operands = 0 : i64, tpu.core_type = #tpu.core_type<tc>, window_params = [{transform_indices = @transform_0, window_bounds = array<i64: 1, 19, 24, 256>}, {transform_indices = @transform_1, window_bounds = array<i64: 3, 3, 256, 128>}, {transform_indices = @transform_2, window_bounds = array<i64: 1, 128>}, {transform_indices = @transform_3, window_bounds = array<i64: 1, 16, 16, 128>}]} {
    %c0 = arith.constant 0 : index
    %c0_0 = arith.constant 0 : index
    %c0_1 = arith.constant 0 : index
    %c0_2 = arith.constant 0 : index
    %0 = vector.load %arg2[%c0, %c0_0, %c0_1, %c0_2] : memref<1x19x24x256xbf16, #tpu.memory_space<vmem>>, vector<1x19x24x256xbf16>
    %1 = vector.shape_cast %0 : vector<1x19x24x256xbf16> to vector<19x24x256xbf16>
    %cst = arith.constant 0.000000e+00 : bf16
    %2 = vector.broadcast %cst : bf16 to vector<19x24x256xbf16>
    %3 = arith.maximumf %1, %2 : vector<19x24x256xbf16>
    %4 = vector.shape_cast %3 : vector<19x24x256xbf16> to vector<456x256xbf16>
    %5 = vector.extract_strided_slice %4 {offsets = [0, 0], sizes = [432, 256], strides = [1, 1]} : vector<456x256xbf16> to vector<432x256xbf16>
    %6 = vector.extract_strided_slice %4 {offsets = [1, 0], sizes = [432, 256], strides = [1, 1]} : vector<456x256xbf16> to vector<432x256xbf16>
    %7 = vector.extract_strided_slice %4 {offsets = [2, 0], sizes = [432, 256], strides = [1, 1]} : vector<456x256xbf16> to vector<432x256xbf16>
    %c0_3 = arith.constant 0 : index
    %c0_4 = arith.constant 0 : index
    %8 = vector.load %arg4[%c0_3, %c0_4] : memref<1x128xf32, #tpu.memory_space<vmem>>, vector<1x128xf32>
    %9 = vector.shape_cast %8 : vector<1x128xf32> to vector<1x128xf32>
    %10 = vector.broadcast %9 : vector<1x128xf32> to vector<384x128xf32>
    %11 = vector.extract_strided_slice %5 {offsets = [0, 0], sizes = [384, 256], strides = [1, 1]} : vector<432x256xbf16> to vector<384x256xbf16>
    %c0_5 = arith.constant 0 : index
    %c0_6 = arith.constant 0 : index
    %c0_7 = arith.constant 0 : index
    %c0_8 = arith.constant 0 : index
    %12 = vector.load %arg3[%c0_5, %c0_6, %c0_7, %c0_8] : memref<3x3x256x128xbf16, #tpu.memory_space<vmem>>, vector<1x1x256x128xbf16>
    %13 = vector.shape_cast %12 : vector<1x1x256x128xbf16> to vector<256x128xbf16>
    %cst_9 = arith.constant dense<0.000000e+00> : vector<384x128xf32>
    %14 = tpu.matmul %11, %13, %cst_9 {dimension_numbers = #tpu.dot_dimension_numbers<[1], [0], [0], [1], [0, 0, 1, 1], [], []>} : vector<384x256xbf16>, vector<256x128xbf16>, vector<384x128xf32> -> vector<384x128xf32>
    %15 = arith.addf %10, %14 : vector<384x128xf32>
    %16 = vector.extract_strided_slice %6 {offsets = [0, 0], sizes = [384, 256], strides = [1, 1]} : vector<432x256xbf16> to vector<384x256xbf16>
    %c0_10 = arith.constant 0 : index
    %c1 = arith.constant 1 : index
    %c0_11 = arith.constant 0 : index
    %c0_12 = arith.constant 0 : index
    %17 = vector.load %arg3[%c0_10, %c1, %c0_11, %c0_12] : memref<3x3x256x128xbf16, #tpu.memory_space<vmem>>, vector<1x1x256x128xbf16>
    %18 = vector.shape_cast %17 : vector<1x1x256x128xbf16> to vector<256x128xbf16>
    %cst_13 = arith.constant dense<0.000000e+00> : vector<384x128xf32>
    %19 = tpu.matmul %16, %18, %cst_13 {dimension_numbers = #tpu.dot_dimension_numbers<[1], [0], [0], [1], [0, 0, 1, 1], [], []>} : vector<384x256xbf16>, vector<256x128xbf16>, vector<384x128xf32> -> vector<384x128xf32>
    %20 = arith.addf %15, %19 : vector<384x128xf32>
    %21 = vector.extract_strided_slice %7 {offsets = [0, 0], sizes = [384, 256], strides = [1, 1]} : vector<432x256xbf16> to vector<384x256xbf16>
    %c0_14 = arith.constant 0 : index
    %c2 = arith.constant 2 : index
    %c0_15 = arith.constant 0 : index
    %c0_16 = arith.constant 0 : index
    %22 = vector.load %arg3[%c0_14, %c2, %c0_15, %c0_16] : memref<3x3x256x128xbf16, #tpu.memory_space<vmem>>, vector<1x1x256x128xbf16>
    %23 = vector.shape_cast %22 : vector<1x1x256x128xbf16> to vector<256x128xbf16>
    %cst_17 = arith.constant dense<0.000000e+00> : vector<384x128xf32>
    %24 = tpu.matmul %21, %23, %cst_17 {dimension_numbers = #tpu.dot_dimension_numbers<[1], [0], [0], [1], [0, 0, 1, 1], [], []>} : vector<384x256xbf16>, vector<256x128xbf16>, vector<384x128xf32> -> vector<384x128xf32>
    %25 = arith.addf %20, %24 : vector<384x128xf32>
    %26 = vector.extract_strided_slice %5 {offsets = [24, 0], sizes = [384, 256], strides = [1, 1]} : vector<432x256xbf16> to vector<384x256xbf16>
    %c1_18 = arith.constant 1 : index
    %c0_19 = arith.constant 0 : index
    %c0_20 = arith.constant 0 : index
    %c0_21 = arith.constant 0 : index
    %27 = vector.load %arg3[%c1_18, %c0_19, %c0_20, %c0_21] : memref<3x3x256x128xbf16, #tpu.memory_space<vmem>>, vector<1x1x256x128xbf16>
    %28 = vector.shape_cast %27 : vector<1x1x256x128xbf16> to vector<256x128xbf16>
    %cst_22 = arith.constant dense<0.000000e+00> : vector<384x128xf32>
    %29 = tpu.matmul %26, %28, %cst_22 {dimension_numbers = #tpu.dot_dimension_numbers<[1], [0], [0], [1], [0, 0, 1, 1], [], []>} : vector<384x256xbf16>, vector<256x128xbf16>, vector<384x128xf32> -> vector<384x128xf32>
    %30 = arith.addf %25, %29 : vector<384x128xf32>
    %31 = vector.extract_strided_slice %6 {offsets = [24, 0], sizes = [384, 256], strides = [1, 1]} : vector<432x256xbf16> to vector<384x256xbf16>
    %c1_23 = arith.constant 1 : index
    %c1_24 = arith.constant 1 : index
    %c0_25 = arith.constant 0 : index
    %c0_26 = arith.constant 0 : index
    %32 = vector.load %arg3[%c1_23, %c1_24, %c0_25, %c0_26] : memref<3x3x256x128xbf16, #tpu.memory_space<vmem>>, vector<1x1x256x128xbf16>
    %33 = vector.shape_cast %32 : vector<1x1x256x128xbf16> to vector<256x128xbf16>
    %cst_27 = arith.constant dense<0.000000e+00> : vector<384x128xf32>
    %34 = tpu.matmul %31, %33, %cst_27 {dimension_numbers = #tpu.dot_dimension_numbers<[1], [0], [0], [1], [0, 0, 1, 1], [], []>} : vector<384x256xbf16>, vector<256x128xbf16>, vector<384x128xf32> -> vector<384x128xf32>
    %35 = arith.addf %30, %34 : vector<384x128xf32>
    %36 = vector.extract_strided_slice %7 {offsets = [24, 0], sizes = [384, 256], strides = [1, 1]} : vector<432x256xbf16> to vector<384x256xbf16>
    %c1_28 = arith.constant 1 : index
    %c2_29 = arith.constant 2 : index
    %c0_30 = arith.constant 0 : index
    %c0_31 = arith.constant 0 : index
    %37 = vector.load %arg3[%c1_28, %c2_29, %c0_30, %c0_31] : memref<3x3x256x128xbf16, #tpu.memory_space<vmem>>, vector<1x1x256x128xbf16>
    %38 = vector.shape_cast %37 : vector<1x1x256x128xbf16> to vector<256x128xbf16>
    %cst_32 = arith.constant dense<0.000000e+00> : vector<384x128xf32>
    %39 = tpu.matmul %36, %38, %cst_32 {dimension_numbers = #tpu.dot_dimension_numbers<[1], [0], [0], [1], [0, 0, 1, 1], [], []>} : vector<384x256xbf16>, vector<256x128xbf16>, vector<384x128xf32> -> vector<384x128xf32>
    %40 = arith.addf %35, %39 : vector<384x128xf32>
    %41 = vector.extract_strided_slice %5 {offsets = [48, 0], sizes = [384, 256], strides = [1, 1]} : vector<432x256xbf16> to vector<384x256xbf16>
    %c2_33 = arith.constant 2 : index
    %c0_34 = arith.constant 0 : index
    %c0_35 = arith.constant 0 : index
    %c0_36 = arith.constant 0 : index
    %42 = vector.load %arg3[%c2_33, %c0_34, %c0_35, %c0_36] : memref<3x3x256x128xbf16, #tpu.memory_space<vmem>>, vector<1x1x256x128xbf16>
    %43 = vector.shape_cast %42 : vector<1x1x256x128xbf16> to vector<256x128xbf16>
    %cst_37 = arith.constant dense<0.000000e+00> : vector<384x128xf32>
    %44 = tpu.matmul %41, %43, %cst_37 {dimension_numbers = #tpu.dot_dimension_numbers<[1], [0], [0], [1], [0, 0, 1, 1], [], []>} : vector<384x256xbf16>, vector<256x128xbf16>, vector<384x128xf32> -> vector<384x128xf32>
    %45 = arith.addf %40, %44 : vector<384x128xf32>
    %46 = vector.extract_strided_slice %6 {offsets = [48, 0], sizes = [384, 256], strides = [1, 1]} : vector<432x256xbf16> to vector<384x256xbf16>
    %c2_38 = arith.constant 2 : index
    %c1_39 = arith.constant 1 : index
    %c0_40 = arith.constant 0 : index
    %c0_41 = arith.constant 0 : index
    %47 = vector.load %arg3[%c2_38, %c1_39, %c0_40, %c0_41] : memref<3x3x256x128xbf16, #tpu.memory_space<vmem>>, vector<1x1x256x128xbf16>
    %48 = vector.shape_cast %47 : vector<1x1x256x128xbf16> to vector<256x128xbf16>
    %cst_42 = arith.constant dense<0.000000e+00> : vector<384x128xf32>
    %49 = tpu.matmul %46, %48, %cst_42 {dimension_numbers = #tpu.dot_dimension_numbers<[1], [0], [0], [1], [0, 0, 1, 1], [], []>} : vector<384x256xbf16>, vector<256x128xbf16>, vector<384x128xf32> -> vector<384x128xf32>
    %50 = arith.addf %45, %49 : vector<384x128xf32>
    %51 = vector.extract_strided_slice %7 {offsets = [48, 0], sizes = [384, 256], strides = [1, 1]} : vector<432x256xbf16> to vector<384x256xbf16>
    %c2_43 = arith.constant 2 : index
    %c2_44 = arith.constant 2 : index
    %c0_45 = arith.constant 0 : index
    %c0_46 = arith.constant 0 : index
    %52 = vector.load %arg3[%c2_43, %c2_44, %c0_45, %c0_46] : memref<3x3x256x128xbf16, #tpu.memory_space<vmem>>, vector<1x1x256x128xbf16>
    %53 = vector.shape_cast %52 : vector<1x1x256x128xbf16> to vector<256x128xbf16>
    %cst_47 = arith.constant dense<0.000000e+00> : vector<384x128xf32>
    %54 = tpu.matmul %51, %53, %cst_47 {dimension_numbers = #tpu.dot_dimension_numbers<[1], [0], [0], [1], [0, 0, 1, 1], [], []>} : vector<384x256xbf16>, vector<256x128xbf16>, vector<384x128xf32> -> vector<384x128xf32>
    %55 = arith.addf %50, %54 : vector<384x128xf32>
    %cst_48 = arith.constant 0.000000e+00 : f32
    %56 = vector.broadcast %cst_48 : f32 to vector<384x128xf32>
    %57 = arith.maximumf %55, %56 : vector<384x128xf32>
    %58 = vector.shape_cast %57 : vector<384x128xf32> to vector<16x24x128xf32>
    %59 = vector.extract_strided_slice %58 {offsets = [0, 0, 0], sizes = [16, 16, 128], strides = [1, 1, 1]} : vector<16x24x128xf32> to vector<16x16x128xf32>
    %60 = arith.truncf %59 : vector<16x16x128xf32> to vector<16x16x128xbf16>
    %c0_49 = arith.constant 0 : index
    %c0_50 = arith.constant 0 : index
    %c0_51 = arith.constant 0 : index
    %c0_52 = arith.constant 0 : index
    %61 = vector.load %arg5[%c0_49, %c0_50, %c0_51, %c0_52] : memref<1x16x16x128xbf16, #tpu.memory_space<vmem>>, vector<1x16x16x128xbf16>
    %62 = vector.shape_cast %61 : vector<1x16x16x128xbf16> to vector<16x16x128xbf16>
    %63 = vector.shape_cast %60 : vector<16x16x128xbf16> to vector<1x16x16x128xbf16>
    tpu.vector_store %arg5[%c0_49, %c0_50, %c0_51, %c0_52], %63 {strides = array<i32>} : memref<1x16x16x128xbf16, #tpu.memory_space<vmem>>, vector<1x16x16x128xbf16>,
    return
  }
  func.func @transform_0(%arg0: i32, %arg1: i32) -> (i32, i32, i32, i32) {
    %c0_i32 = arith.constant 0 : i32
    %c0_i32_0 = arith.constant 0 : i32
    %c0_i32_1 = arith.constant 0 : i32
    %c0_i32_2 = arith.constant 0 : i32
    return %arg0, %c0_i32, %c0_i32_0, %c0_i32_1 : i32, i32, i32, i32
  }
  func.func @transform_1(%arg0: i32, %arg1: i32) -> (i32, i32, i32, i32) {
    %c0_i32 = arith.constant 0 : i32
    %c0_i32_0 = arith.constant 0 : i32
    %c0_i32_1 = arith.constant 0 : i32
    %c0_i32_2 = arith.constant 0 : i32
    return %c0_i32, %c0_i32_0, %c0_i32_1, %arg1 : i32, i32, i32, i32
  }
  func.func @transform_2(%arg0: i32, %arg1: i32) -> (i32, i32) {
    %c0_i32 = arith.constant 0 : i32
    %c0_i32_0 = arith.constant 0 : i32
    return %c0_i32, %arg1 : i32, i32
  }
  func.func @transform_3(%arg0: i32, %arg1: i32) -> (i32, i32, i32, i32) {
    %c0_i32 = arith.constant 0 : i32
    %c0_i32_0 = arith.constant 0 : i32
    %c0_i32_1 = arith.constant 0 : i32
    return %arg0, %c0_i32, %c0_i32_0, %arg1 : i32, i32, i32, i32
  }
}

module attributes {stable_mosaic.version = 11 : i64} {
  func.func @_conv3x3_bias_relu_kernel(%arg0: i32, %arg1: i32, %arg2: memref<1x19x24x256xbf16, #tpu.memory_space<vmem>>, %arg3: memref<3x3x256x128xbf16, #tpu.memory_space<vmem>>, %arg4: memref<1x128xf32, #tpu.memory_space<vmem>>, %arg5: memref<1x16x16x128xf32, #tpu.memory_space<vmem>>) attributes {dimension_semantics = [#tpu.dimension_semantics<parallel>, #tpu.dimension_semantics<parallel>], iteration_bounds = array<i64: 2, 2>, scalar_prefetch = 0 : i64, scratch_operands = 0 : i64, tpu.core_type = #tpu.core_type<tc>, window_params = [{transform_indices = @transform_0, window_bounds = array<i64: 1, 19, 24, 256>}, {transform_indices = @transform_1, window_bounds = array<i64: 3, 3, 256, 128>}, {transform_indices = @transform_2, window_bounds = array<i64: 1, 128>}, {transform_indices = @transform_3, window_bounds = array<i64: 1, 16, 16, 128>}]} {
    %c0 = arith.constant 0 : index
    %c0_0 = arith.constant 0 : index
    %c0_1 = arith.constant 0 : index
    %c0_2 = arith.constant 0 : index
    %0 = vector.load %arg2[%c0, %c0_0, %c0_1, %c0_2] : memref<1x19x24x256xbf16, #tpu.memory_space<vmem>>, vector<1x19x24x256xbf16>
    %1 = vector.shape_cast %0 : vector<1x19x24x256xbf16> to vector<19x24x256xbf16>
    %2 = vector.shape_cast %1 : vector<19x24x256xbf16> to vector<456x256xbf16>
    %3 = vector.extract_strided_slice %2 {offsets = [0, 0], sizes = [432, 256], strides = [1, 1]} : vector<456x256xbf16> to vector<432x256xbf16>
    %4 = vector.extract_strided_slice %2 {offsets = [1, 0], sizes = [432, 256], strides = [1, 1]} : vector<456x256xbf16> to vector<432x256xbf16>
    %5 = vector.extract_strided_slice %2 {offsets = [2, 0], sizes = [432, 256], strides = [1, 1]} : vector<456x256xbf16> to vector<432x256xbf16>
    %c0_3 = arith.constant 0 : index
    %c0_4 = arith.constant 0 : index
    %6 = vector.load %arg4[%c0_3, %c0_4] : memref<1x128xf32, #tpu.memory_space<vmem>>, vector<1x128xf32>
    %7 = vector.shape_cast %6 : vector<1x128xf32> to vector<1x128xf32>
    %8 = vector.broadcast %7 : vector<1x128xf32> to vector<384x128xf32>
    %9 = vector.extract_strided_slice %3 {offsets = [0, 0], sizes = [384, 256], strides = [1, 1]} : vector<432x256xbf16> to vector<384x256xbf16>
    %c0_5 = arith.constant 0 : index
    %c0_6 = arith.constant 0 : index
    %c0_7 = arith.constant 0 : index
    %c0_8 = arith.constant 0 : index
    %10 = vector.load %arg3[%c0_5, %c0_6, %c0_7, %c0_8] : memref<3x3x256x128xbf16, #tpu.memory_space<vmem>>, vector<1x1x256x128xbf16>
    %11 = vector.shape_cast %10 : vector<1x1x256x128xbf16> to vector<256x128xbf16>
    %cst = arith.constant dense<0.000000e+00> : vector<384x128xf32>
    %12 = tpu.matmul %9, %11, %cst {dimension_numbers = #tpu.dot_dimension_numbers<[1], [0], [0], [1], [0, 0, 1, 1], [], []>} : vector<384x256xbf16>, vector<256x128xbf16>, vector<384x128xf32> -> vector<384x128xf32>
    %13 = arith.addf %8, %12 : vector<384x128xf32>
    %14 = vector.extract_strided_slice %4 {offsets = [0, 0], sizes = [384, 256], strides = [1, 1]} : vector<432x256xbf16> to vector<384x256xbf16>
    %c0_9 = arith.constant 0 : index
    %c1 = arith.constant 1 : index
    %c0_10 = arith.constant 0 : index
    %c0_11 = arith.constant 0 : index
    %15 = vector.load %arg3[%c0_9, %c1, %c0_10, %c0_11] : memref<3x3x256x128xbf16, #tpu.memory_space<vmem>>, vector<1x1x256x128xbf16>
    %16 = vector.shape_cast %15 : vector<1x1x256x128xbf16> to vector<256x128xbf16>
    %cst_12 = arith.constant dense<0.000000e+00> : vector<384x128xf32>
    %17 = tpu.matmul %14, %16, %cst_12 {dimension_numbers = #tpu.dot_dimension_numbers<[1], [0], [0], [1], [0, 0, 1, 1], [], []>} : vector<384x256xbf16>, vector<256x128xbf16>, vector<384x128xf32> -> vector<384x128xf32>
    %18 = arith.addf %13, %17 : vector<384x128xf32>
    %19 = vector.extract_strided_slice %5 {offsets = [0, 0], sizes = [384, 256], strides = [1, 1]} : vector<432x256xbf16> to vector<384x256xbf16>
    %c0_13 = arith.constant 0 : index
    %c2 = arith.constant 2 : index
    %c0_14 = arith.constant 0 : index
    %c0_15 = arith.constant 0 : index
    %20 = vector.load %arg3[%c0_13, %c2, %c0_14, %c0_15] : memref<3x3x256x128xbf16, #tpu.memory_space<vmem>>, vector<1x1x256x128xbf16>
    %21 = vector.shape_cast %20 : vector<1x1x256x128xbf16> to vector<256x128xbf16>
    %cst_16 = arith.constant dense<0.000000e+00> : vector<384x128xf32>
    %22 = tpu.matmul %19, %21, %cst_16 {dimension_numbers = #tpu.dot_dimension_numbers<[1], [0], [0], [1], [0, 0, 1, 1], [], []>} : vector<384x256xbf16>, vector<256x128xbf16>, vector<384x128xf32> -> vector<384x128xf32>
    %23 = arith.addf %18, %22 : vector<384x128xf32>
    %24 = vector.extract_strided_slice %3 {offsets = [24, 0], sizes = [384, 256], strides = [1, 1]} : vector<432x256xbf16> to vector<384x256xbf16>
    %c1_17 = arith.constant 1 : index
    %c0_18 = arith.constant 0 : index
    %c0_19 = arith.constant 0 : index
    %c0_20 = arith.constant 0 : index
    %25 = vector.load %arg3[%c1_17, %c0_18, %c0_19, %c0_20] : memref<3x3x256x128xbf16, #tpu.memory_space<vmem>>, vector<1x1x256x128xbf16>
    %26 = vector.shape_cast %25 : vector<1x1x256x128xbf16> to vector<256x128xbf16>
    %cst_21 = arith.constant dense<0.000000e+00> : vector<384x128xf32>
    %27 = tpu.matmul %24, %26, %cst_21 {dimension_numbers = #tpu.dot_dimension_numbers<[1], [0], [0], [1], [0, 0, 1, 1], [], []>} : vector<384x256xbf16>, vector<256x128xbf16>, vector<384x128xf32> -> vector<384x128xf32>
    %28 = arith.addf %23, %27 : vector<384x128xf32>
    %29 = vector.extract_strided_slice %4 {offsets = [24, 0], sizes = [384, 256], strides = [1, 1]} : vector<432x256xbf16> to vector<384x256xbf16>
    %c1_22 = arith.constant 1 : index
    %c1_23 = arith.constant 1 : index
    %c0_24 = arith.constant 0 : index
    %c0_25 = arith.constant 0 : index
    %30 = vector.load %arg3[%c1_22, %c1_23, %c0_24, %c0_25] : memref<3x3x256x128xbf16, #tpu.memory_space<vmem>>, vector<1x1x256x128xbf16>
    %31 = vector.shape_cast %30 : vector<1x1x256x128xbf16> to vector<256x128xbf16>
    %cst_26 = arith.constant dense<0.000000e+00> : vector<384x128xf32>
    %32 = tpu.matmul %29, %31, %cst_26 {dimension_numbers = #tpu.dot_dimension_numbers<[1], [0], [0], [1], [0, 0, 1, 1], [], []>} : vector<384x256xbf16>, vector<256x128xbf16>, vector<384x128xf32> -> vector<384x128xf32>
    %33 = arith.addf %28, %32 : vector<384x128xf32>
    %34 = vector.extract_strided_slice %5 {offsets = [24, 0], sizes = [384, 256], strides = [1, 1]} : vector<432x256xbf16> to vector<384x256xbf16>
    %c1_27 = arith.constant 1 : index
    %c2_28 = arith.constant 2 : index
    %c0_29 = arith.constant 0 : index
    %c0_30 = arith.constant 0 : index
    %35 = vector.load %arg3[%c1_27, %c2_28, %c0_29, %c0_30] : memref<3x3x256x128xbf16, #tpu.memory_space<vmem>>, vector<1x1x256x128xbf16>
    %36 = vector.shape_cast %35 : vector<1x1x256x128xbf16> to vector<256x128xbf16>
    %cst_31 = arith.constant dense<0.000000e+00> : vector<384x128xf32>
    %37 = tpu.matmul %34, %36, %cst_31 {dimension_numbers = #tpu.dot_dimension_numbers<[1], [0], [0], [1], [0, 0, 1, 1], [], []>} : vector<384x256xbf16>, vector<256x128xbf16>, vector<384x128xf32> -> vector<384x128xf32>
    %38 = arith.addf %33, %37 : vector<384x128xf32>
    %39 = vector.extract_strided_slice %3 {offsets = [48, 0], sizes = [384, 256], strides = [1, 1]} : vector<432x256xbf16> to vector<384x256xbf16>
    %c2_32 = arith.constant 2 : index
    %c0_33 = arith.constant 0 : index
    %c0_34 = arith.constant 0 : index
    %c0_35 = arith.constant 0 : index
    %40 = vector.load %arg3[%c2_32, %c0_33, %c0_34, %c0_35] : memref<3x3x256x128xbf16, #tpu.memory_space<vmem>>, vector<1x1x256x128xbf16>
    %41 = vector.shape_cast %40 : vector<1x1x256x128xbf16> to vector<256x128xbf16>
    %cst_36 = arith.constant dense<0.000000e+00> : vector<384x128xf32>
    %42 = tpu.matmul %39, %41, %cst_36 {dimension_numbers = #tpu.dot_dimension_numbers<[1], [0], [0], [1], [0, 0, 1, 1], [], []>} : vector<384x256xbf16>, vector<256x128xbf16>, vector<384x128xf32> -> vector<384x128xf32>
    %43 = arith.addf %38, %42 : vector<384x128xf32>
    %44 = vector.extract_strided_slice %4 {offsets = [48, 0], sizes = [384, 256], strides = [1, 1]} : vector<432x256xbf16> to vector<384x256xbf16>
    %c2_37 = arith.constant 2 : index
    %c1_38 = arith.constant 1 : index
    %c0_39 = arith.constant 0 : index
    %c0_40 = arith.constant 0 : index
    %45 = vector.load %arg3[%c2_37, %c1_38, %c0_39, %c0_40] : memref<3x3x256x128xbf16, #tpu.memory_space<vmem>>, vector<1x1x256x128xbf16>
    %46 = vector.shape_cast %45 : vector<1x1x256x128xbf16> to vector<256x128xbf16>
    %cst_41 = arith.constant dense<0.000000e+00> : vector<384x128xf32>
    %47 = tpu.matmul %44, %46, %cst_41 {dimension_numbers = #tpu.dot_dimension_numbers<[1], [0], [0], [1], [0, 0, 1, 1], [], []>} : vector<384x256xbf16>, vector<256x128xbf16>, vector<384x128xf32> -> vector<384x128xf32>
    %48 = arith.addf %43, %47 : vector<384x128xf32>
    %49 = vector.extract_strided_slice %5 {offsets = [48, 0], sizes = [384, 256], strides = [1, 1]} : vector<432x256xbf16> to vector<384x256xbf16>
    %c2_42 = arith.constant 2 : index
    %c2_43 = arith.constant 2 : index
    %c0_44 = arith.constant 0 : index
    %c0_45 = arith.constant 0 : index
    %50 = vector.load %arg3[%c2_42, %c2_43, %c0_44, %c0_45] : memref<3x3x256x128xbf16, #tpu.memory_space<vmem>>, vector<1x1x256x128xbf16>
    %51 = vector.shape_cast %50 : vector<1x1x256x128xbf16> to vector<256x128xbf16>
    %cst_46 = arith.constant dense<0.000000e+00> : vector<384x128xf32>
    %52 = tpu.matmul %49, %51, %cst_46 {dimension_numbers = #tpu.dot_dimension_numbers<[1], [0], [0], [1], [0, 0, 1, 1], [], []>} : vector<384x256xbf16>, vector<256x128xbf16>, vector<384x128xf32> -> vector<384x128xf32>
    %53 = arith.addf %48, %52 : vector<384x128xf32>
    %cst_47 = arith.constant 0.000000e+00 : f32
    %54 = vector.broadcast %cst_47 : f32 to vector<384x128xf32>
    %55 = arith.maximumf %53, %54 : vector<384x128xf32>
    %56 = vector.shape_cast %55 : vector<384x128xf32> to vector<16x24x128xf32>
    %57 = vector.extract_strided_slice %56 {offsets = [0, 0, 0], sizes = [16, 16, 128], strides = [1, 1, 1]} : vector<16x24x128xf32> to vector<16x16x128xf32>
    %c0_48 = arith.constant 0 : index
    %c0_49 = arith.constant 0 : index
    %c0_50 = arith.constant 0 : index
    %c0_51 = arith.constant 0 : index
    %58 = vector.load %arg5[%c0_48, %c0_49, %c0_50, %c0_51] : memref<1x16x16x128xf32, #tpu.memory_space<vmem>>, vector<1x16x16x128xf32>
    %59 = vector.shape_cast %58 : vector<1x16x16x128xf32> to vector<16x16x128xf32>
    %60 = vector.shape_cast %57 : vector<16x16x128xf32> to vector<1x16x16x128xf32>
    tpu.vector_store %arg5[%c0_48, %c0_49, %c0_50, %c0_51], %60 {strides = array<i32>} : memref<1x16x16x128xf32, #tpu.memory_space<vmem>>, vector<1x16x16x128xf32>,
    return
  }
  func.func @transform_0(%arg0: i32, %arg1: i32) -> (i32, i32, i32, i32) {
    %c0_i32 = arith.constant 0 : i32
    %c0_i32_0 = arith.constant 0 : i32
    %c0_i32_1 = arith.constant 0 : i32
    %c0_i32_2 = arith.constant 0 : i32
    return %arg0, %c0_i32, %c0_i32_0, %c0_i32_1 : i32, i32, i32, i32
  }
  func.func @transform_1(%arg0: i32, %arg1: i32) -> (i32, i32, i32, i32) {
    %c0_i32 = arith.constant 0 : i32
    %c0_i32_0 = arith.constant 0 : i32
    %c0_i32_1 = arith.constant 0 : i32
    %c0_i32_2 = arith.constant 0 : i32
    return %c0_i32, %c0_i32_0, %c0_i32_1, %arg1 : i32, i32, i32, i32
  }
  func.func @transform_2(%arg0: i32, %arg1: i32) -> (i32, i32) {
    %c0_i32 = arith.constant 0 : i32
    %c0_i32_0 = arith.constant 0 : i32
    return %c0_i32, %arg1 : i32, i32
  }
  func.func @transform_3(%arg0: i32, %arg1: i32) -> (i32, i32, i32, i32) {
    %c0_i32 = arith.constant 0 : i32
    %c0_i32_0 = arith.constant 0 : i32
    %c0_i32_1 = arith.constant 0 : i32
    return %arg0, %c0_i32, %c0_i32_0, %arg1 : i32, i32, i32, i32
  }
}

</mosaic_0001>

<bundles_post_ra>
// kernel: forward.2
= control target key start
LH: loop header
LB: loop body
LE: loop exit
PB: predicated region body
PF: predicated region fallthrough
CT: control target
= control target key end

     0   :  { %s8723_s12 = smov 0   ;;  %s8725_s13 = smov 0   ;;  %s11571_s0 = inlined_call_operand.vmem [shape: bf16[2,19,24,256], index: 0, kind: input, shape index: {}]   ;;  %s11572_s1 = inlined_call_operand.vmem [shape: bf16[3,3,256,256], index: 1, kind: input, shape index: {}]   ;;  %s11573_s2 = inlined_call_operand.vmem [shape: f32[1,256], index: 2, kind: input, shape index: {}]   ;;  %s11574_s3 = inlined_call_operand.vmem [shape: bf16[2,16,16,256], index: 3, kind: output, shape index: {}]  }
   0x1   :  { %s8727_s14 = smov 0   ;;  %s8729_s15 = smov 0  }
   0x2   :  { %s8731_s16 = smov 0   ;;  %s8733_s17 = smov 0  }
   0x3   :  { %s8735_s18 = smov 0   ;;  %s8737_s19 = smov 0  }
   0x4   :  { %s8739_s20 = smov 0  }
   0x5 LB: > { %s6945_s21 = sadd.s32 4294967295, %s8700_s20   ;;  %s22_s22 = sadd.s32 1, %s8692_s18  ;;  %s8700_s20 = sphi %s8739_s20, %s13_s20   ;;  %s8696_s19 = sphi %s8737_s19, %s12010_s19   ;;  %s8692_s18 = sphi %s8735_s18, %s12009_s18   ;;  %s8688_s17 = sphi %s8733_s17, %s12008_s17   ;;  %s8684_s16 = sphi %s8731_s16, %s12007_s16   ;;  %s8680_s15 = sphi %s8729_s15, %s12006_s15   ;;  %s8676_s14 = sphi %s8727_s14, %s12005_s14   ;;  %s8672_s13 = sphi %s8725_s13, %s12004_s13   ;;  %s8668_s12 = sphi %s8723_s12, %s12003_s12  }
   0x6   : > { %p23_p0 = scmp.ge.s32.totalorder %s22_s22, 2  ;;  %s25_s23 = sadd.s32 1, %s8696_s19 }
   0x7   : > { %s58_s24 = sadd.s32 1, %s8680_s15  ;;  %p65_p1 = scmp.ne.s32.totalorder %s8680_s15, %s8676_s14 }
   0x8   : > { %s12012_s22 = smov (%p23_p0, %s22_s22), 0  ;;  %s12014_s23 = smov (!%p23_p0, %s25_s23), %s8696_s19 }
   0x9   : > { %s55_s25 = ssub.s32 %s8692_s18, %s12012_s22  ;;  %p66_p2 = scmp.eq.s32.totalorder %s8700_s20, 0 }
   0xa   : > { %p27_p3 = scmp.ge.s32.totalorder %s12014_s23, 2  ;;  %p56_p4 = scmp.eq.s32.totalorder %s55_s25, 0 }
   0xb   : > { %p67_p5 = por %p66_p2, %p65_p1  ;;  %s112_s26 = sadd.s32 1, %s8672_s13 }
   0xc   : > { %s12016_s23 = smov (%p27_p3, %s12014_s23), 0  ;;  %p122_p6 = scmp.ne.s32.totalorder %s8672_s13, %s8668_s12 }
   0xd   : > { %s8784_s27 = scalar_select %p56_p4, %s8680_s15, %s58_s24  }
   0xe   : > { %s107_s28 = ssub.s32 %s8696_s19, %s12016_s23  ;;  %p123_p7 = scmp.eq.s32.totalorder %s6945_s21, 3 }
   0xf   : > { %s109_s29 = sor.u32 %s107_s28, %s55_s25  ;;  %p6948_p10 = scmp.ge.s32.totalorder %s8700_s20, 4 }
  0x10   : > { %p110_p8 = scmp.eq.s32.totalorder %s109_s29, 0  ;;  %p8790_p9 = por %p123_p7, %p122_p6 }
  0x11   : > { %145 = sbr.rel (%p6948_p10) target bundleno = 220 (0xdc), region = 16 }
  0x12   : > { %s8795_s4 = scalar_select %p110_p8, %s8672_s13, %s112_s26  }
  0x18   : > { %156 = sbr.rel (!%p67_p5) target bundleno = 220 (0xdc), region = 24  ;;  %s158_s5 = sand.u32 (%p67_p5), 1, %s8680_s15  }
  0x19   : > { %s6949_s6 = sshll.u32 (%p67_p5), %s8692_s18, 2  ;;  %s8394_s7 = smul.u32 (%p67_p5), 1152, %s158_s5 }
  0x1a   : > { %s8803_s10 = scalar_lea.vmem (%p67_p5), %s11572_s1, %s6949_s6 }
  0x1b   : > { %v178_v0 = vld [vmem:[%s8803_s10] sm:$0xf] (%p67_p5)  ;;  %v180_v1 = vld [vmem:[%s8803_s10 + $0x8] sm:$0xf] (%p67_p5)  ;;  %v182_v2 = vld [vmem:[%s8803_s10 + $0x10] sm:$0xf] (%p67_p5) }
  0x1c   : > { %v184_v3 = vld [vmem:[%s8803_s10 + $0x18] sm:$0xf] (%p67_p5)  ;;  %v186_v4 = vld [vmem:[%s8803_s10 + $0x20] sm:$0xf] (%p67_p5)  ;;  %s8810_s11 = scalar_lea.vmem (%p67_p5), [#allocation2], %s8394_s7 }
  0x1d   : > { %179 = vst [vmem:[%s8810_s11] sm:$0xf] (%p67_p5), %v178_v0  ;;  %181 = vst [vmem:[%s8810_s11 + $0x4] sm:$0xf] (%p67_p5), %v180_v1  ;;  %v188_v5 = vld [vmem:[%s8803_s10 + $0x28] sm:$0xf] (%p67_p5) }
  0x1e   : > { %183 = vst [vmem:[%s8810_s11 + $0x8] sm:$0xf] (%p67_p5), %v182_v2  ;;  %185 = vst [vmem:[%s8810_s11 + $0xc] sm:$0xf] (%p67_p5), %v184_v3  ;;  %v190_v6 = vld [vmem:[%s8803_s10 + $0x30] sm:$0xf] (%p67_p5) }
  0x1f   : > { %187 = vst [vmem:[%s8810_s11 + $0x10] sm:$0xf] %v186_v4  ;;  %v192_v7 = vld [vmem:[%s8803_s10 + $0x38] sm:$0xf]  ;;  %189 = vst [vmem:[%s8810_s11 + $0x14] sm:$0xf] %v188_v5 }
  0x20   : > { %191 = vst [vmem:[%s8810_s11 + $0x18] sm:$0xf] %v190_v6  ;;  %193 = vst [vmem:[%s8810_s11 + $0x1c] sm:$0xf] %v192_v7  ;;  %v194_v8 = vld [vmem:[%s8803_s10 + $0x40] sm:$0xf] }
  0x21   : > { %v196_v9 = vld [vmem:[%s8803_s10 + $0x48] sm:$0xf]  ;;  %v198_v10 = vld [vmem:[%s8803_s10 + $0x50] sm:$0xf]  ;;  %195 = vst [vmem:[%s8810_s11 + $0x20] sm:$0xf] %v194_v8 }
  0x22   : > { %197 = vst [vmem:[%s8810_s11 + $0x24] sm:$0xf] %v196_v9  ;;  %199 = vst [vmem:[%s8810_s11 + $0x28] sm:$0xf] %v198_v10  ;;  %v200_v11 = vld [vmem:[%s8803_s10 + $0x58] sm:$0xf] }
  0x23   : > { %v202_v12 = vld [vmem:[%s8803_s10 + $0x60] sm:$0xf]  ;;  %v204_v13 = vld [vmem:[%s8803_s10 + $0x68] sm:$0xf]  ;;  %201 = vst [vmem:[%s8810_s11 + $0x2c] sm:$0xf] %v200_v11 }
  0x24   : > { %203 = vst [vmem:[%s8810_s11 + $0x30] sm:$0xf] %v202_v12  ;;  %205 = vst [vmem:[%s8810_s11 + $0x34] sm:$0xf] %v204_v13  ;;  %v206_v14 = vld [vmem:[%s8803_s10 + $0x70] sm:$0xf] }
  0x25   : > { %v208_v15 = vld [vmem:[%s8803_s10 + $0x78] sm:$0xf]  ;;  %v210_v16 = vld [vmem:[%s8803_s10 + $0x80] sm:$0xf]  ;;  %207 = vst [vmem:[%s8810_s11 + $0x38] sm:$0xf] %v206_v14 }
  0x26   : > { %209 = vst [vmem:[%s8810_s11 + $0x3c] sm:$0xf] %v208_v15  ;;  %211 = vst [vmem:[%s8810_s11 + $0x40] sm:$0xf] %v210_v16  ;;  %v212_v17 = vld [vmem:[%s8803_s10 + $0x88] sm:$0xf] }
  0x27   : > { %v214_v18 = vld [vmem:[%s8803_s10 + $0x90] sm:$0xf]  ;;  %v216_v19 = vld [vmem:[%s8803_s10 + $0x98] sm:$0xf]  ;;  %213 = vst [vmem:[%s8810_s11 + $0x44] sm:$0xf] %v212_v17 }
  0x28   : > { %215 = vst [vmem:[%s8810_s11 + $0x48] sm:$0xf] %v214_v18  ;;  %217 = vst [vmem:[%s8810_s11 + $0x4c] sm:$0xf] %v216_v19  ;;  %v218_v20 = vld [vmem:[%s8803_s10 + $0xa0] sm:$0xf] }
  0x29   : > { %v220_v21 = vld [vmem:[%s8803_s10 + $0xa8] sm:$0xf]  ;;  %v222_v22 = vld [vmem:[%s8803_s10 + $0xb0] sm:$0xf]  ;;  %219 = vst [vmem:[%s8810_s11 + $0x50] sm:$0xf] %v218_v20 }
  0x2a   : > { %221 = vst [vmem:[%s8810_s11 + $0x54] sm:$0xf] %v220_v21  ;;  %223 = vst [vmem:[%s8810_s11 + $0x58] sm:$0xf] %v222_v22  ;;  %v224_v23 = vld [vmem:[%s8803_s10 + $0xb8] sm:$0xf] }
  0x2b   : > { %v226_v24 = vld [vmem:[%s8803_s10 + $0xc0] sm:$0xf]  ;;  %v228_v25 = vld [vmem:[%s8803_s10 + $0xc8] sm:$0xf]  ;;  %225 = vst [vmem:[%s8810_s11 + $0x5c] sm:$0xf] %v224_v23 }
  0x2c   : > { %227 = vst [vmem:[%s8810_s11 + $0x60] sm:$0xf] %v226_v24  ;;  %229 = vst [vmem:[%s8810_s11 + $0x64] sm:$0xf] %v228_v25  ;;  %v230_v26 = vld [vmem:[%s8803_s10 + $0xd0] sm:$0xf] }
  0x2d   : > { %v232_v27 = vld [vmem:[%s8803_s10 + $0xd8] sm:$0xf]  ;;  %v234_v28 = vld [vmem:[%s8803_s10 + $0xe0] sm:$0xf]  ;;  %231 = vst [vmem:[%s8810_s11 + $0x68] sm:$0xf] %v230_v26 }
  0x2e   : > { %233 = vst [vmem:[%s8810_s11 + $0x6c] sm:$0xf] %v232_v27  ;;  %235 = vst [vmem:[%s8810_s11 + $0x70] sm:$0xf] %v234_v28  ;;  %v236_v29 = vld [vmem:[%s8803_s10 + $0xe8] sm:$0xf] }
  0x2f   : > { %v238_v30 = vld [vmem:[%s8803_s10 + $0xf0] sm:$0xf]  ;;  %v240_v31 = vld [vmem:[%s8803_s10 + $0xf8] sm:$0xf]  ;;  %237 = vst [vmem:[%s8810_s11 + $0x74] sm:$0xf] %v236_v29 }
  0x30   : > { %239 = vst [vmem:[%s8810_s11 + $0x78] sm:$0xf] %v238_v30  ;;  %241 = vst [vmem:[%s8810_s11 + $0x7c] sm:$0xf] %v240_v31  ;;  %v242_v32 = vld [vmem:[%s8803_s10 + $0x100] sm:$0xf] }
  0x31   : > { %v244_v33 = vld [vmem:[%s8803_s10 + $0x108] sm:$0xf]  ;;  %v246_v34 = vld [vmem:[%s8803_s10 + $0x110] sm:$0xf]  ;;  %243 = vst [vmem:[%s8810_s11 + $0x80] sm:$0xf] %v242_v32 }
  0x32   : > { %245 = vst [vmem:[%s8810_s11 + $0x84] sm:$0xf] %v244_v33  ;;  %247 = vst [vmem:[%s8810_s11 + $0x88] sm:$0xf] %v246_v34  ;;  %v248_v35 = vld [vmem:[%s8803_s10 + $0x118] sm:$0xf] }
  0x33   : > { %v250_v36 = vld [vmem:[%s8803_s10 + $0x120] sm:$0xf]  ;;  %v252_v37 = vld [vmem:[%s8803_s10 + $0x128] sm:$0xf]  ;;  %249 = vst [vmem:[%s8810_s11 + $0x8c] sm:$0xf] %v248_v35 }
  0x34   : > { %251 = vst [vmem:[%s8810_s11 + $0x90] sm:$0xf] %v250_v36  ;;  %253 = vst [vmem:[%s8810_s11 + $0x94] sm:$0xf] %v252_v37  ;;  %v254_v38 = vld [vmem:[%s8803_s10 + $0x130] sm:$0xf] }
  0x35   : > { %v256_v39 = vld [vmem:[%s8803_s10 + $0x138] sm:$0xf]  ;;  %v258_v40 = vld [vmem:[%s8803_s10 + $0x140] sm:$0xf]  ;;  %255 = vst [vmem:[%s8810_s11 + $0x98] sm:$0xf] %v254_v38 }
  0x36   : > { %257 = vst [vmem:[%s8810_s11 + $0x9c] sm:$0xf] %v256_v39  ;;  %259 = vst [vmem:[%s8810_s11 + $0xa0] sm:$0xf] %v258_v40  ;;  %v260_v41 = vld [vmem:[%s8803_s10 + $0x148] sm:$0xf] }
  0x37   : > { %v262_v42 = vld [vmem:[%s8803_s10 + $0x150] sm:$0xf]  ;;  %v264_v43 = vld [vmem:[%s8803_s10 + $0x158] sm:$0xf]  ;;  %261 = vst [vmem:[%s8810_s11 + $0xa4] sm:$0xf] %v260_v41 }
  0x38   : > { %263 = vst [vmem:[%s8810_s11 + $0xa8] sm:$0xf] %v262_v42  ;;  %265 = vst [vmem:[%s8810_s11 + $0xac] sm:$0xf] %v264_v43  ;;  %v266_v44 = vld [vmem:[%s8803_s10 + $0x160] sm:$0xf] }
  0x39   : > { %v268_v45 = vld [vmem:[%s8803_s10 + $0x168] sm:$0xf]  ;;  %v270_v46 = vld [vmem:[%s8803_s10 + $0x170] sm:$0xf]  ;;  %267 = vst [vmem:[%s8810_s11 + $0xb0] sm:$0xf] %v266_v44 }
  0x3a   : > { %269 = vst [vmem:[%s8810_s11 + $0xb4] sm:$0xf] %v268_v45  ;;  %271 = vst [vmem:[%s8810_s11 + $0xb8] sm:$0xf] %v270_v46  ;;  %v272_v47 = vld [vmem:[%s8803_s10 + $0x178] sm:$0xf] }
  0x3b   : > { %v274_v48 = vld [vmem:[%s8803_s10 + $0x180] sm:$0xf]  ;;  %v276_v49 = vld [vmem:[%s8803_s10 + $0x188] sm:$0xf]  ;;  %273 = vst [vmem:[%s8810_s11 + $0xbc] sm:$0xf] %v272_v47 }
  0x3c   : > { %275 = vst [vmem:[%s8810_s11 + $0xc0] sm:$0xf] %v274_v48  ;;  %277 = vst [vmem:[%s8810_s11 + $0xc4] sm:$0xf] %v276_v49  ;;  %v278_v50 = vld [vmem:[%s8803_s10 + $0x190] sm:$0xf] }
  0x3d   : > { %v280_v51 = vld [vmem:[%s8803_s10 + $0x198] sm:$0xf]  ;;  %v282_v52 = vld [vmem:[%s8803_s10 + $0x1a0] sm:$0xf]  ;;  %279 = vst [vmem:[%s8810_s11 + $0xc8] sm:$0xf] %v278_v50 }
  0x3e   : > { %281 = vst [vmem:[%s8810_s11 + $0xcc] sm:$0xf] %v280_v51  ;;  %283 = vst [vmem:[%s8810_s11 + $0xd0] sm:$0xf] %v282_v52  ;;  %v284_v53 = vld [vmem:[%s8803_s10 + $0x1a8] sm:$0xf] }
  0x3f   : > { %v286_v54 = vld [vmem:[%s8803_s10 + $0x1b0] sm:$0xf]  ;;  %v288_v55 = vld [vmem:[%s8803_s10 + $0x1b8] sm:$0xf]  ;;  %285 = vst [vmem:[%s8810_s11 + $0xd4] sm:$0xf] %v284_v53 }
  0x40   : > { %287 = vst [vmem:[%s8810_s11 + $0xd8] sm:$0xf] %v286_v54  ;;  %289 = vst [vmem:[%s8810_s11 + $0xdc] sm:$0xf] %v288_v55  ;;  %v290_v56 = vld [vmem:[%s8803_s10 + $0x1c0] sm:$0xf] }
  0x41   : > { %v292_v57 = vld [vmem:[%s8803_s10 + $0x1c8] sm:$0xf]  ;;  %v294_v58 = vld [vmem:[%s8803_s10 + $0x1d0] sm:$0xf]  ;;  %291 = vst [vmem:[%s8810_s11 + $0xe0] sm:$0xf] %v290_v56 }
  0x42   : > { %293 = vst [vmem:[%s8810_s11 + $0xe4] sm:$0xf] %v292_v57  ;;  %295 = vst [vmem:[%s8810_s11 + $0xe8] sm:$0xf] %v294_v58  ;;  %v296_v59 = vld [vmem:[%s8803_s10 + $0x1d8] sm:$0xf] }
  0x43   : > { %v298_v60 = vld [vmem:[%s8803_s10 + $0x1e0] sm:$0xf]  ;;  %v300_v61 = vld [vmem:[%s8803_s10 + $0x1e8] sm:$0xf]  ;;  %297 = vst [vmem:[%s8810_s11 + $0xec] sm:$0xf] %v296_v59 }
  0x44   : > { %299 = vst [vmem:[%s8810_s11 + $0xf0] sm:$0xf] %v298_v60  ;;  %301 = vst [vmem:[%s8810_s11 + $0xf4] sm:$0xf] %v300_v61  ;;  %v302_v62 = vld [vmem:[%s8803_s10 + $0x1f0] sm:$0xf] }
  0x45   : > { %v304_v63 = vld [vmem:[%s8803_s10 + $0x1f8] sm:$0xf]  ;;  %v306_v0 = vld [vmem:[%s8803_s10 + $0x200] sm:$0xf]  ;;  %303 = vst [vmem:[%s8810_s11 + $0xf8] sm:$0xf] %v302_v62 }
  0x46   : > { %305 = vst [vmem:[%s8810_s11 + $0xfc] sm:$0xf] %v304_v63  ;;  %307 = vst [vmem:[%s8810_s11 + $0x100] sm:$0xf] %v306_v0  ;;  %v308_v1 = vld [vmem:[%s8803_s10 + $0x208] sm:$0xf] }
  0x47   : > { %v310_v2 = vld [vmem:[%s8803_s10 + $0x210] sm:$0xf]  ;;  %v312_v3 = vld [vmem:[%s8803_s10 + $0x218] sm:$0xf]  ;;  %309 = vst [vmem:[%s8810_s11 + $0x104] sm:$0xf] %v308_v1 }
  0x48   : > { %311 = vst [vmem:[%s8810_s11 + $0x108] sm:$0xf] %v310_v2  ;;  %313 = vst [vmem:[%s8810_s11 + $0x10c] sm:$0xf] %v312_v3  ;;  %v314_v4 = vld [vmem:[%s8803_s10 + $0x220] sm:$0xf] }
  0x49   : > { %v316_v5 = vld [vmem:[%s8803_s10 + $0x228] sm:$0xf]  ;;  %v318_v6 = vld [vmem:[%s8803_s10 + $0x230] sm:$0xf]  ;;  %315 = vst [vmem:[%s8810_s11 + $0x110] sm:$0xf] %v314_v4 }
  0x4a   : > { %317 = vst [vmem:[%s8810_s11 + $0x114] sm:$0xf] %v316_v5  ;;  %319 = vst [vmem:[%s8810_s11 + $0x118] sm:$0xf] %v318_v6  ;;  %v320_v7 = vld [vmem:[%s8803_s10 + $0x238] sm:$0xf] }
  0x4b   : > { %v322_v8 = vld [vmem:[%s8803_s10 + $0x240] sm:$0xf]  ;;  %v324_v9 = vld [vmem:[%s8803_s10 + $0x248] sm:$0xf]  ;;  %321 = vst [vmem:[%s8810_s11 + $0x11c] sm:$0xf] %v320_v7 }
  0x4c   : > { %323 = vst [vmem:[%s8810_s11 + $0x120] sm:$0xf] %v322_v8  ;;  %325 = vst [vmem:[%s8810_s11 + $0x124] sm:$0xf] %v324_v9  ;;  %v326_v10 = vld [vmem:[%s8803_s10 + $0x250] sm:$0xf] }
  0x4d   : > { %v328_v11 = vld [vmem:[%s8803_s10 + $0x258] sm:$0xf]  ;;  %v330_v12 = vld [vmem:[%s8803_s10 + $0x260] sm:$0xf]  ;;  %327 = vst [vmem:[%s8810_s11 + $0x128] sm:$0xf] %v326_v10 }
  0x4e   : > { %329 = vst [vmem:[%s8810_s11 + $0x12c] sm:$0xf] %v328_v11  ;;  %331 = vst [vmem:[%s8810_s11 + $0x130] sm:$0xf] %v330_v12  ;;  %v332_v13 = vld [vmem:[%s8803_s10 + $0x268] sm:$0xf] }
  0x4f   : > { %v334_v14 = vld [vmem:[%s8803_s10 + $0x270] sm:$0xf]  ;;  %v336_v15 = vld [vmem:[%s8803_s10 + $0x278] sm:$0xf]  ;;  %333 = vst [vmem:[%s8810_s11 + $0x134] sm:$0xf] %v332_v13 }
  0x50   : > { %335 = vst [vmem:[%s8810_s11 + $0x138] sm:$0xf] %v334_v14  ;;  %337 = vst [vmem:[%s8810_s11 + $0x13c] sm:$0xf] %v336_v15  ;;  %v338_v16 = vld [vmem:[%s8803_s10 + $0x280] sm:$0xf] }
  0x51   : > { %v340_v17 = vld [vmem:[%s8803_s10 + $0x288] sm:$0xf]  ;;  %v342_v18 = vld [vmem:[%s8803_s10 + $0x290] sm:$0xf]  ;;  %339 = vst [vmem:[%s8810_s11 + $0x140] sm:$0xf] %v338_v16 }
  0x52   : > { %341 = vst [vmem:[%s8810_s11 + $0x144] sm:$0xf] %v340_v17  ;;  %343 = vst [vmem:[%s8810_s11 + $0x148] sm:$0xf] %v342_v18  ;;  %v344_v19 = vld [vmem:[%s8803_s10 + $0x298] sm:$0xf] }
  0x53   : > { %v346_v20 = vld [vmem:[%s8803_s10 + $0x2a0] sm:$0xf]  ;;  %v348_v21 = vld [vmem:[%s8803_s10 + $0x2a8] sm:$0xf]  ;;  %345 = vst [vmem:[%s8810_s11 + $0x14c] sm:$0xf] %v344_v19 }
  0x54   : > { %347 = vst [vmem:[%s8810_s11 + $0x150] sm:$0xf] %v346_v20  ;;  %349 = vst [vmem:[%s8810_s11 + $0x154] sm:$0xf] %v348_v21  ;;  %v350_v22 = vld [vmem:[%s8803_s10 + $0x2b0] sm:$0xf] }
  0x55   : > { %v352_v23 = vld [vmem:[%s8803_s10 + $0x2b8] sm:$0xf]  ;;  %v354_v24 = vld [vmem:[%s8803_s10 + $0x2c0] sm:$0xf]  ;;  %351 = vst [vmem:[%s8810_s11 + $0x158] sm:$0xf] %v350_v22 }
  0x56   : > { %353 = vst [vmem:[%s8810_s11 + $0x15c] sm:$0xf] %v352_v23  ;;  %355 = vst [vmem:[%s8810_s11 + $0x160] sm:$0xf] %v354_v24  ;;  %v356_v25 = vld [vmem:[%s8803_s10 + $0x2c8] sm:$0xf] }
  0x57   : > { %v358_v26 = vld [vmem:[%s8803_s10 + $0x2d0] sm:$0xf]  ;;  %v360_v27 = vld [vmem:[%s8803_s10 + $0x2d8] sm:$0xf]  ;;  %357 = vst [vmem:[%s8810_s11 + $0x164] sm:$0xf] %v356_v25 }
  0x58   : > { %359 = vst [vmem:[%s8810_s11 + $0x168] sm:$0xf] %v358_v26  ;;  %361 = vst [vmem:[%s8810_s11 + $0x16c] sm:$0xf] %v360_v27  ;;  %v362_v28 = vld [vmem:[%s8803_s10 + $0x2e0] sm:$0xf] }
  0x59   : > { %v364_v29 = vld [vmem:[%s8803_s10 + $0x2e8] sm:$0xf]  ;;  %v366_v30 = vld [vmem:[%s8803_s10 + $0x2f0] sm:$0xf]  ;;  %363 = vst [vmem:[%s8810_s11 + $0x170] sm:$0xf] %v362_v28 }
  0x5a   : > { %365 = vst [vmem:[%s8810_s11 + $0x174] sm:$0xf] %v364_v29  ;;  %367 = vst [vmem:[%s8810_s11 + $0x178] sm:$0xf] %v366_v30  ;;  %v368_v31 = vld [vmem:[%s8803_s10 + $0x2f8] sm:$0xf] }
  0x5b   : > { %v370_v32 = vld [vmem:[%s8803_s10 + $0x300] sm:$0xf]  ;;  %v372_v33 = vld [vmem:[%s8803_s10 + $0x308] sm:$0xf]  ;;  %369 = vst [vmem:[%s8810_s11 + $0x17c] sm:$0xf] %v368_v31 }
  0x5c   : > { %371 = vst [vmem:[%s8810_s11 + $0x180] sm:$0xf] %v370_v32  ;;  %373 = vst [vmem:[%s8810_s11 + $0x184] sm:$0xf] %v372_v33  ;;  %v374_v34 = vld [vmem:[%s8803_s10 + $0x310] sm:$0xf] }
  0x5d   : > { %v376_v35 = vld [vmem:[%s8803_s10 + $0x318] sm:$0xf]  ;;  %v378_v36 = vld [vmem:[%s8803_s10 + $0x320] sm:$0xf]  ;;  %375 = vst [vmem:[%s8810_s11 + $0x188] sm:$0xf] %v374_v34 }
  0x5e   : > { %377 = vst [vmem:[%s8810_s11 + $0x18c] sm:$0xf] %v376_v35  ;;  %379 = vst [vmem:[%s8810_s11 + $0x190] sm:$0xf] %v378_v36  ;;  %v380_v37 = vld [vmem:[%s8803_s10 + $0x328] sm:$0xf] }
  0x5f   : > { %v382_v38 = vld [vmem:[%s8803_s10 + $0x330] sm:$0xf]  ;;  %v384_v39 = vld [vmem:[%s8803_s10 + $0x338] sm:$0xf]  ;;  %381 = vst [vmem:[%s8810_s11 + $0x194] sm:$0xf] %v380_v37 }
  0x60   : > { %383 = vst [vmem:[%s8810_s11 + $0x198] sm:$0xf] %v382_v38  ;;  %385 = vst [vmem:[%s8810_s11 + $0x19c] sm:$0xf] %v384_v39  ;;  %v386_v40 = vld [vmem:[%s8803_s10 + $0x340] sm:$0xf] }
  0x61   : > { %v388_v41 = vld [vmem:[%s8803_s10 + $0x348] sm:$0xf]  ;;  %v390_v42 = vld [vmem:[%s8803_s10 + $0x350] sm:$0xf]  ;;  %387 = vst [vmem:[%s8810_s11 + $0x1a0] sm:$0xf] %v386_v40 }
  0x62   : > { %389 = vst [vmem:[%s8810_s11 + $0x1a4] sm:$0xf] %v388_v41  ;;  %391 = vst [vmem:[%s8810_s11 + $0x1a8] sm:$0xf] %v390_v42  ;;  %v392_v43 = vld [vmem:[%s8803_s10 + $0x358] sm:$0xf] }
  0x63   : > { %v394_v44 = vld [vmem:[%s8803_s10 + $0x360] sm:$0xf]  ;;  %v396_v45 = vld [vmem:[%s8803_s10 + $0x368] sm:$0xf]  ;;  %393 = vst [vmem:[%s8810_s11 + $0x1ac] sm:$0xf] %v392_v43 }
  0x64   : > { %395 = vst [vmem:[%s8810_s11 + $0x1b0] sm:$0xf] %v394_v44  ;;  %397 = vst [vmem:[%s8810_s11 + $0x1b4] sm:$0xf] %v396_v45  ;;  %v398_v46 = vld [vmem:[%s8803_s10 + $0x370] sm:$0xf] }
  0x65   : > { %v400_v47 = vld [vmem:[%s8803_s10 + $0x378] sm:$0xf]  ;;  %v402_v48 = vld [vmem:[%s8803_s10 + $0x380] sm:$0xf]  ;;  %399 = vst [vmem:[%s8810_s11 + $0x1b8] sm:$0xf] %v398_v46 }
  0x66   : > { %401 = vst [vmem:[%s8810_s11 + $0x1bc] sm:$0xf] %v400_v47  ;;  %403 = vst [vmem:[%s8810_s11 + $0x1c0] sm:$0xf] %v402_v48  ;;  %v404_v49 = vld [vmem:[%s8803_s10 + $0x388] sm:$0xf] }
  0x67   : > { %v406_v50 = vld [vmem:[%s8803_s10 + $0x390] sm:$0xf]  ;;  %v408_v51 = vld [vmem:[%s8803_s10 + $0x398] sm:$0xf]  ;;  %405 = vst [vmem:[%s8810_s11 + $0x1c4] sm:$0xf] %v404_v49 }
  0x68   : > { %407 = vst [vmem:[%s8810_s11 + $0x1c8] sm:$0xf] %v406_v50  ;;  %409 = vst [vmem:[%s8810_s11 + $0x1cc] sm:$0xf] %v408_v51  ;;  %v410_v52 = vld [vmem:[%s8803_s10 + $0x3a0] sm:$0xf] }
  0x69   : > { %v412_v53 = vld [vmem:[%s8803_s10 + $0x3a8] sm:$0xf]  ;;  %v414_v54 = vld [vmem:[%s8803_s10 + $0x3b0] sm:$0xf]  ;;  %411 = vst [vmem:[%s8810_s11 + $0x1d0] sm:$0xf] %v410_v52 }
  0x6a   : > { %413 = vst [vmem:[%s8810_s11 + $0x1d4] sm:$0xf] %v412_v53  ;;  %415 = vst [vmem:[%s8810_s11 + $0x1d8] sm:$0xf] %v414_v54  ;;  %v416_v55 = vld [vmem:[%s8803_s10 + $0x3b8] sm:$0xf] }
  0x6b   : > { %v418_v56 = vld [vmem:[%s8803_s10 + $0x3c0] sm:$0xf]  ;;  %v420_v57 = vld [vmem:[%s8803_s10 + $0x3c8] sm:$0xf]  ;;  %417 = vst [vmem:[%s8810_s11 + $0x1dc] sm:$0xf] %v416_v55 }
  0x6c   : > { %419 = vst [vmem:[%s8810_s11 + $0x1e0] sm:$0xf] %v418_v56  ;;  %421 = vst [vmem:[%s8810_s11 + $0x1e4] sm:$0xf] %v420_v57  ;;  %v422_v58 = vld [vmem:[%s8803_s10 + $0x3d0] sm:$0xf] }
  0x6d   : > { %v424_v59 = vld [vmem:[%s8803_s10 + $0x3d8] sm:$0xf]  ;;  %v426_v60 = vld [vmem:[%s8803_s10 + $0x3e0] sm:$0xf]  ;;  %423 = vst [vmem:[%s8810_s11 + $0x1e8] sm:$0xf] %v422_v58 }
  0x6e   : > { %425 = vst [vmem:[%s8810_s11 + $0x1ec] sm:$0xf] %v424_v59  ;;  %427 = vst [vmem:[%s8810_s11 + $0x1f0] sm:$0xf] %v426_v60  ;;  %v428_v61 = vld [vmem:[%s8803_s10 + $0x3e8] sm:$0xf] }
  0x6f   : > { %v430_v62 = vld [vmem:[%s8803_s10 + $0x3f0] sm:$0xf]  ;;  %v432_v63 = vld [vmem:[%s8803_s10 + $0x3f8] sm:$0xf]  ;;  %429 = vst [vmem:[%s8810_s11 + $0x1f4] sm:$0xf] %v428_v61 }
  0x70   : > { %431 = vst [vmem:[%s8810_s11 + $0x1f8] sm:$0xf] %v430_v62  ;;  %433 = vst [vmem:[%s8810_s11 + $0x1fc] sm:$0xf] %v432_v63  ;;  %v434_v0 = vld [vmem:[%s8803_s10 + $0x400] sm:$0xf] }
  0x71   : > { %v436_v1 = vld [vmem:[%s8803_s10 + $0x408] sm:$0xf]  ;;  %v438_v2 = vld [vmem:[%s8803_s10 + $0x410] sm:$0xf]  ;;  %435 = vst [vmem:[%s8810_s11 + $0x200] sm:$0xf] %v434_v0 }
  0x72   : > { %437 = vst [vmem:[%s8810_s11 + $0x204] sm:$0xf] %v436_v1  ;;  %439 = vst [vmem:[%s8810_s11 + $0x208] sm:$0xf] %v438_v2  ;;  %v440_v3 = vld [vmem:[%s8803_s10 + $0x418] sm:$0xf] }
  0x73   : > { %v442_v4 = vld [vmem:[%s8803_s10 + $0x420] sm:$0xf]  ;;  %v444_v5 = vld [vmem:[%s8803_s10 + $0x428] sm:$0xf]  ;;  %441 = vst [vmem:[%s8810_s11 + $0x20c] sm:$0xf] %v440_v3 }
  0x74   : > { %443 = vst [vmem:[%s8810_s11 + $0x210] sm:$0xf] %v442_v4  ;;  %445 = vst [vmem:[%s8810_s11 + $0x214] sm:$0xf] %v444_v5  ;;  %v446_v6 = vld [vmem:[%s8803_s10 + $0x430] sm:$0xf] }
  0x75   : > { %v448_v7 = vld [vmem:[%s8803_s10 + $0x438] sm:$0xf]  ;;  %v450_v8 = vld [vmem:[%s8803_s10 + $0x440] sm:$0xf]  ;;  %447 = vst [vmem:[%s8810_s11 + $0x218] sm:$0xf] %v446_v6 }
  0x76   : > { %449 = vst [vmem:[%s8810_s11 + $0x21c] sm:$0xf] %v448_v7  ;;  %451 = vst [vmem:[%s8810_s11 + $0x220] sm:$0xf] %v450_v8  ;;  %v452_v9 = vld [vmem:[%s8803_s10 + $0x448] sm:$0xf] }
  0x77   : > { %v454_v10 = vld [vmem:[%s8803_s10 + $0x450] sm:$0xf]  ;;  %v456_v11 = vld [vmem:[%s8803_s10 + $0x458] sm:$0xf]  ;;  %453 = vst [vmem:[%s8810_s11 + $0x224] sm:$0xf] %v452_v9 }
  0x78   : > { %455 = vst [vmem:[%s8810_s11 + $0x228] sm:$0xf] %v454_v10  ;;  %457 = vst [vmem:[%s8810_s11 + $0x22c] sm:$0xf] %v456_v11  ;;  %v458_v12 = vld [vmem:[%s8803_s10 + $0x460] sm:$0xf] }
  0x79   : > { %v460_v13 = vld [vmem:[%s8803_s10 + $0x468] sm:$0xf]  ;;  %v462_v14 = vld [vmem:[%s8803_s10 + $0x470] sm:$0xf]  ;;  %459 = vst [vmem:[%s8810_s11 + $0x230] sm:$0xf] %v458_v12 }
  0x7a   : > { %461 = vst [vmem:[%s8810_s11 + $0x234] sm:$0xf] %v460_v13  ;;  %463 = vst [vmem:[%s8810_s11 + $0x238] sm:$0xf] %v462_v14  ;;  %v464_v15 = vld [vmem:[%s8803_s10 + $0x478] sm:$0xf] }
  0x7b   : > { %v466_v16 = vld [vmem:[%s8803_s10 + $0x480] sm:$0xf]  ;;  %v468_v17 = vld [vmem:[%s8803_s10 + $0x488] sm:$0xf]  ;;  %465 = vst [vmem:[%s8810_s11 + $0x23c] sm:$0xf] %v464_v15 }
  0x7c   : > { %467 = vst [vmem:[%s8810_s11 + $0x240] sm:$0xf] %v466_v16  ;;  %469 = vst [vmem:[%s8810_s11 + $0x244] sm:$0xf] %v468_v17  ;;  %v470_v18 = vld [vmem:[%s8803_s10 + $0x490] sm:$0xf] }
  0x7d   : > { %v472_v19 = vld [vmem:[%s8803_s10 + $0x498] sm:$0xf]  ;;  %v474_v20 = vld [vmem:[%s8803_s10 + $0x4a0] sm:$0xf]  ;;  %471 = vst [vmem:[%s8810_s11 + $0x248] sm:$0xf] %v470_v18 }
  0x7e   : > { %473 = vst [vmem:[%s8810_s11 + $0x24c] sm:$0xf] %v472_v19  ;;  %475 = vst [vmem:[%s8810_s11 + $0x250] sm:$0xf] %v474_v20  ;;  %v476_v21 = vld [vmem:[%s8803_s10 + $0x4a8] sm:$0xf] }
  0x7f   : > { %v478_v22 = vld [vmem:[%s8803_s10 + $0x4b0] sm:$0xf]  ;;  %v480_v23 = vld [vmem:[%s8803_s10 + $0x4b8] sm:$0xf]  ;;  %477 = vst [vmem:[%s8810_s11 + $0x254] sm:$0xf] %v476_v21 }
  0x80   : > { %479 = vst [vmem:[%s8810_s11 + $0x258] sm:$0xf] %v478_v22  ;;  %481 = vst [vmem:[%s8810_s11 + $0x25c] sm:$0xf] %v480_v23  ;;  %v482_v24 = vld [vmem:[%s8803_s10 + $0x4c0] sm:$0xf] }
  0x81   : > { %v484_v25 = vld [vmem:[%s8803_s10 + $0x4c8] sm:$0xf]  ;;  %v486_v26 = vld [vmem:[%s8803_s10 + $0x4d0] sm:$0xf]  ;;  %483 = vst [vmem:[%s8810_s11 + $0x260] sm:$0xf] %v482_v24 }
  0x82   : > { %485 = vst [vmem:[%s8810_s11 + $0x264] sm:$0xf] %v484_v25  ;;  %487 = vst [vmem:[%s8810_s11 + $0x268] sm:$0xf] %v486_v26  ;;  %v488_v27 = vld [vmem:[%s8803_s10 + $0x4d8] sm:$0xf] }
  0x83   : > { %v490_v28 = vld [vmem:[%s8803_s10 + $0x4e0] sm:$0xf]  ;;  %v492_v29 = vld [vmem:[%s8803_s10 + $0x4e8] sm:$0xf]  ;;  %489 = vst [vmem:[%s8810_s11 + $0x26c] sm:$0xf] %v488_v27 }
  0x84   : > { %491 = vst [vmem:[%s8810_s11 + $0x270] sm:$0xf] %v490_v28  ;;  %493 = vst [vmem:[%s8810_s11 + $0x274] sm:$0xf] %v492_v29  ;;  %v494_v30 = vld [vmem:[%s8803_s10 + $0x4f0] sm:$0xf] }
  0x85   : > { %v496_v31 = vld [vmem:[%s8803_s10 + $0x4f8] sm:$0xf]  ;;  %v498_v32 = vld [vmem:[%s8803_s10 + $0x500] sm:$0xf]  ;;  %495 = vst [vmem:[%s8810_s11 + $0x278] sm:$0xf] %v494_v30 }
  0x86   : > { %497 = vst [vmem:[%s8810_s11 + $0x27c] sm:$0xf] %v496_v31  ;;  %499 = vst [vmem:[%s8810_s11 + $0x280] sm:$0xf] %v498_v32  ;;  %v500_v33 = vld [vmem:[%s8803_s10 + $0x508] sm:$0xf] }
  0x87   : > { %v502_v34 = vld [vmem:[%s8803_s10 + $0x510] sm:$0xf]  ;;  %v504_v35 = vld [vmem:[%s8803_s10 + $0x518] sm:$0xf]  ;;  %501 = vst [vmem:[%s8810_s11 + $0x284] sm:$0xf] %v500_v33 }
  0x88   : > { %503 = vst [vmem:[%s8810_s11 + $0x288] sm:$0xf] %v502_v34  ;;  %505 = vst [vmem:[%s8810_s11 + $0x28c] sm:$0xf] %v504_v35  ;;  %v506_v36 = vld [vmem:[%s8803_s10 + $0x520] sm:$0xf] }
  0x89   : > { %v508_v37 = vld [vmem:[%s8803_s10 + $0x528] sm:$0xf]  ;;  %v510_v38 = vld [vmem:[%s8803_s10 + $0x530] sm:$0xf]  ;;  %507 = vst [vmem:[%s8810_s11 + $0x290] sm:$0xf] %v506_v36 }
  0x8a   : > { %509 = vst [vmem:[%s8810_s11 + $0x294] sm:$0xf] %v508_v37  ;;  %511 = vst [vmem:[%s8810_s11 + $0x298] sm:$0xf] %v510_v38  ;;  %v512_v39 = vld [vmem:[%s8803_s10 + $0x538] sm:$0xf] }
  0x8b   : > { %v514_v40 = vld [vmem:[%s8803_s10 + $0x540] sm:$0xf]  ;;  %v516_v41 = vld [vmem:[%s8803_s10 + $0x548] sm:$0xf]  ;;  %513 = vst [vmem:[%s8810_s11 + $0x29c] sm:$0xf] %v512_v39 }
  0x8c   : > { %515 = vst [vmem:[%s8810_s11 + $0x2a0] sm:$0xf] %v514_v40  ;;  %517 = vst [vmem:[%s8810_s11 + $0x2a4] sm:$0xf] %v516_v41  ;;  %v518_v42 = vld [vmem:[%s8803_s10 + $0x550] sm:$0xf] }
  0x8d   : > { %v520_v43 = vld [vmem:[%s8803_s10 + $0x558] sm:$0xf]  ;;  %v522_v44 = vld [vmem:[%s8803_s10 + $0x560] sm:$0xf]  ;;  %519 = vst [vmem:[%s8810_s11 + $0x2a8] sm:$0xf] %v518_v42 }
  0x8e   : > { %521 = vst [vmem:[%s8810_s11 + $0x2ac] sm:$0xf] %v520_v43  ;;  %523 = vst [vmem:[%s8810_s11 + $0x2b0] sm:$0xf] %v522_v44  ;;  %v524_v45 = vld [vmem:[%s8803_s10 + $0x568] sm:$0xf] }
  0x8f   : > { %v526_v46 = vld [vmem:[%s8803_s10 + $0x570] sm:$0xf]  ;;  %v528_v47 = vld [vmem:[%s8803_s10 + $0x578] sm:$0xf]  ;;  %525 = vst [vmem:[%s8810_s11 + $0x2b4] sm:$0xf] %v524_v45 }
  0x90   : > { %527 = vst [vmem:[%s8810_s11 + $0x2b8] sm:$0xf] %v526_v46  ;;  %529 = vst [vmem:[%s8810_s11 + $0x2bc] sm:$0xf] %v528_v47  ;;  %v530_v48 = vld [vmem:[%s8803_s10 + $0x580] sm:$0xf] }
  0x91   : > { %v532_v49 = vld [vmem:[%s8803_s10 + $0x588] sm:$0xf]  ;;  %v534_v50 = vld [vmem:[%s8803_s10 + $0x590] sm:$0xf]  ;;  %531 = vst [vmem:[%s8810_s11 + $0x2c0] sm:$0xf] %v530_v48 }
  0x92   : > { %533 = vst [vmem:[%s8810_s11 + $0x2c4] sm:$0xf] %v532_v49  ;;  %535 = vst [vmem:[%s8810_s11 + $0x2c8] sm:$0xf] %v534_v50  ;;  %v536_v51 = vld [vmem:[%s8803_s10 + $0x598] sm:$0xf] }
  0x93   : > { %v538_v52 = vld [vmem:[%s8803_s10 + $0x5a0] sm:$0xf]  ;;  %v540_v53 = vld [vmem:[%s8803_s10 + $0x5a8] sm:$0xf]  ;;  %537 = vst [vmem:[%s8810_s11 + $0x2cc] sm:$0xf] %v536_v51 }
  0x94   : > { %539 = vst [vmem:[%s8810_s11 + $0x2d0] sm:$0xf] %v538_v52  ;;  %541 = vst [vmem:[%s8810_s11 + $0x2d4] sm:$0xf] %v540_v53  ;;  %v542_v54 = vld [vmem:[%s8803_s10 + $0x5b0] sm:$0xf] }
  0x95   : > { %v544_v55 = vld [vmem:[%s8803_s10 + $0x5b8] sm:$0xf]  ;;  %v546_v56 = vld [vmem:[%s8803_s10 + $0x5c0] sm:$0xf]  ;;  %543 = vst [vmem:[%s8810_s11 + $0x2d8] sm:$0xf] %v542_v54 }
  0x96   : > { %545 = vst [vmem:[%s8810_s11 + $0x2dc] sm:$0xf] %v544_v55  ;;  %547 = vst [vmem:[%s8810_s11 + $0x2e0] sm:$0xf] %v546_v56  ;;  %v548_v57 = vld [vmem:[%s8803_s10 + $0x5c8] sm:$0xf] }
  0x97   : > { %v550_v58 = vld [vmem:[%s8803_s10 + $0x5d0] sm:$0xf]  ;;  %v552_v59 = vld [vmem:[%s8803_s10 + $0x5d8] sm:$0xf]  ;;  %549 = vst [vmem:[%s8810_s11 + $0x2e4] sm:$0xf] %v548_v57 }
  0x98   : > { %551 = vst [vmem:[%s8810_s11 + $0x2e8] sm:$0xf] %v550_v58  ;;  %553 = vst [vmem:[%s8810_s11 + $0x2ec] sm:$0xf] %v552_v59  ;;  %v554_v60 = vld [vmem:[%s8803_s10 + $0x5e0] sm:$0xf] }
  0x99   : > { %v556_v61 = vld [vmem:[%s8803_s10 + $0x5e8] sm:$0xf]  ;;  %v558_v62 = vld [vmem:[%s8803_s10 + $0x5f0] sm:$0xf]  ;;  %555 = vst [vmem:[%s8810_s11 + $0x2f0] sm:$0xf] %v554_v60 }
  0x9a   : > { %557 = vst [vmem:[%s8810_s11 + $0x2f4] sm:$0xf] %v556_v61  ;;  %559 = vst [vmem:[%s8810_s11 + $0x2f8] sm:$0xf] %v558_v62  ;;  %v560_v63 = vld [vmem:[%s8803_s10 + $0x5f8] sm:$0xf] }
  0x9b   : > { %v562_v0 = vld [vmem:[%s8803_s10 + $0x600] sm:$0xf]  ;;  %v564_v1 = vld [vmem:[%s8803_s10 + $0x608] sm:$0xf]  ;;  %561 = vst [vmem:[%s8810_s11 + $0x2fc] sm:$0xf] %v560_v63 }
  0x9c   : > { %563 = vst [vmem:[%s8810_s11 + $0x300] sm:$0xf] %v562_v0  ;;  %565 = vst [vmem:[%s8810_s11 + $0x304] sm:$0xf] %v564_v1  ;;  %v566_v2 = vld [vmem:[%s8803_s10 + $0x610] sm:$0xf] }
  0x9d   : > { %v568_v3 = vld [vmem:[%s8803_s10 + $0x618] sm:$0xf]  ;;  %v570_v4 = vld [vmem:[%s8803_s10 + $0x620] sm:$0xf]  ;;  %567 = vst [vmem:[%s8810_s11 + $0x308] sm:$0xf] %v566_v2 }
  0x9e   : > { %569 = vst [vmem:[%s8810_s11 + $0x30c] sm:$0xf] %v568_v3  ;;  %571 = vst [vmem:[%s8810_s11 + $0x310] sm:$0xf] %v570_v4  ;;  %v572_v5 = vld [vmem:[%s8803_s10 + $0x628] sm:$0xf] }
  0x9f   : > { %v574_v6 = vld [vmem:[%s8803_s10 + $0x630] sm:$0xf]  ;;  %v576_v7 = vld [vmem:[%s8803_s10 + $0x638] sm:$0xf]  ;;  %573 = vst [vmem:[%s8810_s11 + $0x314] sm:$0xf] %v572_v5 }
  0xa0   : > { %575 = vst [vmem:[%s8810_s11 + $0x318] sm:$0xf] %v574_v6  ;;  %577 = vst [vmem:[%s8810_s11 + $0x31c] sm:$0xf] %v576_v7  ;;  %v578_v8 = vld [vmem:[%s8803_s10 + $0x640] sm:$0xf] }
  0xa1   : > { %v580_v9 = vld [vmem:[%s8803_s10 + $0x648] sm:$0xf]  ;;  %v582_v10 = vld [vmem:[%s8803_s10 + $0x650] sm:$0xf]  ;;  %579 = vst [vmem:[%s8810_s11 + $0x320] sm:$0xf] %v578_v8 }
  0xa2   : > { %581 = vst [vmem:[%s8810_s11 + $0x324] sm:$0xf] %v580_v9  ;;  %583 = vst [vmem:[%s8810_s11 + $0x328] sm:$0xf] %v582_v10  ;;  %v584_v11 = vld [vmem:[%s8803_s10 + $0x658] sm:$0xf] }
  0xa3   : > { %v586_v12 = vld [vmem:[%s8803_s10 + $0x660] sm:$0xf]  ;;  %v588_v13 = vld [vmem:[%s8803_s10 + $0x668] sm:$0xf]  ;;  %585 = vst [vmem:[%s8810_s11 + $0x32c] sm:$0xf] %v584_v11 }
  0xa4   : > { %587 = vst [vmem:[%s8810_s11 + $0x330] sm:$0xf] %v586_v12  ;;  %589 = vst [vmem:[%s8810_s11 + $0x334] sm:$0xf] %v588_v13  ;;  %v590_v14 = vld [vmem:[%s8803_s10 + $0x670] sm:$0xf] }
  0xa5   : > { %v592_v15 = vld [vmem:[%s8803_s10 + $0x678] sm:$0xf]  ;;  %v594_v16 = vld [vmem:[%s8803_s10 + $0x680] sm:$0xf]  ;;  %591 = vst [vmem:[%s8810_s11 + $0x338] sm:$0xf] %v590_v14 }
  0xa6   : > { %593 = vst [vmem:[%s8810_s11 + $0x33c] sm:$0xf] %v592_v15  ;;  %595 = vst [vmem:[%s8810_s11 + $0x340] sm:$0xf] %v594_v16  ;;  %v596_v17 = vld [vmem:[%s8803_s10 + $0x688] sm:$0xf] }
  0xa7   : > { %v598_v18 = vld [vmem:[%s8803_s10 + $0x690] sm:$0xf]  ;;  %v600_v19 = vld [vmem:[%s8803_s10 + $0x698] sm:$0xf]  ;;  %597 = vst [vmem:[%s8810_s11 + $0x344] sm:$0xf] %v596_v17 }
  0xa8   : > { %599 = vst [vmem:[%s8810_s11 + $0x348] sm:$0xf] %v598_v18  ;;  %601 = vst [vmem:[%s8810_s11 + $0x34c] sm:$0xf] %v600_v19  ;;  %v602_v20 = vld [vmem:[%s8803_s10 + $0x6a0] sm:$0xf] }
  0xa9   : > { %v604_v21 = vld [vmem:[%s8803_s10 + $0x6a8] sm:$0xf]  ;;  %v606_v22 = vld [vmem:[%s8803_s10 + $0x6b0] sm:$0xf]  ;;  %603 = vst [vmem:[%s8810_s11 + $0x350] sm:$0xf] %v602_v20 }
  0xaa   : > { %605 = vst [vmem:[%s8810_s11 + $0x354] sm:$0xf] %v604_v21  ;;  %607 = vst [vmem:[%s8810_s11 + $0x358] sm:$0xf] %v606_v22  ;;  %v608_v23 = vld [vmem:[%s8803_s10 + $0x6b8] sm:$0xf] }
  0xab   : > { %v610_v24 = vld [vmem:[%s8803_s10 + $0x6c0] sm:$0xf]  ;;  %v612_v25 = vld [vmem:[%s8803_s10 + $0x6c8] sm:$0xf]  ;;  %609 = vst [vmem:[%s8810_s11 + $0x35c] sm:$0xf] %v608_v23 }
  0xac   : > { %611 = vst [vmem:[%s8810_s11 + $0x360] sm:$0xf] %v610_v24  ;;  %613 = vst [vmem:[%s8810_s11 + $0x364] sm:$0xf] %v612_v25  ;;  %v614_v26 = vld [vmem:[%s8803_s10 + $0x6d0] sm:$0xf] }
  0xad   : > { %v616_v27 = vld [vmem:[%s8803_s10 + $0x6d8] sm:$0xf]  ;;  %v618_v28 = vld [vmem:[%s8803_s10 + $0x6e0] sm:$0xf]  ;;  %615 = vst [vmem:[%s8810_s11 + $0x368] sm:$0xf] %v614_v26 }
  0xae   : > { %617 = vst [vmem:[%s8810_s11 + $0x36c] sm:$0xf] %v616_v27  ;;  %619 = vst [vmem:[%s8810_s11 + $0x370] sm:$0xf] %v618_v28  ;;  %v620_v29 = vld [vmem:[%s8803_s10 + $0x6e8] sm:$0xf] }
  0xaf   : > { %v622_v30 = vld [vmem:[%s8803_s10 + $0x6f0] sm:$0xf]  ;;  %v624_v31 = vld [vmem:[%s8803_s10 + $0x6f8] sm:$0xf]  ;;  %621 = vst [vmem:[%s8810_s11 + $0x374] sm:$0xf] %v620_v29 }
  0xb0   : > { %623 = vst [vmem:[%s8810_s11 + $0x378] sm:$0xf] %v622_v30  ;;  %625 = vst [vmem:[%s8810_s11 + $0x37c] sm:$0xf] %v624_v31  ;;  %v626_v32 = vld [vmem:[%s8803_s10 + $0x700] sm:$0xf] }
  0xb1   : > { %v628_v33 = vld [vmem:[%s8803_s10 + $0x708] sm:$0xf]  ;;  %v630_v34 = vld [vmem:[%s8803_s10 + $0x710] sm:$0xf]  ;;  %627 = vst [vmem:[%s8810_s11 + $0x380] sm:$0xf] %v626_v32 }
  0xb2   : > { %629 = vst [vmem:[%s8810_s11 + $0x384] sm:$0xf] %v628_v33  ;;  %631 = vst [vmem:[%s8810_s11 + $0x388] sm:$0xf] %v630_v34  ;;  %v632_v35 = vld [vmem:[%s8803_s10 + $0x718] sm:$0xf] }
  0xb3   : > { %v634_v36 = vld [vmem:[%s8803_s10 + $0x720] sm:$0xf]  ;;  %v636_v37 = vld [vmem:[%s8803_s10 + $0x728] sm:$0xf]  ;;  %633 = vst [vmem:[%s8810_s11 + $0x38c] sm:$0xf] %v632_v35 }
  0xb4   : > { %635 = vst [vmem:[%s8810_s11 + $0x390] sm:$0xf] %v634_v36  ;;  %637 = vst [vmem:[%s8810_s11 + $0x394] sm:$0xf] %v636_v37  ;;  %v638_v38 = vld [vmem:[%s8803_s10 + $0x730] sm:$0xf] }
  0xb5   : > { %v640_v39 = vld [vmem:[%s8803_s10 + $0x738] sm:$0xf]  ;;  %v642_v40 = vld [vmem:[%s8803_s10 + $0x740] sm:$0xf]  ;;  %639 = vst [vmem:[%s8810_s11 + $0x398] sm:$0xf] %v638_v38 }
  0xb6   : > { %641 = vst [vmem:[%s8810_s11 + $0x39c] sm:$0xf] %v640_v39  ;;  %643 = vst [vmem:[%s8810_s11 + $0x3a0] sm:$0xf] %v642_v40  ;;  %v644_v41 = vld [vmem:[%s8803_s10 + $0x748] sm:$0xf] }
  0xb7   : > { %v646_v42 = vld [vmem:[%s8803_s10 + $0x750] sm:$0xf]  ;;  %v648_v43 = vld [vmem:[%s8803_s10 + $0x758] sm:$0xf]  ;;  %645 = vst [vmem:[%s8810_s11 + $0x3a4] sm:$0xf] %v644_v41 }
  0xb8   : > { %647 = vst [vmem:[%s8810_s11 + $0x3a8] sm:$0xf] %v646_v42  ;;  %649 = vst [vmem:[%s8810_s11 + $0x3ac] sm:$0xf] %v648_v43  ;;  %v650_v44 = vld [vmem:[%s8803_s10 + $0x760] sm:$0xf] }
  0xb9   : > { %v652_v45 = vld [vmem:[%s8803_s10 + $0x768] sm:$0xf]  ;;  %v654_v46 = vld [vmem:[%s8803_s10 + $0x770] sm:$0xf]  ;;  %651 = vst [vmem:[%s8810_s11 + $0x3b0] sm:$0xf] %v650_v44 }
  0xba   : > { %653 = vst [vmem:[%s8810_s11 + $0x3b4] sm:$0xf] %v652_v45  ;;  %655 = vst [vmem:[%s8810_s11 + $0x3b8] sm:$0xf] %v654_v46  ;;  %v656_v47 = vld [vmem:[%s8803_s10 + $0x778] sm:$0xf] }
  0xbb   : > { %v658_v48 = vld [vmem:[%s8803_s10 + $0x780] sm:$0xf]  ;;  %v660_v49 = vld [vmem:[%s8803_s10 + $0x788] sm:$0xf]  ;;  %657 = vst [vmem:[%s8810_s11 + $0x3bc] sm:$0xf] %v656_v47 }
  0xbc   : > { %659 = vst [vmem:[%s8810_s11 + $0x3c0] sm:$0xf] %v658_v48  ;;  %661 = vst [vmem:[%s8810_s11 + $0x3c4] sm:$0xf] %v660_v49  ;;  %v662_v50 = vld [vmem:[%s8803_s10 + $0x790] sm:$0xf] }
  0xbd   : > { %v664_v51 = vld [vmem:[%s8803_s10 + $0x798] sm:$0xf]  ;;  %v666_v52 = vld [vmem:[%s8803_s10 + $0x7a0] sm:$0xf]  ;;  %663 = vst [vmem:[%s8810_s11 + $0x3c8] sm:$0xf] %v662_v50 }
  0xbe   : > { %665 = vst [vmem:[%s8810_s11 + $0x3cc] sm:$0xf] %v664_v51  ;;  %667 = vst [vmem:[%s8810_s11 + $0x3d0] sm:$0xf] %v666_v52  ;;  %v668_v53 = vld [vmem:[%s8803_s10 + $0x7a8] sm:$0xf] }
  0xbf   : > { %v670_v54 = vld [vmem:[%s8803_s10 + $0x7b0] sm:$0xf]  ;;  %v672_v55 = vld [vmem:[%s8803_s10 + $0x7b8] sm:$0xf]  ;;  %669 = vst [vmem:[%s8810_s11 + $0x3d4] sm:$0xf] %v668_v53 }
  0xc0   : > { %671 = vst [vmem:[%s8810_s11 + $0x3d8] sm:$0xf] %v670_v54  ;;  %673 = vst [vmem:[%s8810_s11 + $0x3dc] sm:$0xf] %v672_v55  ;;  %v674_v56 = vld [vmem:[%s8803_s10 + $0x7c0] sm:$0xf] }
  0xc1   : > { %v676_v57 = vld [vmem:[%s8803_s10 + $0x7c8] sm:$0xf]  ;;  %v678_v58 = vld [vmem:[%s8803_s10 + $0x7d0] sm:$0xf]  ;;  %675 = vst [vmem:[%s8810_s11 + $0x3e0] sm:$0xf] %v674_v56 }
  0xc2   : > { %677 = vst [vmem:[%s8810_s11 + $0x3e4] sm:$0xf] %v676_v57  ;;  %679 = vst [vmem:[%s8810_s11 + $0x3e8] sm:$0xf] %v678_v58  ;;  %v680_v59 = vld [vmem:[%s8803_s10 + $0x7d8] sm:$0xf] }
  0xc3   : > { %v682_v60 = vld [vmem:[%s8803_s10 + $0x7e0] sm:$0xf]  ;;  %v684_v61 = vld [vmem:[%s8803_s10 + $0x7e8] sm:$0xf]  ;;  %681 = vst [vmem:[%s8810_s11 + $0x3ec] sm:$0xf] %v680_v59 }
  0xc4   : > { %683 = vst [vmem:[%s8810_s11 + $0x3f0] sm:$0xf] %v682_v60  ;;  %685 = vst [vmem:[%s8810_s11 + $0x3f4] sm:$0xf] %v684_v61  ;;  %v686_v62 = vld [vmem:[%s8803_s10 + $0x7f0] sm:$0xf] }
  0xc5   : > { %v688_v63 = vld [vmem:[%s8803_s10 + $0x7f8] sm:$0xf]  ;;  %v690_v0 = vld [vmem:[%s8803_s10 + $0x800] sm:$0xf]  ;;  %687 = vst [vmem:[%s8810_s11 + $0x3f8] sm:$0xf] %v686_v62 }
  0xc6   : > { %689 = vst [vmem:[%s8810_s11 + $0x3fc] sm:$0xf] %v688_v63  ;;  %691 = vst [vmem:[%s8810_s11 + $0x400] sm:$0xf] %v690_v0  ;;  %v692_v1 = vld [vmem:[%s8803_s10 + $0x808] sm:$0xf] }
  0xc7   : > { %v694_v2 = vld [vmem:[%s8803_s10 + $0x810] sm:$0xf]  ;;  %v696_v3 = vld [vmem:[%s8803_s10 + $0x818] sm:$0xf]  ;;  %693 = vst [vmem:[%s8810_s11 + $0x404] sm:$0xf] %v692_v1 }
  0xc8   : > { %695 = vst [vmem:[%s8810_s11 + $0x408] sm:$0xf] %v694_v2  ;;  %697 = vst [vmem:[%s8810_s11 + $0x40c] sm:$0xf] %v696_v3  ;;  %v698_v4 = vld [vmem:[%s8803_s10 + $0x820] sm:$0xf] }
  0xc9   : > { %v700_v5 = vld [vmem:[%s8803_s10 + $0x828] sm:$0xf]  ;;  %v702_v6 = vld [vmem:[%s8803_s10 + $0x830] sm:$0xf]  ;;  %699 = vst [vmem:[%s8810_s11 + $0x410] sm:$0xf] %v698_v4 }
  0xca   : > { %701 = vst [vmem:[%s8810_s11 + $0x414] sm:$0xf] %v700_v5  ;;  %703 = vst [vmem:[%s8810_s11 + $0x418] sm:$0xf] %v702_v6  ;;  %v704_v7 = vld [vmem:[%s8803_s10 + $0x838] sm:$0xf] }
  0xcb   : > { %v706_v8 = vld [vmem:[%s8803_s10 + $0x840] sm:$0xf]  ;;  %v708_v9 = vld [vmem:[%s8803_s10 + $0x848] sm:$0xf]  ;;  %705 = vst [vmem:[%s8810_s11 + $0x41c] sm:$0xf] %v704_v7 }
  0xcc   : > { %707 = vst [vmem:[%s8810_s11 + $0x420] sm:$0xf] %v706_v8  ;;  %709 = vst [vmem:[%s8810_s11 + $0x424] sm:$0xf] %v708_v9  ;;  %v710_v10 = vld [vmem:[%s8803_s10 + $0x850] sm:$0xf] }
  0xcd   : > { %v712_v11 = vld [vmem:[%s8803_s10 + $0x858] sm:$0xf]  ;;  %v714_v12 = vld [vmem:[%s8803_s10 + $0x860] sm:$0xf]  ;;  %711 = vst [vmem:[%s8810_s11 + $0x428] sm:$0xf] %v710_v10 }
  0xce   : > { %713 = vst [vmem:[%s8810_s11 + $0x42c] sm:$0xf] %v712_v11  ;;  %715 = vst [vmem:[%s8810_s11 + $0x430] sm:$0xf] %v714_v12  ;;  %v716_v13 = vld [vmem:[%s8803_s10 + $0x868] sm:$0xf] }
  0xcf   : > { %v718_v14 = vld [vmem:[%s8803_s10 + $0x870] sm:$0xf]  ;;  %v720_v15 = vld [vmem:[%s8803_s10 + $0x878] sm:$0xf]  ;;  %717 = vst [vmem:[%s8810_s11 + $0x434] sm:$0xf] %v716_v13 }
  0xd0   : > { %719 = vst [vmem:[%s8810_s11 + $0x438] sm:$0xf] %v718_v14  ;;  %721 = vst [vmem:[%s8810_s11 + $0x43c] sm:$0xf] %v720_v15  ;;  %v722_v16 = vld [vmem:[%s8803_s10 + $0x880] sm:$0xf] }
  0xd1   : > { %v724_v17 = vld [vmem:[%s8803_s10 + $0x888] sm:$0xf]  ;;  %v726_v18 = vld [vmem:[%s8803_s10 + $0x890] sm:$0xf]  ;;  %723 = vst [vmem:[%s8810_s11 + $0x440] sm:$0xf] %v722_v16 }
  0xd2   : > { %725 = vst [vmem:[%s8810_s11 + $0x444] sm:$0xf] %v724_v17  ;;  %727 = vst [vmem:[%s8810_s11 + $0x448] sm:$0xf] %v726_v18  ;;  %v728_v19 = vld [vmem:[%s8803_s10 + $0x898] sm:$0xf] }
  0xd3   : > { %v730_v20 = vld [vmem:[%s8803_s10 + $0x8a0] sm:$0xf]  ;;  %v732_v21 = vld [vmem:[%s8803_s10 + $0x8a8] sm:$0xf]  ;;  %729 = vst [vmem:[%s8810_s11 + $0x44c] sm:$0xf] %v728_v19 }
  0xd4   : > { %731 = vst [vmem:[%s8810_s11 + $0x450] sm:$0xf] %v730_v20  ;;  %733 = vst [vmem:[%s8810_s11 + $0x454] sm:$0xf] %v732_v21  ;;  %v734_v22 = vld [vmem:[%s8803_s10 + $0x8b0] sm:$0xf] }
  0xd5   : > { %v736_v23 = vld [vmem:[%s8803_s10 + $0x8b8] sm:$0xf]  ;;  %v738_v24 = vld [vmem:[%s8803_s10 + $0x8c0] sm:$0xf]  ;;  %735 = vst [vmem:[%s8810_s11 + $0x458] sm:$0xf] %v734_v22 }
  0xd6   : > { %737 = vst [vmem:[%s8810_s11 + $0x45c] sm:$0xf] %v736_v23  ;;  %739 = vst [vmem:[%s8810_s11 + $0x460] sm:$0xf] %v738_v24  ;;  %v740_v25 = vld [vmem:[%s8803_s10 + $0x8c8] sm:$0xf] }
  0xd7   : > { %v742_v26 = vld [vmem:[%s8803_s10 + $0x8d0] sm:$0xf]  ;;  %v744_v27 = vld [vmem:[%s8803_s10 + $0x8d8] sm:$0xf]  ;;  %741 = vst [vmem:[%s8810_s11 + $0x464] sm:$0xf] %v740_v25 }
  0xd8   : > { %743 = vst [vmem:[%s8810_s11 + $0x468] sm:$0xf] %v742_v26  ;;  %745 = vst [vmem:[%s8810_s11 + $0x46c] sm:$0xf] %v744_v27  ;;  %v746_v28 = vld [vmem:[%s8803_s10 + $0x8e0] sm:$0xf] }
  0xd9   : > { %v748_v29 = vld [vmem:[%s8803_s10 + $0x8e8] sm:$0xf]  ;;  %v750_v30 = vld [vmem:[%s8803_s10 + $0x8f0] sm:$0xf]  ;;  %747 = vst [vmem:[%s8810_s11 + $0x470] sm:$0xf] %v746_v28 }
  0xda   : > { %749 = vst [vmem:[%s8810_s11 + $0x474] sm:$0xf] %v748_v29  ;;  %751 = vst [vmem:[%s8810_s11 + $0x478] sm:$0xf] %v750_v30  ;;  %v752_v31 = vld [vmem:[%s8803_s10 + $0x8f8] sm:$0xf] }
  0xdb   : > { %753 = vst [vmem:[%s8810_s11 + $0x47c] sm:$0xf] %v752_v31 }
  0xdc PF: > { %p6950_p11 = scmp.ge.s32.totalorder %s8700_s20, 1  ;;  %p1357_p12 = scmp.lt.s32.totalorder %s8700_s20, 5 }
  0xde   : > { %p1358_p13 = pnand %p6950_p11, %p1357_p12 }
  0xe0   : > { %1361 = sbr.rel (%p1358_p13) target bundleno = 1384 (0x568), region = 69 }
  0xe7   : > { %s1364_s21 = sand.u32 1, %s8676_s14   ;;  %v11575_v32 = vmov 0   ;;  %p1394_p0 = scmp.lt.s32.totalorder %s8688_s17, 1  ;;  %vm2167_vm0 = vsmask.f32 7424  ;;  %vm2978_vm1 = vcmask 1046528  }
  0xe8   : > { %1888 = vmatprep.subr.bf16.mxu1 %v11575_v32  ;;  %4508 = vmatprep.subr.bf16.mxu0 %v11575_v32  ;;  %s8395_s24 = smul.u32 1152, %s1364_s21  ;;  %p1399_p1 = scmp.lt.s32.totalorder %s8684_s16, 1 }
  0xe9   : > { %s1395_s14 = scalar_select %p1394_p0, %s8688_s17, 1 }
  0xea   : > { %s9388_s25 = scalar_lea.vmem [#allocation2], %s8395_s24  ;;  %s1391_s10 = sand.u32 1, %s8668_s12  }
  0xeb   : > { %v8470_v33 = vld [vmem:[%s9388_s25] sm:$0xff]   ;;  %v8472_v35 = vld [vmem:[%s9388_s25 + $0x8] sm:$0xff]   ;;  %v8474_v37 = vld [vmem:[%s9388_s25 + $0x10] sm:$0xff]   ;;  %s8396_s26 = smul.u32 456, %s1395_s14  ;;  %s6951_s11 = sshll.u32 %s1391_s10, 7 }
  0xec   : > { %v8471_v34 = vld [vmem:[%s9388_s25 + $0x200] sm:$0xff]   ;;  %1889 = vmatpush1.bf16.msra.mxu1 %v8470_v33  ;;  %v8473_v36 = vld [vmem:[%s9388_s25 + $0x208] sm:$0xff]   ;;  %v8475_v38 = vld [vmem:[%s9388_s25 + $0x210] sm:$0xff]   ;;  %s1400_s6 = scalar_select %p1399_p1, %s8684_s16, 1 }
  0xed   : > { %4509 = vmatpush1.bf16.msra.mxu0 %v8471_v34  ;;  %1890 = vmatprep.subr.bf16.mxu1 %v11575_v32  ;;  %v8476_v39 = vld [vmem:[%s9388_s25 + $0x18] sm:$0xff]   ;;  %v8478_v41 = vld [vmem:[%s9388_s25 + $0x20] sm:$0xff]   ;;  %v8480_v43 = vld [vmem:[%s9388_s25 + $0x28] sm:$0xff]   ;;  %s9425_s5 = scalar_lea.vmem %s11571_s0, %s8396_s26  ;;  %s11411_s21 = scalar_lea.vmem [#allocation3], %s6951_s11 }
  0xee   : > { %4510 = vmatprep.subr.bf16.mxu0 %v11575_v32  ;;  %v8477_v40 = vld [vmem:[%s9388_s25 + $0x218] sm:$0xff]   ;;  %v8479_v42 = vld [vmem:[%s9388_s25 + $0x220] sm:$0xff]   ;;  %v8481_v44 = vld [vmem:[%s9388_s25 + $0x228] sm:$0xff]   ;;  %s1401_s9 = scalar_lea.vmem %s11573_s2, %s1400_s6  ;;  %s7495_s12 = sshll.u32 (%p8790_p9), %s8688_s17, 6 }
  0xef   : > { %v8482_v45 = vld [vmem:[%s9388_s25 + $0x30] sm:$0xff]   ;;  %v8484_v47 = vld [vmem:[%s9388_s25 + $0x38] sm:$0xff]   ;;  %v8486_v49 = vld [vmem:[%s9388_s25 + $0x40] sm:$0xff]   ;;  %s6688_s24 = sadd.s32 (%p8790_p9), %s8684_s16, %s7495_s12 }
  0xf0   : > { %1891 = vmatpush1.bf16.msra.mxu1 %v8472_v35  ;;  %v8483_v46 = vld [vmem:[%s9388_s25 + $0x230] sm:$0xff]   ;;  %v8485_v48 = vld [vmem:[%s9388_s25 + $0x238] sm:$0xff]   ;;  %v8487_v50 = vld [vmem:[%s9388_s25 + $0x240] sm:$0xff]   ;;  %s7496_s30 = sshll.u32 (%p8790_p9), %s6688_s24, 2 }
  0xf1   : > { %4511 = vmatpush1.bf16.msra.mxu0 %v8473_v36  ;;  %1892 = vmatprep.subr.bf16.mxu1 %v11575_v32  ;;  %v1403_v51 = vld [vmem:[%s9425_s5] sm:$0xff]  ;;  %v1404_v52 = vld [vmem:[%s9425_s5 + $0x8] sm:$0xff]  ;;  %v1406_v53 = vld [vmem:[%s9425_s5 + $0x18] sm:$0xff]  ;;  %s11485_s26 = scalar_lea.vmem (%p8790_p9), %s11574_s3, %s7496_s30 }
  0xf2   : > { %4512 = vmatprep.subr.bf16.mxu0 %v11575_v32  ;;  %v9435_v54 = vmax.bf16 %v11575_v32, %v1403_v51  ;;  %v9438_v55 = vmax.bf16 %v11575_v32, %v1404_v52  ;;  %v1407_v56 = vld [vmem:[%s9425_s5 + $0x20] sm:$0xff]  ;;  %v1408_v57 = vld [vmem:[%s9425_s5 + $0x28] sm:$0xff]  ;;  %v1409_v58 = vld [vmem:[%s9425_s5 + $0x30] sm:$0xff]  ;;  %v9444_v59 = vmax.bf16 %v11575_v32, %v1406_v53 }
  0xf3   : > { %v8488_v60 = vld [vmem:[%s9388_s25 + $0x48] sm:$0xff]   ;;  %v9448_v61 = vmax.bf16 %v11575_v32, %v1407_v56  ;;  %v9451_v62 = vmax.bf16 %v11575_v32, %v1408_v57  ;;  %v9454_v63 = vmax.bf16 %v11575_v32, %v1409_v58  ;;  %v8490_v4 = vld [vmem:[%s9388_s25 + $0x50] sm:$0xff]   ;;  %v8492_v11 = vld [vmem:[%s9388_s25 + $0x58] sm:$0xff]  }
  0xf4   : > { %1893 = vmatpush1.bf16.msra.mxu1 %v8474_v37  ;;  %v8489_v0 = vld [vmem:[%s9388_s25 + $0x248] sm:$0xff]   ;;  %v9460_v1 = vcombine.high %v9435_v54, %v9438_v55  ;;  %v8491_v8 = vld [vmem:[%s9388_s25 + $0x250] sm:$0xff]   ;;  %v8493_v13 = vld [vmem:[%s9388_s25 + $0x258] sm:$0xff]  }
  0xf5   : > { %4513 = vmatpush1.bf16.msra.mxu0 %v8475_v38  ;;  %1894 = vmatprep.subr.bf16.mxu1 %v11575_v32  ;;  %v9465_v2 = vcombine.high %v9444_v59, %v9448_v61  ;;  %v9469_v3 = vcombine.high %v9451_v62, %v9454_v63  ;;  %v8494_v15 = vld [vmem:[%s9388_s25 + $0x60] sm:$0xff]   ;;  %v1410_v16 = vld [vmem:[%s9425_s5 + $0x38] sm:$0xff]  ;;  %v9491_v19 = vcombine.low %v9444_v59, %v9448_v61  ;;  %v8496_v22 = vld [vmem:[%s9388_s25 + $0x68] sm:$0xff]  }
  0xf6   : > { %4514 = vmatprep.subr.bf16.mxu0 %v11575_v32  ;;  %11748 = vst [vmem:[#allocation4_spill] sm:$0xff] %v9460_v1  ;;  %1920 = vmatprep.mubr.bf16.mxu1 %v9460_v1  ;;  %v1411_v17 = vld [vmem:[%s9425_s5 + $0x40] sm:$0xff]  ;;  %v9495_v20 = vmax.bf16 %v11575_v32, %v1410_v16  ;;  %v8497_v23 = vld [vmem:[%s9388_s25 + $0x268] sm:$0xff]   ;;  %v9505_v24 = vcombine.low %v9451_v62, %v9454_v63  ;;  %v1413_v28 = vld [vmem:[%s9425_s5 + $0x50] sm:$0xff] }
  0xf7   : > { %11749 = vst [vmem:[#allocation5_spill] sm:$0xff] %v9465_v2  ;;  %11750 = vst [vmem:[#allocation6_spill] sm:$0xff] %v9469_v3  ;;  %v3985_v5 = vshrl.u32 %v9465_v2, 16  ;;  %v3987_v6 = vshll.u32 %v9465_v2, 16  ;;  %v3992_v7 = vshll.u32 %v9469_v3, 16  ;;  %v8495_v18 = vld [vmem:[%s9388_s25 + $0x260] sm:$0xff]   ;;  %v9498_v21 = vmax.bf16 %v11575_v32, %v1411_v17 }
  0xf8   : > { %1895 = vmatpush1.bf16.msra.mxu1 %v8476_v39  ;;  %11751 = vst [vmem:[#allocation7_spill] sm:$0xff] %v9491_v19  ;;  %11752 = vst [vmem:[#allocation8_spill] sm:$0xff] %v9505_v24  ;;  %v3975_v25 = vshll.u32 %v9491_v19, 16  ;;  %v1412_v26 = vld [vmem:[%s9425_s5 + $0x48] sm:$0xff]  ;;  %v8498_v29 = vld [vmem:[%s9388_s25 + $0x70] sm:$0xff]   ;;  %v3973_v31 = vshrl.u32 %v9491_v19, 16  ;;  %v9526_v37 = vmax.bf16 %v11575_v32, %v1413_v28  ;;  %v9589_v17 = vcombine.high %v9448_v61, %v9451_v62 }
  0xf9   : > { %4515 = vmatpush1.bf16.msra.mxu0 %v8477_v40  ;;  %1896 = vmatprep.subr.bf16.mxu1 %v11575_v32  ;;  %v3989_v9 = vrot.slane %v3987_v6, 1  ;;  %v3994_v10 = vrot.slane %v3992_v7, 1  ;;  %v9512_v27 = vcombine.high %v9495_v20, %v9498_v21  ;;  %v8499_v30 = vld [vmem:[%s9388_s25 + $0x270] sm:$0xff]   ;;  %v3980_v34 = vshll.u32 %v9505_v24, 16  ;;  %v8500_v40 = vld [vmem:[%s9388_s25 + $0x78] sm:$0xff]   ;;  %v1415_v51 = vld [vmem:[%s9425_s5 + $0x60] sm:$0xff] }
  0xfa   : > { %4516 = vmatprep.subr.bf16.mxu0 %v11575_v32  ;;  %v3977_v33 = vrot.slane %v3975_v25, 1  ;;  %v1405_v35 = vld [vmem:[%s9425_s5 + $0x10] sm:$0xff]  ;;  %v9523_v36 = vmax.bf16 %v11575_v32, %v1412_v26  ;;  %v4004_v38 = vshrl.u32 %v9469_v3, 16  ;;  %v8502_v52 = vld [vmem:[%s9388_s25 + $0x80] sm:$0xff]   ;;  %v3996_v58 = vshrl.u32 %v9505_v24, 16  ;;  %v8505_v6 = vld [vmem:[%s9388_s25 + $0x88] sm:$0xff]  }
  0xfb   : > { %v3990_v12 = vor.u32 %v3989_v9, %v3985_v5  ;;  %11753 = vst [vmem:[#allocation9_spill] sm:$0xff] %v9512_v27  ;;  %v4008_v39 = vshll.u32 %v9512_v27, 16  ;;  %v8503_v56 = vld [vmem:[%s9388_s25 + $0x280] sm:$0xff]   ;;  %v8504_v9 = vld [vmem:[%s9388_s25 + $0x288] sm:$0xff]   ;;  %v1417_v16 = vld [vmem:[%s9425_s5 + $0x70] sm:$0xff] }
  0xfc   : > { %1897 = vmatpush1.bf16.msra.mxu1 %v8478_v41  ;;  %v8501_v41 = vld [vmem:[%s9388_s25 + $0x278] sm:$0xff]   ;;  %11761 = vst [vmem:[#allocation17_spill] sm:$0xff] %v9589_v17 }
  0xfd   : > { %4517 = vmatpush1.bf16.msra.mxu0 %v8479_v42  ;;  %1898 = vmatprep.subr.bf16.mxu1 %v11575_v32  ;;  %v3995_v14 = vsel %vm2167_vm0, %v3990_v12, %v3994_v10  ;;  %v3978_v42 = vor.u32 %v3977_v33, %v3973_v31  ;;  %v9605_v31 = vmax.bf16 %v11575_v32, %v1417_v16 }
  0xfe   : > { %4518 = vmatprep.subr.bf16.mxu0 %v11575_v32  ;;  %4540 = vmatprep.mubr.bf16.mxu0 %v3995_v14  ;;  %v1416_v14 = vld [vmem:[%s9425_s5 + $0x68] sm:$0xff]  ;;  %v9663_v16 = vcombine.low %v9454_v63, %v9495_v20 }
 0x100   : > { %1899 = vmatpush1.bf16.msra.mxu1 %v8480_v43  ;;  %v3982_v43 = vrot.slane %v3980_v34, 1  ;;  %11768 = vst [vmem:[#allocation24_spill] sm:$0xff] %v9663_v16 }
 0x101   : > { %4519 = vmatpush1.bf16.msra.mxu0 %v8481_v44  ;;  %1900 = vmatprep.subr.bf16.mxu1 %v11575_v32  ;;  %v1460_v44 = vmax.bf16 %v11575_v32, %v1405_v35  ;;  %v8507_v35 = vld [vmem:[%s9388_s25 + $0x298] sm:$0xff]  }
 0x102   : > { %4520 = vmatprep.subr.bf16.mxu0 %v11575_v32  ;;  %v3983_v53 = vsel %vm2167_vm0, %v3978_v42, %v3982_v43  ;;  %v3998_v7 = vor.u32 %v3996_v58, %v3982_v43  ;;  %v8511_v42 = vld [vmem:[%s9388_s25 + $0x98] sm:$0xff]   ;;  %v9622_v43 = vcombine.low %v9448_v61, %v9451_v62 }
 0x103   : > { %v9554_v57 = vcombine.high %v1460_v44, %v9444_v59 }
 0x104   : > { %1901 = vmatpush1.bf16.msra.mxu1 %v8482_v45  ;;  %v9536_v45 = vcombine.low %v9495_v20, %v9498_v21  ;;  %11764 = vst [vmem:[#allocation20_spill] sm:$0xff] %v9622_v43 }
 0x105   : > { %4521 = vmatpush1.bf16.msra.mxu0 %v8483_v46  ;;  %1902 = vmatprep.subr.bf16.mxu1 %v11575_v32  ;;  %v9541_v46 = vcombine.high %v9523_v36, %v9526_v37  ;;  %11757 = vst [vmem:[#allocation13_spill] sm:$0xff] %v9554_v57 }
 0x106   : > { %4522 = vmatprep.subr.bf16.mxu0 %v11575_v32  ;;  %11754 = vst [vmem:[#allocation10_spill] sm:$0xff] %v9536_v45 }
 0x107   : > { %11755 = vst [vmem:[#allocation11_spill] sm:$0xff] %v9541_v46 }
 0x108   : > { %1903 = vmatpush1.bf16.msra.mxu1 %v8484_v47  ;;  %v1414_v47 = vld [vmem:[%s9425_s5 + $0x58] sm:$0xff] }
 0x109   : > { %4523 = vmatpush1.bf16.msra.mxu0 %v8485_v48  ;;  %1904 = vmatprep.subr.bf16.mxu1 %v11575_v32  ;;  %v9546_v48 = vcombine.low %v9435_v54, %v9438_v55  ;;  %v4000_v54 = vshll.u32 %v9536_v45, 16  ;;  %v4020_v55 = vshrl.u32 %v9512_v27, 16 }
 0x10a   : > { %4524 = vmatprep.subr.bf16.mxu0 %v11575_v32 }
 0x10b   : > { %11756 = vst [vmem:[#allocation12_spill] sm:$0xff] %v9546_v48 }
 0x10c   : > { %1905 = vmatpush1.bf16.msra.mxu1 %v8486_v49  ;;  %v4006_v49 = vor.u32 %v4004_v38, %v3994_v10  ;;  %v9574_v10 = vcombine.low %v9523_v36, %v9526_v37 }
 0x10d   : > { %4525 = vmatpush1.bf16.msra.mxu0 %v8487_v50  ;;  %1906 = vmatprep.subr.bf16.mxu1 %v11575_v32  ;;  %v4010_v50 = vrot.slane %v4008_v39, 1 }
 0x10e   : > { %4526 = vmatprep.subr.bf16.mxu0 %v11575_v32  ;;  %11758 = vst [vmem:[#allocation14_spill] sm:$0xff] %v9574_v10  ;;  %v4016_v25 = vshll.u32 %v9574_v10, 16 }
 0x10f   : > { %v4011_v5 = vsel %vm2167_vm0, %v4006_v49, %v4010_v50  ;;  %v9629_v49 = vcombine.high %v9454_v63, %v9495_v20 }
 0x110   : > { %1907 = vmatpush1.bf16.msra.mxu1 %v8488_v60  ;;  %v4024_v60 = vshll.u32 %v9541_v46, 16  ;;  %v4018_v34 = vrot.slane %v4016_v25, 1  ;;  %v8512_v25 = vld [vmem:[%s9388_s25 + $0x2b0] sm:$0xff]  }
 0x111   : > { %4527 = vmatpush1.bf16.msra.mxu0 %v8489_v0  ;;  %1908 = vmatprep.subr.bf16.mxu1 %v11575_v32  ;;  %v9562_v0 = vmax.bf16 %v11575_v32, %v1414_v47  ;;  %v1419_v47 = vld [vmem:[%s9425_s5 + $0x80] sm:$0xff]  ;;  %11765 = vst [vmem:[#allocation21_spill] sm:$0xff] %v9629_v49 }
 0x112   : > { %4528 = vmatprep.subr.bf16.mxu0 %v11575_v32  ;;  %v4026_v12 = vrot.slane %v4024_v60, 1 }
 0x114   : > { %1909 = vmatpush1.bf16.msra.mxu1 %v8490_v4  ;;  %v9565_v4 = vmax.bf16 %v11575_v32, %v1415_v51  ;;  %v4028_v51 = vshrl.u32 %v9574_v10, 16 }
 0x115   : > { %4529 = vmatpush1.bf16.msra.mxu0 %v8491_v8  ;;  %1910 = vmatprep.subr.bf16.mxu1 %v11575_v32  ;;  %v4002_v8 = vrot.slane %v4000_v54, 1  ;;  %v9643_v54 = vmax.bf16 %v11575_v32, %v1419_v47  ;;  %v1423_v47 = vld [vmem:[%s9425_s5 + $0xa0] sm:$0xff] }
 0x116   : > { %4530 = vmatprep.subr.bf16.mxu0 %v11575_v32  ;;  %v9612_v38 = vcombine.low %v9562_v0, %v9565_v4  ;;  %v4030_v60 = vor.u32 %v4028_v51, %v4018_v34 }
 0x118   : > { %1911 = vmatpush1.bf16.msra.mxu1 %v8492_v11  ;;  %v4022_v11 = vor.u32 %v4020_v55, %v4010_v50  ;;  %11762 = vst [vmem:[#allocation18_spill] sm:$0xff] %v9612_v38  ;;  %v8514_v55 = vld [vmem:[%s9388_s25 + $0xa0] sm:$0xff]  }
 0x119   : > { %4531 = vmatpush1.bf16.msra.mxu0 %v8493_v13  ;;  %1912 = vmatprep.subr.bf16.mxu1 %v11575_v32  ;;  %v9579_v13 = vcombine.high %v9562_v0, %v9565_v4 }
 0x11a   : > { %4532 = vmatprep.subr.bf16.mxu0 %v11575_v32  ;;  %v4027_v26 = vsel %vm2167_vm0, %v4022_v11, %v4026_v12 }
 0x11b   : > { %11759 = vst [vmem:[#allocation15_spill] sm:$0xff] %v9579_v13  ;;  %v4040_v28 = vshll.u32 %v9579_v13, 16  ;;  %v4052_v61 = vshrl.u32 %v9579_v13, 16 }
 0x11c   : > { %1913 = vmatpush1.bf16.msra.mxu1 %v8494_v15  ;;  %v9583_v15 = vcombine.low %v1460_v44, %v9444_v59  ;;  %v4036_v59 = vshrl.u32 %v9541_v46, 16  ;;  %v1418_v44 = vld [vmem:[%s9425_s5 + $0x78] sm:$0xff] }
 0x11d   : > { %4533 = vmatpush1.bf16.msra.mxu0 %v8495_v18  ;;  %1914 = vmatprep.subr.bf16.mxu1 %v11575_v32  ;;  %v8506_v18 = vld [vmem:[%s9388_s25 + $0x290] sm:$0xff]   ;;  %v9640_v58 = vmax.bf16 %v11575_v32, %v1418_v44 }
 0x11e   : > { %4534 = vmatprep.subr.bf16.mxu0 %v11575_v32  ;;  %11760 = vst [vmem:[#allocation16_spill] sm:$0xff] %v9583_v15  ;;  %v4038_v39 = vor.u32 %v4036_v59, %v4026_v12 }
 0x11f   : > { %v9658_v12 = vcombine.high %v9640_v58, %v9643_v54  ;;  %v9693_v44 = vcombine.low %v9640_v58, %v9643_v54 }
 0x120   : > { %1915 = vmatpush1.bf16.msra.mxu1 %v8496_v22  ;;  %v4012_v22 = vshrl.u32 %v9536_v45, 16 }
 0x121   : > { %4535 = vmatpush1.bf16.msra.mxu0 %v8497_v23  ;;  %1916 = vmatprep.subr.bf16.mxu1 %v11575_v32  ;;  %v4003_v23 = vsel %vm2167_vm0, %v3998_v7, %v4002_v8  ;;  %v8510_v7 = vld [vmem:[%s9388_s25 + $0x2a8] sm:$0xff]   ;;  %11767 = vst [vmem:[#allocation23_spill] sm:$0xff] %v9658_v12  ;;  %11770 = vst [vmem:[#allocation26_spill] sm:$0xff] %v9693_v44 }
 0x122   : > { %4536 = vmatprep.subr.bf16.mxu0 %v11575_v32  ;;  %v4014_v33 = vor.u32 %v4012_v22, %v4002_v8  ;;  %v1420_v8 = vld [vmem:[%s9425_s5 + $0x88] sm:$0xff]  ;;  %v9669_v22 = vcombine.high %v9498_v21, %v9523_v36 }
 0x124   : > { %1917 = vmatpush1.bf16.msra.mxu1 %v8498_v29  ;;  %v8508_v29 = vld [vmem:[%s9388_s25 + $0x90] sm:$0xff]   ;;  %v4019_v50 = vsel %vm2167_vm0, %v4014_v33, %v4018_v34  ;;  %11769 = vst [vmem:[#allocation25_spill] sm:$0xff] %v9669_v22 }
 0x125   : > { %4537 = vmatpush1.bf16.msra.mxu0 %v8499_v30  ;;  %1918 = vmatprep.subr.bf16.mxu1 %v11575_v32  ;;  %v9602_v30 = vmax.bf16 %v11575_v32, %v1416_v14  ;;  %v8517_v14 = vld [vmem:[%s9388_s25 + $0xa8] sm:$0xff]   ;;  %v8520_v34 = vld [vmem:[%s9388_s25 + $0xb0] sm:$0xff]  }
 0x126   : > { %4538 = vmatprep.subr.bf16.mxu0 %v11575_v32 }
 0x128   : > { %1919 = vmatpush1.bf16.msra.mxu1 %v8500_v40  ;;  %v4042_v40 = vrot.slane %v4040_v28, 1  ;;  %v4072_v28 = vshll.u32 %v9658_v12, 16 }
 0x129   : > { %4539 = vmatpush1.bf16.msra.mxu0 %v8501_v41  ;;  %2704 = vmatprep.subr.bf16.mxu1 %v11575_v32  ;;  %v9617_v41 = vcombine.high %v9602_v30, %v9605_v31 }
 0x12a   : > { %5024 = vmatprep.subr.bf16.mxu0 %v11575_v32  ;;  %v4043_v62 = vsel %vm2167_vm0, %v4038_v39, %v4042_v40  ;;  %v1422_v39 = vld [vmem:[%s9425_s5 + $0x98] sm:$0xff]  ;;  %v4074_v51 = vrot.slane %v4072_v28, 1 }
 0x12b   : > { %1921 = vmatmul.mubr.bf16.vlgmr.msra.gmra.mrb[0].mxu1 %v9546_v48  ;;  %11763 = vst [vmem:[#allocation19_spill] sm:$0xff] %v9617_v41  ;;  %v4068_v63 = vshrl.u32 %v9617_v41, 16 }
 0x12c   : > { %4541 = vmatmul.mubr.bf16.vlgmr.msra.gmra.mrb[0].mxu0 %v3983_v53  ;;  %2705 = vmatpush1.bf16.msra.mxu1 %v8502_v52  ;;  %v4032_v52 = vshll.u32 %v9612_v38, 16  ;;  %v8509_v53 = vld [vmem:[%s9388_s25 + $0x2a0] sm:$0xff]  }
 0x12d   : > { %5025 = vmatpush1.bf16.msra.mxu0 %v8503_v56  ;;  %1928 = vmatprep.mubr.bf16.mxu1 %v9554_v57  ;;  %v4056_v56 = vshll.u32 %v9617_v41, 16 }
 0x12e   : > { %4548 = vmatprep.mubr.bf16.mxu0 %v4011_v5  ;;  %5026 = vmatprep.subr.bf16.mxu0 %v11575_v32  ;;  %v4034_v5 = vrot.slane %v4032_v52, 1 }
 0x12f   : > { %2706 = vmatprep.subr.bf16.mxu1 %v11575_v32  ;;  %v4058_v11 = vrot.slane %v4056_v56, 1  ;;  %v9710_v56 = vcombine.high %v9526_v37, %v9562_v0 }
 0x130   : > { %2707 = vmatpush1.bf16.msra.mxu1 %v8505_v6  ;;  %v9651_v6 = vcombine.low %v9602_v30, %v9605_v31  ;;  %v4035_v59 = vsel %vm2167_vm0, %v4030_v60, %v4034_v5  ;;  %v9714_v60 = vmax.bf16 %v11575_v32, %v1422_v39  ;;  %v8528_v39 = vld [vmem:[%s9388_s25 + $0xc8] sm:$0xff]  }
 0x131   : > { %5027 = vmatpush1.bf16.msra.mxu0 %v8504_v9  ;;  %2708 = vmatprep.subr.bf16.mxu1 %v11575_v32  ;;  %v4054_v9 = vor.u32 %v4052_v61, %v4042_v40  ;;  %v9704_v61 = vcombine.low %v9498_v21, %v9523_v36  ;;  %11773 = vst [vmem:[#allocation29_spill] sm:$0xff] %v9710_v56  ;;  %v4064_v36 = vshll.u32 %v9693_v44, 16 }
 0x132   : > { %5028 = vmatprep.subr.bf16.mxu0 %v11575_v32  ;;  %11766 = vst [vmem:[#allocation22_spill] sm:$0xff] %v9651_v6 }
 0x133   : > { %1929 = vmatmul.mubr.bf16.gmra.mrb[4].mxu1 %v9583_v15  ;;  %v4059_v20 = vsel %vm2167_vm0, %v4054_v9, %v4058_v11  ;;  %11772 = vst [vmem:[#allocation28_spill] sm:$0xff] %v9704_v61  ;;  %v4084_v9 = vshrl.u32 %v9658_v12, 16 }
 0x134   : > { %4549 = vmatmul.mubr.bf16.gmra.mrb[4].mxu0 %v4003_v23  ;;  %1935 = vmatprep.mubr.bf16.mxu1 %v9589_v17  ;;  %v4044_v23 = vshrl.u32 %v9612_v38, 16 }
 0x135   : > { %4555 = vmatprep.mubr.bf16.mxu0 %v4027_v26  ;;  %5029 = vmatpush1.bf16.msra.mxu0 %v8506_v18  ;;  %v1421_v18 = vld [vmem:[%s9425_s5 + $0x90] sm:$0xff]  ;;  %v4048_v26 = vshll.u32 %v9651_v6, 16 }
 0x136   : > { %5030 = vmatprep.subr.bf16.mxu0 %v11575_v32  ;;  %2709 = vmatpush1.bf16.msra.mxu1 %v8508_v29  ;;  %v9680_v29 = vmax.bf16 %v11575_v32, %v1420_v8  ;;  %v9683_v33 = vmax.bf16 %v11575_v32, %v1421_v18  ;;  %v4046_v40 = vor.u32 %v4044_v23, %v4034_v5  ;;  %v1425_v8 = vld [vmem:[%s9425_s5 + $0xb0] sm:$0xff]  ;;  %v8526_v18 = vld [vmem:[%s9388_s25 + $0xc0] sm:$0xff]  }
 0x137   : > { %2710 = vmatprep.subr.bf16.mxu1 %v11575_v32  ;;  %v9717_v5 = vmax.bf16 %v11575_v32, %v1423_v47  ;;  %v9744_v28 = vmax.bf16 %v11575_v32, %v1425_v8  ;;  %v8518_v47 = vld [vmem:[%s9388_s25 + $0x2d0] sm:$0xff]  }
 0x138   : > { %v9699_v52 = vcombine.high %v9680_v29, %v9683_v33  ;;  %v9733_v23 = vcombine.low %v9680_v29, %v9683_v33 }
 0x139   : > { %5031 = vmatpush1.bf16.msra.mxu0 %v8507_v35  ;;  %v8513_v35 = vld [vmem:[%s9388_s25 + $0x2b8] sm:$0xff]  }
 0x13a   : > { %5032 = vmatprep.subr.bf16.mxu0 %v11575_v32  ;;  %2711 = vmatpush1.bf16.msra.mxu1 %v8511_v42  ;;  %v4050_v42 = vrot.slane %v4048_v26, 1  ;;  %11771 = vst [vmem:[#allocation27_spill] sm:$0xff] %v9699_v52  ;;  %11774 = vst [vmem:[#allocation30_spill] sm:$0xff] %v9733_v23  ;;  %v4066_v26 = vrot.slane %v4064_v36, 1 }
 0x13b   : > { %1936 = vmatmul.mubr.bf16.gmra.mrb[8].mxu1 %v9622_v43  ;;  %2712 = vmatprep.subr.bf16.mxu1 %v11575_v32 }
 0x13c   : > { %4556 = vmatmul.mubr.bf16.gmra.mrb[8].mxu0 %v4019_v50  ;;  %1942 = vmatprep.mubr.bf16.mxu1 %v9629_v49  ;;  %v4070_v50 = vor.u32 %v4068_v63, %v4058_v11  ;;  %v4051_v21 = vsel %vm2167_vm0, %v4046_v40, %v4050_v42  ;;  %v8516_v63 = vld [vmem:[%s9388_s25 + $0x2c8] sm:$0xff]   ;;  %v9750_v40 = vcombine.low %v9526_v37, %v9562_v0  ;;  %v4100_v0 = vshrl.u32 %v9699_v52, 16 }
 0x13d   : > { %4562 = vmatprep.mubr.bf16.mxu0 %v4043_v62  ;;  %5033 = vmatpush1.bf16.msra.mxu0 %v8509_v53  ;;  %v8523_v53 = vld [vmem:[%s9388_s25 + $0xb8] sm:$0xff]   ;;  %v8515_v62 = vld [vmem:[%s9388_s25 + $0x2c0] sm:$0xff]  }
 0x13e   : > { %5034 = vmatprep.subr.bf16.mxu0 %v11575_v32  ;;  %2713 = vmatpush1.bf16.msra.mxu1 %v8514_v55  ;;  %v4060_v55 = vshrl.u32 %v9651_v6, 16  ;;  %v4075_v11 = vsel %vm2167_vm0, %v4070_v50, %v4074_v51  ;;  %11776 = vst [vmem:[#allocation32_spill] sm:$0xff] %v9750_v40  ;;  %v9757_v50 = vcombine.high %v9565_v4, %v9602_v30 }
 0x13f   : > { %2714 = vmatprep.subr.bf16.mxu1 %v11575_v32 }
 0x140   : > { %11777 = vst [vmem:[#allocation33_spill] sm:$0xff] %v9757_v50 }
 0x141   : > { %5035 = vmatpush1.bf16.msra.mxu0 %v8510_v7  ;;  %v1424_v7 = vld [vmem:[%s9425_s5 + $0xa8] sm:$0xff] }
 0x142   : > { %5036 = vmatprep.subr.bf16.mxu0 %v11575_v32  ;;  %2715 = vmatpush1.bf16.msra.mxu1 %v8517_v14  ;;  %v4088_v14 = vshll.u32 %v9699_v52, 16 }
 0x143   : > { %1943 = vmatmul.mubr.bf16.gmra.mrb[12].mxu1 %v9663_v16  ;;  %2716 = vmatprep.subr.bf16.mxu1 %v11575_v32 }
 0x144   : > { %4563 = vmatmul.mubr.bf16.gmra.mrb[12].mxu0 %v4035_v59  ;;  %1950 = vmatprep.mubr.bf16.mxu1 %v9669_v22  ;;  %v4062_v59 = vor.u32 %v4060_v55, %v4050_v42  ;;  %v4076_v42 = vshrl.u32 %v9693_v44, 16  ;;  %v1435_v22 = vld [vmem:[%s9425_s5 + $0x100] sm:$0xff] }
 0x145   : > { %4570 = vmatprep.mubr.bf16.mxu0 %v4059_v20  ;;  %5037 = vmatpush1.bf16.msra.mxu0 %v8512_v25  ;;  %v9737_v25 = vcombine.high %v9714_v60, %v9717_v5  ;;  %v9741_v20 = vmax.bf16 %v11575_v32, %v1424_v7  ;;  %v8530_v7 = vld [vmem:[%s9388_s25 + $0xd0] sm:$0xff]  }
 0x146   : > { %5038 = vmatprep.subr.bf16.mxu0 %v11575_v32  ;;  %2717 = vmatpush1.bf16.msra.mxu1 %v8520_v34  ;;  %v4086_v34 = vor.u32 %v4084_v9, %v4074_v51  ;;  %v4080_v51 = vshll.u32 %v9733_v23, 16  ;;  %v4067_v37 = vsel %vm2167_vm0, %v4062_v59, %v4066_v26  ;;  %v1427_v59 = vld [vmem:[%s9425_s5 + $0xc0] sm:$0xff] }
 0x147   : > { %2718 = vmatprep.subr.bf16.mxu1 %v11575_v32  ;;  %11775 = vst [vmem:[#allocation31_spill] sm:$0xff] %v9737_v25  ;;  %v9769_v55 = vcombine.high %v9741_v20, %v9744_v28 }
 0x148   : > { %v4082_v36 = vrot.slane %v4080_v51, 1  ;;  %v9787_v51 = vcombine.low %v9565_v4, %v9602_v30 }
 0x149   : > { %5039 = vmatpush1.bf16.msra.mxu0 %v8513_v35  ;;  %v4090_v35 = vrot.slane %v4088_v14, 1  ;;  %11779 = vst [vmem:[#allocation35_spill] sm:$0xff] %v9769_v55 }
 0x14a   : > { %5040 = vmatprep.subr.bf16.mxu0 %v11575_v32  ;;  %2719 = vmatpush1.bf16.msra.mxu1 %v8523_v53  ;;  %v4104_v53 = vshll.u32 %v9737_v25, 16  ;;  %11781 = vst [vmem:[#allocation36_spill] sm:$0xff] %v9787_v51 }
 0x14b   : > { %1951 = vmatmul.mubr.bf16.gmra.mrb[16].mxu1 %v9704_v61  ;;  %2720 = vmatprep.subr.bf16.mxu1 %v11575_v32  ;;  %v4091_v8 = vsel %vm2167_vm0, %v4086_v34, %v4090_v35  ;;  %v4120_v34 = vshll.u32 %v9769_v55, 16 }
 0x14c   : > { %4571 = vmatmul.mubr.bf16.gmra.mrb[16].mxu0 %v4051_v21  ;;  %1957 = vmatprep.mubr.bf16.mxu1 %v9710_v56  ;;  %v8519_v21 = vld [vmem:[%s9388_s25 + $0x2d8] sm:$0xff]   ;;  %v4106_v9 = vrot.slane %v4104_v53, 1  ;;  %v8521_v53 = vld [vmem:[%s9388_s25 + $0x2e0] sm:$0xff]   ;;  %v9829_v56 = vcombine.low %v9605_v31, %v9640_v58 }
 0x14d   : > { %4577 = vmatprep.mubr.bf16.mxu0 %v4075_v11  ;;  %5041 = vmatpush1.bf16.msra.mxu0 %v8515_v62  ;;  %v9763_v62 = vcombine.low %v9714_v60, %v9717_v5  ;;  %v4092_v11 = vshrl.u32 %v9733_v23, 16 }
 0x14e   : > { %5042 = vmatprep.subr.bf16.mxu0 %v11575_v32  ;;  %2721 = vmatpush1.bf16.msra.mxu1 %v8526_v18  ;;  %v1426_v18 = vld [vmem:[%s9425_s5 + $0xb8] sm:$0xff]  ;;  %11785 = vst [vmem:[#allocation40_spill] sm:$0xff] %v9829_v56 }
 0x14f   : > { %2722 = vmatprep.subr.bf16.mxu1 %v11575_v32  ;;  %11778 = vst [vmem:[#allocation34_spill] sm:$0xff] %v9763_v62  ;;  %v4096_v14 = vshll.u32 %v9763_v62, 16 }
 0x151   : > { %5043 = vmatpush1.bf16.msra.mxu0 %v8516_v63  ;;  %v4078_v63 = vor.u32 %v4076_v42, %v4066_v26  ;;  %v9797_v26 = vcombine.low %v9741_v20, %v9744_v28  ;;  %v4116_v42 = vshrl.u32 %v9737_v25, 16 }
 0x152   : > { %5044 = vmatprep.subr.bf16.mxu0 %v11575_v32  ;;  %2723 = vmatpush1.bf16.msra.mxu1 %v8528_v39  ;;  %v8532_v39 = vld [vmem:[%s9388_s25 + $0xd8] sm:$0xff]  }
 0x153   : > { %1958 = vmatmul.mubr.bf16.gmra.mrb[20].mxu1 %v9750_v40  ;;  %2724 = vmatprep.subr.bf16.mxu1 %v11575_v32  ;;  %v4102_v32 = vor.u32 %v4100_v0, %v4090_v35  ;;  %11783 = vst [vmem:[#allocation38_spill] sm:$0xff] %v9797_v26  ;;  %v4083_v35 = vsel %vm2167_vm0, %v4078_v63, %v4082_v36  ;;  %v1429_v63 = vld [vmem:[%s9425_s5 + $0xd0] sm:$0xff] }
 0x154   : > { %4578 = vmatmul.mubr.bf16.gmra.mrb[20].mxu0 %v4067_v37  ;;  %1964 = vmatprep.mubr.bf16.mxu1 %v9757_v50  ;;  %v11780_v37 = vmov 0   ;;  %v4118_v40 = vor.u32 %v4116_v42, %v4106_v9 }
 0x155   : > { %4584 = vmatprep.mubr.bf16.mxu0 %v4091_v8  ;;  %5045 = vmatpush1.bf16.msra.mxu0 %v8518_v47  ;;  %v9793_v8 = vcombine.high %v9605_v31, %v9640_v58  ;;  %v9802_v4 = vmax.bf16 %v11780_v37, %v1426_v18  ;;  %v9805_v30 = vmax.bf16 %v11780_v37, %v1427_v59  ;;  %v8534_v47 = vld [vmem:[%s9388_s25 + $0xe0] sm:$0xff]   ;;  %v4108_v18 = vshrl.u32 %v9763_v62, 16  ;;  %v8538_v31 = vld [vmem:[%s9388_s25 + $0xf0] sm:$0xff]  }
 0x156   : > { %5046 = vmatprep.subr.bf16.mxu0 %v11780_v37  ;;  %2725 = vmatpush1.bf16.msra.mxu1 %v8530_v7  ;;  %v4107_v0 = vsel %vm2167_vm0, %v4102_v32, %v4106_v9  ;;  %v4098_v7 = vrot.slane %v4096_v14, 1  ;;  %v4112_v59 = vshll.u32 %v9797_v26, 16  ;;  %v1428_v32 = vld [vmem:[%s9425_s5 + $0xc8] sm:$0xff]  ;;  %v9843_v42 = vmax.bf16 %v11780_v37, %v1429_v63 }
 0x157   : > { %2726 = vmatprep.subr.bf16.mxu1 %v11780_v37  ;;  %11782 = vst [vmem:[#allocation37_spill] sm:$0xff] %v9793_v8  ;;  %v9820_v50 = vcombine.high %v9802_v4, %v9805_v30  ;;  %v1432_v14 = vld [vmem:[%s9425_s5 + $0xe8] sm:$0xff]  ;;  %v9840_v9 = vmax.bf16 %v11780_v37, %v1428_v32  ;;  %v9857_v32 = vcombine.low %v9802_v4, %v9805_v30 }
 0x158   : > { %v4114_v63 = vrot.slane %v4112_v59, 1  ;;  %v9878_v59 = vcombine.low %v9643_v54, %v9680_v29 }
 0x159   : > { %5047 = vmatpush1.bf16.msra.mxu0 %v8519_v21  ;;  %v4122_v21 = vrot.slane %v4120_v34, 1  ;;  %11784 = vst [vmem:[#allocation39_spill] sm:$0xff] %v9820_v50  ;;  %v1433_v34 = vld [vmem:[%s9425_s5 + $0xf0] sm:$0xff]  ;;  %11787 = vst [vmem:[#allocation42_spill] sm:$0xff] %v9857_v32  ;;  %v4140_v43 = vshrl.u32 %v9857_v32, 16 }
 0x15a   : > { %5048 = vmatprep.subr.bf16.mxu0 %v11780_v37  ;;  %2727 = vmatpush1.bf16.msra.mxu1 %v8532_v39  ;;  %v8522_v39 = vld [vmem:[%s9388_s25 + $0x2e8] sm:$0xff]   ;;  %11790 = vst [vmem:[#allocation45_spill] sm:$0xff] %v9878_v59 }
 0x15b   : > { %1965 = vmatmul.mubr.bf16.gmra.mrb[24].mxu1 %v9787_v51  ;;  %2728 = vmatprep.subr.bf16.mxu1 %v11780_v37  ;;  %v4094_v51 = vor.u32 %v4092_v11, %v4082_v36  ;;  %v8524_v36 = vld [vmem:[%s9388_s25 + $0x2f0] sm:$0xff]   ;;  %v9835_v11 = vcombine.high %v9643_v54, %v9680_v29  ;;  %v4123_v58 = vsel %vm2167_vm0, %v4118_v40, %v4122_v21 }
 0x15c   : > { %4585 = vmatmul.mubr.bf16.gmra.mrb[24].mxu0 %v4083_v35  ;;  %1972 = vmatprep.mubr.bf16.mxu1 %v9793_v8  ;;  %v4132_v35 = vshrl.u32 %v9769_v55, 16  ;;  %v8536_v8 = vld [vmem:[%s9388_s25 + $0xe8] sm:$0xff]   ;;  %v4110_v40 = vor.u32 %v4108_v18, %v4098_v7  ;;  %v8540_v18 = vld [vmem:[%s9388_s25 + $0xf8] sm:$0xff]  }
 0x15d   : > { %4592 = vmatprep.mubr.bf16.mxu0 %v4107_v0  ;;  %5049 = vmatpush1.bf16.msra.mxu0 %v8521_v53  ;;  %11786 = vst [vmem:[#allocation41_spill] sm:$0xff] %v9835_v11  ;;  %v4099_v53 = vsel %vm2167_vm0, %v4094_v51, %v4098_v7  ;;  %v4136_v0 = vshll.u32 %v9820_v50, 16  ;;  %v9852_v51 = vmax.bf16 %v11780_v37, %v1433_v34  ;;  %v1431_v34 = vld [vmem:[%s9425_s5 + $0xe0] sm:$0xff]  ;;  %v1434_v7 = vld [vmem:[%s9425_s5 + $0xf8] sm:$0xff] }
 0x15e   : > { %5050 = vmatprep.subr.bf16.mxu0 %v11780_v37  ;;  %2729 = vmatpush1.bf16.msra.mxu1 %v8534_v47  ;;  %v9849_v47 = vmax.bf16 %v11780_v37, %v1432_v14  ;;  %v9868_v14 = vcombine.high %v9840_v9, %v9843_v42  ;;  %v9908_v49 = vmax.bf16 %v11780_v37, %v1434_v7 }
 0x15f   : > { %2730 = vmatprep.subr.bf16.mxu1 %v11780_v37  ;;  %v4138_v61 = vrot.slane %v4136_v0, 1  ;;  %v4148_v0 = vshrl.u32 %v9820_v50, 16 }
 0x160   : > { %11789 = vst [vmem:[#allocation44_spill] sm:$0xff] %v9868_v14  ;;  %v4152_v54 = vshll.u32 %v9868_v14, 16 }
 0x161   : > { %5051 = vmatpush1.bf16.msra.mxu0 %v8522_v39  ;;  %v1430_v39 = vld [vmem:[%s9425_s5 + $0xd8] sm:$0xff] }
 0x162   : > { %5052 = vmatprep.subr.bf16.mxu0 %v11780_v37  ;;  %2731 = vmatpush1.bf16.msra.mxu1 %v8536_v8  ;;  %v9864_v8 = vcombine.high %v9849_v47, %v9852_v51  ;;  %v9895_v29 = vmax.bf16 %v11780_v37, %v1430_v39  ;;  %v9911_v39 = vmax.bf16 %v11780_v37, %v1435_v22  ;;  %v4154_v22 = vrot.slane %v4152_v54, 1 }
 0x163   : > { %1973 = vmatmul.mubr.bf16.gmra.mrb[28].mxu1 %v9829_v56  ;;  %2732 = vmatprep.subr.bf16.mxu1 %v11780_v37  ;;  %v8525_v56 = vld [vmem:[%s9388_s25 + $0x2f8] sm:$0xff]  }
 0x164   : > { %4593 = vmatmul.mubr.bf16.gmra.mrb[28].mxu0 %v4099_v53  ;;  %1979 = vmatprep.mubr.bf16.mxu1 %v9835_v11  ;;  %11788 = vst [vmem:[#allocation43_spill] sm:$0xff] %v9864_v8  ;;  %v4134_v53 = vor.u32 %v4132_v35, %v4122_v21  ;;  %v4124_v11 = vshrl.u32 %v9797_v26, 16  ;;  %v9885_v21 = vcombine.low %v9849_v47, %v9852_v51 }
 0x165   : > { %4599 = vmatprep.mubr.bf16.mxu0 %v4123_v58  ;;  %5053 = vmatpush1.bf16.msra.mxu0 %v8524_v36  ;;  %v4128_v58 = vshll.u32 %v9857_v32, 16  ;;  %v4115_v35 = vsel %vm2167_vm0, %v4110_v40, %v4114_v63  ;;  %v9890_v36 = vcombine.high %v9683_v33, %v9714_v60  ;;  %v9905_v40 = vcombine.low %v9840_v9, %v9843_v42 }
 0x166   : > { %5054 = vmatprep.subr.bf16.mxu0 %v11780_v37  ;;  %2733 = vmatpush1.bf16.msra.mxu1 %v8538_v31  ;;  %11791 = vst [vmem:[#allocation46_spill] sm:$0xff] %v9885_v21  ;;  %v9898_v31 = vmax.bf16 %v11780_v37, %v1431_v34  ;;  %v4139_v16 = vsel %vm2167_vm0, %v4134_v53, %v4138_v61 }
 0x167   : > { %2734 = vmatprep.subr.bf16.mxu1 %v11780_v37  ;;  %11792 = vst [vmem:[#allocation47_spill] sm:$0xff] %v9890_v36  ;;  %11793 = vst [vmem:[#allocation48_spill] sm:$0xff] %v9905_v40  ;;  %v4130_v34 = vrot.slane %v4128_v58, 1  ;;  %v9922_v7 = vcombine.high %v9908_v49, %v9911_v39  ;;  %v9937_v58 = vcombine.high %v9717_v5, %v9741_v20 }
 0x168   : > { %v9917_v53 = vcombine.high %v9895_v29, %v9898_v31 }
 0x169   : > { %5055 = vmatpush1.bf16.msra.mxu0 %v8525_v56  ;;  %v4126_v56 = vor.u32 %v4124_v11, %v4114_v63  ;;  %11795 = vst [vmem:[#allocation50_spill] sm:$0xff] %v9922_v7  ;;  %v1437_v11 = vld [vmem:[%s9425_s5 + $0x110] sm:$0xff]  ;;  %v9933_v63 = vcombine.low %v9908_v49, %v9911_v39  ;;  %11798 = vst [vmem:[#allocation53_spill] sm:$0xff] %v9937_v58 }
 0x16a   : > { %5412 = vmatprep.subr.bf16.mxu0 %v11780_v37  ;;  %2735 = vmatpush1.bf16.msra.mxu1 %v8540_v18  ;;  %11794 = vst [vmem:[#allocation49_spill] sm:$0xff] %v9917_v53  ;;  %v1436_v18 = vld [vmem:[%s9425_s5 + $0x108] sm:$0xff]  ;;  %v4168_v54 = vshll.u32 %v9917_v53, 16 }
 0x16b   : > { %1980 = vmatmul.mubr.bf16.gmra.mrb[32].mxu1 %v9878_v59  ;;  %3221 = vmatprep.subr.bf16.mxu1 %v11780_v37  ;;  %v4150_v59 = vor.u32 %v4148_v0, %v4138_v61  ;;  %11797 = vst [vmem:[#allocation52_spill] sm:$0xff] %v9933_v63  ;;  %v4131_v61 = vsel %vm2167_vm0, %v4126_v56, %v4130_v34  ;;  %v4164_v0 = vshrl.u32 %v9868_v14, 16 }
 0x16c   : > { %4600 = vmatmul.mubr.bf16.gmra.mrb[32].mxu0 %v4115_v35  ;;  %1986 = vmatprep.mubr.bf16.mxu1 %v9890_v36  ;;  %v9927_v35 = vcombine.low %v9683_v33, %v9714_v60  ;;  %v9944_v60 = vmax.bf16 %v11780_v37, %v1436_v18  ;;  %v9947_v36 = vmax.bf16 %v11780_v37, %v1437_v11  ;;  %v9959_v21 = vrot.slane %v4168_v54, 1  ;;  %v1438_v11 = vld [vmem:[%s9425_s5 + $0x118] sm:$0xff] }
 0x16d   : > { %4606 = vmatprep.mubr.bf16.mxu0 %v4139_v16  ;;  %v4144_v16 = vshll.u32 %v9905_v40, 16  ;;  %v4155_v33 = vsel %vm2167_vm0, %v4150_v59, %v4154_v22  ;;  %v4142_v63 = vor.u32 %v4140_v43, %v4130_v34  ;;  %v9957_v59 = vcombine.low %v9895_v29, %v9898_v31 }
 0x16e   : > { %11796 = vst [vmem:[#allocation51_spill] sm:$0xff] %v9927_v35  ;;  %v9953_v56 = vcombine.high %v9944_v60, %v9947_v36  ;;  %v4166_v18 = vor.u32 %v4164_v0, %v4154_v22  ;;  %11801 = vst [vmem:[#allocation56_spill] sm:$0xff] %v9959_v21  ;;  %v9973_v43 = vcombine.high %v9744_v28, %v9802_v4  ;;  %v4156_v22 = vshrl.u32 %v9905_v40, 16 }
 0x16f   : > { %v4146_v7 = vrot.slane %v4144_v16, 1  ;;  %11800 = vst [vmem:[#allocation55_spill] sm:$0xff] %v9957_v59  ;;  %v4160_v16 = vshll.u32 %v9957_v59, 16 }
 0x170   : > { %11799 = vst [vmem:[#allocation54_spill] sm:$0xff] %v9953_v56  ;;  %11803 = vst [vmem:[#allocation58_spill] sm:$0xff] %v9973_v43 }
 0x171   : > { %v4147_v34 = vsel %vm2167_vm0, %v4142_v63, %v4146_v7  ;;  %v4158_v54 = vor.u32 %v4156_v22, %v4146_v7  ;;  %v10008_v7 = vcombine.high %v9805_v30, %v9840_v9 }
 0x173   : > { %1987 = vmatmul.mubr.bf16.gmra.mrb[36].mxu1 %v9927_v35  ;;  %v9969_v35 = vcombine.low %v9944_v60, %v9947_v36 }
 0x174   : > { %4607 = vmatmul.mubr.bf16.gmra.mrb[36].mxu0 %v4131_v61  ;;  %1994 = vmatprep.mubr.bf16.mxu1 %v9937_v58  ;;  %v9964_v61 = vcombine.low %v9717_v5, %v9741_v20  ;;  %v1439_v58 = vld [vmem:[%s9425_s5 + $0x120] sm:$0xff]  ;;  %v4171_v5 = vsel %vm2167_vm0, %v4166_v18, %v9959_v21  ;;  %v9981_v20 = vmax.bf16 %v11780_v37, %v1438_v11  ;;  %v4785_v18 = vrot.slane %v9465_v2, 1  ;;  %v1440_v21 = vld [vmem:[%s9425_s5 + $0x128] sm:$0xff] }
 0x175   : > { %4614 = vmatprep.mubr.bf16.mxu0 %v4155_v33  ;;  %11802 = vst [vmem:[#allocation57_spill] sm:$0xff] %v9969_v35  ;;  %v9984_v0 = vmax.bf16 %v11780_v37, %v1439_v58  ;;  %v9992_v33 = vrot.slane %v4160_v16, 1  ;;  %v4786_v11 = vrot.slane %v9469_v3, 1  ;;  %v9999_v58 = vcombine.low %v9744_v28, %v9802_v4  ;;  %v8527_v3 = vld [vmem:[%s9388_s25 + $0x300] sm:$0xff]  }
 0x177   : > { %v9990_v63 = vcombine.high %v9981_v20, %v9984_v0  ;;  %11805 = vst [vmem:[#allocation60_spill] sm:$0xff] %v9992_v33  ;;  %v4163_v22 = vsel %vm2167_vm0, %v4158_v54, %v9992_v33  ;;  %v4787_v16 = vsel %vm2978_vm1, %v4785_v18, %v4786_v11  ;;  %v4782_v54 = vrot.slane %v9491_v19, 1 }
 0x178   : > { %v4783_v18 = vrot.slane %v9505_v24, 1  ;;  %v10038_v33 = vcombine.high %v9843_v42, %v9895_v29 }
 0x179   : > { %11804 = vst [vmem:[#allocation59_spill] sm:$0xff] %v9990_v63 }
 0x17b   : > { %1995 = vmatmul.mubr.bf16.gmra.mrb[40].mxu1 %v9964_v61 }
 0x17c   : > { %4615 = vmatmul.mubr.bf16.gmra.mrb[40].mxu0 %v4147_v34  ;;  %2001 = vmatprep.mubr.bf16.mxu1 %v9973_v43  ;;  %v1441_v34 = vld [vmem:[%s9425_s5 + $0x130] sm:$0xff]  ;;  %v10004_v43 = vcombine.low %v9981_v20, %v9984_v0 }
 0x17d   : > { %4621 = vmatprep.mubr.bf16.mxu0 %v4171_v5  ;;  %v10014_v5 = vmax.bf16 %v11780_v37, %v1440_v21  ;;  %v10017_v28 = vmax.bf16 %v11780_v37, %v1441_v34  ;;  %v4790_v21 = vrot.slane %v9512_v27, 1  ;;  %v10030_v34 = vcombine.low %v9805_v30, %v9840_v9  ;;  %v8529_v9 = vld [vmem:[%s9388_s25 + $0x308] sm:$0xff]  }
 0x17e   : > { %11806 = vst [vmem:[#allocation61_spill] sm:$0xff] %v10004_v43  ;;  %v4788_v30 = vrot.slane %v9536_v45, 1  ;;  %v4794_v27 = vrot.slane %v9541_v46, 1 }
 0x17f   : > { %v10023_v4 = vcombine.high %v10014_v5, %v10017_v28  ;;  %v4791_v24 = vsel %vm2978_vm1, %v4786_v11, %v4790_v21  ;;  %v10055_v11 = vcombine.high %v9898_v31, %v9849_v47 }
 0x181   : > { %11807 = vst [vmem:[#allocation62_spill] sm:$0xff] %v10023_v4 }
 0x183   : > { %2002 = vmatmul.mubr.bf16.gmra.mrb[44].mxu1 %v9999_v58 }
 0x184   : > { %4622 = vmatmul.mubr.bf16.gmra.mrb[44].mxu0 %v4163_v22  ;;  %2008 = vmatprep.mubr.bf16.mxu1 %v10008_v7  ;;  %v10034_v22 = vcombine.low %v10014_v5, %v10017_v28 }
 0x185   : > { %5056 = vmatprep.mubr.bf16.mxu0 %v4787_v16  ;;  %v4784_v16 = vsel %vm2978_vm1, %v4782_v54, %v4783_v18  ;;  %v10051_v54 = vcombine.low %v9843_v42, %v9895_v29  ;;  %v4792_v42 = vrot.slane %v9574_v10, 1  ;;  %v8533_v29 = vld [vmem:[%s9388_s25 + $0x318] sm:$0xff]   ;;  %v4828_v10 = vrot.slane %v9957_v59, 1 }
 0x186   : > { %11808 = vst [vmem:[#allocation63_spill] sm:$0xff] %v10034_v22 }
 0x18b   : > { %2009 = vmatmul.mubr.bf16.gmra.mrb[48].mxu1 %v10030_v34 }
 0x18c   : > { %5057 = vmatmul.mubr.bf16.vlgmr.msra.gmra.mrb[0].mxu0 %v4784_v16  ;;  %2016 = vmatprep.mubr.bf16.mxu1 %v10038_v33  ;;  %v4789_v16 = vsel %vm2978_vm1, %v4783_v18, %v4788_v30  ;;  %v4798_v18 = vrot.slane %v9579_v13, 1 }
 0x18d   : > { %5413 = vmatpush1.bf16.msra.mxu0 %v8527_v3  ;;  %5064 = vmatprep.mubr.bf16.mxu0 %v4791_v24  ;;  %v8531_v3 = vld [vmem:[%s9388_s25 + $0x310] sm:$0xff]   ;;  %v4795_v24 = vsel %vm2978_vm1, %v4790_v21, %v4794_v27  ;;  %v10069_v21 = vcombine.low %v9898_v31, %v9849_v47  ;;  %v4796_v47 = vrot.slane %v9612_v38, 1  ;;  %v8537_v31 = vld [vmem:[%s9388_s25 + $0x328] sm:$0xff]   ;;  %v4830_v38 = vrot.slane %v9917_v53, 1 }
 0x18e   : > { %5414 = vmatprep.subr.bf16.mxu0 %v11780_v37  ;;  %v2171_v53 = vshll.u32 %v9546_v48, 16 }
 0x190   : > { %v2173_v19 = vrot.slane %v2171_v53, 1  ;;  %v11814_v53 = vld [vmem:[#allocation46_spill] sm:$0xff] }
 0x191   : > { %5415 = vmatpush1.bf16.msra.mxu0 %v8529_v9  ;;  %v10073_v9 = vcombine.high %v9852_v51, %v9908_v49 }
 0x192   : > { %5416 = vmatprep.subr.bf16.mxu0 %v11780_v37 }
 0x193   : > { %2017 = vmatmul.mubr.bf16.gmra.mrb[52].mxu1 %v10051_v54 }
 0x194   : > { %5065 = vmatmul.mubr.bf16.gmra.mrb[4].mxu0 %v4789_v16  ;;  %2023 = vmatprep.mubr.bf16.mxu1 %v10055_v11  ;;  %v4793_v16 = vsel %vm2978_vm1, %v4788_v30, %v4792_v42  ;;  %v4802_v30 = vrot.slane %v9617_v41, 1  ;;  %v1450_v41 = vld [vmem:[%s9425_s5 + $0x178] sm:$0xff] }
 0x195   : > { %5071 = vmatprep.mubr.bf16.mxu0 %v4795_v24  ;;  %5417 = vmatpush1.bf16.msra.mxu0 %v8531_v3  ;;  %v8535_v24 = vld [vmem:[%s9388_s25 + $0x320] sm:$0xff]   ;;  %v4799_v3 = vsel %vm2978_vm1, %v4794_v27, %v4798_v18  ;;  %v10087_v27 = vcombine.low %v9852_v51, %v9908_v49  ;;  %v4800_v49 = vrot.slane %v9651_v6, 1  ;;  %v8541_v51 = vld [vmem:[%s9388_s25 + $0x338] sm:$0xff]  }
 0x196   : > { %5418 = vmatprep.subr.bf16.mxu0 %v11780_v37 }
 0x199   : > { %5419 = vmatpush1.bf16.msra.mxu0 %v8533_v29  ;;  %v10091_v29 = vcombine.high %v9911_v39, %v9944_v60 }
 0x19a   : > { %5420 = vmatprep.subr.bf16.mxu0 %v11780_v37 }
 0x19b   : > { %2024 = vmatmul.mubr.bf16.gmra.mrb[56].mxu1 %v10069_v21 }
 0x19c   : > { %5072 = vmatmul.mubr.bf16.gmra.mrb[8].mxu0 %v4793_v16  ;;  %2030 = vmatprep.mubr.bf16.mxu1 %v10073_v9  ;;  %v4797_v16 = vsel %vm2978_vm1, %v4792_v42, %v4796_v47  ;;  %v4806_v42 = vrot.slane %v9658_v12, 1  ;;  %v1447_v12 = vld [vmem:[%s9425_s5 + $0x160] sm:$0xff] }
 0x19d   : > { %5078 = vmatprep.mubr.bf16.mxu0 %v4799_v3  ;;  %5421 = vmatpush1.bf16.msra.mxu0 %v8535_v24  ;;  %v8539_v3 = vld [vmem:[%s9388_s25 + $0x330] sm:$0xff]   ;;  %v4803_v24 = vsel %vm2978_vm1, %v4798_v18, %v4802_v30  ;;  %v10105_v18 = vcombine.low %v9911_v39, %v9944_v60  ;;  %v4804_v39 = vrot.slane %v9693_v44, 1  ;;  %v8545_v60 = vld [vmem:[%s9388_s25 + $0x348] sm:$0xff]  }
 0x19e   : > { %5422 = vmatprep.subr.bf16.mxu0 %v11780_v37  ;;  %v8547_v44 = vld [vmem:[%s9388_s25 + $0x350] sm:$0xff]  }
 0x1a1   : > { %5423 = vmatpush1.bf16.msra.mxu0 %v8537_v31  ;;  %v10109_v31 = vcombine.high %v9947_v36, %v9981_v20 }
 0x1a2   : > { %5424 = vmatprep.subr.bf16.mxu0 %v11780_v37 }
 0x1a3   : > { %2031 = vmatmul.mubr.bf16.gmra.mrb[60].mxu1 %v10087_v27 }
 0x1a4   : > { %5079 = vmatmul.mubr.bf16.gmra.mrb[12].mxu0 %v4797_v16  ;;  %2038 = vmatprep.mubr.bf16.mxu1 %v10091_v29  ;;  %v4801_v16 = vsel %vm2978_vm1, %v4796_v47, %v4800_v49  ;;  %v4810_v47 = vrot.slane %v9699_v52, 1  ;;  %v1444_v52 = vld [vmem:[%s9425_s5 + $0x148] sm:$0xff] }
 0x1a5   : > { %5086 = vmatprep.mubr.bf16.mxu0 %v4803_v24  ;;  %5425 = vmatpush1.bf16.msra.mxu0 %v8539_v3  ;;  %v8543_v24 = vld [vmem:[%s9388_s25 + $0x340] sm:$0xff]   ;;  %v4807_v3 = vsel %vm2978_vm1, %v4802_v30, %v4806_v42  ;;  %v10123_v30 = vcombine.low %v9947_v36, %v9981_v20  ;;  %v4808_v20 = vrot.slane %v9733_v23, 1 }
 0x1a6   : > { %5426 = vmatprep.subr.bf16.mxu0 %v11780_v37 }
 0x1a9   : > { %5427 = vmatpush1.bf16.msra.mxu0 %v8541_v51  ;;  %v10127_v51 = vcombine.high %v9984_v0, %v10014_v5 }
 0x1aa   : > { %5428 = vmatprep.subr.bf16.mxu0 %v11780_v37 }
 0x1ab   : > { %2039 = vmatmul.mubr.bf16.gmra.mrb[64].mxu1 %v10105_v18 }
 0x1ac   : > { %5087 = vmatmul.mubr.bf16.gmra.mrb[16].mxu0 %v4801_v16  ;;  %2045 = vmatprep.mubr.bf16.mxu1 %v10109_v31  ;;  %v4805_v16 = vsel %vm2978_vm1, %v4800_v49, %v4804_v39  ;;  %v8549_v49 = vld [vmem:[%s9388_s25 + $0x358] sm:$0xff]  }
 0x1ad   : > { %5093 = vmatprep.mubr.bf16.mxu0 %v4807_v3  ;;  %5429 = vmatpush1.bf16.msra.mxu0 %v8543_v24  ;;  %v1442_v3 = vld [vmem:[%s9425_s5 + $0x138] sm:$0xff]  ;;  %v4811_v24 = vsel %vm2978_vm1, %v4806_v42, %v4810_v47  ;;  %v10145_v42 = vcombine.low %v9984_v0, %v10014_v5  ;;  %v10163_v5 = vmax.bf16 %v11780_v37, %v1444_v52 }
 0x1ae   : > { %5430 = vmatprep.subr.bf16.mxu0 %v11780_v37  ;;  %v10137_v36 = vmax.bf16 %v11780_v37, %v1442_v3  ;;  %v4809_v3 = vsel %vm2978_vm1, %v4804_v39, %v4808_v20  ;;  %v4812_v39 = vrot.slane %v9763_v62, 1 }
 0x1b0   : > { %v4813_v52 = vsel %vm2978_vm1, %v4808_v20, %v4812_v39 }
 0x1b1   : > { %5431 = vmatpush1.bf16.msra.mxu0 %v8545_v60  ;;  %v4814_v60 = vrot.slane %v9737_v25, 1  ;;  %v1446_v25 = vld [vmem:[%s9425_s5 + $0x158] sm:$0xff] }
 0x1b2   : > { %5432 = vmatprep.subr.bf16.mxu0 %v11780_v37  ;;  %v10189_v20 = vmax.bf16 %v11780_v37, %v1446_v25 }
 0x1b3   : > { %2046 = vmatmul.mubr.bf16.gmra.mrb[68].mxu1 %v10123_v30  ;;  %v4815_v23 = vsel %vm2978_vm1, %v4810_v47, %v4814_v60  ;;  %v8553_v47 = vld [vmem:[%s9388_s25 + $0x368] sm:$0xff]  }
 0x1b4   : > { %5094 = vmatmul.mubr.bf16.gmra.mrb[20].mxu0 %v4805_v16  ;;  %2052 = vmatprep.mubr.bf16.mxu1 %v10127_v51  ;;  %v10149_v16 = vcombine.high %v10017_v28, %v10137_v36 }
 0x1b5   : > { %5100 = vmatprep.mubr.bf16.mxu0 %v4811_v24  ;;  %5433 = vmatpush1.bf16.msra.mxu0 %v8547_v44  ;;  %v1443_v24 = vld [vmem:[%s9425_s5 + $0x140] sm:$0xff] }
 0x1b6   : > { %5434 = vmatprep.subr.bf16.mxu0 %v11780_v37  ;;  %v8551_v44 = vld [vmem:[%s9388_s25 + $0x360] sm:$0xff]   ;;  %v10160_v0 = vmax.bf16 %v11780_v37, %v1443_v24 }
 0x1b8   : > { %v10175_v24 = vcombine.high %v10160_v0, %v10163_v5 }
 0x1b9   : > { %5435 = vmatpush1.bf16.msra.mxu0 %v8549_v49  ;;  %v4818_v49 = vrot.slane %v9769_v55, 1  ;;  %v4822_v55 = vrot.slane %v9820_v50, 1  ;;  %v10211_v50 = vmax.bf16 %v11780_v37, %v1447_v12  ;;  %v1449_v12 = vld [vmem:[%s9425_s5 + $0x170] sm:$0xff] }
 0x1ba   : > { %5436 = vmatprep.subr.bf16.mxu0 %v11780_v37 }
 0x1bb   : > { %2053 = vmatmul.mubr.bf16.gmra.mrb[72].mxu1 %v10145_v42  ;;  %v4819_v62 = vsel %vm2978_vm1, %v4814_v60, %v4818_v49  ;;  %v8557_v60 = vld [vmem:[%s9388_s25 + $0x378] sm:$0xff]  }
 0x1bc   : > { %5101 = vmatmul.mubr.bf16.gmra.mrb[24].mxu0 %v4809_v3  ;;  %2060 = vmatprep.mubr.bf16.mxu1 %v10149_v16  ;;  %v10171_v3 = vcombine.low %v10017_v28, %v10137_v36 }
 0x1bd   : > { %5108 = vmatprep.mubr.bf16.mxu0 %v4815_v23  ;;  %5437 = vmatpush1.bf16.msra.mxu0 %v8551_v44  ;;  %v1445_v23 = vld [vmem:[%s9425_s5 + $0x150] sm:$0xff] }
 0x1be   : > { %5438 = vmatprep.subr.bf16.mxu0 %v11780_v37  ;;  %v8555_v44 = vld [vmem:[%s9388_s25 + $0x370] sm:$0xff]   ;;  %v10186_v28 = vmax.bf16 %v11780_v37, %v1445_v23 }
 0x1c0   : > { %v10201_v23 = vcombine.high %v10186_v28, %v10189_v20 }
 0x1c1   : > { %5439 = vmatpush1.bf16.msra.mxu0 %v8553_v47  ;;  %v4816_v47 = vrot.slane %v9797_v26, 1 }
 0x1c2   : > { %5440 = vmatprep.subr.bf16.mxu0 %v11780_v37 }
 0x1c3   : > { %2061 = vmatmul.mubr.bf16.gmra.mrb[76].mxu1 %v10171_v3  ;;  %v4817_v25 = vsel %vm2978_vm1, %v4812_v39, %v4816_v47  ;;  %v4820_v39 = vrot.slane %v9857_v32, 1  ;;  %v4824_v32 = vrot.slane %v9905_v40, 1 }
 0x1c4   : > { %5109 = vmatmul.mubr.bf16.gmra.mrb[28].mxu0 %v4813_v52  ;;  %2067 = vmatprep.mubr.bf16.mxu1 %v10175_v24  ;;  %v10197_v52 = vcombine.low %v10160_v0, %v10163_v5 }
 0x1c5   : > { %5115 = vmatprep.mubr.bf16.mxu0 %v4819_v62  ;;  %5441 = vmatpush1.bf16.msra.mxu0 %v8555_v44  ;;  %v1448_v62 = vld [vmem:[%s9425_s5 + $0x168] sm:$0xff]  ;;  %v4823_v44 = vsel %vm2978_vm1, %v4818_v49, %v4822_v55  ;;  %v10220_v49 = vcombine.low %v10186_v28, %v10189_v20  ;;  %v4821_v6 = vsel %vm2978_vm1, %v4816_v47, %v4820_v39  ;;  %v2183_v47 = vshll.u32 %v9460_v1, 16 }
 0x1c6   : > { %5442 = vmatprep.subr.bf16.mxu0 %v11780_v37  ;;  %v10214_v26 = vmax.bf16 %v11780_v37, %v1448_v62  ;;  %v4829_v2 = vsel %vm2978_vm1, %v4824_v32, %v4828_v10 }
 0x1c7   : > { %11809 = vst [vmem:[#allocation64_spill] sm:$0xff] %v10220_v49  ;;  %v2185_v13 = vrot.slane %v2183_v47, 1 }
 0x1c9   : > { %5443 = vmatpush1.bf16.msra.mxu0 %v8557_v60  ;;  %v4826_v60 = vrot.slane %v9868_v14, 1  ;;  %v10236_v14 = vmax.bf16 %v11780_v37, %v1450_v41  ;;  %v2181_v41 = vshrl.u32 %v9460_v1, 16 }
 0x1ca   : > { %5853 = vmatprep.subr.bf16.mxu0 %v11780_v37 }
 0x1cb   : > { %2068 = vmatmul.mubr.bf16.gmra.mrb[80].mxu1 %v10197_v52  ;;  %v4827_v62 = vsel %vm2978_vm1, %v4822_v55, %v4826_v60  ;;  %v10243_v55 = vcombine.low %v10211_v50, %v10214_v26  ;;  %v4831_v40 = vsel %vm2978_vm1, %v4826_v60, %v4830_v38  ;;  %v2186_v46 = vor.u32 %v2185_v13, %v2181_v41 }
 0x1cc   : > { %5116 = vmatmul.mubr.bf16.gmra.mrb[32].mxu0 %v4817_v25  ;;  %2074 = vmatprep.mubr.bf16.mxu1 %v10201_v23  ;;  %v10224_v25 = vcombine.high %v10211_v50, %v10214_v26  ;;  %v2169_v60 = vshrl.u32 %v9546_v48, 16  ;;  %v2200_v13 = vshrl.u32 %v9554_v57, 16  ;;  %v2204_v41 = vshll.u32 %v9589_v17, 16 }
 0x1cd   : > { %5122 = vmatprep.mubr.bf16.mxu0 %v4823_v44  ;;  %v10233_v44 = vmax.bf16 %v11780_v37, %v1449_v12  ;;  %11811 = vst [vmem:[#allocation66_spill] sm:$0xff] %v10243_v55  ;;  %v4825_v12 = vsel %vm2978_vm1, %v4820_v39, %v4824_v32  ;;  %v4834_v39 = vrot.slane %v9864_v8, 1  ;;  %v4832_v48 = vrot.slane %v11814_v53, 1 }
 0x1ce   : > { %11810 = vst [vmem:[#allocation65_spill] sm:$0xff] %v10224_v25  ;;  %v2206_v32 = vrot.slane %v2204_v41, 1  ;;  %v8544_v41 = vld [vmem:[%s9388_s25 + $0x108] sm:$0xff]  }
 0x1cf   : > { %v10260_v47 = vcombine.low %v10233_v44, %v10236_v14  ;;  %v4835_v59 = vsel %vm2978_vm1, %v4830_v38, %v4834_v39 }
 0x1d1   : > { %11813 = vst [vmem:[#allocation68_spill] sm:$0xff] %v10260_v47 }
 0x1d3   : > { %2075 = vmatmul.mubr.bf16.gmra.mrb[84].mxu1 %v10220_v49 }
 0x1d4   : > { %5123 = vmatmul.mubr.bf16.gmra.mrb[36].mxu0 %v4821_v6  ;;  %2082 = vmatprep.mubr.bf16.mxu1 %v10224_v25  ;;  %v10247_v6 = vcombine.high %v10233_v44, %v10236_v14  ;;  %v11816_v25 = vld [vmem:[#allocation20_spill] sm:$0xff] }
 0x1d5   : > { %5130 = vmatprep.mubr.bf16.mxu0 %v4827_v62  ;;  %v2188_v62 = vshll.u32 %v9554_v57, 16  ;;  %v2192_v57 = vshrl.u32 %v9583_v15, 16  ;;  %v2196_v49 = vshll.u32 %v11816_v25, 16 }
 0x1d6   : > { %11812 = vst [vmem:[#allocation67_spill] sm:$0xff] %v10247_v6 }
 0x1d7   : > { %v2190_v45 = vrot.slane %v2188_v62, 1  ;;  %v2174_v62 = vor.u32 %v2173_v19, %v2169_v60  ;;  %v2216_v19 = vshrl.u32 %v9589_v17, 16  ;;  %v11817_v60 = vld [vmem:[#allocation21_spill] sm:$0xff]  ;;  %v4842_v17 = vrot.slane %v9953_v56, 1 }
 0x1d8   : > { %v4846_v56 = vrot.slane %v9990_v63, 1  ;;  %v8552_v63 = vld [vmem:[%s9388_s25 + $0x128] sm:$0xff]  }
 0x1d9   : > { %v2202_v1 = vor.u32 %v2200_v13, %v2190_v45  ;;  %v2198_v13 = vrot.slane %v2196_v49, 1 }
 0x1db   : > { %2083 = vmatmul.mubr.bf16.gmra.mrb[88].mxu1 %v10243_v55  ;;  %v8542_v55 = vld [vmem:[%s9388_s25 + $0x100] sm:$0xff]  }
 0x1dc   : > { %5131 = vmatmul.mubr.bf16.gmra.mrb[40].mxu0 %v4825_v12  ;;  %2089 = vmatprep.mubr.bf16.mxu1 %v10247_v6  ;;  %v2176_v12 = vshll.u32 %v9583_v15, 16  ;;  %v11815_v6 = vld [vmem:[#allocation50_spill] sm:$0xff] }
 0x1dd   : > { %5137 = vmatprep.mubr.bf16.mxu0 %v4831_v40  ;;  %v2191_v40 = vsel %vm2167_vm0, %v2186_v46, %v2190_v45  ;;  %v4838_v46 = vrot.slane %v11815_v6, 1 }
 0x1de   : > { %v2178_v8 = vrot.slane %v2176_v12, 1  ;;  %v2207_v12 = vsel %vm2167_vm0, %v2202_v1, %v2206_v32 }
 0x1df   : > { %v4839_v45 = vsel %vm2978_vm1, %v4834_v39, %v4838_v46  ;;  %v2208_v39 = vshrl.u32 %v11816_v25, 16 }
 0x1e0   : > { %v2179_v38 = vsel %vm2167_vm0, %v2174_v62, %v2178_v8  ;;  %v11818_v62 = vld [vmem:[#allocation52_spill] sm:$0xff] }
 0x1e1   : > { %v4836_v6 = vrot.slane %v11818_v62, 1 }
 0x1e3   : > { %2090 = vmatmul.mubr.bf16.gmra.mrb[92].mxu1 %v10260_v47 }
 0x1e4   : > { %5138 = vmatmul.mubr.bf16.gmra.mrb[44].mxu0 %v4829_v2  ;;  %2736 = vmatprep.mubr.bf16.mxu1 %v2191_v40  ;;  %v4833_v2 = vsel %vm2978_vm1, %v4828_v10, %v4832_v48  ;;  %v2194_v40 = vor.u32 %v2192_v57, %v2178_v8  ;;  %v2218_v10 = vor.u32 %v2216_v19, %v2206_v32  ;;  %v11820_v32 = vld [vmem:[#allocation25_spill] sm:$0xff]  ;;  %v8546_v19 = vld [vmem:[%s9388_s25 + $0x110] sm:$0xff]  }
 0x1e5   : > { %5144 = vmatprep.mubr.bf16.mxu0 %v4835_v59  ;;  %v2220_v59 = vshll.u32 %v11817_v60, 16  ;;  %v4837_v8 = vsel %vm2978_vm1, %v4832_v48, %v4836_v6  ;;  %v4840_v48 = vrot.slane %v9969_v35, 1 }
 0x1e6   : > { %v2199_v1 = vsel %vm2167_vm0, %v2194_v40, %v2198_v13 }
 0x1e7   : > { %v2222_v53 = vrot.slane %v2220_v59, 1  ;;  %v4843_v59 = vsel %vm2978_vm1, %v4838_v46, %v4842_v17 }
 0x1e9   : > { %v2223_v49 = vsel %vm2167_vm0, %v2218_v10, %v2222_v53  ;;  %v8548_v10 = vld [vmem:[%s9388_s25 + $0x118] sm:$0xff]  }
 0x1eb   : > { %2737 = vmatmul.mubr.bf16.vlgmr.msra.gmra.mrb[0].mxu1 %v2179_v38  ;;  %v2232_v38 = vshrl.u32 %v11817_v60, 16 }
 0x1ec   : > { %5145 = vmatmul.mubr.bf16.gmra.mrb[48].mxu0 %v4833_v2  ;;  %3222 = vmatpush1.bf16.msra.mxu1 %v8542_v55  ;;  %v11819_v55 = vld [vmem:[#allocation24_spill] sm:$0xff]  ;;  %v2236_v2 = vshll.u32 %v11820_v32, 16 }
 0x1ed   : > { %2744 = vmatprep.mubr.bf16.mxu1 %v2207_v12  ;;  %5152 = vmatprep.mubr.bf16.mxu0 %v4839_v45  ;;  %v2212_v57 = vshll.u32 %v11819_v55, 16  ;;  %v2210_v12 = vor.u32 %v2208_v39, %v2198_v13  ;;  %v2234_v40 = vor.u32 %v2232_v38, %v2222_v53  ;;  %v2224_v46 = vshrl.u32 %v11819_v55, 16  ;;  %v8550_v38 = vld [vmem:[%s9388_s25 + $0x120] sm:$0xff]  }
 0x1ee   : > { %3223 = vmatprep.subr.bf16.mxu1 %v11780_v37  ;;  %v4841_v13 = vsel %vm2978_vm1, %v4836_v6, %v4840_v48  ;;  %v2248_v53 = vshrl.u32 %v11820_v32, 16 }
 0x1ef   : > { %v2214_v45 = vrot.slane %v2212_v57, 1  ;;  %v11823_v57 = vld [vmem:[#allocation29_spill] sm:$0xff] }
 0x1f0   : > { %3224 = vmatpush1.bf16.msra.mxu1 %v8544_v41  ;;  %v2238_v41 = vrot.slane %v2236_v2, 1  ;;  %v4847_v2 = vsel %vm2978_vm1, %v4842_v17, %v4846_v56 }
 0x1f1   : > { %3225 = vmatprep.subr.bf16.mxu1 %v11780_v37  ;;  %v2215_v62 = vsel %vm2167_vm0, %v2210_v12, %v2214_v45 }
 0x1f2   : > { %v10304_v39 = vsel %vm2167_vm0, %v2234_v40, %v2238_v41  ;;  %v2250_v12 = vor.u32 %v2248_v53, %v2238_v41  ;;  %v2264_v41 = vshrl.u32 %v11823_v57, 16  ;;  %v11827_v53 = vld [vmem:[#allocation33_spill] sm:$0xff] }
 0x1f3   : > { %2745 = vmatmul.mubr.bf16.gmra.mrb[4].mxu1 %v2199_v1  ;;  %v11821_v1 = vld [vmem:[#allocation28_spill] sm:$0xff]  ;;  %11822 = vst [vmem:[#allocation21_spill] sm:$0xff] %v10304_v39 }
 0x1f4   : > { %5153 = vmatmul.mubr.bf16.gmra.mrb[52].mxu0 %v4837_v8  ;;  %2751 = vmatprep.mubr.bf16.mxu1 %v2223_v49  ;;  %v2228_v8 = vshll.u32 %v11821_v1, 16  ;;  %v2252_v49 = vshll.u32 %v11823_v57, 16 }
 0x1f5   : > { %5159 = vmatprep.mubr.bf16.mxu0 %v4843_v59  ;;  %3226 = vmatpush1.bf16.msra.mxu1 %v8546_v19  ;;  %v2226_v19 = vor.u32 %v2224_v46, %v2214_v45  ;;  %v4844_v59 = vrot.slane %v10004_v43, 1 }
 0x1f6   : > { %3227 = vmatprep.subr.bf16.mxu1 %v11780_v37  ;;  %v2230_v6 = vrot.slane %v2228_v8, 1  ;;  %v2254_v40 = vrot.slane %v2252_v49, 1  ;;  %v2268_v49 = vshll.u32 %v11827_v53, 16 }
 0x1f7   : > { %v4845_v46 = vsel %vm2978_vm1, %v4840_v48, %v4844_v59 }
 0x1f8   : > { %v10317_v17 = vsel %vm2167_vm0, %v2226_v19, %v2230_v6  ;;  %v10323_v8 = vsel %vm2167_vm0, %v2250_v12, %v2254_v40  ;;  %v10331_v19 = vcombine.high %v10137_v36, %v10160_v0  ;;  %v2270_v43 = vrot.slane %v2268_v49, 1  ;;  %v11833_v49 = vld [vmem:[#allocation37_spill] sm:$0xff] }
 0x1f9   : > { %3228 = vmatpush1.bf16.msra.mxu1 %v8548_v10  ;;  %v4850_v10 = vrot.slane %v10023_v4, 1  ;;  %11824 = vst [vmem:[#allocation24_spill] sm:$0xff] %v10317_v17  ;;  %11826 = vst [vmem:[#allocation25_spill] sm:$0xff] %v10323_v8  ;;  %v4848_v4 = vrot.slane %v10034_v22, 1 }
 0x1fa   : > { %3229 = vmatprep.subr.bf16.mxu1 %v11780_v37  ;;  %11828 = vst [vmem:[#allocation28_spill] sm:$0xff] %v10331_v19  ;;  %v4854_v35 = vrot.slane %v10331_v19, 1  ;;  %v10359_v19 = vcombine.high %v10163_v5, %v10186_v28 }
 0x1fb   : > { %2752 = vmatmul.mubr.bf16.gmra.mrb[8].mxu1 %v2215_v62  ;;  %v2240_v62 = vshrl.u32 %v11821_v1, 16 }
 0x1fc   : > { %5160 = vmatmul.mubr.bf16.gmra.mrb[56].mxu0 %v4841_v13  ;;  %2758 = vmatprep.mubr.bf16.mxu1 %v10304_v39  ;;  %v11825_v13 = vld [vmem:[#allocation32_spill] sm:$0xff] }
 0x1fd   : > { %5166 = vmatprep.mubr.bf16.mxu0 %v4847_v2  ;;  %3230 = vmatpush1.bf16.msra.mxu1 %v8550_v38  ;;  %v2244_v45 = vshll.u32 %v11825_v13, 16  ;;  %v8554_v38 = vld [vmem:[%s9388_s25 + $0x130] sm:$0xff]   ;;  %v4851_v2 = vsel %vm2978_vm1, %v4846_v56, %v4850_v10  ;;  %v2242_v48 = vor.u32 %v2240_v62, %v2230_v6  ;;  %v8556_v56 = vld [vmem:[%s9388_s25 + $0x138] sm:$0xff]   ;;  %v2256_v6 = vshrl.u32 %v11825_v13, 16  ;;  %v11830_v62 = vld [vmem:[#allocation36_spill] sm:$0xff] }
 0x1fe   : > { %3231 = vmatprep.subr.bf16.mxu1 %v11780_v37  ;;  %11834 = vst [vmem:[#allocation36_spill] sm:$0xff] %v10359_v19 }
 0x1ff   : > { %v2246_v12 = vrot.slane %v2244_v45, 1  ;;  %v2260_v45 = vshll.u32 %v11830_v62, 16 }
 0x201   : > { %3232 = vmatpush1.bf16.msra.mxu1 %v8552_v63  ;;  %v2266_v63 = vor.u32 %v2264_v41, %v2254_v40  ;;  %v10341_v39 = vsel %vm2167_vm0, %v2242_v48, %v2246_v12  ;;  %v10351_v40 = vcombine.low %v10137_v36, %v10160_v0  ;;  %v2280_v41 = vshrl.u32 %v11827_v53, 16  ;;  %v8558_v48 = vld [vmem:[%s9388_s25 + $0x140] sm:$0xff]  }
 0x202   : > { %3233 = vmatprep.subr.bf16.mxu1 %v11780_v37  ;;  %11829 = vst [vmem:[#allocation29_spill] sm:$0xff] %v10341_v39  ;;  %v2258_v36 = vor.u32 %v2256_v6, %v2246_v12  ;;  %v2262_v0 = vrot.slane %v2260_v45, 1  ;;  %v10375_v6 = vcombine.low %v10163_v5, %v10186_v28 }
 0x203   : > { %2759 = vmatmul.mubr.bf16.gmra.mrb[12].mxu1 %v10317_v17  ;;  %11832 = vst [vmem:[#allocation33_spill] sm:$0xff] %v10351_v40 }
 0x204   : > { %5167 = vmatmul.mubr.bf16.gmra.mrb[60].mxu0 %v4845_v46  ;;  %2766 = vmatprep.mubr.bf16.mxu1 %v10323_v8  ;;  %v4849_v46 = vsel %vm2978_vm1, %v4844_v59, %v4848_v4  ;;  %v4855_v59 = vsel %vm2978_vm1, %v4850_v10, %v4854_v35  ;;  %v8560_v10 = vld [vmem:[%s9388_s25 + $0x148] sm:$0xff]   ;;  %v4858_v8 = vrot.slane %v10359_v19, 1  ;;  %v10369_v17 = vsel %vm2167_vm0, %v2258_v36, %v2262_v0 }
 0x205   : > { %5174 = vmatprep.mubr.bf16.mxu0 %v4851_v2  ;;  %3234 = vmatpush1.bf16.msra.mxu1 %v8554_v38  ;;  %v10347_v2 = vsel %vm2167_vm0, %v2266_v63, %v2270_v43  ;;  %v2284_v38 = vshll.u32 %v11833_v49, 16  ;;  %v4852_v63 = vrot.slane %v10351_v40, 1  ;;  %11835 = vst [vmem:[#allocation37_spill] sm:$0xff] %v10369_v17  ;;  %v10387_v19 = vcombine.high %v10189_v20, %v10211_v50 }
 0x206   : > { %3235 = vmatprep.subr.bf16.mxu1 %v11780_v37  ;;  %11831 = vst [vmem:[#allocation32_spill] sm:$0xff] %v10347_v2  ;;  %v4859_v36 = vsel %vm2978_vm1, %v4854_v35, %v4858_v8  ;;  %v4856_v28 = vrot.slane %v10375_v6, 1  ;;  %v8564_v35 = vld [vmem:[%s9388_s25 + $0x158] sm:$0xff]  }
 0x207   : > { %v2286_v22 = vrot.slane %v2284_v38, 1  ;;  %v11839_v38 = vld [vmem:[#allocation41_spill] sm:$0xff]  ;;  %v4862_v40 = vrot.slane %v10387_v19, 1 }
 0x208   : > { %11840 = vst [vmem:[#allocation41_spill] sm:$0xff] %v10387_v19  ;;  %v10415_v19 = vcombine.high %v10214_v26, %v10233_v44 }
 0x209   : > { %3236 = vmatpush1.bf16.msra.mxu1 %v8556_v56  ;;  %v2282_v56 = vor.u32 %v2280_v41, %v2270_v43  ;;  %v4853_v43 = vsel %vm2978_vm1, %v4848_v4, %v4852_v63  ;;  %v2296_v41 = vshrl.u32 %v11833_v49, 16 }
 0x20a   : > { %3237 = vmatprep.subr.bf16.mxu1 %v11780_v37 }
 0x20b   : > { %2767 = vmatmul.mubr.bf16.gmra.mrb[16].mxu1 %v10341_v39  ;;  %v10379_v45 = vsel %vm2167_vm0, %v2282_v56, %v2286_v22  ;;  %v2298_v56 = vor.u32 %v2296_v41, %v2286_v22  ;;  %v10407_v22 = vcombine.low %v10189_v20, %v10211_v50  ;;  %v2312_v41 = vshrl.u32 %v11839_v38, 16 }
 0x20c   : > { %5175 = vmatmul.mubr.bf16.gmra.mrb[64].mxu0 %v4849_v46  ;;  %2773 = vmatprep.mubr.bf16.mxu1 %v10347_v2  ;;  %v2272_v46 = vshrl.u32 %v11830_v62, 16  ;;  %v11836_v2 = vld [vmem:[#allocation40_spill] sm:$0xff]  ;;  %11838 = vst [vmem:[#allocation69_spill] sm:$0xff] %v10379_v45  ;;  %v4866_v39 = vrot.slane %v10415_v19, 1 }
 0x20d   : > { %5181 = vmatprep.mubr.bf16.mxu0 %v4855_v59  ;;  %3238 = vmatpush1.bf16.msra.mxu1 %v8558_v48  ;;  %v2276_v12 = vshll.u32 %v11836_v2, 16  ;;  %11837 = vst [vmem:[#allocation40_spill] sm:$0xff] %v10375_v6  ;;  %v2300_v48 = vshll.u32 %v11839_v38, 16  ;;  %v8562_v59 = vld [vmem:[%s9388_s25 + $0x150] sm:$0xff]   ;;  %11844 = vst [vmem:[#allocation71_spill] sm:$0xff] %v10407_v22 }
 0x20e   : > { %3239 = vmatprep.subr.bf16.mxu1 %v11780_v37  ;;  %v2274_v4 = vor.u32 %v2272_v46, %v2262_v0  ;;  %v2288_v0 = vshrl.u32 %v11836_v2, 16  ;;  %v11842_v46 = vld [vmem:[#allocation45_spill] sm:$0xff] }
 0x20f   : > { %v2278_v5 = vrot.slane %v2276_v12, 1  ;;  %v2292_v12 = vshll.u32 %v11842_v46, 16 }
 0x211   : > { %3240 = vmatpush1.bf16.msra.mxu1 %v8560_v10  ;;  %v2302_v10 = vrot.slane %v2300_v48, 1  ;;  %v11845_v48 = vld [vmem:[#allocation47_spill] sm:$0xff]  ;;  %v2290_v50 = vor.u32 %v2288_v0, %v2278_v5  ;;  %v2294_v20 = vrot.slane %v2292_v12, 1  ;;  %v10435_v12 = vcombine.low %v10214_v26, %v10233_v44  ;;  %v1452_v26 = vld [vmem:[%s9425_s5 + $0x188] sm:$0xff]  ;;  %v1453_v44 = vld [vmem:[%s9425_s5 + $0x190] sm:$0xff] }
 0x212   : > { %3241 = vmatprep.subr.bf16.mxu1 %v11780_v37  ;;  %11846 = vst [vmem:[#allocation47_spill] sm:$0xff] %v10415_v19  ;;  %v11848_v0 = vld [vmem:[#allocation51_spill] sm:$0xff]  ;;  %v4867_v19 = vsel %vm2978_vm1, %v4862_v40, %v4866_v39  ;;  %v10458_v47 = vmax.bf16 %v11780_v37, %v1452_v26 }
 0x213   : > { %2774 = vmatmul.mubr.bf16.gmra.mrb[20].mxu1 %v10369_v17  ;;  %v10397_v17 = vsel %vm2167_vm0, %v2274_v4, %v2278_v5  ;;  %v8566_v4 = vld [vmem:[%s9388_s25 + $0x160] sm:$0xff]   ;;  %v2314_v6 = vor.u32 %v2312_v41, %v2302_v10  ;;  %v10429_v5 = vsel %vm2167_vm0, %v2290_v50, %v2294_v20  ;;  %11849 = vst [vmem:[#allocation51_spill] sm:$0xff] %v10435_v12  ;;  %v8570_v50 = vld [vmem:[%s9388_s25 + $0x170] sm:$0xff]  }
 0x214   : > { %5182 = vmatmul.mubr.bf16.gmra.mrb[68].mxu0 %v4853_v43  ;;  %2780 = vmatprep.mubr.bf16.mxu1 %v10379_v45  ;;  %11841 = vst [vmem:[#allocation70_spill] sm:$0xff] %v10397_v17  ;;  %v4857_v43 = vsel %vm2978_vm1, %v4852_v63, %v4856_v28  ;;  %v4863_v63 = vsel %vm2978_vm1, %v4858_v8, %v4862_v40  ;;  %v8568_v45 = vld [vmem:[%s9388_s25 + $0x168] sm:$0xff]   ;;  %11847 = vst [vmem:[#allocation72_spill] sm:$0xff] %v10429_v5 }
 0x215   : > { %5188 = vmatprep.mubr.bf16.mxu0 %v4859_v36  ;;  %3242 = vmatpush1.bf16.msra.mxu1 %v8562_v59  ;;  %v10403_v36 = vsel %vm2167_vm0, %v2298_v56, %v2302_v10  ;;  %v2316_v59 = vshll.u32 %v11845_v48, 16  ;;  %v1451_v56 = vld [vmem:[%s9425_s5 + $0x180] sm:$0xff]  ;;  %v2308_v10 = vshll.u32 %v11848_v0, 16 }
 0x216   : > { %3243 = vmatprep.subr.bf16.mxu1 %v11780_v37  ;;  %11843 = vst [vmem:[#allocation45_spill] sm:$0xff] %v10403_v36  ;;  %v10425_v25 = vmax.bf16 %v11780_v37, %v1451_v56 }
 0x217   : > { %v2318_v8 = vrot.slane %v2316_v59, 1 }
 0x219   : > { %3244 = vmatpush1.bf16.msra.mxu1 %v8564_v35  ;;  %v4860_v35 = vrot.slane %v10407_v22, 1  ;;  %v10439_v59 = vsel %vm2167_vm0, %v2314_v6, %v2318_v8  ;;  %v10447_v22 = vcombine.high %v10236_v14, %v10425_v25 }
 0x21a   : > { %3245 = vmatprep.subr.bf16.mxu1 %v11780_v37  ;;  %11850 = vst [vmem:[#allocation73_spill] sm:$0xff] %v10439_v59 }
 0x21b   : > { %2781 = vmatmul.mubr.bf16.gmra.mrb[24].mxu1 %v10397_v17  ;;  %v4861_v41 = vsel %vm2978_vm1, %v4856_v28, %v4860_v35  ;;  %v2310_v28 = vrot.slane %v2308_v10, 1  ;;  %v8572_v17 = vld [vmem:[%s9388_s25 + $0x178] sm:$0xff]   ;;  %v4870_v15 = vrot.slane %v10447_v22, 1 }
 0x21c   : > { %5189 = vmatmul.mubr.bf16.gmra.mrb[72].mxu0 %v4857_v43  ;;  %2788 = vmatprep.mubr.bf16.mxu1 %v10403_v36  ;;  %v2304_v43 = vshrl.u32 %v11842_v46, 16 }
 0x21d   : > { %5196 = vmatprep.mubr.bf16.mxu0 %v4863_v63  ;;  %3246 = vmatpush1.bf16.msra.mxu1 %v8566_v4  ;;  %v2328_v4 = vshrl.u32 %v11845_v48, 16  ;;  %v11851_v63 = vld [vmem:[#allocation53_spill] sm:$0xff]  ;;  %v4871_v26 = vsel %vm2978_vm1, %v4866_v39, %v4870_v15 }
 0x21e   : > { %3247 = vmatprep.subr.bf16.mxu1 %v11780_v37  ;;  %v2332_v56 = vshll.u32 %v11851_v63, 16  ;;  %11852 = vst [vmem:[#allocation53_spill] sm:$0xff] %v10447_v22  ;;  %v2306_v6 = vor.u32 %v2304_v43, %v2294_v20  ;;  %v2324_v43 = vshll.u32 %v9964_v61, 16 }
 0x21f   : > { %v2330_v36 = vor.u32 %v2328_v4, %v2318_v8  ;;  %v2320_v8 = vshrl.u32 %v11848_v0, 16  ;;  %v2344_v4 = vshrl.u32 %v11851_v63, 16 }
 0x220   : > { %v2334_v40 = vrot.slane %v2332_v56, 1  ;;  %v10465_v20 = vsel %vm2167_vm0, %v2306_v6, %v2310_v28  ;;  %v11857_v56 = vld [vmem:[#allocation58_spill] sm:$0xff] }
 0x221   : > { %3248 = vmatpush1.bf16.msra.mxu1 %v8568_v45  ;;  %v4864_v45 = vrot.slane %v10435_v12, 1  ;;  %11854 = vst [vmem:[#allocation75_spill] sm:$0xff] %v10465_v20 }
 0x222   : > { %3249 = vmatprep.subr.bf16.mxu1 %v11780_v37  ;;  %v10471_v10 = vsel %vm2167_vm0, %v2330_v36, %v2334_v40  ;;  %v1454_v36 = vld [vmem:[%s9425_s5 + $0x198] sm:$0xff] }
 0x223   : > { %2789 = vmatmul.mubr.bf16.gmra.mrb[28].mxu1 %v10429_v5  ;;  %v10461_v5 = vmax.bf16 %v11780_v37, %v1453_v44  ;;  %11855 = vst [vmem:[#allocation76_spill] sm:$0xff] %v10471_v10  ;;  %v2326_v44 = vrot.slane %v2324_v43, 1  ;;  %v10491_v12 = vmax.bf16 %v11780_v37, %v1454_v36  ;;  %v2360_v43 = vshrl.u32 %v11857_v56, 16 }
 0x224   : > { %5197 = vmatmul.mubr.bf16.gmra.mrb[76].mxu0 %v4861_v41  ;;  %2795 = vmatprep.mubr.bf16.mxu1 %v10439_v59  ;;  %v10475_v41 = vcombine.low %v10236_v14, %v10425_v25  ;;  %v2322_v14 = vor.u32 %v2320_v8, %v2310_v28 }
 0x225   : > { %5203 = vmatprep.mubr.bf16.mxu0 %v4867_v19  ;;  %3250 = vmatpush1.bf16.msra.mxu1 %v8570_v50  ;;  %11853 = vst [vmem:[#allocation74_spill] sm:$0xff] %v10461_v5  ;;  %v4865_v19 = vsel %vm2978_vm1, %v4860_v35, %v4864_v45  ;;  %v2348_v50 = vshll.u32 %v11857_v56, 16  ;;  %v10482_v35 = vcombine.high %v10458_v47, %v10461_v5 }
 0x226   : > { %3251 = vmatprep.subr.bf16.mxu1 %v11780_v37  ;;  %11856 = vst [vmem:[#allocation77_spill] sm:$0xff] %v10475_v41  ;;  %v4868_v6 = vrot.slane %v10475_v41, 1  ;;  %v10494_v59 = vsel %vm2167_vm0, %v2322_v14, %v2326_v44  ;;  %v10500_v28 = vcombine.low %v10458_v47, %v10461_v5  ;;  %v2352_v5 = vshrl.u32 %v9999_v58, 16 }
 0x227   : > { %11858 = vst [vmem:[#allocation58_spill] sm:$0xff] %v10482_v35  ;;  %v2350_v22 = vrot.slane %v2348_v50, 1  ;;  %v4874_v39 = vrot.slane %v10482_v35, 1 }
 0x228   : > { %11859 = vst [vmem:[#allocation78_spill] sm:$0xff] %v10500_v28  ;;  %v4869_v8 = vsel %vm2978_vm1, %v4864_v45, %v4868_v6  ;;  %v4872_v14 = vrot.slane %v10500_v28, 1  ;;  %v2372_v28 = vshll.u32 %v10051_v54, 16 }
 0x229   : > { %3252 = vmatpush1.bf16.msra.mxu1 %v8572_v17  ;;  %v2346_v17 = vor.u32 %v2344_v4, %v2334_v40  ;;  %v2364_v4 = vshll.u32 %v10008_v7, 16  ;;  %v4875_v50 = vsel %vm2978_vm1, %v4870_v15, %v4874_v39 }
 0x22a   : > { %3693 = vmatprep.subr.bf16.mxu1 %v11780_v37 }
 0x22b   : > { %2796 = vmatmul.mubr.bf16.gmra.mrb[32].mxu1 %v10465_v20  ;;  %v2336_v20 = vshrl.u32 %v9964_v61, 16  ;;  %v10504_v40 = vsel %vm2167_vm0, %v2346_v17, %v2350_v22  ;;  %v2362_v17 = vor.u32 %v2360_v43, %v2350_v22  ;;  %v2366_v35 = vrot.slane %v2364_v4, 1 }
 0x22c   : > { %5204 = vmatmul.mubr.bf16.gmra.mrb[80].mxu0 %v4865_v19  ;;  %2802 = vmatprep.mubr.bf16.mxu1 %v10471_v10  ;;  %v2340_v19 = vshll.u32 %v9999_v58, 16  ;;  %11860 = vst [vmem:[#allocation79_spill] sm:$0xff] %v10504_v40  ;;  %v4873_v10 = vsel %vm2978_vm1, %v4868_v6, %v4872_v14  ;;  %v2376_v22 = vshrl.u32 %v10008_v7, 16 }
 0x22d   : > { %5210 = vmatprep.mubr.bf16.mxu0 %v4871_v26  ;;  %v10511_v26 = vcombine.high %v10491_v12, %v10491_v12  ;;  %v2338_v36 = vor.u32 %v2336_v20, %v2326_v44  ;;  %v10528_v20 = vcombine.low %v10491_v12, %v10491_v12  ;;  %v2380_v44 = vshll.u32 %v10038_v33, 16 }
 0x22e   : > { %v2342_v45 = vrot.slane %v2340_v19, 1 }
 0x22f   : > { %11861 = vst [vmem:[#allocation80_spill] sm:$0xff] %v10511_v26  ;;  %v4878_v41 = vrot.slane %v10511_v26, 1  ;;  %11863 = vst [vmem:[#allocation82_spill] sm:$0xff] %v10528_v20  ;;  %v4876_v4 = vrot.slane %v10528_v20, 1  ;;  %v2368_v26 = vshrl.u32 %v10030_v34, 16 }
 0x230   : > { %v10518_v15 = vsel %vm2167_vm0, %v2338_v36, %v2342_v45  ;;  %v2354_v6 = vor.u32 %v2352_v5, %v2342_v45  ;;  %v2382_v36 = vrot.slane %v2380_v44, 1  ;;  %v2392_v5 = vshrl.u32 %v10038_v33, 16 }
 0x231   : > { %v4879_v19 = vsel %vm2978_vm1, %v4874_v39, %v4878_v41  ;;  %v4877_v41 = vsel %vm2978_vm1, %v4872_v14, %v4876_v4  ;;  %v2396_v39 = vshll.u32 %v10055_v11, 16  ;;  %v2374_v45 = vrot.slane %v2372_v28, 1 }
 0x232   : > { %v2384_v44 = vshrl.u32 %v10051_v54, 16  ;;  %v2412_v28 = vshll.u32 %v10073_v9, 16 }
 0x233   : > { %2803 = vmatmul.mubr.bf16.gmra.mrb[36].mxu1 %v10494_v59 }
 0x234   : > { %5211 = vmatmul.mubr.bf16.gmra.mrb[84].mxu0 %v4869_v8  ;;  %2810 = vmatprep.mubr.bf16.mxu1 %v10504_v40  ;;  %v2356_v8 = vshll.u32 %v10030_v34, 16  ;;  %v10524_v40 = vsel %vm2167_vm0, %v2362_v17, %v2366_v35 }
 0x235   : > { %5218 = vmatprep.mubr.bf16.mxu0 %v4875_v50  ;;  %11862 = vst [vmem:[#allocation81_spill] sm:$0xff] %v10524_v40  ;;  %v2378_v50 = vor.u32 %v2376_v22, %v2366_v35  ;;  %v2398_v22 = vrot.slane %v2396_v39, 1 }
 0x236   : > { %v2358_v43 = vrot.slane %v2356_v8, 1  ;;  %v2394_v8 = vor.u32 %v2392_v5, %v2382_v36  ;;  %v8561_v5 = vld [vmem:[%s9388_s25 + $0x388] sm:$0xff]  }
 0x238   : > { %v10537_v17 = vsel %vm2167_vm0, %v2354_v6, %v2358_v43  ;;  %v2370_v35 = vor.u32 %v2368_v26, %v2358_v43  ;;  %v8559_v6 = vld [vmem:[%s9388_s25 + $0x380] sm:$0xff]   ;;  %v10557_v4 = vsel %vm2167_vm0, %v2394_v8, %v2398_v22  ;;  %v2386_v26 = vor.u32 %v2384_v44, %v2374_v45  ;;  %v8563_v44 = vld [vmem:[%s9388_s25 + $0x390] sm:$0xff]  }
 0x239   : > { %11864 = vst [vmem:[#allocation83_spill] sm:$0xff] %v10537_v17  ;;  %11867 = vst [vmem:[#allocation86_spill] sm:$0xff] %v10557_v4  ;;  %v2404_v8 = vshll.u32 %v10087_v27, 16 }
 0x23a   : > { %v10551_v14 = vsel %vm2167_vm0, %v2370_v35, %v2374_v45  ;;  %v2400_v35 = vshrl.u32 %v10069_v21, 16  ;;  %v2424_v45 = vshrl.u32 %v10073_v9, 16 }
 0x23b   : > { %2811 = vmatmul.mubr.bf16.gmra.mrb[40].mxu1 %v10518_v15  ;;  %11866 = vst [vmem:[#allocation85_spill] sm:$0xff] %v10551_v14 }
 0x23c   : > { %5219 = vmatmul.mubr.bf16.gmra.mrb[88].mxu0 %v4873_v10  ;;  %2817 = vmatprep.mubr.bf16.mxu1 %v10524_v40  ;;  %v10543_v10 = vsel %vm2167_vm0, %v2378_v50, %v2382_v36  ;;  %v2408_v50 = vshrl.u32 %v10055_v11, 16 }
 0x23d   : > { %5225 = vmatprep.mubr.bf16.mxu0 %v4879_v19  ;;  %11865 = vst [vmem:[#allocation84_spill] sm:$0xff] %v10543_v10  ;;  %v2388_v19 = vshll.u32 %v10069_v21, 16 }
 0x23e   : > { %v2410_v36 = vor.u32 %v2408_v50, %v2398_v22  ;;  %v2428_v22 = vshll.u32 %v10091_v29, 16 }
 0x23f   : > { %v2390_v43 = vrot.slane %v2388_v19, 1 }
 0x241   : > { %v10568_v39 = vsel %vm2167_vm0, %v2386_v26, %v2390_v43  ;;  %v2402_v19 = vor.u32 %v2400_v35, %v2390_v43  ;;  %v8565_v26 = vld [vmem:[%s9388_s25 + $0x398] sm:$0xff]   ;;  %v2440_v43 = vshrl.u32 %v10091_v29, 16  ;;  %v8567_v35 = vld [vmem:[%s9388_s25 + $0x3a0] sm:$0xff]  }
 0x242   : > { %11868 = vst [vmem:[#allocation87_spill] sm:$0xff] %v10568_v39 }
 0x243   : > { %2818 = vmatmul.mubr.bf16.gmra.mrb[44].mxu1 %v10537_v17 }
 0x244   : > { %5226 = vmatmul.mubr.bf16.gmra.mrb[92].mxu0 %v4877_v41  ;;  %2824 = vmatprep.mubr.bf16.mxu1 %v10543_v10  ;;  %v2414_v41 = vrot.slane %v2412_v28, 1  ;;  %v2430_v28 = vrot.slane %v2428_v22, 1 }
 0x245   : > { %5444 = vmatprep.mubr.bf16.mxu0 %v11817_v60 }
 0x246   : > { %v10573_v20 = vsel %vm2167_vm0, %v2410_v36, %v2414_v41  ;;  %v2426_v50 = vor.u32 %v2424_v45, %v2414_v41  ;;  %v2444_v41 = vshll.u32 %v10109_v31, 16  ;;  %v2442_v22 = vor.u32 %v2440_v43, %v2430_v28 }
 0x247   : > { %11869 = vst [vmem:[#allocation88_spill] sm:$0xff] %v10573_v20 }
 0x24b   : > { %2825 = vmatmul.mubr.bf16.gmra.mrb[48].mxu1 %v10551_v14 }
 0x24c   : > { %5445 = vmatmul.mubr.bf16.vlgmr.msra.gmra.mrb[0].mxu0 %v11819_v55  ;;  %2832 = vmatprep.mubr.bf16.mxu1 %v10557_v4 }
 0x24d   : > { %5854 = vmatpush1.bf16.msra.mxu0 %v8559_v6  ;;  %5452 = vmatprep.mubr.bf16.mxu0 %v11820_v32  ;;  %v2406_v6 = vrot.slane %v2404_v8, 1 }
 0x24e   : > { %5855 = vmatprep.subr.bf16.mxu0 %v11780_v37 }
 0x24f   : > { %v10586_v36 = vsel %vm2167_vm0, %v2402_v19, %v2406_v6  ;;  %v8569_v19 = vld [vmem:[%s9388_s25 + $0x3a8] sm:$0xff]  }
 0x250   : > { %11870 = vst [vmem:[#allocation89_spill] sm:$0xff] %v10586_v36 }
 0x251   : > { %5856 = vmatpush1.bf16.msra.mxu0 %v8561_v5  ;;  %v2416_v5 = vshrl.u32 %v10087_v27, 16 }
 0x252   : > { %5857 = vmatprep.subr.bf16.mxu0 %v11780_v37 }
 0x253   : > { %2833 = vmatmul.mubr.bf16.gmra.mrb[52].mxu1 %v10568_v39  ;;  %v2420_v39 = vshll.u32 %v10105_v18, 16  ;;  %v2418_v8 = vor.u32 %v2416_v5, %v2406_v6  ;;  %v2460_v6 = vshll.u32 %v10127_v51, 16 }
 0x254   : > { %5453 = vmatmul.mubr.bf16.gmra.mrb[4].mxu0 %v11821_v1  ;;  %2839 = vmatprep.mubr.bf16.mxu1 %v10573_v20  ;;  %v10591_v20 = vsel %vm2167_vm0, %v2426_v50, %v2430_v28  ;;  %v8571_v28 = vld [vmem:[%s9388_s25 + $0x3b0] sm:$0xff]  }
 0x255   : > { %5459 = vmatprep.mubr.bf16.mxu0 %v11823_v57  ;;  %5858 = vmatpush1.bf16.msra.mxu0 %v8563_v44  ;;  %11871 = vst [vmem:[#allocation90_spill] sm:$0xff] %v10591_v20  ;;  %v2422_v45 = vrot.slane %v2420_v39, 1  ;;  %v2446_v44 = vrot.slane %v2444_v41, 1  ;;  %v2456_v39 = vshrl.u32 %v10109_v31, 16 }
 0x256   : > { %5859 = vmatprep.subr.bf16.mxu0 %v11780_v37 }
 0x257   : > { %v10604_v50 = vsel %vm2167_vm0, %v2418_v8, %v2422_v45  ;;  %v2458_v41 = vor.u32 %v2456_v39, %v2446_v44  ;;  %v8573_v8 = vld [vmem:[%s9388_s25 + $0x3b8] sm:$0xff]  }
 0x258   : > { %11872 = vst [vmem:[#allocation91_spill] sm:$0xff] %v10604_v50 }
 0x259   : > { %5860 = vmatpush1.bf16.msra.mxu0 %v8565_v26  ;;  %v2432_v26 = vshrl.u32 %v10105_v18, 16 }
 0x25a   : > { %5861 = vmatprep.subr.bf16.mxu0 %v11780_v37 }
 0x25b   : > { %2840 = vmatmul.mubr.bf16.gmra.mrb[56].mxu1 %v10586_v36  ;;  %v2436_v36 = vshll.u32 %v10123_v30, 16  ;;  %v2434_v5 = vor.u32 %v2432_v26, %v2422_v45  ;;  %v2476_v45 = vshll.u32 %v10149_v16, 16 }
 0x25c   : > { %5460 = vmatmul.mubr.bf16.gmra.mrb[8].mxu0 %v11825_v13  ;;  %2846 = vmatprep.mubr.bf16.mxu1 %v10591_v20  ;;  %v10609_v20 = vsel %vm2167_vm0, %v2442_v22, %v2446_v44  ;;  %v8575_v44 = vld [vmem:[%s9388_s25 + $0x3c0] sm:$0xff]  }
 0x25d   : > { %5466 = vmatprep.mubr.bf16.mxu0 %v11827_v53  ;;  %5862 = vmatpush1.bf16.msra.mxu0 %v8567_v35  ;;  %11873 = vst [vmem:[#allocation92_spill] sm:$0xff] %v10609_v20  ;;  %v2438_v43 = vrot.slane %v2436_v36, 1  ;;  %v2462_v35 = vrot.slane %v2460_v6, 1  ;;  %v2472_v36 = vshrl.u32 %v10127_v51, 16 }
 0x25e   : > { %5863 = vmatprep.subr.bf16.mxu0 %v11780_v37 }
 0x25f   : > { %v10622_v22 = vsel %vm2167_vm0, %v2434_v5, %v2438_v43  ;;  %v2474_v6 = vor.u32 %v2472_v36, %v2462_v35  ;;  %v8577_v5 = vld [vmem:[%s9388_s25 + $0x3c8] sm:$0xff]  }
 0x260   : > { %11874 = vst [vmem:[#allocation93_spill] sm:$0xff] %v10622_v22 }
 0x261   : > { %5864 = vmatpush1.bf16.msra.mxu0 %v8569_v19  ;;  %v2448_v19 = vshrl.u32 %v10123_v30, 16 }
 0x262   : > { %5865 = vmatprep.subr.bf16.mxu0 %v11780_v37 }
 0x263   : > { %2847 = vmatmul.mubr.bf16.gmra.mrb[60].mxu1 %v10604_v50  ;;  %v2452_v50 = vshll.u32 %v10145_v42, 16  ;;  %v2450_v26 = vor.u32 %v2448_v19, %v2438_v43  ;;  %v2492_v43 = vshll.u32 %v10175_v24, 16 }
 0x264   : > { %5467 = vmatmul.mubr.bf16.gmra.mrb[12].mxu0 %v11830_v62  ;;  %2854 = vmatprep.mubr.bf16.mxu1 %v10609_v20  ;;  %v10627_v20 = vsel %vm2167_vm0, %v2458_v41, %v2462_v35  ;;  %v8579_v35 = vld [vmem:[%s9388_s25 + $0x3d0] sm:$0xff]  }
 0x265   : > { %5474 = vmatprep.mubr.bf16.mxu0 %v11833_v49  ;;  %5866 = vmatpush1.bf16.msra.mxu0 %v8571_v28  ;;  %11875 = vst [vmem:[#allocation94_spill] sm:$0xff] %v10627_v20  ;;  %v2454_v39 = vrot.slane %v2452_v50, 1  ;;  %v2478_v28 = vrot.slane %v2476_v45, 1  ;;  %v2488_v50 = vshrl.u32 %v10149_v16, 16 }
 0x266   : > { %5867 = vmatprep.subr.bf16.mxu0 %v11780_v37 }
 0x267   : > { %v10640_v41 = vsel %vm2167_vm0, %v2450_v26, %v2454_v39  ;;  %v2490_v45 = vor.u32 %v2488_v50, %v2478_v28  ;;  %v8581_v26 = vld [vmem:[%s9388_s25 + $0x3d8] sm:$0xff]  }
 0x268   : > { %11876 = vst [vmem:[#allocation95_spill] sm:$0xff] %v10640_v41 }
 0x269   : > { %5868 = vmatpush1.bf16.msra.mxu0 %v8573_v8  ;;  %v2464_v8 = vshrl.u32 %v10145_v42, 16 }
 0x26a   : > { %5869 = vmatprep.subr.bf16.mxu0 %v11780_v37 }
 0x26b   : > { %2855 = vmatmul.mubr.bf16.gmra.mrb[64].mxu1 %v10622_v22  ;;  %v2468_v22 = vshll.u32 %v10171_v3, 16  ;;  %v2466_v19 = vor.u32 %v2464_v8, %v2454_v39  ;;  %v2508_v39 = vshll.u32 %v10201_v23, 16 }
 0x26c   : > { %5475 = vmatmul.mubr.bf16.gmra.mrb[16].mxu0 %v11836_v2  ;;  %2861 = vmatprep.mubr.bf16.mxu1 %v10627_v20  ;;  %v10645_v20 = vsel %vm2167_vm0, %v2474_v6, %v2478_v28  ;;  %v8583_v28 = vld [vmem:[%s9388_s25 + $0x3e0] sm:$0xff]  }
 0x26d   : > { %5481 = vmatprep.mubr.bf16.mxu0 %v11839_v38  ;;  %5870 = vmatpush1.bf16.msra.mxu0 %v8575_v44  ;;  %11877 = vst [vmem:[#allocation96_spill] sm:$0xff] %v10645_v20  ;;  %v2470_v36 = vrot.slane %v2468_v22, 1  ;;  %v2494_v44 = vrot.slane %v2492_v43, 1  ;;  %v2504_v22 = vshrl.u32 %v10175_v24, 16 }
 0x26e   : > { %5871 = vmatprep.subr.bf16.mxu0 %v11780_v37 }
 0x26f   : > { %v10658_v6 = vsel %vm2167_vm0, %v2466_v19, %v2470_v36  ;;  %v2506_v43 = vor.u32 %v2504_v22, %v2494_v44  ;;  %v8585_v19 = vld [vmem:[%s9388_s25 + $0x3e8] sm:$0xff]  }
 0x270   : > { %11878 = vst [vmem:[#allocation97_spill] sm:$0xff] %v10658_v6 }
 0x271   : > { %5872 = vmatpush1.bf16.msra.mxu0 %v8577_v5  ;;  %v2480_v5 = vshrl.u32 %v10171_v3, 16 }
 0x272   : > { %5873 = vmatprep.subr.bf16.mxu0 %v11780_v37 }
 0x273   : > { %2862 = vmatmul.mubr.bf16.gmra.mrb[68].mxu1 %v10640_v41  ;;  %v2484_v41 = vshll.u32 %v10197_v52, 16  ;;  %v2482_v8 = vor.u32 %v2480_v5, %v2470_v36  ;;  %v11883_v36 = vld [vmem:[#allocation65_spill] sm:$0xff]  ;;  %v8587_v5 = vld [vmem:[%s9388_s25 + $0x3f0] sm:$0xff]  }
 0x274   : > { %5482 = vmatmul.mubr.bf16.gmra.mrb[20].mxu0 %v11842_v46  ;;  %2868 = vmatprep.mubr.bf16.mxu1 %v10645_v20  ;;  %v10663_v20 = vsel %vm2167_vm0, %v2490_v45, %v2494_v44  ;;  %v2524_v44 = vshll.u32 %v11883_v36, 16 }
 0x275   : > { %5488 = vmatprep.mubr.bf16.mxu0 %v11845_v48  ;;  %5874 = vmatpush1.bf16.msra.mxu0 %v8579_v35  ;;  %11879 = vst [vmem:[#allocation98_spill] sm:$0xff] %v10663_v20  ;;  %v2486_v50 = vrot.slane %v2484_v41, 1  ;;  %v2510_v35 = vrot.slane %v2508_v39, 1  ;;  %v2520_v41 = vshrl.u32 %v10201_v23, 16 }
 0x276   : > { %5875 = vmatprep.subr.bf16.mxu0 %v11780_v37 }
 0x277   : > { %v10676_v45 = vsel %vm2167_vm0, %v2482_v8, %v2486_v50  ;;  %v2526_v8 = vrot.slane %v2524_v44, 1 }
 0x278   : > { %11880 = vst [vmem:[#allocation99_spill] sm:$0xff] %v10676_v45 }
 0x279   : > { %5876 = vmatpush1.bf16.msra.mxu0 %v8581_v26  ;;  %v2496_v26 = vshrl.u32 %v10197_v52, 16 }
 0x27a   : > { %5877 = vmatprep.subr.bf16.mxu0 %v11780_v37 }
 0x27b   : > { %2869 = vmatmul.mubr.bf16.gmra.mrb[72].mxu1 %v10658_v6  ;;  %v11881_v6 = vld [vmem:[#allocation64_spill] sm:$0xff]  ;;  %v2498_v22 = vor.u32 %v2496_v26, %v2486_v50  ;;  %v11887_v50 = vld [vmem:[#allocation67_spill] sm:$0xff] }
 0x27c   : > { %5489 = vmatmul.mubr.bf16.gmra.mrb[24].mxu0 %v11848_v0  ;;  %2876 = vmatprep.mubr.bf16.mxu1 %v10663_v20  ;;  %v2500_v4 = vshll.u32 %v11881_v6, 16  ;;  %v10681_v20 = vsel %vm2167_vm0, %v2506_v43, %v2510_v35  ;;  %v8589_v43 = vld [vmem:[%s9388_s25 + $0x3f8] sm:$0xff]   ;;  %v2512_v14 = vshrl.u32 %v11881_v6, 16  ;;  %v2540_v26 = vshll.u32 %v11887_v50, 16 }
 0x27d   : > { %5496 = vmatprep.mubr.bf16.mxu0 %v11851_v63  ;;  %5878 = vmatpush1.bf16.msra.mxu0 %v8583_v28  ;;  %11882 = vst [vmem:[#allocation64_spill] sm:$0xff] %v10681_v20  ;;  %v2522_v28 = vor.u32 %v2520_v41, %v2510_v35 }
 0x27e   : > { %5879 = vmatprep.subr.bf16.mxu0 %v11780_v37  ;;  %v2502_v39 = vrot.slane %v2500_v4, 1  ;;  %v2536_v4 = vshrl.u32 %v11883_v36, 16 }
 0x27f   : > { %v10699_v17 = vsel %vm2167_vm0, %v2522_v28, %v2526_v8 }
 0x280   : > { %v2514_v35 = vor.u32 %v2512_v14, %v2502_v39  ;;  %v2538_v44 = vor.u32 %v2536_v4, %v2526_v8  ;;  %v10727_v4 = vcombine.low %v10425_v25, %v10425_v25 }
 0x281   : > { %5880 = vmatpush1.bf16.msra.mxu0 %v8585_v19  ;;  %v10694_v19 = vsel %vm2167_vm0, %v2498_v22, %v2502_v39  ;;  %v10710_v22 = vcombine.high %v10425_v25, %v10425_v25 }
 0x282   : > { %5881 = vmatprep.subr.bf16.mxu0 %v11780_v37  ;;  %11884 = vst [vmem:[#allocation65_spill] sm:$0xff] %v10694_v19 }
 0x283   : > { %2877 = vmatmul.mubr.bf16.gmra.mrb[76].mxu1 %v10676_v45  ;;  %v11885_v45 = vld [vmem:[#allocation66_spill] sm:$0xff]  ;;  %v2556_v14 = vshll.u32 %v10710_v22, 16 }
 0x284   : > { %5497 = vmatmul.mubr.bf16.gmra.mrb[28].mxu0 %v9964_v61  ;;  %2883 = vmatprep.mubr.bf16.mxu1 %v10681_v20  ;;  %v2516_v10 = vshll.u32 %v11885_v45, 16  ;;  %11886 = vst [vmem:[#allocation66_spill] sm:$0xff] %v10699_v17 }
 0x285   : > { %5503 = vmatprep.mubr.bf16.mxu0 %v11857_v56  ;;  %5882 = vmatpush1.bf16.msra.mxu0 %v8587_v5  ;;  %v2542_v5 = vrot.slane %v2540_v26, 1 }
 0x286   : > { %5883 = vmatprep.subr.bf16.mxu0 %v11780_v37  ;;  %v2518_v41 = vrot.slane %v2516_v10, 1  ;;  %v2552_v10 = vshrl.u32 %v11887_v50, 16 }
 0x287   : > { %v10718_v40 = vsel %vm2167_vm0, %v2538_v44, %v2542_v5 }
 0x288   : > { %v10713_v28 = vsel %vm2167_vm0, %v2514_v35, %v2518_v41  ;;  %v10730_v26 = vor.u32 %v2552_v10, %v2542_v5  ;;  %v2558_v35 = vrot.slane %v2556_v14, 1  ;;  %v11894_v14 = vld [vmem:[#allocation13_spill] sm:$0xff] }
 0x289   : > { %5884 = vmatpush1.bf16.msra.mxu0 %v8589_v43  ;;  %11888 = vst [vmem:[#allocation67_spill] sm:$0xff] %v10713_v28  ;;  %v2528_v43 = vshrl.u32 %v11885_v45, 16 }
 0x28a   : > { %6247 = vmatprep.subr.bf16.mxu0 %v11780_v37  ;;  %11891 = vst [vmem:[#allocation100_spill] sm:$0xff] %v10730_v26 }
 0x28b   : > { %2884 = vmatmul.mubr.bf16.gmra.mrb[80].mxu1 %v10694_v19  ;;  %v11889_v19 = vld [vmem:[#allocation68_spill] sm:$0xff]  ;;  %v2530_v39 = vor.u32 %v2528_v43, %v2518_v41  ;;  %v2559_v41 = vsel %vm2167_vm0, %v10730_v26, %v2558_v35 }
 0x28c   : > { %5504 = vmatmul.mubr.bf16.gmra.mrb[32].mxu0 %v9999_v58  ;;  %2890 = vmatprep.mubr.bf16.mxu1 %v10699_v17  ;;  %v2532_v20 = vshll.u32 %v11889_v19, 16  ;;  %11890 = vst [vmem:[#allocation68_spill] sm:$0xff] %v10718_v40  ;;  %v2548_v17 = vshll.u32 %v10727_v4, 16  ;;  %v11893_v43 = vld [vmem:[#allocation4_spill] sm:$0xff] }
 0x28d   : > { %5510 = vmatprep.mubr.bf16.mxu0 %v10008_v7  ;;  %v2982_v10 = vrot.slane %v11893_v43, 1  ;;  %v8574_v26 = vld [vmem:[%s9388_s25 + $0x180] sm:$0xff]  }
 0x28e   : > { %v2534_v8 = vrot.slane %v2532_v20, 1  ;;  %v2550_v5 = vrot.slane %v2548_v17, 1 }
 0x290   : > { %v10733_v44 = vsel %vm2167_vm0, %v2530_v39, %v2534_v8  ;;  %v2983_v39 = vrot.slane %v11894_v14, 1 }
 0x291   : > { %11892 = vst [vmem:[#allocation101_spill] sm:$0xff] %v10733_v44 }
 0x292   : > { %v2984_v35 = vsel %vm2978_vm1, %v2982_v10, %v2983_v39 }
 0x293   : > { %2891 = vmatmul.mubr.bf16.gmra.mrb[84].mxu1 %v10713_v28  ;;  %v2544_v28 = vshrl.u32 %v11889_v19, 16 }
 0x294   : > { %5511 = vmatmul.mubr.bf16.gmra.mrb[36].mxu0 %v10030_v34  ;;  %2898 = vmatprep.mubr.bf16.mxu1 %v10718_v40 }
 0x295   : > { %5518 = vmatprep.mubr.bf16.mxu0 %v10038_v33  ;;  %v10741_v20 = vor.u32 %v2544_v28, %v2534_v8  ;;  %v11896_v8 = vld [vmem:[#allocation16_spill] sm:$0xff] }
 0x296   : > { %v2980_v17 = vrot.slane %v11896_v8, 1  ;;  %v8580_v8 = vld [vmem:[%s9388_s25 + $0x198] sm:$0xff]  }
 0x297   : > { %v2551_v40 = vsel %vm2167_vm0, %v10741_v20, %v2550_v5 }
 0x29b   : > { %2899 = vmatmul.mubr.bf16.gmra.mrb[88].mxu1 %v10733_v44  ;;  %v11897_v44 = vld [vmem:[#allocation17_spill] sm:$0xff] }
 0x29c   : > { %5519 = vmatmul.mubr.bf16.gmra.mrb[40].mxu0 %v10051_v54  ;;  %2905 = vmatprep.mubr.bf16.mxu1 %v2559_v41  ;;  %v11895_v41 = vld [vmem:[#allocation12_spill] sm:$0xff]  ;;  %v2987_v43 = vrot.slane %v11897_v44, 1 }
 0x29d   : > { %5525 = vmatprep.mubr.bf16.mxu0 %v10055_v11  ;;  %v2979_v28 = vrot.slane %v11895_v41, 1  ;;  %v2991_v41 = vrot.slane %v11817_v60, 1  ;;  %v2995_v60 = vrot.slane %v11820_v32, 1  ;;  %v2999_v32 = vrot.slane %v11823_v57, 1 }
 0x29e   : > { %v2988_v5 = vsel %vm2978_vm1, %v2983_v39, %v2987_v43  ;;  %v3003_v57 = vrot.slane %v11827_v53, 1  ;;  %v3007_v53 = vrot.slane %v11833_v49, 1  ;;  %v3011_v49 = vrot.slane %v11839_v38, 1 }
 0x29f   : > { %v2981_v14 = vsel %vm2978_vm1, %v2979_v28, %v2980_v17  ;;  %v2992_v39 = vsel %vm2978_vm1, %v2987_v43, %v2991_v41  ;;  %v2989_v28 = vrot.slane %v11819_v55, 1  ;;  %v10775_v43 = vsel %vm2978_vm1, %v2991_v41, %v2995_v60  ;;  %v8588_v41 = vld [vmem:[%s9388_s25 + $0x1b8] sm:$0xff]  }
 0x2a0   : > { %v2993_v55 = vrot.slane %v11821_v1, 1  ;;  %v2997_v1 = vrot.slane %v11825_v13, 1  ;;  %v3001_v13 = vrot.slane %v11830_v62, 1  ;;  %v3005_v62 = vrot.slane %v11836_v2, 1 }
 0x2a1   : > { %v3009_v2 = vrot.slane %v11842_v46, 1  ;;  %v3015_v38 = vrot.slane %v11845_v48, 1  ;;  %v3013_v46 = vrot.slane %v11848_v0, 1  ;;  %v3019_v48 = vrot.slane %v11851_v63, 1 }
 0x2a2   : > { %v3017_v0 = vrot.slane %v9964_v61, 1  ;;  %v3023_v63 = vrot.slane %v11857_v56, 1  ;;  %v1456_v61 = vld [vmem:[%s9425_s5 + $0x1a8] sm:$0xff]  ;;  %v3021_v56 = vrot.slane %v9999_v58, 1  ;;  %v3025_v58 = vrot.slane %v10030_v34, 1 }
 0x2a3   : > { %2906 = vmatmul.mubr.bf16.gmra.mrb[92].mxu1 %v2551_v40  ;;  %v11898_v40 = vld [vmem:[#allocation20_spill] sm:$0xff]  ;;  %v3029_v34 = vrot.slane %v10051_v54, 1  ;;  %v3033_v54 = vrot.slane %v10069_v21, 1 }
 0x2a4   : > { %5526 = vmatmul.mubr.bf16.gmra.mrb[44].mxu0 %v10069_v21  ;;  %3253 = vmatprep.mubr.bf16.mxu1 %v2984_v35  ;;  %v2985_v10 = vrot.slane %v11898_v40, 1  ;;  %v8576_v35 = vld [vmem:[%s9388_s25 + $0x188] sm:$0xff]   ;;  %v10787_v40 = vsel %vm2978_vm1, %v2989_v28, %v2993_v55 }
 0x2a5   : > { %5532 = vmatprep.mubr.bf16.mxu0 %v10073_v9  ;;  %v11905_v21 = vld [vmem:[#allocation29_spill] sm:$0xff] }
 0x2a6   : > { %v2986_v44 = vsel %vm2978_vm1, %v2980_v17, %v2985_v10  ;;  %v2990_v17 = vsel %vm2978_vm1, %v2985_v10, %v2989_v28  ;;  %v10790_v10 = vsel %vm2978_vm1, %v2995_v60, %v2999_v32  ;;  %v8592_v28 = vld [vmem:[%s9388_s25 + $0x1c8] sm:$0xff]   ;;  %v10819_v60 = vsel %vm2978_vm1, %v2997_v1, %v3001_v13 }
 0x2ab   : > { %3254 = vmatmul.mubr.bf16.vlgmr.msra.gmra.mrb[0].mxu1 %v2981_v14  ;;  %v8582_v14 = vld [vmem:[%s9388_s25 + $0x1a0] sm:$0xff]  }
 0x2ac   : > { %5533 = vmatmul.mubr.bf16.gmra.mrb[48].mxu0 %v10087_v27  ;;  %3694 = vmatpush1.bf16.msra.mxu1 %v8574_v26  ;;  %v8578_v26 = vld [vmem:[%s9388_s25 + $0x190] sm:$0xff]  }
 0x2ad   : > { %3261 = vmatprep.mubr.bf16.mxu1 %v2988_v5  ;;  %5540 = vmatprep.mubr.bf16.mxu0 %v10091_v29  ;;  %v8584_v5 = vld [vmem:[%s9388_s25 + $0x1a8] sm:$0xff]  }
 0x2ae   : > { %3695 = vmatprep.subr.bf16.mxu1 %v11780_v37 }
 0x2b0   : > { %3696 = vmatpush1.bf16.msra.mxu1 %v8576_v35  ;;  %v8586_v35 = vld [vmem:[%s9388_s25 + $0x1b0] sm:$0xff]  }
 0x2b1   : > { %3697 = vmatprep.subr.bf16.mxu1 %v11780_v37 }
 0x2b3   : > { %3262 = vmatmul.mubr.bf16.gmra.mrb[4].mxu1 %v2986_v44  ;;  %v10803_v44 = vsel %vm2978_vm1, %v2993_v55, %v2997_v1  ;;  %v10835_v55 = vsel %vm2978_vm1, %v3001_v13, %v3005_v62  ;;  %v10851_v1 = vsel %vm2978_vm1, %v3005_v62, %v3009_v2  ;;  %v10867_v13 = vsel %vm2978_vm1, %v3009_v2, %v3013_v46  ;;  %v1455_v2 = vld [vmem:[%s9425_s5 + $0x1a0] sm:$0xff] }
 0x2b4   : > { %5541 = vmatmul.mubr.bf16.gmra.mrb[52].mxu0 %v10105_v18  ;;  %3268 = vmatprep.mubr.bf16.mxu1 %v2992_v39  ;;  %v10806_v39 = vsel %vm2978_vm1, %v2999_v32, %v3003_v57  ;;  %v10838_v32 = vsel %vm2978_vm1, %v3007_v53, %v3011_v49  ;;  %v10888_v62 = vcombine.low %v10425_v25, %v10458_v47 }
 0x2b5   : > { %5547 = vmatprep.mubr.bf16.mxu0 %v10109_v31  ;;  %3698 = vmatpush1.bf16.msra.mxu1 %v8578_v26  ;;  %v8590_v26 = vld [vmem:[%s9388_s25 + $0x1c0] sm:$0xff]  }
 0x2b6   : > { %3699 = vmatprep.subr.bf16.mxu1 %v11780_v37  ;;  %11899 = vst [vmem:[#allocation4_spill] sm:$0xff] %v10888_v62 }
 0x2b9   : > { %3700 = vmatpush1.bf16.msra.mxu1 %v8580_v8  ;;  %v10822_v8 = vsel %vm2978_vm1, %v3003_v57, %v3007_v53  ;;  %v10854_v57 = vsel %vm2978_vm1, %v3011_v49, %v3015_v38  ;;  %v10870_v53 = vsel %vm2978_vm1, %v3015_v38, %v3019_v48  ;;  %v10891_v49 = vsel %vm2978_vm1, %v3019_v48, %v3023_v63 }
 0x2ba   : > { %3701 = vmatprep.subr.bf16.mxu1 %v11780_v37  ;;  %v1511_v38 = vmax.bf16 %v11780_v37, %v1456_v61 }
 0x2bb   : > { %3269 = vmatmul.mubr.bf16.gmra.mrb[8].mxu1 %v2990_v17  ;;  %v8594_v17 = vld [vmem:[%s9388_s25 + $0x1d0] sm:$0xff]  }
 0x2bc   : > { %5548 = vmatmul.mubr.bf16.gmra.mrb[56].mxu0 %v10123_v30  ;;  %3275 = vmatprep.mubr.bf16.mxu1 %v10775_v43 }
 0x2bd   : > { %5554 = vmatprep.mubr.bf16.mxu0 %v10127_v51  ;;  %3702 = vmatpush1.bf16.msra.mxu1 %v8582_v14  ;;  %v8596_v14 = vld [vmem:[%s9388_s25 + $0x1d8] sm:$0xff]  }
 0x2be   : > { %3703 = vmatprep.subr.bf16.mxu1 %v11780_v37 }
 0x2c1   : > { %3704 = vmatpush1.bf16.msra.mxu1 %v8584_v5  ;;  %v8598_v5 = vld [vmem:[%s9388_s25 + $0x1e0] sm:$0xff]  }
 0x2c2   : > { %3705 = vmatprep.subr.bf16.mxu1 %v11780_v37 }
 0x2c3   : > { %3276 = vmatmul.mubr.bf16.gmra.mrb[12].mxu1 %v10787_v40 }
 0x2c4   : > { %5555 = vmatmul.mubr.bf16.gmra.mrb[60].mxu0 %v10145_v42  ;;  %3283 = vmatprep.mubr.bf16.mxu1 %v10790_v10 }
 0x2c5   : > { %5562 = vmatprep.mubr.bf16.mxu0 %v10149_v16  ;;  %3706 = vmatpush1.bf16.msra.mxu1 %v8586_v35  ;;  %v8600_v35 = vld [vmem:[%s9388_s25 + $0x1e8] sm:$0xff]  }
 0x2c6   : > { %3707 = vmatprep.subr.bf16.mxu1 %v11780_v37 }
 0x2c9   : > { %3708 = vmatpush1.bf16.msra.mxu1 %v8588_v41  ;;  %v8602_v41 = vld [vmem:[%s9388_s25 + $0x1f0] sm:$0xff]  }
 0x2ca   : > { %3709 = vmatprep.subr.bf16.mxu1 %v11780_v37 }
 0x2cb   : > { %3284 = vmatmul.mubr.bf16.gmra.mrb[16].mxu1 %v10803_v44 }
 0x2cc   : > { %5563 = vmatmul.mubr.bf16.gmra.mrb[64].mxu0 %v10171_v3  ;;  %3290 = vmatprep.mubr.bf16.mxu1 %v10806_v39 }
 0x2cd   : > { %5569 = vmatprep.mubr.bf16.mxu0 %v10175_v24  ;;  %3710 = vmatpush1.bf16.msra.mxu1 %v8590_v26  ;;  %v8604_v26 = vld [vmem:[%s9388_s25 + $0x1f8] sm:$0xff]  }
 0x2ce   : > { %3711 = vmatprep.subr.bf16.mxu1 %v11780_v37 }
 0x2d1   : > { %3712 = vmatpush1.bf16.msra.mxu1 %v8592_v28  ;;  %v10874_v28 = vcombine.high %v10425_v25, %v10458_v47  ;;  %v3027_v25 = vrot.slane %v10008_v7, 1  ;;  %v1510_v47 = vmax.bf16 %v11780_v37, %v1455_v2  ;;  %v3031_v7 = vrot.slane %v10038_v33, 1  ;;  %v8591_v2 = vld [vmem:[%s9388_s25 + $0x400] sm:$0xff]  }
 0x2d2   : > { %3713 = vmatprep.subr.bf16.mxu1 %v11780_v37  ;;  %v3035_v33 = vrot.slane %v10055_v11, 1  ;;  %v3039_v11 = vrot.slane %v10073_v9, 1  ;;  %v3037_v9 = vrot.slane %v10087_v27, 1  ;;  %v11907_v27 = vld [vmem:[#allocation37_spill] sm:$0xff] }
 0x2d3   : > { %3291 = vmatmul.mubr.bf16.gmra.mrb[20].mxu1 %v10819_v60  ;;  %v10917_v48 = vcombine.high %v1510_v47, %v1511_v38 }
 0x2d4   : > { %5570 = vmatmul.mubr.bf16.gmra.mrb[68].mxu0 %v10197_v52  ;;  %3297 = vmatprep.mubr.bf16.mxu1 %v10822_v8  ;;  %v10944_v61 = vsel %vm2978_vm1, %v3031_v7, %v3035_v33 }
 0x2d5   : > { %5576 = vmatprep.mubr.bf16.mxu0 %v10201_v23  ;;  %3714 = vmatpush1.bf16.msra.mxu1 %v8594_v17  ;;  %v10884_v17 = vsel %vm2978_vm1, %v3013_v46, %v3017_v0  ;;  %v10915_v46 = vsel %vm2978_vm1, %v3023_v63, %v3027_v25  ;;  %v11902_v63 = vld [vmem:[#allocation21_spill] sm:$0xff] }
 0x2d6   : > { %3715 = vmatprep.subr.bf16.mxu1 %v11780_v37 }
 0x2d9   : > { %3716 = vmatpush1.bf16.msra.mxu1 %v8596_v14  ;;  %v11900_v14 = vld [vmem:[#allocation74_spill] sm:$0xff] }
 0x2da   : > { %3717 = vmatprep.subr.bf16.mxu1 %v11780_v37 }
 0x2db   : > { %3298 = vmatmul.mubr.bf16.gmra.mrb[24].mxu1 %v10835_v55 }
 0x2dc   : > { %5577 = vmatmul.mubr.bf16.gmra.mrb[72].mxu0 %v11881_v6  ;;  %3305 = vmatprep.mubr.bf16.mxu1 %v10838_v32 }
 0x2dd   : > { %5584 = vmatprep.mubr.bf16.mxu0 %v11883_v36  ;;  %3718 = vmatpush1.bf16.msra.mxu1 %v8598_v5  ;;  %v10895_v5 = vcombine.high %v11900_v14, %v10491_v12 }
 0x2de   : > { %3719 = vmatprep.subr.bf16.mxu1 %v11780_v37 }
 0x2df   : > { %11901 = vst [vmem:[#allocation13_spill] sm:$0xff] %v10895_v5 }
 0x2e1   : > { %3720 = vmatpush1.bf16.msra.mxu1 %v8600_v35  ;;  %v10908_v35 = vsel %vm2978_vm1, %v3017_v0, %v3021_v56  ;;  %v10931_v0 = vsel %vm2978_vm1, %v3027_v25, %v3031_v7  ;;  %v11904_v25 = vld [vmem:[#allocation25_spill] sm:$0xff]  ;;  %v8595_v7 = vld [vmem:[%s9388_s25 + $0x410] sm:$0xff]  }
 0x2e2   : > { %3721 = vmatprep.subr.bf16.mxu1 %v11780_v37 }
 0x2e3   : > { %3306 = vmatmul.mubr.bf16.gmra.mrb[28].mxu1 %v10851_v1 }
 0x2e4   : > { %5585 = vmatmul.mubr.bf16.gmra.mrb[76].mxu0 %v11885_v45  ;;  %3312 = vmatprep.mubr.bf16.mxu1 %v10854_v57 }
 0x2e5   : > { %5591 = vmatprep.mubr.bf16.mxu0 %v11887_v50  ;;  %3722 = vmatpush1.bf16.msra.mxu1 %v8602_v41  ;;  %v10912_v41 = vcombine.low %v11900_v14, %v10491_v12  ;;  %v10926_v12 = vsel %vm2978_vm1, %v3021_v56, %v3025_v58  ;;  %v10940_v14 = vsel %vm2978_vm1, %v3025_v58, %v3029_v34  ;;  %v11903_v56 = vld [vmem:[#allocation24_spill] sm:$0xff] }
 0x2e6   : > { %3723 = vmatprep.subr.bf16.mxu1 %v11780_v37  ;;  %v10958_v58 = vsel %vm2978_vm1, %v3035_v33, %v3039_v11  ;;  %v8597_v33 = vld [vmem:[%s9388_s25 + $0x418] sm:$0xff]  }
 0x2e9   : > { %3724 = vmatpush1.bf16.msra.mxu1 %v8604_v26  ;;  %v10928_v26 = vcombine.low %v1510_v47, %v1511_v38  ;;  %v8593_v47 = vld [vmem:[%s9388_s25 + $0x408] sm:$0xff]   ;;  %v10955_v38 = vsel %vm2978_vm1, %v3029_v34, %v3033_v54  ;;  %v3043_v34 = vrot.slane %v10091_v29, 1  ;;  %v3041_v29 = vrot.slane %v10105_v18, 1  ;;  %v11909_v18 = vld [vmem:[#allocation70_spill] sm:$0xff] }
 0x2ea   : > { %7626 = vmatprep.subr.bf16.mxu1 %v11780_v37 }
 0x2eb   : > { %3313 = vmatmul.mubr.bf16.gmra.mrb[32].mxu1 %v10867_v13 }
 0x2ec   : > { %5592 = vmatmul.mubr.bf16.gmra.mrb[80].mxu0 %v11889_v19  ;;  %3319 = vmatprep.mubr.bf16.mxu1 %v10870_v53 }
 0x2ed   : > { %5598 = vmatprep.mubr.bf16.mxu0 %v10874_v28 }
 0x2f3   : > { %3320 = vmatmul.mubr.bf16.gmra.mrb[36].mxu1 %v10884_v17 }
 0x2f4   : > { %5599 = vmatmul.mubr.bf16.gmra.mrb[84].mxu0 %v10888_v62  ;;  %3327 = vmatprep.mubr.bf16.mxu1 %v10891_v49 }
 0x2f5   : > { %5606 = vmatprep.mubr.bf16.mxu0 %v10895_v5 }
 0x2fb   : > { %3328 = vmatmul.mubr.bf16.gmra.mrb[40].mxu1 %v10908_v35 }
 0x2fc   : > { %5607 = vmatmul.mubr.bf16.gmra.mrb[88].mxu0 %v10912_v41  ;;  %3334 = vmatprep.mubr.bf16.mxu1 %v10915_v46 }
 0x2fd   : > { %5613 = vmatprep.mubr.bf16.mxu0 %v10917_v48 }
 0x303   : > { %3335 = vmatmul.mubr.bf16.gmra.mrb[44].mxu1 %v10926_v12 }
 0x304   : > { %5614 = vmatmul.mubr.bf16.gmra.mrb[92].mxu0 %v10928_v26  ;;  %3341 = vmatprep.mubr.bf16.mxu1 %v10931_v0 }
 0x305   : > { %5885 = vmatprep.mubr.bf16.mxu0 %v11902_v63  ;;  %v11906_v63 = vld [vmem:[#allocation32_spill] sm:$0xff] }
 0x30b   : > { %3342 = vmatmul.mubr.bf16.gmra.mrb[48].mxu1 %v10940_v14 }
 0x30c   : > { %5886 = vmatmul.mubr.bf16.vlgmr.msra.gmra.mrb[0].mxu0 %v11903_v56  ;;  %3349 = vmatprep.mubr.bf16.mxu1 %v10944_v61  ;;  %v10974_v56 = vsel %vm2978_vm1, %v3039_v11, %v3043_v34  ;;  %v8601_v11 = vld [vmem:[%s9388_s25 + $0x428] sm:$0xff]  }
 0x30d   : > { %6248 = vmatpush1.bf16.msra.mxu0 %v8591_v2  ;;  %5893 = vmatprep.mubr.bf16.mxu0 %v11904_v25  ;;  %v10971_v2 = vsel %vm2978_vm1, %v3033_v54, %v3037_v9  ;;  %v8599_v25 = vld [vmem:[%s9388_s25 + $0x420] sm:$0xff]   ;;  %v3047_v54 = vrot.slane %v10109_v31, 1  ;;  %v3045_v31 = vrot.slane %v10123_v30, 1 }
 0x30e   : > { %6249 = vmatprep.subr.bf16.mxu0 %v11780_v37  ;;  %v11911_v30 = vld [vmem:[#allocation72_spill] sm:$0xff] }
 0x311   : > { %6250 = vmatpush1.bf16.msra.mxu0 %v8593_v47  ;;  %v11908_v47 = vld [vmem:[#allocation69_spill] sm:$0xff] }
 0x312   : > { %6251 = vmatprep.subr.bf16.mxu0 %v11780_v37 }
 0x313   : > { %3350 = vmatmul.mubr.bf16.gmra.mrb[52].mxu1 %v10955_v38 }
 0x314   : > { %5894 = vmatmul.mubr.bf16.gmra.mrb[4].mxu0 %v11905_v21  ;;  %3356 = vmatprep.mubr.bf16.mxu1 %v10958_v58  ;;  %v10990_v21 = vsel %vm2978_vm1, %v3043_v34, %v3047_v54  ;;  %v8605_v34 = vld [vmem:[%s9388_s25 + $0x438] sm:$0xff]  }
 0x315   : > { %5900 = vmatprep.mubr.bf16.mxu0 %v11906_v63  ;;  %6252 = vmatpush1.bf16.msra.mxu0 %v8595_v7  ;;  %v10987_v7 = vsel %vm2978_vm1, %v3037_v9, %v3041_v29  ;;  %v8603_v63 = vld [vmem:[%s9388_s25 + $0x430] sm:$0xff]   ;;  %v3051_v9 = vrot.slane %v10127_v51, 1  ;;  %v3049_v51 = vrot.slane %v10145_v42, 1  ;;  %v11913_v42 = vld [vmem:[#allocation75_spill] sm:$0xff] }
 0x316   : > { %6253 = vmatprep.subr.bf16.mxu0 %v11780_v37 }
 0x319   : > { %6254 = vmatpush1.bf16.msra.mxu0 %v8597_v33  ;;  %v11910_v33 = vld [vmem:[#allocation45_spill] sm:$0xff] }
 0x31a   : > { %6255 = vmatprep.subr.bf16.mxu0 %v11780_v37 }
 0x31b   : > { %3357 = vmatmul.mubr.bf16.gmra.mrb[56].mxu1 %v10971_v2 }
 0x31c   : > { %5901 = vmatmul.mubr.bf16.gmra.mrb[8].mxu0 %v11907_v27  ;;  %3363 = vmatprep.mubr.bf16.mxu1 %v10974_v56  ;;  %v11006_v27 = vsel %vm2978_vm1, %v3047_v54, %v3051_v9  ;;  %v8607_v54 = vld [vmem:[%s9388_s25 + $0x448] sm:$0xff]  }
 0x31d   : > { %5907 = vmatprep.mubr.bf16.mxu0 %v11908_v47  ;;  %6256 = vmatpush1.bf16.msra.mxu0 %v8599_v25  ;;  %v11003_v25 = vsel %vm2978_vm1, %v3041_v29, %v3045_v31  ;;  %v8606_v47 = vld [vmem:[%s9388_s25 + $0x440] sm:$0xff]   ;;  %v3055_v29 = vrot.slane %v10149_v16, 1  ;;  %v3053_v16 = vrot.slane %v10171_v3, 1  ;;  %v3057_v3 = vrot.slane %v10197_v52, 1 }
 0x31e   : > { %6257 = vmatprep.subr.bf16.mxu0 %v11780_v37  ;;  %v3061_v52 = vrot.slane %v11881_v6, 1  ;;  %v3065_v6 = vrot.slane %v11885_v45, 1  ;;  %v11091_v45 = vrot.slane %v11889_v19, 1  ;;  %v3073_v19 = vrot.slane %v10727_v4, 1  ;;  %v11931_v4 = vld [vmem:[#allocation6_spill] sm:$0xff] }
 0x320   : > { %11921 = vst [vmem:[#allocation16_spill] sm:$0xff] %v11091_v45 }
 0x321   : > { %6258 = vmatpush1.bf16.msra.mxu0 %v8601_v11  ;;  %v11912_v11 = vld [vmem:[#allocation73_spill] sm:$0xff] }
 0x322   : > { %6259 = vmatprep.subr.bf16.mxu0 %v11780_v37 }
 0x323   : > { %3364 = vmatmul.mubr.bf16.gmra.mrb[60].mxu1 %v10987_v7 }
 0x324   : > { %5908 = vmatmul.mubr.bf16.gmra.mrb[12].mxu0 %v11909_v18  ;;  %3371 = vmatprep.mubr.bf16.mxu1 %v10990_v21  ;;  %v11022_v18 = vsel %vm2978_vm1, %v3051_v9, %v3055_v29  ;;  %v8609_v9 = vld [vmem:[%s9388_s25 + $0x458] sm:$0xff]  }
 0x325   : > { %5915 = vmatprep.mubr.bf16.mxu0 %v11910_v33  ;;  %6260 = vmatpush1.bf16.msra.mxu0 %v8603_v63  ;;  %v11019_v63 = vsel %vm2978_vm1, %v3045_v31, %v3049_v51  ;;  %v8608_v33 = vld [vmem:[%s9388_s25 + $0x450] sm:$0xff]   ;;  %v3059_v31 = vrot.slane %v10175_v24, 1  ;;  %v11915_v24 = vld [vmem:[#allocation79_spill] sm:$0xff] }
 0x326   : > { %6261 = vmatprep.subr.bf16.mxu0 %v11780_v37 }
 0x329   : > { %6262 = vmatpush1.bf16.msra.mxu0 %v8605_v34  ;;  %v11914_v34 = vld [vmem:[#allocation76_spill] sm:$0xff] }
 0x32a   : > { %6263 = vmatprep.subr.bf16.mxu0 %v11780_v37 }
 0x32b   : > { %3372 = vmatmul.mubr.bf16.gmra.mrb[64].mxu1 %v11003_v25 }
 0x32c   : > { %5916 = vmatmul.mubr.bf16.gmra.mrb[16].mxu0 %v11911_v30  ;;  %3378 = vmatprep.mubr.bf16.mxu1 %v11006_v27  ;;  %v11038_v30 = vsel %vm2978_vm1, %v3055_v29, %v3059_v31  ;;  %v8611_v29 = vld [vmem:[%s9388_s25 + $0x468] sm:$0xff]  }
 0x32d   : > { %5922 = vmatprep.mubr.bf16.mxu0 %v11912_v11  ;;  %6264 = vmatpush1.bf16.msra.mxu0 %v8606_v47  ;;  %v11035_v47 = vsel %vm2978_vm1, %v3049_v51, %v3053_v16  ;;  %v8610_v11 = vld [vmem:[%s9388_s25 + $0x460] sm:$0xff]   ;;  %v3063_v51 = vrot.slane %v10201_v23, 1  ;;  %v11916_v23 = vld [vmem:[#allocation81_spill] sm:$0xff] }
 0x32e   : > { %6265 = vmatprep.subr.bf16.mxu0 %v11780_v37 }
 0x331   : > { %6266 = vmatpush1.bf16.msra.mxu0 %v8607_v54  ;;  %v11051_v54 = vsel %vm2978_vm1, %v3053_v16, %v3057_v3  ;;  %v8613_v16 = vld [vmem:[%s9388_s25 + $0x478] sm:$0xff]  }
 0x332   : > { %6267 = vmatprep.subr.bf16.mxu0 %v11780_v37 }
 0x333   : > { %3379 = vmatmul.mubr.bf16.gmra.mrb[68].mxu1 %v11019_v63 }
 0x334   : > { %5923 = vmatmul.mubr.bf16.gmra.mrb[20].mxu0 %v11913_v42  ;;  %3385 = vmatprep.mubr.bf16.mxu1 %v11022_v18  ;;  %v3067_v42 = vrot.slane %v11883_v36, 1  ;;  %v11918_v36 = vld [vmem:[#allocation84_spill] sm:$0xff] }
 0x335   : > { %5929 = vmatprep.mubr.bf16.mxu0 %v11914_v34  ;;  %6268 = vmatpush1.bf16.msra.mxu0 %v8608_v33  ;;  %v11054_v33 = vsel %vm2978_vm1, %v3059_v31, %v3063_v51  ;;  %v11067_v34 = vsel %vm2978_vm1, %v3057_v3, %v3061_v52 }
 0x336   : > { %6269 = vmatprep.subr.bf16.mxu0 %v11780_v37  ;;  %v11070_v31 = vsel %vm2978_vm1, %v3063_v51, %v3067_v42  ;;  %v11922_v51 = vld [vmem:[#allocation86_spill] sm:$0xff] }
 0x339   : > { %6270 = vmatpush1.bf16.msra.mxu0 %v8609_v9  ;;  %v11078_v9 = vrot.slane %v11887_v50, 1  ;;  %v3075_v50 = vrot.slane %v10710_v22, 1  ;;  %v3074_v22 = vsel %vm2978_vm1, %v11091_v45, %v3073_v19  ;;  %v11935_v19 = vld [vmem:[#allocation9_spill] sm:$0xff] }
 0x33a   : > { %6271 = vmatprep.subr.bf16.mxu0 %v11780_v37 }
 0x33b   : > { %3386 = vmatmul.mubr.bf16.gmra.mrb[72].mxu1 %v11035_v47  ;;  %11919 = vst [vmem:[#allocation12_spill] sm:$0xff] %v11078_v9  ;;  %v11085_v3 = vsel %vm2978_vm1, %v3067_v42, %v11078_v9  ;;  %v11926_v42 = vld [vmem:[#allocation89_spill] sm:$0xff] }
 0x33c   : > { %5930 = vmatmul.mubr.bf16.gmra.mrb[24].mxu0 %v10494_v59  ;;  %3393 = vmatprep.mubr.bf16.mxu1 %v11038_v30  ;;  %v8612_v59 = vld [vmem:[%s9388_s25 + $0x470] sm:$0xff]  }
 0x33d   : > { %5937 = vmatprep.mubr.bf16.mxu0 %v11915_v24  ;;  %6272 = vmatpush1.bf16.msra.mxu0 %v8610_v11  ;;  %v11081_v11 = vsel %vm2978_vm1, %v3061_v52, %v3065_v6  ;;  %v11920_v24 = vld [vmem:[#allocation85_spill] sm:$0xff]  ;;  %v11924_v52 = vld [vmem:[#allocation87_spill] sm:$0xff] }
 0x33e   : > { %6273 = vmatprep.subr.bf16.mxu0 %v11780_v37 }
 0x341   : > { %6274 = vmatpush1.bf16.msra.mxu0 %v8611_v29  ;;  %v11097_v29 = vsel %vm2978_vm1, %v3065_v6, %v11091_v45  ;;  %v11929_v6 = vld [vmem:[#allocation7_spill] sm:$0xff]  ;;  %v5701_v45 = vshrl.u32 %v10888_v62, 16 }
 0x342   : > { %6275 = vmatprep.subr.bf16.mxu0 %v11780_v37  ;;  %11923 = vst [vmem:[#allocation17_spill] sm:$0xff] %v11097_v29 }
 0x343   : > { %3394 = vmatmul.mubr.bf16.gmra.mrb[76].mxu1 %v11051_v54 }
 0x344   : > { %5938 = vmatmul.mubr.bf16.gmra.mrb[28].mxu0 %v10518_v15  ;;  %3400 = vmatprep.mubr.bf16.mxu1 %v11054_v33  ;;  %v11917_v15 = vld [vmem:[#allocation83_spill] sm:$0xff] }
 0x345   : > { %5944 = vmatprep.mubr.bf16.mxu0 %v11916_v23  ;;  %6276 = vmatpush1.bf16.msra.mxu0 %v8612_v59  ;;  %v3076_v59 = vsel %vm2978_vm1, %v11078_v9, %v3075_v50  ;;  %v11925_v23 = vld [vmem:[#allocation88_spill] sm:$0xff]  ;;  %v8615_v50 = vld [vmem:[%s9388_s25 + $0x208] sm:$0xff]  }
 0x346   : > { %6277 = vmatprep.subr.bf16.mxu0 %v11780_v37 }
 0x349   : > { %6278 = vmatpush1.bf16.msra.mxu0 %v8613_v16  ;;  %v11927_v16 = vld [vmem:[#allocation5_spill] sm:$0xff] }
 0x34b   : > { %3401 = vmatmul.mubr.bf16.gmra.mrb[80].mxu1 %v11067_v34 }
 0x34c   : > { %5945 = vmatmul.mubr.bf16.gmra.mrb[32].mxu0 %v11917_v15  ;;  %3407 = vmatprep.mubr.bf16.mxu1 %v11070_v31  ;;  %v11928_v15 = vld [vmem:[#allocation90_spill] sm:$0xff] }
 0x34d   : > { %5951 = vmatprep.mubr.bf16.mxu0 %v11918_v36  ;;  %v11930_v36 = vld [vmem:[#allocation91_spill] sm:$0xff] }
 0x353   : > { %3408 = vmatmul.mubr.bf16.gmra.mrb[84].mxu1 %v11081_v11 }
 0x354   : > { %5952 = vmatmul.mubr.bf16.gmra.mrb[36].mxu0 %v11920_v24  ;;  %3415 = vmatprep.mubr.bf16.mxu1 %v11085_v3  ;;  %v8614_v24 = vld [vmem:[%s9388_s25 + $0x200] sm:$0xff]  }
 0x355   : > { %5959 = vmatprep.mubr.bf16.mxu0 %v11922_v51  ;;  %v11932_v51 = vld [vmem:[#allocation92_spill] sm:$0xff] }
 0x35b   : > { %3416 = vmatmul.mubr.bf16.gmra.mrb[88].mxu1 %v11097_v29  ;;  %v8629_v29 = vld [vmem:[%s9388_s25 + $0x278] sm:$0xff]  }
 0x35c   : > { %5960 = vmatmul.mubr.bf16.gmra.mrb[40].mxu0 %v11924_v52  ;;  %3422 = vmatprep.mubr.bf16.mxu1 %v3076_v59  ;;  %v11933_v59 = vld [vmem:[#allocation8_spill] sm:$0xff]  ;;  %v11934_v52 = vld [vmem:[#allocation93_spill] sm:$0xff] }
 0x35d   : > { %5966 = vmatprep.mubr.bf16.mxu0 %v11925_v23  ;;  %v11936_v23 = vld [vmem:[#allocation94_spill] sm:$0xff] }
 0x363   : > { %3423 = vmatmul.mubr.bf16.gmra.mrb[92].mxu1 %v3074_v22  ;;  %v8616_v22 = vld [vmem:[%s9388_s25 + $0x210] sm:$0xff]  }
 0x364   : > { %5967 = vmatmul.mubr.bf16.gmra.mrb[44].mxu0 %v11926_v42  ;;  %3725 = vmatprep.mubr.bf16.mxu1 %v11927_v16  ;;  %v8617_v42 = vld [vmem:[%s9388_s25 + $0x218] sm:$0xff]   ;;  %v11937_v16 = vld [vmem:[#allocation10_spill] sm:$0xff] }
 0x365   : > { %5973 = vmatprep.mubr.bf16.mxu0 %v11928_v15  ;;  %v11938_v15 = vld [vmem:[#allocation95_spill] sm:$0xff] }
 0x36b   : > { %3726 = vmatmul.mubr.bf16.vlgmr.msra.gmra.mrb[0].mxu1 %v11929_v6  ;;  %v11939_v6 = vld [vmem:[#allocation11_spill] sm:$0xff] }
 0x36c   : > { %5974 = vmatmul.mubr.bf16.gmra.mrb[48].mxu0 %v11930_v36  ;;  %7642 = vmatpush1.bf16.msra.mxu1 %v8614_v24  ;;  %v11940_v36 = vld [vmem:[#allocation96_spill] sm:$0xff] }
 0x36d   : > { %3733 = vmatprep.mubr.bf16.mxu1 %v11931_v4  ;;  %5981 = vmatprep.mubr.bf16.mxu0 %v11932_v51  ;;  %v8618_v24 = vld [vmem:[%s9388_s25 + $0x220] sm:$0xff]   ;;  %v8619_v4 = vld [vmem:[%s9388_s25 + $0x228] sm:$0xff]   ;;  %v11941_v51 = vld [vmem:[#allocation14_spill] sm:$0xff] }
 0x36e   : > { %7627 = vmatprep.subr.bf16.mxu1 %v11780_v37 }
 0x370   : > { %7643 = vmatpush1.bf16.msra.mxu1 %v8615_v50  ;;  %v11942_v50 = vld [vmem:[#allocation97_spill] sm:$0xff] }
 0x371   : > { %7628 = vmatprep.subr.bf16.mxu1 %v11780_v37 }
 0x373   : > { %3734 = vmatmul.mubr.bf16.gmra.mrb[4].mxu1 %v11933_v59  ;;  %v11943_v59 = vld [vmem:[#allocation15_spill] sm:$0xff] }
 0x374   : > { %5982 = vmatmul.mubr.bf16.gmra.mrb[52].mxu0 %v11934_v52  ;;  %3740 = vmatprep.mubr.bf16.mxu1 %v11935_v19  ;;  %v11944_v52 = vld [vmem:[#allocation98_spill] sm:$0xff] }
 0x375   : > { %5988 = vmatprep.mubr.bf16.mxu0 %v11936_v23  ;;  %7644 = vmatpush1.bf16.msra.mxu1 %v8616_v22  ;;  %v8620_v19 = vld [vmem:[%s9388_s25 + $0x230] sm:$0xff]   ;;  %v8621_v23 = vld [vmem:[%s9388_s25 + $0x238] sm:$0xff]  }
 0x376   : > { %7629 = vmatprep.subr.bf16.mxu1 %v11780_v37  ;;  %v11945_v22 = vld [vmem:[#allocation18_spill] sm:$0xff] }
 0x379   : > { %7645 = vmatpush1.bf16.msra.mxu1 %v8617_v42  ;;  %v11946_v42 = vld [vmem:[#allocation99_spill] sm:$0xff] }
 0x37a   : > { %7630 = vmatprep.subr.bf16.mxu1 %v11780_v37 }
 0x37b   : > { %3741 = vmatmul.mubr.bf16.gmra.mrb[8].mxu1 %v11937_v16  ;;  %v11947_v16 = vld [vmem:[#allocation19_spill] sm:$0xff] }
 0x37c   : > { %5989 = vmatmul.mubr.bf16.gmra.mrb[56].mxu0 %v11938_v15  ;;  %3747 = vmatprep.mubr.bf16.mxu1 %v11939_v6  ;;  %v11948_v15 = vld [vmem:[#allocation64_spill] sm:$0xff] }
 0x37d   : > { %5995 = vmatprep.mubr.bf16.mxu0 %v11940_v36  ;;  %7646 = vmatpush1.bf16.msra.mxu1 %v8618_v24  ;;  %v8622_v6 = vld [vmem:[%s9388_s25 + $0x240] sm:$0xff]   ;;  %v8623_v36 = vld [vmem:[%s9388_s25 + $0x248] sm:$0xff]   ;;  %v11949_v24 = vld [vmem:[#allocation22_spill] sm:$0xff] }
 0x37e   : > { %7631 = vmatprep.subr.bf16.mxu1 %v11780_v37 }
 0x381   : > { %7647 = vmatpush1.bf16.msra.mxu1 %v8619_v4  ;;  %v11950_v4 = vld [vmem:[#allocation65_spill] sm:$0xff] }
 0x382   : > { %7632 = vmatprep.subr.bf16.mxu1 %v11780_v37 }
 0x383   : > { %3748 = vmatmul.mubr.bf16.gmra.mrb[12].mxu1 %v11941_v51  ;;  %v11951_v51 = vld [vmem:[#allocation23_spill] sm:$0xff] }
 0x384   : > { %5996 = vmatmul.mubr.bf16.gmra.mrb[60].mxu0 %v11942_v50  ;;  %3755 = vmatprep.mubr.bf16.mxu1 %v11943_v59  ;;  %v11952_v50 = vld [vmem:[#allocation66_spill] sm:$0xff] }
 0x385   : > { %6003 = vmatprep.mubr.bf16.mxu0 %v11944_v52  ;;  %7648 = vmatpush1.bf16.msra.mxu1 %v8620_v19  ;;  %v8624_v59 = vld [vmem:[%s9388_s25 + $0x250] sm:$0xff]   ;;  %v8625_v52 = vld [vmem:[%s9388_s25 + $0x258] sm:$0xff]   ;;  %v5697_v19 = vshll.u32 %v10874_v28, 16 }
 0x386   : > { %7633 = vmatprep.subr.bf16.mxu1 %v11780_v37 }
 0x389   : > { %7649 = vmatpush1.bf16.msra.mxu1 %v8621_v23  ;;  %v11953_v23 = vld [vmem:[#allocation26_spill] sm:$0xff] }
 0x38a   : > { %7634 = vmatprep.subr.bf16.mxu1 %v11780_v37 }
 0x38b   : > { %3756 = vmatmul.mubr.bf16.gmra.mrb[16].mxu1 %v11945_v22  ;;  %v11954_v22 = vld [vmem:[#allocation67_spill] sm:$0xff] }
 0x38c   : > { %6004 = vmatmul.mubr.bf16.gmra.mrb[64].mxu0 %v11946_v42  ;;  %3762 = vmatprep.mubr.bf16.mxu1 %v11947_v16  ;;  %v11955_v42 = vld [vmem:[#allocation27_spill] sm:$0xff]  ;;  %v11956_v16 = vld [vmem:[#allocation68_spill] sm:$0xff] }
 0x38d   : > { %6010 = vmatprep.mubr.bf16.mxu0 %v11948_v15  ;;  %7650 = vmatpush1.bf16.msra.mxu1 %v8622_v6  ;;  %v8626_v15 = vld [vmem:[%s9388_s25 + $0x260] sm:$0xff]   ;;  %v5699_v6 = vrot.slane %v5697_v19, 1  ;;  %v11959_v19 = vld [vmem:[#allocation101_spill] sm:$0xff] }
 0x38e   : > { %7635 = vmatprep.subr.bf16.mxu1 %v11780_v37 }
 0x391   : > { %7651 = vmatpush1.bf16.msra.mxu1 %v8623_v36  ;;  %v5692_v36 = vshll.u32 %v10888_v62, 16 }
 0x392   : > { %7636 = vmatprep.subr.bf16.mxu1 %v11780_v37 }
 0x393   : > { %3763 = vmatmul.mubr.bf16.gmra.mrb[20].mxu1 %v11949_v24  ;;  %v8627_v24 = vld [vmem:[%s9388_s25 + $0x268] sm:$0xff]  }
 0x394   : > { %6011 = vmatmul.mubr.bf16.gmra.mrb[68].mxu0 %v11950_v4  ;;  %3769 = vmatprep.mubr.bf16.mxu1 %v11951_v51  ;;  %v11957_v4 = vld [vmem:[#allocation100_spill] sm:$0xff] }
 0x395   : > { %6017 = vmatprep.mubr.bf16.mxu0 %v11952_v50  ;;  %7652 = vmatpush1.bf16.msra.mxu1 %v8624_v59  ;;  %v5700_v51 = vsel %vm2167_vm0, %v11957_v4, %v5699_v6  ;;  %v5709_v50 = vshrl.u32 %v10874_v28, 16  ;;  %v5713_v59 = vshll.u32 %v10895_v5, 16 }
 0x396   : > { %7637 = vmatprep.subr.bf16.mxu1 %v11780_v37 }
 0x399   : > { %7653 = vmatpush1.bf16.msra.mxu1 %v8625_v52  ;;  %v11958_v52 = vld [vmem:[#allocation30_spill] sm:$0xff] }
 0x39a   : > { %7638 = vmatprep.subr.bf16.mxu1 %v11780_v37 }
 0x39b   : > { %3770 = vmatmul.mubr.bf16.gmra.mrb[24].mxu1 %v11953_v23  ;;  %v11960_v23 = vld [vmem:[#allocation31_spill] sm:$0xff] }
 0x39c   : > { %6018 = vmatmul.mubr.bf16.gmra.mrb[72].mxu0 %v11954_v22  ;;  %3777 = vmatprep.mubr.bf16.mxu1 %v11955_v42  ;;  %v5694_v22 = vrot.slane %v5692_v36, 1  ;;  %v8628_v42 = vld [vmem:[%s9388_s25 + $0x270] sm:$0xff]   ;;  %v5725_v36 = vshrl.u32 %v10895_v5, 16  ;;  %v5721_v5 = vshll.u32 %v10928_v26, 16 }
 0x39d   : > { %6025 = vmatprep.mubr.bf16.mxu0 %v11956_v16  ;;  %7654 = vmatpush1.bf16.msra.mxu1 %v8626_v15  ;;  %v5711_v16 = vor.u32 %v5709_v50, %v5699_v6  ;;  %v5715_v15 = vrot.slane %v5713_v59, 1  ;;  %v11961_v50 = vld [vmem:[#allocation34_spill] sm:$0xff]  ;;  %v11962_v59 = vld [vmem:[#allocation35_spill] sm:$0xff] }
 0x39e   : > { %7639 = vmatprep.subr.bf16.mxu1 %v11780_v37  ;;  %v5695_v4 = vsel %vm2167_vm0, %v10741_v20, %v5694_v22  ;;  %v5703_v20 = vor.u32 %v5701_v45, %v5694_v22  ;;  %v11965_v45 = vld [vmem:[#allocation39_spill] sm:$0xff] }
 0x3a1   : > { %7655 = vmatpush1.bf16.msra.mxu1 %v8627_v24  ;;  %v1457_v24 = vld [vmem:[%s9425_s5 + $0x1b0] sm:$0xff] }
 0x3a2   : > { %7640 = vmatprep.subr.bf16.mxu1 %v11780_v37  ;;  %v1512_v6 = vmax.bf16 %v11780_v37, %v1457_v24  ;;  %v5741_v24 = vshrl.u32 %v10917_v48, 16 }
 0x3a3   : > { %3778 = vmatmul.mubr.bf16.gmra.mrb[28].mxu1 %v11958_v52  ;;  %v5705_v52 = vshll.u32 %v10912_v41, 16 }
 0x3a4   : > { %6026 = vmatmul.mubr.bf16.gmra.mrb[76].mxu0 %v11959_v19  ;;  %3784 = vmatprep.mubr.bf16.mxu1 %v11960_v23  ;;  %v5716_v19 = vsel %vm2167_vm0, %v5711_v16, %v5715_v15  ;;  %v11189_v9 = vcombine.high %v1512_v6, %v1512_v6  ;;  %v5717_v16 = vshrl.u32 %v10912_v41, 16 }
 0x3a5   : > { %6032 = vmatprep.mubr.bf16.mxu0 %v5700_v51  ;;  %7656 = vmatpush1.bf16.msra.mxu1 %v8628_v42  ;;  %v5729_v51 = vshll.u32 %v10917_v48, 16  ;;  %v5707_v23 = vrot.slane %v5705_v52, 1  ;;  %v5727_v42 = vor.u32 %v5725_v36, %v5715_v15  ;;  %v5723_v15 = vrot.slane %v5721_v5, 1 }
 0x3a6   : > { %7641 = vmatprep.subr.bf16.mxu1 %v11780_v37  ;;  %11963 = vst [vmem:[#allocation20_spill] sm:$0xff] %v11189_v9  ;;  %v11199_v52 = vcombine.low %v1512_v6, %v1512_v6 }
 0x3a7   : > { %v5731_v62 = vrot.slane %v5729_v51, 1  ;;  %v5719_v22 = vor.u32 %v5717_v16, %v5707_v23  ;;  %v11969_v16 = vld [vmem:[#allocation49_spill] sm:$0xff] }
 0x3a9   : > { %7657 = vmatpush1.bf16.msra.mxu1 %v8629_v29  ;;  %v5708_v29 = vsel %vm2167_vm0, %v5703_v20, %v5707_v23  ;;  %v5732_v37 = vsel %vm2167_vm0, %v5727_v42, %v5731_v62  ;;  %v5724_v51 = vsel %vm2167_vm0, %v5719_v22, %v5723_v15  ;;  %v5737_v20 = vshll.u32 %v11199_v52, 16 }
 0x3ab   : > { %3785 = vmatmul.mubr.bf16.gmra.mrb[32].mxu1 %v11961_v50  ;;  %v11964_v50 = vld [vmem:[#allocation38_spill] sm:$0xff]  ;;  %v5739_v5 = vrot.slane %v5737_v20, 1 }
 0x3ac   : > { %6033 = vmatmul.mubr.bf16.gmra.mrb[80].mxu0 %v5695_v4  ;;  %3791 = vmatprep.mubr.bf16.mxu1 %v11962_v59  ;;  %v5745_v4 = vshll.u32 %v11189_v9, 16  ;;  %v5733_v59 = vshrl.u32 %v10928_v26, 16  ;;  %v11966_v9 = vld [vmem:[#allocation42_spill] sm:$0xff] }
 0x3ad   : > { %6039 = vmatprep.mubr.bf16.mxu0 %v5716_v19  ;;  %v5743_v19 = vor.u32 %v5741_v24, %v5731_v62  ;;  %v11968_v62 = vld [vmem:[#allocation48_spill] sm:$0xff]  ;;  %v11972_v24 = vld [vmem:[#allocation46_spill] sm:$0xff] }
 0x3ae   : > { %v5747_v36 = vrot.slane %v5745_v4, 1  ;;  %v5735_v23 = vor.u32 %v5733_v59, %v5723_v15  ;;  %v11973_v4 = vld [vmem:[#allocation50_spill] sm:$0xff] }
 0x3af   : > { %v11993_v59 = vld [vmem:[#allocation78_spill] sm:$0xff] }
 0x3b0   : > { %v5748_v42 = vsel %vm2167_vm0, %v5743_v19, %v5747_v36  ;;  %v5740_v6 = vsel %vm2167_vm0, %v5735_v23, %v5739_v5  ;;  %v4176_v19 = vshll.u32 %v11972_v24, 16  ;;  %v4188_v5 = vshrl.u32 %v11972_v24, 16 }
 0x3b3   : > { %3792 = vmatmul.mubr.bf16.gmra.mrb[36].mxu1 %v11964_v50  ;;  %v11974_v50 = vld [vmem:[#allocation52_spill] sm:$0xff] }
 0x3b4   : > { %6040 = vmatmul.mubr.bf16.gmra.mrb[84].mxu0 %v5708_v29  ;;  %3799 = vmatprep.mubr.bf16.mxu1 %v11965_v45  ;;  %v11967_v29 = vld [vmem:[#allocation44_spill] sm:$0xff]  ;;  %v11990_v45 = vld [vmem:[#allocation77_spill] sm:$0xff] }
 0x3b5   : > { %6047 = vmatprep.mubr.bf16.mxu0 %v5732_v37  ;;  %v11970_v37 = vld [vmem:[#allocation55_spill] sm:$0xff] }
 0x3bb   : > { %3800 = vmatmul.mubr.bf16.gmra.mrb[40].mxu1 %v11966_v9  ;;  %v11971_v9 = vld [vmem:[#allocation43_spill] sm:$0xff] }
 0x3bc   : > { %6048 = vmatmul.mubr.bf16.gmra.mrb[88].mxu0 %v5724_v51  ;;  %3806 = vmatprep.mubr.bf16.mxu1 %v11967_v29  ;;  %v4196_v36 = vshrl.u32 %v11971_v9, 16  ;;  %v4200_v51 = vshll.u32 %v11973_v4, 16 }
 0x3bd   : > { %6054 = vmatprep.mubr.bf16.mxu0 %v5748_v42 }
 0x3be   : > { %v4202_v29 = vrot.slane %v4200_v51, 1 }
 0x3c3   : > { %3807 = vmatmul.mubr.bf16.gmra.mrb[44].mxu1 %v11968_v62 }
 0x3c4   : > { %6055 = vmatmul.mubr.bf16.gmra.mrb[92].mxu0 %v5740_v6  ;;  %3813 = vmatprep.mubr.bf16.mxu1 %v11969_v16  ;;  %v4192_v6 = vshll.u32 %v11974_v50, 16 }
 0x3c5   : > { %6279 = vmatprep.mubr.bf16.mxu0 %v10775_v43  ;;  %v11975_v43 = vld [vmem:[#allocation54_spill] sm:$0xff] }
 0x3cb   : > { %3814 = vmatmul.mubr.bf16.gmra.mrb[48].mxu1 %v11970_v37 }
 0x3cc   : > { %6280 = vmatmul.mubr.bf16.vlgmr.msra.gmra.mrb[0].mxu0 %v10787_v40  ;;  %3821 = vmatprep.mubr.bf16.mxu1 %v11971_v9  ;;  %v11976_v40 = vld [vmem:[#allocation57_spill] sm:$0xff] }
 0x3cd   : > { %6287 = vmatprep.mubr.bf16.mxu0 %v10790_v10  ;;  %v11977_v10 = vld [vmem:[#allocation59_spill] sm:$0xff] }
 0x3ce   : > { %v4244_v51 = vshrl.u32 %v11977_v10, 16 }
 0x3d3   : > { %3822 = vmatmul.mubr.bf16.gmra.mrb[52].mxu1 %v11972_v24 }
 0x3d4   : > { %6288 = vmatmul.mubr.bf16.gmra.mrb[4].mxu0 %v10803_v44  ;;  %3828 = vmatprep.mubr.bf16.mxu1 %v11973_v4  ;;  %v11978_v44 = vld [vmem:[#allocation61_spill] sm:$0xff] }
 0x3d5   : > { %6294 = vmatprep.mubr.bf16.mxu0 %v10806_v39  ;;  %v11979_v39 = vld [vmem:[#allocation62_spill] sm:$0xff] }
 0x3db   : > { %3829 = vmatmul.mubr.bf16.gmra.mrb[56].mxu1 %v11974_v50 }
 0x3dc   : > { %6295 = vmatmul.mubr.bf16.gmra.mrb[8].mxu0 %v10819_v60  ;;  %3835 = vmatprep.mubr.bf16.mxu1 %v11975_v43  ;;  %v11980_v60 = vld [vmem:[#allocation63_spill] sm:$0xff] }
 0x3dd   : > { %6301 = vmatprep.mubr.bf16.mxu0 %v10822_v8  ;;  %v11981_v8 = vld [vmem:[#allocation28_spill] sm:$0xff] }
 0x3e3   : > { %3836 = vmatmul.mubr.bf16.gmra.mrb[60].mxu1 %v11976_v40 }
 0x3e4   : > { %6302 = vmatmul.mubr.bf16.gmra.mrb[12].mxu0 %v10835_v55  ;;  %3843 = vmatprep.mubr.bf16.mxu1 %v11977_v10  ;;  %v11982_v55 = vld [vmem:[#allocation33_spill] sm:$0xff] }
 0x3e5   : > { %6309 = vmatprep.mubr.bf16.mxu0 %v10838_v32  ;;  %v11983_v32 = vld [vmem:[#allocation36_spill] sm:$0xff] }
 0x3eb   : > { %3844 = vmatmul.mubr.bf16.gmra.mrb[64].mxu1 %v11978_v44 }
 0x3ec   : > { %6310 = vmatmul.mubr.bf16.gmra.mrb[16].mxu0 %v10851_v1  ;;  %3850 = vmatprep.mubr.bf16.mxu1 %v11979_v39  ;;  %v11984_v1 = vld [vmem:[#allocation40_spill] sm:$0xff] }
 0x3ed   : > { %6316 = vmatprep.mubr.bf16.mxu0 %v10854_v57  ;;  %v11985_v57 = vld [vmem:[#allocation41_spill] sm:$0xff] }
 0x3f3   : > { %3851 = vmatmul.mubr.bf16.gmra.mrb[68].mxu1 %v11980_v60 }
 0x3f4   : > { %6317 = vmatmul.mubr.bf16.gmra.mrb[20].mxu0 %v10867_v13  ;;  %3857 = vmatprep.mubr.bf16.mxu1 %v11981_v8  ;;  %v11986_v13 = vld [vmem:[#allocation71_spill] sm:$0xff] }
 0x3f5   : > { %6323 = vmatprep.mubr.bf16.mxu0 %v10870_v53  ;;  %v11987_v53 = vld [vmem:[#allocation47_spill] sm:$0xff] }
 0x3fb   : > { %3858 = vmatmul.mubr.bf16.gmra.mrb[72].mxu1 %v11982_v55 }
 0x3fc   : > { %6324 = vmatmul.mubr.bf16.gmra.mrb[24].mxu0 %v10884_v17  ;;  %3865 = vmatprep.mubr.bf16.mxu1 %v11983_v32  ;;  %v11988_v17 = vld [vmem:[#allocation51_spill] sm:$0xff] }
 0x3fd   : > { %6331 = vmatprep.mubr.bf16.mxu0 %v10891_v49  ;;  %v11989_v49 = vld [vmem:[#allocation53_spill] sm:$0xff] }
 0x403   : > { %3866 = vmatmul.mubr.bf16.gmra.mrb[76].mxu1 %v11984_v1 }
 0x404   : > { %6332 = vmatmul.mubr.bf16.gmra.mrb[28].mxu0 %v10908_v35  ;;  %3872 = vmatprep.mubr.bf16.mxu1 %v11985_v57  ;;  %v4180_v35 = vshrl.u32 %v11969_v16, 16  ;;  %v4212_v16 = vshrl.u32 %v11973_v4, 16 }
 0x405   : > { %6338 = vmatprep.mubr.bf16.mxu0 %v10915_v46  ;;  %v4184_v46 = vshll.u32 %v11971_v9, 16 }
 0x406   : > { %v4214_v9 = vor.u32 %v4212_v16, %v4202_v29 }
 0x407   : > { %v4186_v15 = vrot.slane %v4184_v46, 1  ;;  %v4204_v46 = vshrl.u32 %v11974_v50, 16 }
 0x409   : > { %v4198_v42 = vor.u32 %v4196_v36, %v4186_v15  ;;  %v4224_v36 = vshll.u32 %v11978_v44, 16 }
 0x40b   : > { %3873 = vmatmul.mubr.bf16.gmra.mrb[80].mxu1 %v11986_v13  ;;  %v4203_v62 = vsel %vm2167_vm0, %v4198_v42, %v4202_v29 }
 0x40c   : > { %6339 = vmatmul.mubr.bf16.gmra.mrb[32].mxu0 %v10926_v12  ;;  %3879 = vmatprep.mubr.bf16.mxu1 %v11987_v53  ;;  %v11991_v12 = vld [vmem:[#allocation58_spill] sm:$0xff] }
 0x40d   : > { %6345 = vmatprep.mubr.bf16.mxu0 %v10931_v0  ;;  %v11992_v0 = vld [vmem:[#allocation56_spill] sm:$0xff] }
 0x40e   : > { %v4182_v22 = vor.u32 %v4180_v35, %v11992_v0  ;;  %v4208_v0 = vshll.u32 %v11976_v40, 16 }
 0x413   : > { %3880 = vmatmul.mubr.bf16.gmra.mrb[84].mxu1 %v11988_v17 }
 0x414   : > { %6346 = vmatmul.mubr.bf16.gmra.mrb[36].mxu0 %v10940_v14  ;;  %3887 = vmatprep.mubr.bf16.mxu1 %v11989_v49  ;;  %v4172_v14 = vshrl.u32 %v11970_v37, 16  ;;  %v4216_v37 = vshll.u32 %v11975_v43, 16 }
 0x415   : > { %6353 = vmatprep.mubr.bf16.mxu0 %v10944_v61  ;;  %v4187_v61 = vsel %vm2167_vm0, %v4182_v22, %v4186_v15  ;;  %v4228_v22 = vshrl.u32 %v11975_v43, 16  ;;  %v4232_v15 = vshll.u32 %v11977_v10, 16  ;;  %v4236_v10 = vshrl.u32 %v11978_v44, 16 }
 0x416   : > { %v4218_v35 = vrot.slane %v4216_v37, 1 }
 0x418   : > { %v4219_v4 = vsel %vm2167_vm0, %v4214_v9, %v4218_v35 }
 0x41b   : > { %3888 = vmatmul.mubr.bf16.gmra.mrb[88].mxu1 %v11990_v45 }
 0x41c   : > { %6354 = vmatmul.mubr.bf16.gmra.mrb[40].mxu0 %v10955_v38  ;;  %3894 = vmatprep.mubr.bf16.mxu1 %v11991_v12  ;;  %v11994_v38 = vld [vmem:[#allocation60_spill] sm:$0xff] }
 0x41d   : > { %6360 = vmatprep.mubr.bf16.mxu0 %v10958_v58  ;;  %v4174_v20 = vor.u32 %v4172_v14, %v11994_v38  ;;  %v4178_v58 = vrot.slane %v4176_v19, 1  ;;  %v4230_v14 = vor.u32 %v4228_v22, %v4218_v35  ;;  %v4234_v19 = vrot.slane %v4232_v15, 1 }
 0x41e   : > { %v4248_v38 = vshll.u32 %v11979_v39, 16  ;;  %v4280_v22 = vshll.u32 %v11983_v32, 16 }
 0x41f   : > { %v4179_v23 = vsel %vm2167_vm0, %v4174_v20, %v4178_v58  ;;  %v4235_v43 = vsel %vm2167_vm0, %v4230_v14, %v4234_v19  ;;  %v4246_v20 = vor.u32 %v4244_v51, %v4234_v19  ;;  %v4296_v51 = vshll.u32 %v11985_v57, 16 }
 0x423   : > { %3895 = vmatmul.mubr.bf16.gmra.mrb[92].mxu1 %v11993_v59 }
 0x424   : > { %6361 = vmatmul.mubr.bf16.gmra.mrb[44].mxu0 %v10971_v2  ;;  %4628 = vmatprep.mubr.bf16.mxu1 %v4187_v61  ;;  %v4190_v2 = vor.u32 %v4188_v5, %v4178_v58  ;;  %v4220_v61 = vshrl.u32 %v11976_v40, 16  ;;  %v4250_v58 = vrot.slane %v4248_v38, 1  ;;  %v4240_v5 = vshll.u32 %v11980_v60, 16 }
 0x425   : > { %6367 = vmatprep.mubr.bf16.mxu0 %v10974_v56  ;;  %v4194_v56 = vrot.slane %v4192_v6, 1 }
 0x426   : > { %v4242_v37 = vrot.slane %v4240_v5, 1  ;;  %v4308_v5 = vshrl.u32 %v11985_v57, 16 }
 0x427   : > { %v4195_v24 = vsel %vm2167_vm0, %v4190_v2, %v4194_v56 }
 0x42b   : > { %4629 = vmatmul.mubr.bf16.vlgmr.msra.gmra.mrb[48].mxu1 %v4179_v23 }
 0x42c   : > { %6368 = vmatmul.mubr.bf16.gmra.mrb[48].mxu0 %v10987_v7  ;;  %4636 = vmatprep.mubr.bf16.mxu1 %v4203_v62  ;;  %v4206_v7 = vor.u32 %v4204_v46, %v4194_v56  ;;  %v4260_v62 = vshrl.u32 %v11979_v39, 16  ;;  %v4252_v39 = vshrl.u32 %v11980_v60, 16  ;;  %v4256_v46 = vshll.u32 %v11982_v55, 16 }
 0x42d   : > { %6375 = vmatprep.mubr.bf16.mxu0 %v10990_v21  ;;  %v4210_v21 = vrot.slane %v4208_v0, 1 }
 0x42e   : > { %v4262_v2 = vor.u32 %v4260_v62, %v4250_v58  ;;  %v4258_v15 = vrot.slane %v4256_v46, 1 }
 0x42f   : > { %v4211_v50 = vsel %vm2167_vm0, %v4206_v7, %v4210_v21 }
 0x433   : > { %4637 = vmatmul.mubr.bf16.gmra.mrb[52].mxu1 %v4195_v24 }
 0x434   : > { %6376 = vmatmul.mubr.bf16.gmra.mrb[52].mxu0 %v11003_v25  ;;  %4643 = vmatprep.mubr.bf16.mxu1 %v4219_v4  ;;  %v4222_v25 = vor.u32 %v4220_v61, %v4210_v21  ;;  %v4276_v4 = vshrl.u32 %v11981_v8, 16  ;;  %v4282_v21 = vrot.slane %v4280_v22, 1  ;;  %v4272_v61 = vshll.u32 %v11984_v1, 16 }
 0x435   : > { %6382 = vmatprep.mubr.bf16.mxu0 %v11006_v27  ;;  %v4226_v27 = vrot.slane %v4224_v36, 1 }
 0x436   : > { %v4274_v38 = vrot.slane %v4272_v61, 1 }
 0x437   : > { %v4227_v23 = vsel %vm2167_vm0, %v4222_v25, %v4226_v27  ;;  %v4238_v16 = vor.u32 %v4236_v10, %v4226_v27  ;;  %v4298_v27 = vrot.slane %v4296_v51, 1  ;;  %v4340_v51 = vshrl.u32 %v11989_v49, 16 }
 0x439   : > { %v4243_v24 = vsel %vm2167_vm0, %v4238_v16, %v4242_v37  ;;  %v4310_v62 = vor.u32 %v4308_v5, %v4298_v27  ;;  %v6129_v16 = vrot.slane %v10874_v28, 1  ;;  %v11996_v28 = vld [vmem:[#allocation17_spill] sm:$0xff]  ;;  %v4332_v5 = vshrl.u32 %v11990_v45, 16 }
 0x43b   : > { %4644 = vmatmul.mubr.bf16.gmra.mrb[56].mxu1 %v4211_v50 }
 0x43c   : > { %6383 = vmatmul.mubr.bf16.gmra.mrb[56].mxu0 %v11019_v63  ;;  %4650 = vmatprep.mubr.bf16.mxu1 %v4235_v43  ;;  %v4251_v63 = vsel %vm2167_vm0, %v4246_v20, %v4250_v58  ;;  %v4292_v43 = vshrl.u32 %v11983_v32, 16  ;;  %v4284_v32 = vshrl.u32 %v11984_v1, 16 }
 0x43d   : > { %6389 = vmatprep.mubr.bf16.mxu0 %v11022_v18  ;;  %v4264_v18 = vshll.u32 %v11981_v8, 16  ;;  %v4268_v8 = vshrl.u32 %v11982_v55, 16 }
 0x43e   : > { %v11291_v42 = vpop.f32.mrb[0].mxu1  ;;  %v4294_v25 = vor.u32 %v4292_v43, %v4282_v21 }
 0x43f   : > { %v3729_v40 = vpop.f32.mrb[1].mxu1  ;;  %v4266_v56 = vrot.slane %v4264_v18, 1 }
 0x440   : > { %v11293_v29 = vpop.f32.mrb[2].mxu1 }
 0x441   : > { %v3732_v6 = vpop.f32.mrb[3].mxu1  ;;  %v4278_v7 = vor.u32 %v4276_v4, %v4266_v56 }
 0x442   : > { %v4286_v6 = vor.u32 %v4284_v32, %v4274_v38 }
 0x443   : > { %4651 = vmatmul.mubr.bf16.gmra.mrb[60].mxu1 %v4227_v23  ;;  %v4288_v23 = vshll.u32 %v11986_v13, 16 }
 0x444   : > { %6390 = vmatmul.mubr.bf16.gmra.mrb[60].mxu0 %v11035_v47  ;;  %4658 = vmatprep.mubr.bf16.mxu1 %v4251_v63  ;;  %v4267_v47 = vsel %vm2167_vm0, %v4262_v2, %v4266_v56  ;;  %v4300_v56 = vshrl.u32 %v11986_v13, 16  ;;  %v11997_v13 = vld [vmem:[#allocation4_spill] sm:$0xff] }
 0x445   : > { %6397 = vmatprep.mubr.bf16.mxu0 %v11038_v30  ;;  %v4254_v30 = vor.u32 %v4252_v39, %v4242_v37  ;;  %v4290_v63 = vrot.slane %v4288_v23, 1  ;;  %v11995_v39 = vld [vmem:[#allocation12_spill] sm:$0xff]  ;;  %v6127_v4 = vrot.slane %v11997_v13, 1  ;;  %v6137_v23 = vrot.slane %v10917_v48, 1 }
 0x446   : > { %v3735_v44 = vpop.f32.mrb[4].mxu1  ;;  %v6130_v46 = vsel %vm2978_vm1, %v11995_v39, %v6129_v16  ;;  %v4348_v39 = vshrl.u32 %v11993_v59, 16 }
 0x447   : > { %v3736_v9 = vpop.f32.mrb[5].mxu1  ;;  %v4259_v50 = vsel %vm2167_vm0, %v4254_v30, %v4258_v15  ;;  %v4291_v57 = vsel %vm2167_vm0, %v4286_v6, %v4290_v63  ;;  %v4304_v44 = vshll.u32 %v11988_v17, 16 }
 0x448   : > { %v11303_v35 = vpop.f32.mrb[6].mxu1 }
 0x449   : > { %v3739_v0 = vpop.f32.mrb[7].mxu1 }
 0x44a   : > { %v4302_v0 = vor.u32 %v4300_v56, %v4290_v63 }
 0x44b   : > { %4659 = vmatmul.mubr.bf16.gmra.mrb[64].mxu1 %v4243_v24  ;;  %v4324_v24 = vshrl.u32 %v11987_v53, 16 }
 0x44c   : > { %6398 = vmatmul.mubr.bf16.gmra.mrb[64].mxu0 %v11051_v54  ;;  %4665 = vmatprep.mubr.bf16.mxu1 %v4267_v47  ;;  %v4283_v54 = vsel %vm2167_vm0, %v4278_v7, %v4282_v21  ;;  %v4306_v47 = vrot.slane %v4304_v44, 1  ;;  %v11998_v7 = vld [vmem:[#allocation13_spill] sm:$0xff] }
 0x44d   : > { %6404 = vmatprep.mubr.bf16.mxu0 %v11054_v33  ;;  %v4270_v33 = vor.u32 %v4268_v8, %v4258_v15  ;;  %v4320_v8 = vshll.u32 %v11990_v45, 16  ;;  %v6135_v45 = vrot.slane %v10928_v26, 1 }
 0x44e   : > { %v11313_v60 = vpop.f32.mrb[8].mxu1 }
 0x44f   : > { %v3744_v14 = vpop.f32.mrb[9].mxu1  ;;  %v4275_v40 = vsel %vm2167_vm0, %v4270_v33, %v4274_v38  ;;  %v4344_v33 = vshll.u32 %v11991_v12, 16 }
 0x450   : > { %v3745_v19 = vpop.f32.mrb[10].mxu1 }
 0x451   : > { %v3746_v36 = vpop.f32.mrb[11].mxu1  ;;  %v4307_v19 = vsel %vm2167_vm0, %v4302_v0, %v4306_v47 }
 0x452   : > { %v11999_v36 = vld [vmem:[#allocation16_spill] sm:$0xff] }
 0x453   : > { %4666 = vmatmul.mubr.bf16.gmra.mrb[68].mxu1 %v4259_v50  ;;  %v4316_v50 = vshrl.u32 %v11988_v17, 16  ;;  %v6131_v17 = vrot.slane %v10912_v41, 1 }
 0x454   : > { %6405 = vmatmul.mubr.bf16.gmra.mrb[68].mxu0 %v11067_v34  ;;  %4672 = vmatprep.mubr.bf16.mxu1 %v4283_v54  ;;  %v4299_v34 = vsel %vm2167_vm0, %v4294_v25, %v4298_v27  ;;  %v6128_v54 = vsel %vm2978_vm1, %v11999_v36, %v6127_v4  ;;  %v4322_v27 = vrot.slane %v4320_v8, 1 }
 0x455   : > { %6411 = vmatprep.mubr.bf16.mxu0 %v11070_v31  ;;  %v4312_v31 = vshll.u32 %v11987_v53, 16  ;;  %v6133_v53 = vrot.slane %v11998_v7, 1  ;;  %v4318_v25 = vor.u32 %v4316_v50, %v4306_v47  ;;  %v6132_v63 = vsel %vm2978_vm1, %v6127_v4, %v6131_v17 }
 0x456   : > { %v11323_v55 = vpop.f32.mrb[12].mxu1  ;;  %v6136_v47 = vsel %vm2978_vm1, %v6131_v17, %v6135_v45  ;;  %v11402_v17 = vld [vmem:[%s1401_s9] ss:$0 sm:$0xff] }
 0x457   : > { %v3751_v20 = vpop.f32.mrb[13].mxu1  ;;  %v4314_v18 = vrot.slane %v4312_v31, 1  ;;  %v6134_v38 = vsel %vm2978_vm1, %v6129_v16, %v6133_v53  ;;  %v4336_v31 = vshll.u32 %v11993_v59, 16  ;;  %v6138_v48 = vsel %vm2978_vm1, %v6133_v53, %v6137_v23 }
 0x458   : > { %v11325_v58 = vpop.f32.mrb[14].mxu1  ;;  %v4334_v16 = vor.u32 %v4332_v5, %v4322_v27 }
 0x459   : > { %v3754_v10 = vpop.f32.mrb[15].mxu1  ;;  %v4315_v9 = vsel %vm2167_vm0, %v4310_v62, %v4314_v18  ;;  %v4326_v22 = vor.u32 %v4324_v24, %v4314_v18  ;;  %v4356_v62 = vshrl.u32 %v11991_v12, 16  ;;  %v12000_v18 = vld [vmem:[#allocation80_spill] sm:$0xff] }
 0x45b   : > { %4673 = vmatmul.mubr.bf16.gmra.mrb[72].mxu1 %v4275_v40  ;;  %v4346_v40 = vrot.slane %v4344_v33, 1 }
 0x45c   : > { %6412 = vmatmul.mubr.bf16.gmra.mrb[72].mxu0 %v11081_v11  ;;  %4680 = vmatprep.mubr.bf16.mxu1 %v4299_v34  ;;  %v4323_v34 = vsel %vm2167_vm0, %v4318_v25, %v4322_v27 }
 0x45d   : > { %6419 = vmatprep.mubr.bf16.mxu0 %v11085_v3  ;;  %v4328_v3 = vshll.u32 %v11989_v49, 16 }
 0x45e   : > { %v3757_v1 = vpop.f32.mrb[16].mxu1 }
 0x45f   : > { %v3758_v37 = vpop.f32.mrb[17].mxu1  ;;  %v4330_v30 = vrot.slane %v4328_v3, 1  ;;  %v4360_v1 = vshll.u32 %v12000_v18, 16 }
 0x460   : > { %v11336_v2 = vpop.f32.mrb[18].mxu1  ;;  %v4338_v37 = vrot.slane %v4336_v31, 1 }
 0x461   : > { %v3761_v11 = vpop.f32.mrb[19].mxu1  ;;  %v4331_v43 = vsel %vm2167_vm0, %v4326_v22, %v4330_v30  ;;  %v4342_v20 = vor.u32 %v4340_v51, %v4330_v30  ;;  %v4362_v56 = vrot.slane %v4360_v1, 1  ;;  %v6139_v30 = vrot.slane %v11199_v52, 1 }
 0x462   : > { %v12001_v11 = vld [vmem:[#allocation20_spill] sm:$0xff]  ;;  %v4339_v12 = vsel %vm2167_vm0, %v4334_v16, %v4338_v37  ;;  %v4350_v4 = vor.u32 %v4348_v39, %v4338_v37  ;;  %v7662_v1 = vadd.f32 %v11402_v17, %v11303_v35  ;;  %v7664_v37 = vadd.f32 %v11402_v17, %v11313_v60 }
 0x463   : > { %4681 = vmatmul.mubr.bf16.gmra.mrb[76].mxu1 %v4291_v57  ;;  %v4347_v41 = vsel %vm2167_vm0, %v4342_v20, %v4346_v40  ;;  %v4358_v57 = vor.u32 %v4356_v62, %v4346_v40  ;;  %v7658_v20 = vadd.f32 %v11402_v17, %v11291_v42 }
 0x464   : > { %6420 = vmatmul.mubr.bf16.gmra.mrb[76].mxu0 %v11996_v28  ;;  %4687 = vmatprep.mubr.bf16.mxu1 %v4315_v9  ;;  %v6141_v9 = vrot.slane %v12001_v11, 1 }
 0x465   : > { %6426 = vmatprep.mubr.bf16.mxu0 %v6130_v46  ;;  %v12002_v46 = vld [vmem:[#allocation82_spill] sm:$0xff]  ;;  %v4363_v13 = vsel %vm2167_vm0, %v4358_v57, %v4362_v56 }
 0x466   : > { %v11348_v15 = vpop.f32.mrb[20].mxu1  ;;  %v4352_v28 = vshll.u32 %v12002_v46, 16  ;;  %v6142_v26 = vsel %vm2978_vm1, %v6137_v23, %v6141_v9  ;;  %v7660_v23 = vadd.f32 %v11402_v17, %v11293_v29  ;;  %v7668_v46 = vadd.f32 %v11402_v17, %v11325_v58 }
 0x467   : > { %v3766_v21 = vpop.f32.mrb[21].mxu1  ;;  %v7672_v58 = vadd.f32 %v11402_v17, %v11348_v15 }
 0x468   : > { %v3767_v14 = vpop.f32.mrb[22].mxu1  ;;  %v4354_v22 = vrot.slane %v4352_v28, 1 }
 0x469   : > { %v3768_v61 = vpop.f32.mrb[23].mxu1 }
 0x46a   : > { %v4355_v21 = vsel %vm2167_vm0, %v4350_v4, %v4354_v22 }
 0x46b   : > { %4688 = vmatmul.mubr.bf16.gmra.mrb[80].mxu1 %v4307_v19  ;;  %v6140_v19 = vsel %vm2978_vm1, %v6135_v45, %v6139_v30 }
 0x46c   : > { %6427 = vmatmul.mubr.bf16.gmra.mrb[80].mxu0 %v6128_v54  ;;  %4694 = vmatprep.mubr.bf16.mxu1 %v4331_v43 }
 0x46d   : > { %6433 = vmatprep.mubr.bf16.mxu0 %v6134_v38 }
 0x46e   : > { %v11361_v32 = vpop.f32.mrb[24].mxu1 }
 0x46f   : > { %v3773_v10 = vpop.f32.mrb[25].mxu1 }
 0x470   : > { %v11364_v49 = vpop.f32.mrb[26].mxu1 }
 0x471   : > { %v3776_v6 = vpop.f32.mrb[27].mxu1 }
 0x473   : > { %4695 = vmatmul.mubr.bf16.gmra.mrb[84].mxu1 %v4323_v34 }
 0x474   : > { %6434 = vmatmul.mubr.bf16.gmra.mrb[84].mxu0 %v6132_v63  ;;  %4702 = vmatprep.mubr.bf16.mxu1 %v4347_v41 }
 0x475   : > { %6441 = vmatprep.mubr.bf16.mxu0 %v6138_v48 }
 0x476   : > { %v3779_v44 = vpop.f32.mrb[28].mxu1 }
 0x477   : > { %v3780_v24 = vpop.f32.mrb[29].mxu1 }
 0x478   : > { %v11376_v3 = vpop.f32.mrb[30].mxu1 }
 0x479   : > { %v3783_v0 = vpop.f32.mrb[31].mxu1 }
 0x47b   : > { %4703 = vmatmul.mubr.bf16.gmra.mrb[88].mxu1 %v4339_v12  ;;  %v7666_v12 = vadd.f32 %v11402_v17, %v11323_v55 }
 0x47c   : > { %6442 = vmatmul.mubr.bf16.gmra.mrb[88].mxu0 %v6136_v47  ;;  %4709 = vmatprep.mubr.bf16.mxu1 %v4363_v13 }
 0x47d   : > { %6448 = vmatprep.mubr.bf16.mxu0 %v6142_v26 }
 0x47e   : > { %v11385_v7 = vpop.f32.mrb[32].mxu1 }
 0x47f   : > { %v3788_v59 = vpop.f32.mrb[33].mxu1 }
 0x480   : > { %v3789_v53 = vpop.f32.mrb[34].mxu1  ;;  %v7670_v59 = vadd.f32 %v11402_v17, %v11336_v2  ;;  %v7674_v2 = vadd.f32 %v11402_v17, %v11361_v32 }
 0x481   : > { %v3790_v14 = vpop.f32.mrb[35].mxu1 }
 0x483   : > { %4710 = vmatmul.mubr.bf16.gmra.mrb[92].mxu1 %v4355_v21 }
 0x484   : > { %6449 = vmatmul.mubr.bf16.gmra.mrb[92].mxu0 %v6140_v19 }
 0x486   : > { %v11389_v50 = vpop.f32.mrb[36].mxu1 }
 0x487   : > { %v3795_v8 = vpop.f32.mrb[37].mxu1 }
 0x488   : > { %v11391_v61 = vpop.f32.mrb[38].mxu1 }
 0x489   : > { %v3798_v36 = vpop.f32.mrb[39].mxu1 }
 0x48e   : > { %v3801_v52 = vpop.f32.mrb[40].mxu1 }
 0x48f   : > { %v3802_v54 = vpop.f32.mrb[41].mxu1 }
 0x490   : > { %v11394_v43 = vpop.f32.mrb[42].mxu1 }
 0x491   : > { %v3805_v51 = vpop.f32.mrb[43].mxu1 }
 0x496   : > { %v11397_v33 = vpop.f32.mrb[44].mxu1 }
 0x497   : > { %v3810_v38 = vpop.f32.mrb[45].mxu1 }
 0x498   : > { %v3811_v25 = vpop.f32.mrb[46].mxu1 }
 0x499   : > { %v3812_v27 = vpop.f32.mrb[47].mxu1 }
 0x49f   : > { %v6281_v40 = vpop.f32.mrb[0].mxu0 }
 0x4a0   : > { %v7659_v10 = vadd.f32 %v7658_v20, %v6281_v40  ;;  %v6283_v34 = vpop.f32.mrb[1].mxu0  ;;  %v7676_v20 = vadd.f32 %v11402_v17, %v11364_v49  ;;  %v7680_v49 = vadd.f32 %v11402_v17, %v11385_v7 }
 0x4a1   : > { %v6284_v5 = vpop.f32.mrb[2].mxu0 }
 0x4a2   : > { %v7661_v31 = vadd.f32 %v7660_v23, %v6284_v5  ;;  %v6286_v6 = vpop.f32.mrb[3].mxu0  ;;  %v6488_v63 = vmax.f32 %v7659_v10, 0.0 }
 0x4a4   : > { %v6489_v41 = vmax.f32 %v7661_v31, 0.0 }
 0x4a6   : > { %v7534_v62 = vpack.c.bf16 %v6489_v41, %v6488_v63  ;;  %v7678_v41 = vadd.f32 %v11402_v17, %v11376_v3  ;;  %v7682_v3 = vadd.f32 %v11402_v17, %v11389_v50 }
 0x4a7   : > { %v6289_v18 = vpop.f32.mrb[4].mxu0 }
 0x4a8   : > { %7535 = vst [vmem:[%s11411_s21] sm:$0xff] %v7534_v62   ;;  %v6290_v42 = vpop.f32.mrb[5].mxu0 }
 0x4a9   : > { %v6291_v29 = vpop.f32.mrb[6].mxu0 }
 0x4aa   : > { %v7663_v48 = vadd.f32 %v7662_v1, %v6291_v29  ;;  %v6293_v16 = vpop.f32.mrb[7].mxu0 }
 0x4ac   : > { %v6490_v11 = vmax.f32 %v7663_v48, 0.0 }
 0x4af   : > { %v6296_v45 = vpop.f32.mrb[8].mxu0 }
 0x4b0   : > { %v7665_v57 = vadd.f32 %v7664_v37, %v6296_v45  ;;  %v6298_v56 = vpop.f32.mrb[9].mxu0 }
 0x4b1   : > { %v6299_v44 = vpop.f32.mrb[10].mxu0 }
 0x4b2   : > { %v6491_v9 = vmax.f32 %v7665_v57, 0.0  ;;  %v6300_v24 = vpop.f32.mrb[11].mxu0 }
 0x4b4   : > { %v7539_v35 = vpack.c.bf16 %v6491_v9, %v6490_v11  ;;  %v7684_v11 = vadd.f32 %v11402_v17, %v11391_v61  ;;  %v7688_v61 = vadd.f32 %v11402_v17, %v11397_v33 }
 0x4b6   : > { %7611 = vst [vmem:[%s11411_s21 + $0x8] sm:$0xff] %v7539_v35  }
 0x4b7   : > { %v6303_v39 = vpop.f32.mrb[12].mxu0 }
 0x4b8   : > { %v7667_v28 = vadd.f32 %v7666_v12, %v6303_v39  ;;  %v6305_v0 = vpop.f32.mrb[13].mxu0 }
 0x4b9   : > { %v6306_v60 = vpop.f32.mrb[14].mxu0 }
 0x4ba   : > { %v7669_v47 = vadd.f32 %v7668_v46, %v6306_v60  ;;  %v6308_v13 = vpop.f32.mrb[15].mxu0  ;;  %v6492_v26 = vmax.f32 %v7667_v28, 0.0  ;;  %v7686_v60 = vadd.f32 %v11402_v17, %v11394_v43 }
 0x4bc   : > { %v6493_v4 = vmax.f32 %v7669_v47, 0.0 }
 0x4be   : > { %v7544_v22 = vpack.c.bf16 %v6493_v4, %v6492_v26 }
 0x4bf   : > { %v6311_v30 = vpop.f32.mrb[16].mxu0 }
 0x4c0   : > { %7612 = vst [vmem:[%s11411_s21 + $0x10] sm:$0xff] %v7544_v22   ;;  %v6312_v55 = vpop.f32.mrb[17].mxu0 }
 0x4c1   : > { %v6313_v53 = vpop.f32.mrb[18].mxu0 }
 0x4c2   : > { %v7671_v21 = vadd.f32 %v7670_v59, %v6313_v53  ;;  %v6315_v14 = vpop.f32.mrb[19].mxu0 }
 0x4c4   : > { %v6494_v54 = vmax.f32 %v7671_v21, 0.0 }
 0x4c7   : > { %v6318_v19 = vpop.f32.mrb[20].mxu0 }
 0x4c8   : > { %v7673_v8 = vadd.f32 %v7672_v58, %v6318_v19  ;;  %v6320_v36 = vpop.f32.mrb[21].mxu0 }
 0x4c9   : > { %v6321_v52 = vpop.f32.mrb[22].mxu0 }
 0x4ca   : > { %v6495_v51 = vmax.f32 %v7673_v8, 0.0  ;;  %v6322_v38 = vpop.f32.mrb[23].mxu0 }
 0x4cc   : > { %v7549_v25 = vpack.c.bf16 %v6495_v51, %v6494_v54 }
 0x4ce   : > { %7613 = vst [vmem:[%s11411_s21 + $0x18] sm:$0xff] %v7549_v25  }
 0x4cf   : > { %v6325_v27 = vpop.f32.mrb[24].mxu0 }
 0x4d0   : > { %v7675_v40 = vadd.f32 %v7674_v2, %v6325_v27  ;;  %v6327_v23 = vpop.f32.mrb[25].mxu0 }
 0x4d1   : > { %v6328_v15 = vpop.f32.mrb[26].mxu0 }
 0x4d2   : > { %v7677_v10 = vadd.f32 %v7676_v20, %v6328_v15  ;;  %v6330_v34 = vpop.f32.mrb[27].mxu0  ;;  %v6496_v5 = vmax.f32 %v7675_v40, 0.0 }
 0x4d4   : > { %v6497_v31 = vmax.f32 %v7677_v10, 0.0 }
 0x4d6   : > { %v7554_v6 = vpack.c.bf16 %v6497_v31, %v6496_v5 }
 0x4d7   : > { %v6333_v63 = vpop.f32.mrb[28].mxu0 }
 0x4d8   : > { %7614 = vst [vmem:[%s11411_s21 + $0x20] sm:$0xff] %v7554_v6   ;;  %v6334_v32 = vpop.f32.mrb[29].mxu0 }
 0x4d9   : > { %v6335_v62 = vpop.f32.mrb[30].mxu0 }
 0x4da   : > { %v7679_v18 = vadd.f32 %v7678_v41, %v6335_v62  ;;  %v6337_v1 = vpop.f32.mrb[31].mxu0 }
 0x4dc   : > { %v6498_v37 = vmax.f32 %v7679_v18, 0.0 }
 0x4df   : > { %v6340_v42 = vpop.f32.mrb[32].mxu0 }
 0x4e0   : > { %v7681_v29 = vadd.f32 %v7680_v49, %v6340_v42  ;;  %v6342_v48 = vpop.f32.mrb[33].mxu0 }
 0x4e1   : > { %v6343_v16 = vpop.f32.mrb[34].mxu0 }
 0x4e2   : > { %v6499_v45 = vmax.f32 %v7681_v29, 0.0  ;;  %v6344_v57 = vpop.f32.mrb[35].mxu0 }
 0x4e4   : > { %v7559_v56 = vpack.c.bf16 %v6499_v45, %v6498_v37 }
 0x4e6   : > { %7615 = vst [vmem:[%s11411_s21 + $0x28] sm:$0xff] %v7559_v56  }
 0x4e7   : > { %v6347_v44 = vpop.f32.mrb[36].mxu0 }
 0x4e8   : > { %v7683_v9 = vadd.f32 %v7682_v3, %v6347_v44  ;;  %v6349_v24 = vpop.f32.mrb[37].mxu0 }
 0x4e9   : > { %v6350_v7 = vpop.f32.mrb[38].mxu0 }
 0x4ea   : > { %v7685_v35 = vadd.f32 %v7684_v11, %v6350_v7  ;;  %v6352_v12 = vpop.f32.mrb[39].mxu0  ;;  %v6500_v39 = vmax.f32 %v7683_v9, 0.0 }
 0x4ec   : > { %v6501_v46 = vmax.f32 %v7685_v35, 0.0 }
 0x4ee   : > { %v7564_v28 = vpack.c.bf16 %v6501_v46, %v6500_v39 }
 0x4ef   : > { %v6355_v0 = vpop.f32.mrb[40].mxu0 }
 0x4f0   : > { %7616 = vst [vmem:[%s11411_s21 + $0x30] sm:$0xff] %v7564_v28   ;;  %v6356_v50 = vpop.f32.mrb[41].mxu0 }
 0x4f1   : > { %v6357_v47 = vpop.f32.mrb[42].mxu0 }
 0x4f2   : > { %v7687_v13 = vadd.f32 %v7686_v60, %v6357_v47  ;;  %v6359_v26 = vpop.f32.mrb[43].mxu0 }
 0x4f4   : > { %v6502_v55 = vmax.f32 %v7687_v13, 0.0 }
 0x4f7   : > { %v6362_v4 = vpop.f32.mrb[44].mxu0 }
 0x4f8   : > { %v7689_v22 = vadd.f32 %v7688_v61, %v6362_v4  ;;  %v6364_v30 = vpop.f32.mrb[45].mxu0 }
 0x4f9   : > { %v6365_v59 = vpop.f32.mrb[46].mxu0 }
 0x4fa   : > { %v6503_v53 = vmax.f32 %v7689_v22, 0.0  ;;  %v6366_v21 = vpop.f32.mrb[47].mxu0 }
 0x4fc   : > { %v7569_v14 = vpack.c.bf16 %v6503_v53, %v6502_v55 }
 0x4fe   : > { %7617 = vst [vmem:[%s11411_s21 + $0x38] sm:$0xff] %v7569_v14   ;;  %v4630_v58 = vpop.f32.mrb[48].mxu1 }
 0x4ff   : > { %v7690_v43 = vadd.f32 %v11402_v17, %v4630_v58  ;;  %v6369_v19 = vpop.f32.mrb[48].mxu0  ;;  %v4632_v8 = vpop.f32.mrb[49].mxu1 }
 0x500   : > { %v6371_v36 = vpop.f32.mrb[49].mxu0  ;;  %v4633_v52 = vpop.f32.mrb[50].mxu1 }
 0x501   : > { %v7691_v54 = vadd.f32 %v7690_v43, %v6369_v19  ;;  %v7692_v33 = vadd.f32 %v11402_v17, %v4633_v52  ;;  %v6372_v51 = vpop.f32.mrb[50].mxu0  ;;  %v4635_v38 = vpop.f32.mrb[51].mxu1 }
 0x502   : > { %v6374_v25 = vpop.f32.mrb[51].mxu0 }
 0x503   : > { %v7693_v2 = vadd.f32 %v7692_v33, %v6372_v51  ;;  %v6504_v27 = vmax.f32 %v7691_v54, 0.0 }
 0x505   : > { %v6505_v20 = vmax.f32 %v7693_v2, 0.0 }
 0x506   : > { %v4638_v40 = vpop.f32.mrb[52].mxu1 }
 0x507   : > { %v7574_v23 = vpack.c.bf16 %v6505_v20, %v6504_v27  ;;  %v6377_v15 = vpop.f32.mrb[52].mxu0  ;;  %v4639_v10 = vpop.f32.mrb[53].mxu1 }
 0x508   : > { %v6378_v34 = vpop.f32.mrb[53].mxu0  ;;  %v4640_v5 = vpop.f32.mrb[54].mxu1 }
 0x509   : > { %7618 = vst [vmem:[%s11411_s21 + $0x40] sm:$0xff] %v7574_v23   ;;  %v7694_v31 = vadd.f32 %v11402_v17, %v4640_v5  ;;  %v6379_v6 = vpop.f32.mrb[54].mxu0  ;;  %v4642_v63 = vpop.f32.mrb[55].mxu1 }
 0x50a   : > { %v6381_v41 = vpop.f32.mrb[55].mxu0 }
 0x50b   : > { %v7695_v32 = vadd.f32 %v7694_v31, %v6379_v6 }
 0x50d   : > { %v6506_v57 = vmax.f32 %v7695_v32, 0.0 }
 0x50e   : > { %v4645_v62 = vpop.f32.mrb[56].mxu1 }
 0x50f   : > { %v7696_v18 = vadd.f32 %v11402_v17, %v4645_v62  ;;  %v6384_v1 = vpop.f32.mrb[56].mxu0  ;;  %v4647_v49 = vpop.f32.mrb[57].mxu1 }
 0x510   : > { %v6386_v42 = vpop.f32.mrb[57].mxu0  ;;  %v4648_v29 = vpop.f32.mrb[58].mxu1 }
 0x511   : > { %v7697_v48 = vadd.f32 %v7696_v18, %v6384_v1  ;;  %v6387_v16 = vpop.f32.mrb[58].mxu0  ;;  %v4649_v37 = vpop.f32.mrb[59].mxu1 }
 0x512   : > { %v6388_v45 = vpop.f32.mrb[59].mxu0 }
 0x513   : > { %v6507_v56 = vmax.f32 %v7697_v48, 0.0 }
 0x515   : > { %v7579_v3 = vpack.c.bf16 %v6507_v56, %v6506_v57 }
 0x516   : > { %v4652_v44 = vpop.f32.mrb[60].mxu1 }
 0x517   : > { %7619 = vst [vmem:[%s11411_s21 + $0x48] sm:$0xff] %v7579_v3   ;;  %v7698_v11 = vadd.f32 %v11402_v17, %v4652_v44  ;;  %v6391_v9 = vpop.f32.mrb[60].mxu0  ;;  %v4654_v24 = vpop.f32.mrb[61].mxu1 }
 0x518   : > { %v6393_v7 = vpop.f32.mrb[61].mxu0  ;;  %v4655_v35 = vpop.f32.mrb[62].mxu1 }
 0x519   : > { %v7699_v12 = vadd.f32 %v7698_v11, %v6391_v9  ;;  %v7700_v39 = vadd.f32 %v11402_v17, %v4655_v35  ;;  %v6394_v46 = vpop.f32.mrb[62].mxu0  ;;  %v4657_v28 = vpop.f32.mrb[63].mxu1 }
 0x51a   : > { %v6396_v0 = vpop.f32.mrb[63].mxu0 }
 0x51b   : > { %v7701_v60 = vadd.f32 %v7700_v39, %v6394_v46  ;;  %v6508_v50 = vmax.f32 %v7699_v12, 0.0 }
 0x51d   : > { %v6509_v47 = vmax.f32 %v7701_v60, 0.0 }
 0x51e   : > { %v4660_v13 = vpop.f32.mrb[64].mxu1 }
 0x51f   : > { %v7584_v26 = vpack.c.bf16 %v6509_v47, %v6508_v50  ;;  %v6399_v61 = vpop.f32.mrb[64].mxu0  ;;  %v4661_v4 = vpop.f32.mrb[65].mxu1 }
 0x520   : > { %v6400_v22 = vpop.f32.mrb[65].mxu0  ;;  %v4662_v30 = vpop.f32.mrb[66].mxu1 }
 0x521   : > { %7620 = vst [vmem:[%s11411_s21 + $0x50] sm:$0xff] %v7584_v26   ;;  %v7702_v59 = vadd.f32 %v11402_v17, %v4662_v30  ;;  %v6401_v55 = vpop.f32.mrb[66].mxu0  ;;  %v4664_v53 = vpop.f32.mrb[67].mxu1 }
 0x522   : > { %v6403_v21 = vpop.f32.mrb[67].mxu0 }
 0x523   : > { %v7703_v14 = vadd.f32 %v7702_v59, %v6401_v55 }
 0x525   : > { %v6510_v25 = vmax.f32 %v7703_v14, 0.0 }
 0x526   : > { %v4667_v58 = vpop.f32.mrb[68].mxu1 }
 0x527   : > { %v7704_v43 = vadd.f32 %v11402_v17, %v4667_v58  ;;  %v6406_v19 = vpop.f32.mrb[68].mxu0  ;;  %v4669_v8 = vpop.f32.mrb[69].mxu1 }
 0x528   : > { %v6408_v36 = vpop.f32.mrb[69].mxu0  ;;  %v4670_v52 = vpop.f32.mrb[70].mxu1 }
 0x529   : > { %v7705_v54 = vadd.f32 %v7704_v43, %v6406_v19  ;;  %v6409_v33 = vpop.f32.mrb[70].mxu0  ;;  %v4671_v51 = vpop.f32.mrb[71].mxu1 }
 0x52a   : > { %v6410_v38 = vpop.f32.mrb[71].mxu0 }
 0x52b   : > { %v6511_v2 = vmax.f32 %v7705_v54, 0.0 }
 0x52d   : > { %v7589_v27 = vpack.c.bf16 %v6511_v2, %v6510_v25 }
 0x52e   : > { %v4674_v20 = vpop.f32.mrb[72].mxu1 }
 0x52f   : > { %7621 = vst [vmem:[%s11411_s21 + $0x58] sm:$0xff] %v7589_v27   ;;  %v7706_v40 = vadd.f32 %v11402_v17, %v4674_v20  ;;  %v6413_v23 = vpop.f32.mrb[72].mxu0  ;;  %v4676_v15 = vpop.f32.mrb[73].mxu1 }
 0x530   : > { %v6415_v10 = vpop.f32.mrb[73].mxu0  ;;  %v4677_v34 = vpop.f32.mrb[74].mxu1 }
 0x531   : > { %v7707_v5 = vadd.f32 %v7706_v40, %v6413_v23  ;;  %v7708_v31 = vadd.f32 %v11402_v17, %v4677_v34  ;;  %v6416_v6 = vpop.f32.mrb[74].mxu0  ;;  %v4679_v63 = vpop.f32.mrb[75].mxu1 }
 0x532   : > { %v6418_v41 = vpop.f32.mrb[75].mxu0 }
 0x533   : > { %v7709_v32 = vadd.f32 %v7708_v31, %v6416_v6  ;;  %v6512_v62 = vmax.f32 %v7707_v5, 0.0 }
 0x535   : > { %v6513_v18 = vmax.f32 %v7709_v32, 0.0 }
 0x536   : > { %v4682_v1 = vpop.f32.mrb[76].mxu1 }
 0x537   : > { %v7594_v49 = vpack.c.bf16 %v6513_v18, %v6512_v62  ;;  %v6421_v42 = vpop.f32.mrb[76].mxu0  ;;  %v4683_v29 = vpop.f32.mrb[77].mxu1  ;;  %v6708_v18 = vld [vmem:[%s11411_s21 + $0x4] sm:$0xf] (%p8790_p9)  ;;  %v6710_v1 = vld [vmem:[%s11411_s21 + $0x8] sm:$0xf] (%p8790_p9) }
 0x538   : > { %v6422_v48 = vpop.f32.mrb[77].mxu0  ;;  %v4684_v16 = vpop.f32.mrb[78].mxu1  ;;  %v6714_v42 = vld [vmem:[%s11411_s21 + $0x10] sm:$0xf] (%p8790_p9)  ;;  %v6716_v29 = vld [vmem:[%s11411_s21 + $0x14] sm:$0xf] (%p8790_p9) }
 0x539   : > { %7622 = vst [vmem:[%s11411_s21 + $0x60] sm:$0xff] %v7594_v49   ;;  %v7710_v37 = vadd.f32 %v11402_v17, %v4684_v16  ;;  %v6423_v45 = vpop.f32.mrb[78].mxu0  ;;  %v4686_v57 = vpop.f32.mrb[79].mxu1  ;;  %v6712_v49 = vld [vmem:[%s11411_s21 + $0xc] sm:$0xf] (%p8790_p9) }
 0x53a   : > { %v6425_v56 = vpop.f32.mrb[79].mxu0  ;;  %v6718_v48 = vld [vmem:[%s11411_s21 + $0x18] sm:$0xf] (%p8790_p9)  ;;  %v6720_v16 = vld [vmem:[%s11411_s21 + $0x1c] sm:$0xf] (%p8790_p9) }
 0x53b   : > { %v7711_v3 = vadd.f32 %v7710_v37, %v6423_v45  ;;  %v6722_v37 = vld [vmem:[%s11411_s21 + $0x20] sm:$0xf] (%p8790_p9)  ;;  %v6724_v45 = vld [vmem:[%s11411_s21 + $0x24] sm:$0xf] (%p8790_p9)  ;;  %6709 = vst [vmem:[%s11485_s26 + $0x8] sm:$0xf] (%p8790_p9), %v6708_v18 }
 0x53c   : > { %6711 = vst [vmem:[%s11485_s26 + $0x10] sm:$0xf] (%p8790_p9), %v6710_v1  ;;  %6713 = vst [vmem:[%s11485_s26 + $0x18] sm:$0xf] (%p8790_p9), %v6712_v49  ;;  %v6726_v57 = vld [vmem:[%s11411_s21 + $0x28] sm:$0xf] (%p8790_p9) }
 0x53d   : > { %v6514_v0 = vmax.f32 %v7711_v3, 0.0  ;;  %6715 = vst [vmem:[%s11485_s26 + $0x20] sm:$0xf] (%p8790_p9), %v6714_v42  ;;  %6717 = vst [vmem:[%s11485_s26 + $0x28] sm:$0xf] (%p8790_p9), %v6716_v29 }
 0x53e   : > { %v4689_v44 = vpop.f32.mrb[80].mxu1  ;;  %6719 = vst [vmem:[%s11485_s26 + $0x30] sm:$0xf] (%p8790_p9), %v6718_v48  ;;  %6721 = vst [vmem:[%s11485_s26 + $0x38] sm:$0xf] (%p8790_p9), %v6720_v16 }
 0x53f   : > { %v7712_v11 = vadd.f32 %v11402_v17, %v4689_v44  ;;  %v6428_v9 = vpop.f32.mrb[80].mxu0  ;;  %v4691_v24 = vpop.f32.mrb[81].mxu1  ;;  %6723 = vst [vmem:[%s11485_s26 + $0x40] sm:$0xf] (%p8790_p9), %v6722_v37  ;;  %6725 = vst [vmem:[%s11485_s26 + $0x48] sm:$0xf] (%p8790_p9), %v6724_v45 }
 0x540   : > { %v6430_v7 = vpop.f32.mrb[81].mxu0  ;;  %v4692_v35 = vpop.f32.mrb[82].mxu1  ;;  %v6728_v56 = vld [vmem:[%s11411_s21 + $0x2c] sm:$0xf] (%p8790_p9)  ;;  %v6730_v3 = vld [vmem:[%s11411_s21 + $0x30] sm:$0xf] (%p8790_p9) }
 0x541   : > { %v7713_v12 = vadd.f32 %v7712_v11, %v6428_v9  ;;  %v6431_v39 = vpop.f32.mrb[82].mxu0  ;;  %v4693_v46 = vpop.f32.mrb[83].mxu1  ;;  %6727 = vst [vmem:[%s11485_s26 + $0x50] sm:$0xf] (%p8790_p9), %v6726_v57  ;;  %6729 = vst [vmem:[%s11485_s26 + $0x58] sm:$0xf] (%p8790_p9), %v6728_v56 }
 0x542   : > { %v6432_v28 = vpop.f32.mrb[83].mxu0  ;;  %6731 = vst [vmem:[%s11485_s26 + $0x60] sm:$0xf] (%p8790_p9), %v6730_v3  ;;  %v6732_v44 = vld [vmem:[%s11411_s21 + $0x34] sm:$0xf] (%p8790_p9) }
 0x543   : > { %v6515_v60 = vmax.f32 %v7713_v12, 0.0  ;;  %v6734_v11 = vld [vmem:[%s11411_s21 + $0x38] sm:$0xf] (%p8790_p9)  ;;  %v6736_v9 = vld [vmem:[%s11411_s21 + $0x3c] sm:$0xf] (%p8790_p9) }
 0x544   : > { %6733 = vst [vmem:[%s11485_s26 + $0x68] sm:$0xf] (%p8790_p9), %v6732_v44  ;;  %6735 = vst [vmem:[%s11485_s26 + $0x70] sm:$0xf] (%p8790_p9), %v6734_v11  ;;  %v6738_v24 = vld [vmem:[%s11411_s21 + $0x40] sm:$0xf] (%p8790_p9) }
 0x545   : > { %v7599_v50 = vpack.c.bf16 %v6515_v60, %v6514_v0  ;;  %6737 = vst [vmem:[%s11485_s26 + $0x78] sm:$0xf] (%p8790_p9), %v6736_v9  ;;  %v6740_v7 = vld [vmem:[%s11411_s21 + $0x44] sm:$0xf] (%p8790_p9)  ;;  %v6742_v35 = vld [vmem:[%s11411_s21 + $0x48] sm:$0xf] (%p8790_p9) }
 0x546   : > { %v4696_v47 = vpop.f32.mrb[84].mxu1  ;;  %6739 = vst [vmem:[%s11485_s26 + $0x80] sm:$0xf] (%p8790_p9), %v6738_v24  ;;  %6741 = vst [vmem:[%s11485_s26 + $0x88] sm:$0xf] (%p8790_p9), %v6740_v7 }
 0x547   : > { %7623 = vst [vmem:[%s11411_s21 + $0x68] sm:$0xff] %v7599_v50   ;;  %v7714_v13 = vadd.f32 %v11402_v17, %v4696_v47  ;;  %v6435_v26 = vpop.f32.mrb[84].mxu0  ;;  %v4698_v61 = vpop.f32.mrb[85].mxu1  ;;  %6743 = vst [vmem:[%s11485_s26 + $0x90] sm:$0xf] (%p8790_p9), %v6742_v35 }
 0x548   : > { %v6437_v4 = vpop.f32.mrb[85].mxu0  ;;  %v4699_v22 = vpop.f32.mrb[86].mxu1  ;;  %v6744_v12 = vld [vmem:[%s11411_s21 + $0x4c] sm:$0xf] (%p8790_p9)  ;;  %v6746_v39 = vld [vmem:[%s11411_s21 + $0x50] sm:$0xf] (%p8790_p9) }
 0x549   : > { %v7715_v30 = vadd.f32 %v7714_v13, %v6435_v26  ;;  %v7716_v59 = vadd.f32 %v11402_v17, %v4699_v22  ;;  %v6438_v55 = vpop.f32.mrb[86].mxu0  ;;  %v4701_v53 = vpop.f32.mrb[87].mxu1  ;;  %v6748_v46 = vld [vmem:[%s11411_s21 + $0x54] sm:$0xf] (%p8790_p9)  ;;  %6745 = vst [vmem:[%s11485_s26 + $0x98] sm:$0xf] (%p8790_p9), %v6744_v12 }
 0x54a   : > { %v6440_v21 = vpop.f32.mrb[87].mxu0  ;;  %6747 = vst [vmem:[%s11485_s26 + $0xa0] sm:$0xf] (%p8790_p9), %v6746_v39  ;;  %6749 = vst [vmem:[%s11485_s26 + $0xa8] sm:$0xf] (%p8790_p9), %v6748_v46 }
 0x54b   : > { %v7717_v14 = vadd.f32 %v7716_v59, %v6438_v55  ;;  %v6516_v58 = vmax.f32 %v7715_v30, 0.0  ;;  %v6750_v28 = vld [vmem:[%s11411_s21 + $0x58] sm:$0xf] (%p8790_p9)  ;;  %v6752_v0 = vld [vmem:[%s11411_s21 + $0x5c] sm:$0xf] (%p8790_p9) }
 0x54c   : > { %v6754_v60 = vld [vmem:[%s11411_s21 + $0x60] sm:$0xf] (%p8790_p9)  ;;  %6751 = vst [vmem:[%s11485_s26 + $0xb0] sm:$0xf] (%p8790_p9), %v6750_v28  ;;  %6753 = vst [vmem:[%s11485_s26 + $0xb8] sm:$0xf] (%p8790_p9), %v6752_v0 }
 0x54d   : > { %v6517_v43 = vmax.f32 %v7717_v14, 0.0  ;;  %6755 = vst [vmem:[%s11485_s26 + $0xc0] sm:$0xf] (%p8790_p9), %v6754_v60  ;;  %v6756_v50 = vld [vmem:[%s11411_s21 + $0x64] sm:$0xf] (%p8790_p9) }
 0x54e   : > { %v4704_v19 = vpop.f32.mrb[88].mxu1  ;;  %v6758_v47 = vld [vmem:[%s11411_s21 + $0x68] sm:$0xf] (%p8790_p9)  ;;  %v6760_v13 = vld [vmem:[%s11411_s21 + $0x6c] sm:$0xf] (%p8790_p9) }
 0x54f   : > { %v7604_v8 = vpack.c.bf16 %v6517_v43, %v6516_v58  ;;  %v6443_v36 = vpop.f32.mrb[88].mxu0  ;;  %v4705_v52 = vpop.f32.mrb[89].mxu1  ;;  %6757 = vst [vmem:[%s11485_s26 + $0xc8] sm:$0xf] (%p8790_p9), %v6756_v50  ;;  %6759 = vst [vmem:[%s11485_s26 + $0xd0] sm:$0xf] (%p8790_p9), %v6758_v47 }
 0x550   : > { %v6444_v54 = vpop.f32.mrb[89].mxu0  ;;  %v4706_v33 = vpop.f32.mrb[90].mxu1  ;;  %6761 = vst [vmem:[%s11485_s26 + $0xd8] sm:$0xf] (%p8790_p9), %v6760_v13 }
 0x551   : > { %7624 = vst [vmem:[%s11411_s21 + $0x70] sm:$0xff] %v7604_v8   ;;  %v7718_v51 = vadd.f32 %v11402_v17, %v4706_v33  ;;  %v6445_v38 = vpop.f32.mrb[90].mxu0  ;;  %v4708_v25 = vpop.f32.mrb[91].mxu1 }
 0x552   : > { %v6447_v2 = vpop.f32.mrb[91].mxu0 }
 0x553   : > { %v7719_v27 = vadd.f32 %v7718_v51, %v6445_v38 }
 0x555   : > { %v6518_v41 = vmax.f32 %v7719_v27, 0.0 }
 0x556   : > { %v4711_v20 = vpop.f32.mrb[92].mxu1 }
 0x557   : > { %v7720_v40 = vadd.f32 %v11402_v17, %v4711_v20  ;;  %v6450_v23 = vpop.f32.mrb[92].mxu0  ;;  %v4713_v15 = vpop.f32.mrb[93].mxu1  ;;  %v6706_v17 = vld [vmem:[%s11411_s21] sm:$0xf] (%p8790_p9) }
 0x558   : > { %v6452_v10 = vpop.f32.mrb[93].mxu0  ;;  %v4714_v34 = vpop.f32.mrb[94].mxu1  ;;  %6707 = vst [vmem:[%s11485_s26] sm:$0xf] (%p8790_p9), %v6706_v17  ;;  %v6762_v26 = vld [vmem:[%s11411_s21 + $0x70] sm:$0xf] (%p8790_p9) }
 0x559   : > { %v7721_v5 = vadd.f32 %v7720_v40, %v6450_v23  ;;  %v6453_v31 = vpop.f32.mrb[94].mxu0  ;;  %v4715_v6 = vpop.f32.mrb[95].mxu1  ;;  %6686 = sbr.rel (!%p8790_p9) target bundleno = 1384 (0x568), region = 77  ;;  %v6764_v61 = vld [vmem:[%s11411_s21 + $0x74] sm:$0xf] (%p8790_p9) }
 0x55a   : > { %v6454_v63 = vpop.f32.mrb[95].mxu0  ;;  %6763 = vst [vmem:[%s11485_s26 + $0xe0] sm:$0xf] (%p8790_p9), %v6762_v26  ;;  %6765 = vst [vmem:[%s11485_s26 + $0xe8] sm:$0xf] (%p8790_p9), %v6764_v61 }
 0x55b   : > { %v6519_v32 = vmax.f32 %v7721_v5, 0.0 }
 0x55d   : > { %v7609_v62 = vpack.c.bf16 %v6519_v32, %v6518_v41 }
 0x55f   : > { %7625 = vst [vmem:[%s11411_s21 + $0x78] sm:$0xff] %v7609_v62  }
 0x566   : > { %v6766_v4 = vld [vmem:[%s11411_s21 + $0x78] sm:$0xf]  ;;  %v6768_v22 = vld [vmem:[%s11411_s21 + $0x7c] sm:$0xf] }
 0x567   : > { %6767 = vst [vmem:[%s11485_s26 + $0xf0] sm:$0xf] %v6766_v4  ;;  %6769 = vst [vmem:[%s11485_s26 + $0xf8] sm:$0xf] %v6768_v22 }
 0x568 PF: > { %s13_s20 = sadd.s32 1, %s8700_s20   ;;  %s12003_s12 = smov %s8672_s13 }
 0x569   : > { %p10_p2 = scmp.ge.s32.totalorder %s13_s20, 6   ;;  %s12004_s13 = smov %s8795_s4 }
 0x56a   : > { %s12005_s14 = smov %s8680_s15  ;;  %s12006_s15 = smov %s8784_s27 }
 0x56b   : > { %s12007_s16 = smov %s8692_s18  ;;  %s12008_s17 = smov %s8696_s19 }
 0x56c   : > { %s12009_s18 = smov %s12012_s22  ;;  %s12010_s19 = smov %s12016_s23 }
 0x56d   :  { %12 = sbr.rel (!%p10_p2) target bundleno = 5 (0x5), region = 163 }

// kernel: forward.3
= control target key start
LH: loop header
LB: loop body
LE: loop exit
PB: predicated region body
PF: predicated region fallthrough
CT: control target
= control target key end

     0   :  { %8 = vsyncpa [#allocation4], 0  ;;  %s11200_s0 = inlined_call_operand.vmem [shape: bf16[2,19,24,256], index: 0, kind: input, shape index: {}]   ;;  %s11201_s1 = inlined_call_operand.vmem [shape: bf16[3,3,256,256], index: 1, kind: input, shape index: {}]   ;;  %s11202_s2 = inlined_call_operand.vmem [shape: f32[1,256], index: 2, kind: input, shape index: {}]   ;;  %s11203_s3 = inlined_call_operand.hbm [shape: f32[2,16,16,256], index: 3, kind: output, shape index: {}]  }
   0x1   :  { %10 = vsyncpa [#allocation4 + $0x1], 0  ;;  %s8413_s12 = smov 0   ;;  %s8415_s13 = smov 0  }
   0x2   :  { %s8417_s14 = smov 0   ;;  %s8419_s15 = smov 0  }
   0x3   :  { %s8421_s16 = smov 0   ;;  %s8423_s17 = smov 0  }
   0x4   :  { %s8425_s18 = smov 0   ;;  %s8427_s19 = smov 0  }
   0x5   :  { %s8429_s20 = smov 0   ;;  %s8431_s21 = smov 0  }
   0x6 LB: > { %s6618_s22 = sadd.s32 4294967295, %s8386_s21   ;;  %s6619_s23 = sadd.s32 4294967294, %s8386_s21   ;;  %s8386_s21 = sphi %s8431_s21, %s16_s21   ;;  %s8382_s20 = sphi %s8429_s20, %s11629_s20   ;;  %s8378_s19 = sphi %s8427_s19, %s11628_s19   ;;  %s8374_s18 = sphi %s8425_s18, %s11627_s18   ;;  %s8370_s17 = sphi %s8423_s17, %s11626_s17   ;;  %s8366_s16 = sphi %s8421_s16, %s11625_s16   ;;  %s8362_s15 = sphi %s8419_s15, %s11624_s15   ;;  %s8358_s14 = sphi %s8417_s14, %s11623_s14   ;;  %s8354_s13 = sphi %s8415_s13, %s11622_s13   ;;  %s8350_s12 = sphi %s8413_s12, %s11621_s12  }
   0x7   : > { %s25_s24 = sadd.s32 1, %s8378_s19  ;;  %s28_s25 = sadd.s32 1, %s8382_s20 }
   0x8   : > { %p26_p0 = scmp.ge.s32.totalorder %s25_s24, 2  ;;  %s61_s26 = sadd.s32 1, %s8366_s16 }
   0x9   : > { %p68_p1 = scmp.ne.s32.totalorder %s8366_s16, %s8362_s15  ;;  %p69_p2 = scmp.eq.s32.totalorder %s8386_s21, 0 }
   0xa   : > { %s11631_s24 = smov (%p26_p0, %s25_s24), 0  ;;  %s11633_s25 = smov (!%p26_p0, %s28_s25), %s8382_s20 }
   0xb   : > { %s58_s27 = ssub.s32 %s8378_s19, %s11631_s24  ;;  %p8476_p3 = por %p69_p2, %p68_p1 }
   0xc   : > { %p30_p4 = scmp.ge.s32.totalorder %s11633_s25, 2  ;;  %p59_p5 = scmp.eq.s32.totalorder %s58_s27, 0 }
   0xd   : > { %s115_s29 = sadd.s32 1, %s8358_s14  ;;  %p125_p6 = scmp.ne.s32.totalorder %s8358_s14, %s8354_s13 }
   0xe   : > { %s11635_s25 = smov (%p30_p4, %s11633_s25), 0  ;;  %p126_p7 = scmp.eq.s32.totalorder %s6618_s22, 3 }
   0xf   : > { %s8486_s30 = scalar_select %p59_p5, %s8366_s16, %s61_s26  }
  0x10   : > { %s110_s4 = ssub.s32 %s8382_s20, %s11635_s25  ;;  %p131_p8 = scmp.ne.s32.totalorder %s8354_s13, %s8350_s12 }
  0x11   : > { %s112_s5 = sor.u32 %s110_s4, %s58_s27  ;;  %p8492_p10 = por %p126_p7, %p125_p6 }
  0x12   : > { %p113_p9 = scmp.eq.s32.totalorder %s112_s5, 0  ;;  %p132_p11 = scmp.eq.s32.totalorder %s6619_s23, 3 }
  0x13   : > { %p6621_p13 = scmp.ge.s32.totalorder %s8386_s21, 4 }
  0x14   : > { %s8497_s7 = scalar_select %p113_p9, %s8358_s14, %s115_s29  }
  0x15   : > { %p8499_p12 = por %p132_p11, %p131_p8  ;;  %148 = sbr.rel (%p6621_p13) target bundleno = 224 (0xe0), region = 16 }
  0x1c   : > { %159 = sbr.rel (!%p8476_p3) target bundleno = 224 (0xe0), region = 24  ;;  %s161_s9 = sand.u32 (%p8476_p3), 1, %s8366_s16  }
  0x1d   : > { %s6622_s10 = sshll.u32 (%p8476_p3), %s8378_s19, 2  ;;  %s7908_s11 = smul.u32 (%p8476_p3), 1152, %s161_s9 }
  0x1e   : > { %s8511_s23 = scalar_lea.vmem (%p8476_p3), %s11201_s1, %s6622_s10 }
  0x1f   : > { %v181_v0 = vld [vmem:[%s8511_s23] sm:$0xf] (%p8476_p3)  ;;  %v183_v1 = vld [vmem:[%s8511_s23 + $0x8] sm:$0xf] (%p8476_p3)  ;;  %v185_v2 = vld [vmem:[%s8511_s23 + $0x10] sm:$0xf] (%p8476_p3) }
  0x20   : > { %v187_v3 = vld [vmem:[%s8511_s23 + $0x18] sm:$0xf] (%p8476_p3)  ;;  %v189_v4 = vld [vmem:[%s8511_s23 + $0x20] sm:$0xf] (%p8476_p3)  ;;  %s8518_s27 = scalar_lea.vmem (%p8476_p3), [#allocation2], %s7908_s11 }
  0x21   : > { %182 = vst [vmem:[%s8518_s27] sm:$0xf] (%p8476_p3), %v181_v0  ;;  %184 = vst [vmem:[%s8518_s27 + $0x4] sm:$0xf] (%p8476_p3), %v183_v1  ;;  %v191_v5 = vld [vmem:[%s8511_s23 + $0x28] sm:$0xf] (%p8476_p3) }
  0x22   : > { %186 = vst [vmem:[%s8518_s27 + $0x8] sm:$0xf] (%p8476_p3), %v185_v2  ;;  %188 = vst [vmem:[%s8518_s27 + $0xc] sm:$0xf] (%p8476_p3), %v187_v3  ;;  %v193_v6 = vld [vmem:[%s8511_s23 + $0x30] sm:$0xf] (%p8476_p3) }
  0x23   : > { %190 = vst [vmem:[%s8518_s27 + $0x10] sm:$0xf] %v189_v4  ;;  %v195_v7 = vld [vmem:[%s8511_s23 + $0x38] sm:$0xf]  ;;  %192 = vst [vmem:[%s8518_s27 + $0x14] sm:$0xf] %v191_v5 }
  0x24   : > { %194 = vst [vmem:[%s8518_s27 + $0x18] sm:$0xf] %v193_v6  ;;  %196 = vst [vmem:[%s8518_s27 + $0x1c] sm:$0xf] %v195_v7  ;;  %v197_v8 = vld [vmem:[%s8511_s23 + $0x40] sm:$0xf] }
  0x25   : > { %v199_v9 = vld [vmem:[%s8511_s23 + $0x48] sm:$0xf]  ;;  %v201_v10 = vld [vmem:[%s8511_s23 + $0x50] sm:$0xf]  ;;  %198 = vst [vmem:[%s8518_s27 + $0x20] sm:$0xf] %v197_v8 }
  0x26   : > { %200 = vst [vmem:[%s8518_s27 + $0x24] sm:$0xf] %v199_v9  ;;  %202 = vst [vmem:[%s8518_s27 + $0x28] sm:$0xf] %v201_v10  ;;  %v203_v11 = vld [vmem:[%s8511_s23 + $0x58] sm:$0xf] }
  0x27   : > { %v205_v12 = vld [vmem:[%s8511_s23 + $0x60] sm:$0xf]  ;;  %v207_v13 = vld [vmem:[%s8511_s23 + $0x68] sm:$0xf]  ;;  %204 = vst [vmem:[%s8518_s27 + $0x2c] sm:$0xf] %v203_v11 }
  0x28   : > { %206 = vst [vmem:[%s8518_s27 + $0x30] sm:$0xf] %v205_v12  ;;  %208 = vst [vmem:[%s8518_s27 + $0x34] sm:$0xf] %v207_v13  ;;  %v209_v14 = vld [vmem:[%s8511_s23 + $0x70] sm:$0xf] }
  0x29   : > { %v211_v15 = vld [vmem:[%s8511_s23 + $0x78] sm:$0xf]  ;;  %v213_v16 = vld [vmem:[%s8511_s23 + $0x80] sm:$0xf]  ;;  %210 = vst [vmem:[%s8518_s27 + $0x38] sm:$0xf] %v209_v14 }
  0x2a   : > { %212 = vst [vmem:[%s8518_s27 + $0x3c] sm:$0xf] %v211_v15  ;;  %214 = vst [vmem:[%s8518_s27 + $0x40] sm:$0xf] %v213_v16  ;;  %v215_v17 = vld [vmem:[%s8511_s23 + $0x88] sm:$0xf] }
  0x2b   : > { %v217_v18 = vld [vmem:[%s8511_s23 + $0x90] sm:$0xf]  ;;  %v219_v19 = vld [vmem:[%s8511_s23 + $0x98] sm:$0xf]  ;;  %216 = vst [vmem:[%s8518_s27 + $0x44] sm:$0xf] %v215_v17 }
  0x2c   : > { %218 = vst [vmem:[%s8518_s27 + $0x48] sm:$0xf] %v217_v18  ;;  %220 = vst [vmem:[%s8518_s27 + $0x4c] sm:$0xf] %v219_v19  ;;  %v221_v20 = vld [vmem:[%s8511_s23 + $0xa0] sm:$0xf] }
  0x2d   : > { %v223_v21 = vld [vmem:[%s8511_s23 + $0xa8] sm:$0xf]  ;;  %v225_v22 = vld [vmem:[%s8511_s23 + $0xb0] sm:$0xf]  ;;  %222 = vst [vmem:[%s8518_s27 + $0x50] sm:$0xf] %v221_v20 }
  0x2e   : > { %224 = vst [vmem:[%s8518_s27 + $0x54] sm:$0xf] %v223_v21  ;;  %226 = vst [vmem:[%s8518_s27 + $0x58] sm:$0xf] %v225_v22  ;;  %v227_v23 = vld [vmem:[%s8511_s23 + $0xb8] sm:$0xf] }
  0x2f   : > { %v229_v24 = vld [vmem:[%s8511_s23 + $0xc0] sm:$0xf]  ;;  %v231_v25 = vld [vmem:[%s8511_s23 + $0xc8] sm:$0xf]  ;;  %228 = vst [vmem:[%s8518_s27 + $0x5c] sm:$0xf] %v227_v23 }
  0x30   : > { %230 = vst [vmem:[%s8518_s27 + $0x60] sm:$0xf] %v229_v24  ;;  %232 = vst [vmem:[%s8518_s27 + $0x64] sm:$0xf] %v231_v25  ;;  %v233_v26 = vld [vmem:[%s8511_s23 + $0xd0] sm:$0xf] }
  0x31   : > { %v235_v27 = vld [vmem:[%s8511_s23 + $0xd8] sm:$0xf]  ;;  %v237_v28 = vld [vmem:[%s8511_s23 + $0xe0] sm:$0xf]  ;;  %234 = vst [vmem:[%s8518_s27 + $0x68] sm:$0xf] %v233_v26 }
  0x32   : > { %236 = vst [vmem:[%s8518_s27 + $0x6c] sm:$0xf] %v235_v27  ;;  %238 = vst [vmem:[%s8518_s27 + $0x70] sm:$0xf] %v237_v28  ;;  %v239_v29 = vld [vmem:[%s8511_s23 + $0xe8] sm:$0xf] }
  0x33   : > { %v241_v30 = vld [vmem:[%s8511_s23 + $0xf0] sm:$0xf]  ;;  %v243_v31 = vld [vmem:[%s8511_s23 + $0xf8] sm:$0xf]  ;;  %240 = vst [vmem:[%s8518_s27 + $0x74] sm:$0xf] %v239_v29 }
  0x34   : > { %242 = vst [vmem:[%s8518_s27 + $0x78] sm:$0xf] %v241_v30  ;;  %244 = vst [vmem:[%s8518_s27 + $0x7c] sm:$0xf] %v243_v31  ;;  %v245_v32 = vld [vmem:[%s8511_s23 + $0x100] sm:$0xf] }
  0x35   : > { %v247_v33 = vld [vmem:[%s8511_s23 + $0x108] sm:$0xf]  ;;  %v249_v34 = vld [vmem:[%s8511_s23 + $0x110] sm:$0xf]  ;;  %246 = vst [vmem:[%s8518_s27 + $0x80] sm:$0xf] %v245_v32 }
  0x36   : > { %248 = vst [vmem:[%s8518_s27 + $0x84] sm:$0xf] %v247_v33  ;;  %250 = vst [vmem:[%s8518_s27 + $0x88] sm:$0xf] %v249_v34  ;;  %v251_v35 = vld [vmem:[%s8511_s23 + $0x118] sm:$0xf] }
  0x37   : > { %v253_v36 = vld [vmem:[%s8511_s23 + $0x120] sm:$0xf]  ;;  %v255_v37 = vld [vmem:[%s8511_s23 + $0x128] sm:$0xf]  ;;  %252 = vst [vmem:[%s8518_s27 + $0x8c] sm:$0xf] %v251_v35 }
  0x38   : > { %254 = vst [vmem:[%s8518_s27 + $0x90] sm:$0xf] %v253_v36  ;;  %256 = vst [vmem:[%s8518_s27 + $0x94] sm:$0xf] %v255_v37  ;;  %v257_v38 = vld [vmem:[%s8511_s23 + $0x130] sm:$0xf] }
  0x39   : > { %v259_v39 = vld [vmem:[%s8511_s23 + $0x138] sm:$0xf]  ;;  %v261_v40 = vld [vmem:[%s8511_s23 + $0x140] sm:$0xf]  ;;  %258 = vst [vmem:[%s8518_s27 + $0x98] sm:$0xf] %v257_v38 }
  0x3a   : > { %260 = vst [vmem:[%s8518_s27 + $0x9c] sm:$0xf] %v259_v39  ;;  %262 = vst [vmem:[%s8518_s27 + $0xa0] sm:$0xf] %v261_v40  ;;  %v263_v41 = vld [vmem:[%s8511_s23 + $0x148] sm:$0xf] }
  0x3b   : > { %v265_v42 = vld [vmem:[%s8511_s23 + $0x150] sm:$0xf]  ;;  %v267_v43 = vld [vmem:[%s8511_s23 + $0x158] sm:$0xf]  ;;  %264 = vst [vmem:[%s8518_s27 + $0xa4] sm:$0xf] %v263_v41 }
  0x3c   : > { %266 = vst [vmem:[%s8518_s27 + $0xa8] sm:$0xf] %v265_v42  ;;  %268 = vst [vmem:[%s8518_s27 + $0xac] sm:$0xf] %v267_v43  ;;  %v269_v44 = vld [vmem:[%s8511_s23 + $0x160] sm:$0xf] }
  0x3d   : > { %v271_v45 = vld [vmem:[%s8511_s23 + $0x168] sm:$0xf]  ;;  %v273_v46 = vld [vmem:[%s8511_s23 + $0x170] sm:$0xf]  ;;  %270 = vst [vmem:[%s8518_s27 + $0xb0] sm:$0xf] %v269_v44 }
  0x3e   : > { %272 = vst [vmem:[%s8518_s27 + $0xb4] sm:$0xf] %v271_v45  ;;  %274 = vst [vmem:[%s8518_s27 + $0xb8] sm:$0xf] %v273_v46  ;;  %v275_v47 = vld [vmem:[%s8511_s23 + $0x178] sm:$0xf] }
  0x3f   : > { %v277_v48 = vld [vmem:[%s8511_s23 + $0x180] sm:$0xf]  ;;  %v279_v49 = vld [vmem:[%s8511_s23 + $0x188] sm:$0xf]  ;;  %276 = vst [vmem:[%s8518_s27 + $0xbc] sm:$0xf] %v275_v47 }
  0x40   : > { %278 = vst [vmem:[%s8518_s27 + $0xc0] sm:$0xf] %v277_v48  ;;  %280 = vst [vmem:[%s8518_s27 + $0xc4] sm:$0xf] %v279_v49  ;;  %v281_v50 = vld [vmem:[%s8511_s23 + $0x190] sm:$0xf] }
  0x41   : > { %v283_v51 = vld [vmem:[%s8511_s23 + $0x198] sm:$0xf]  ;;  %v285_v52 = vld [vmem:[%s8511_s23 + $0x1a0] sm:$0xf]  ;;  %282 = vst [vmem:[%s8518_s27 + $0xc8] sm:$0xf] %v281_v50 }
  0x42   : > { %284 = vst [vmem:[%s8518_s27 + $0xcc] sm:$0xf] %v283_v51  ;;  %286 = vst [vmem:[%s8518_s27 + $0xd0] sm:$0xf] %v285_v52  ;;  %v287_v53 = vld [vmem:[%s8511_s23 + $0x1a8] sm:$0xf] }
  0x43   : > { %v289_v54 = vld [vmem:[%s8511_s23 + $0x1b0] sm:$0xf]  ;;  %v291_v55 = vld [vmem:[%s8511_s23 + $0x1b8] sm:$0xf]  ;;  %288 = vst [vmem:[%s8518_s27 + $0xd4] sm:$0xf] %v287_v53 }
  0x44   : > { %290 = vst [vmem:[%s8518_s27 + $0xd8] sm:$0xf] %v289_v54  ;;  %292 = vst [vmem:[%s8518_s27 + $0xdc] sm:$0xf] %v291_v55  ;;  %v293_v56 = vld [vmem:[%s8511_s23 + $0x1c0] sm:$0xf] }
  0x45   : > { %v295_v57 = vld [vmem:[%s8511_s23 + $0x1c8] sm:$0xf]  ;;  %v297_v58 = vld [vmem:[%s8511_s23 + $0x1d0] sm:$0xf]  ;;  %294 = vst [vmem:[%s8518_s27 + $0xe0] sm:$0xf] %v293_v56 }
  0x46   : > { %296 = vst [vmem:[%s8518_s27 + $0xe4] sm:$0xf] %v295_v57  ;;  %298 = vst [vmem:[%s8518_s27 + $0xe8] sm:$0xf] %v297_v58  ;;  %v299_v59 = vld [vmem:[%s8511_s23 + $0x1d8] sm:$0xf] }
  0x47   : > { %v301_v60 = vld [vmem:[%s8511_s23 + $0x1e0] sm:$0xf]  ;;  %v303_v61 = vld [vmem:[%s8511_s23 + $0x1e8] sm:$0xf]  ;;  %300 = vst [vmem:[%s8518_s27 + $0xec] sm:$0xf] %v299_v59 }
  0x48   : > { %302 = vst [vmem:[%s8518_s27 + $0xf0] sm:$0xf] %v301_v60  ;;  %304 = vst [vmem:[%s8518_s27 + $0xf4] sm:$0xf] %v303_v61  ;;  %v305_v62 = vld [vmem:[%s8511_s23 + $0x1f0] sm:$0xf] }
  0x49   : > { %v307_v63 = vld [vmem:[%s8511_s23 + $0x1f8] sm:$0xf]  ;;  %v309_v0 = vld [vmem:[%s8511_s23 + $0x200] sm:$0xf]  ;;  %306 = vst [vmem:[%s8518_s27 + $0xf8] sm:$0xf] %v305_v62 }
  0x4a   : > { %308 = vst [vmem:[%s8518_s27 + $0xfc] sm:$0xf] %v307_v63  ;;  %310 = vst [vmem:[%s8518_s27 + $0x100] sm:$0xf] %v309_v0  ;;  %v311_v1 = vld [vmem:[%s8511_s23 + $0x208] sm:$0xf] }
  0x4b   : > { %v313_v2 = vld [vmem:[%s8511_s23 + $0x210] sm:$0xf]  ;;  %v315_v3 = vld [vmem:[%s8511_s23 + $0x218] sm:$0xf]  ;;  %312 = vst [vmem:[%s8518_s27 + $0x104] sm:$0xf] %v311_v1 }
  0x4c   : > { %314 = vst [vmem:[%s8518_s27 + $0x108] sm:$0xf] %v313_v2  ;;  %316 = vst [vmem:[%s8518_s27 + $0x10c] sm:$0xf] %v315_v3  ;;  %v317_v4 = vld [vmem:[%s8511_s23 + $0x220] sm:$0xf] }
  0x4d   : > { %v319_v5 = vld [vmem:[%s8511_s23 + $0x228] sm:$0xf]  ;;  %v321_v6 = vld [vmem:[%s8511_s23 + $0x230] sm:$0xf]  ;;  %318 = vst [vmem:[%s8518_s27 + $0x110] sm:$0xf] %v317_v4 }
  0x4e   : > { %320 = vst [vmem:[%s8518_s27 + $0x114] sm:$0xf] %v319_v5  ;;  %322 = vst [vmem:[%s8518_s27 + $0x118] sm:$0xf] %v321_v6  ;;  %v323_v7 = vld [vmem:[%s8511_s23 + $0x238] sm:$0xf] }
  0x4f   : > { %v325_v8 = vld [vmem:[%s8511_s23 + $0x240] sm:$0xf]  ;;  %v327_v9 = vld [vmem:[%s8511_s23 + $0x248] sm:$0xf]  ;;  %324 = vst [vmem:[%s8518_s27 + $0x11c] sm:$0xf] %v323_v7 }
  0x50   : > { %326 = vst [vmem:[%s8518_s27 + $0x120] sm:$0xf] %v325_v8  ;;  %328 = vst [vmem:[%s8518_s27 + $0x124] sm:$0xf] %v327_v9  ;;  %v329_v10 = vld [vmem:[%s8511_s23 + $0x250] sm:$0xf] }
  0x51   : > { %v331_v11 = vld [vmem:[%s8511_s23 + $0x258] sm:$0xf]  ;;  %v333_v12 = vld [vmem:[%s8511_s23 + $0x260] sm:$0xf]  ;;  %330 = vst [vmem:[%s8518_s27 + $0x128] sm:$0xf] %v329_v10 }
  0x52   : > { %332 = vst [vmem:[%s8518_s27 + $0x12c] sm:$0xf] %v331_v11  ;;  %334 = vst [vmem:[%s8518_s27 + $0x130] sm:$0xf] %v333_v12  ;;  %v335_v13 = vld [vmem:[%s8511_s23 + $0x268] sm:$0xf] }
  0x53   : > { %v337_v14 = vld [vmem:[%s8511_s23 + $0x270] sm:$0xf]  ;;  %v339_v15 = vld [vmem:[%s8511_s23 + $0x278] sm:$0xf]  ;;  %336 = vst [vmem:[%s8518_s27 + $0x134] sm:$0xf] %v335_v13 }
  0x54   : > { %338 = vst [vmem:[%s8518_s27 + $0x138] sm:$0xf] %v337_v14  ;;  %340 = vst [vmem:[%s8518_s27 + $0x13c] sm:$0xf] %v339_v15  ;;  %v341_v16 = vld [vmem:[%s8511_s23 + $0x280] sm:$0xf] }
  0x55   : > { %v343_v17 = vld [vmem:[%s8511_s23 + $0x288] sm:$0xf]  ;;  %v345_v18 = vld [vmem:[%s8511_s23 + $0x290] sm:$0xf]  ;;  %342 = vst [vmem:[%s8518_s27 + $0x140] sm:$0xf] %v341_v16 }
  0x56   : > { %344 = vst [vmem:[%s8518_s27 + $0x144] sm:$0xf] %v343_v17  ;;  %346 = vst [vmem:[%s8518_s27 + $0x148] sm:$0xf] %v345_v18  ;;  %v347_v19 = vld [vmem:[%s8511_s23 + $0x298] sm:$0xf] }
  0x57   : > { %v349_v20 = vld [vmem:[%s8511_s23 + $0x2a0] sm:$0xf]  ;;  %v351_v21 = vld [vmem:[%s8511_s23 + $0x2a8] sm:$0xf]  ;;  %348 = vst [vmem:[%s8518_s27 + $0x14c] sm:$0xf] %v347_v19 }
  0x58   : > { %350 = vst [vmem:[%s8518_s27 + $0x150] sm:$0xf] %v349_v20  ;;  %352 = vst [vmem:[%s8518_s27 + $0x154] sm:$0xf] %v351_v21  ;;  %v353_v22 = vld [vmem:[%s8511_s23 + $0x2b0] sm:$0xf] }
  0x59   : > { %v355_v23 = vld [vmem:[%s8511_s23 + $0x2b8] sm:$0xf]  ;;  %v357_v24 = vld [vmem:[%s8511_s23 + $0x2c0] sm:$0xf]  ;;  %354 = vst [vmem:[%s8518_s27 + $0x158] sm:$0xf] %v353_v22 }
  0x5a   : > { %356 = vst [vmem:[%s8518_s27 + $0x15c] sm:$0xf] %v355_v23  ;;  %358 = vst [vmem:[%s8518_s27 + $0x160] sm:$0xf] %v357_v24  ;;  %v359_v25 = vld [vmem:[%s8511_s23 + $0x2c8] sm:$0xf] }
  0x5b   : > { %v361_v26 = vld [vmem:[%s8511_s23 + $0x2d0] sm:$0xf]  ;;  %v363_v27 = vld [vmem:[%s8511_s23 + $0x2d8] sm:$0xf]  ;;  %360 = vst [vmem:[%s8518_s27 + $0x164] sm:$0xf] %v359_v25 }
  0x5c   : > { %362 = vst [vmem:[%s8518_s27 + $0x168] sm:$0xf] %v361_v26  ;;  %364 = vst [vmem:[%s8518_s27 + $0x16c] sm:$0xf] %v363_v27  ;;  %v365_v28 = vld [vmem:[%s8511_s23 + $0x2e0] sm:$0xf] }
  0x5d   : > { %v367_v29 = vld [vmem:[%s8511_s23 + $0x2e8] sm:$0xf]  ;;  %v369_v30 = vld [vmem:[%s8511_s23 + $0x2f0] sm:$0xf]  ;;  %366 = vst [vmem:[%s8518_s27 + $0x170] sm:$0xf] %v365_v28 }
  0x5e   : > { %368 = vst [vmem:[%s8518_s27 + $0x174] sm:$0xf] %v367_v29  ;;  %370 = vst [vmem:[%s8518_s27 + $0x178] sm:$0xf] %v369_v30  ;;  %v371_v31 = vld [vmem:[%s8511_s23 + $0x2f8] sm:$0xf] }
  0x5f   : > { %v373_v32 = vld [vmem:[%s8511_s23 + $0x300] sm:$0xf]  ;;  %v375_v33 = vld [vmem:[%s8511_s23 + $0x308] sm:$0xf]  ;;  %372 = vst [vmem:[%s8518_s27 + $0x17c] sm:$0xf] %v371_v31 }
  0x60   : > { %374 = vst [vmem:[%s8518_s27 + $0x180] sm:$0xf] %v373_v32  ;;  %376 = vst [vmem:[%s8518_s27 + $0x184] sm:$0xf] %v375_v33  ;;  %v377_v34 = vld [vmem:[%s8511_s23 + $0x310] sm:$0xf] }
  0x61   : > { %v379_v35 = vld [vmem:[%s8511_s23 + $0x318] sm:$0xf]  ;;  %v381_v36 = vld [vmem:[%s8511_s23 + $0x320] sm:$0xf]  ;;  %378 = vst [vmem:[%s8518_s27 + $0x188] sm:$0xf] %v377_v34 }
  0x62   : > { %380 = vst [vmem:[%s8518_s27 + $0x18c] sm:$0xf] %v379_v35  ;;  %382 = vst [vmem:[%s8518_s27 + $0x190] sm:$0xf] %v381_v36  ;;  %v383_v37 = vld [vmem:[%s8511_s23 + $0x328] sm:$0xf] }
  0x63   : > { %v385_v38 = vld [vmem:[%s8511_s23 + $0x330] sm:$0xf]  ;;  %v387_v39 = vld [vmem:[%s8511_s23 + $0x338] sm:$0xf]  ;;  %384 = vst [vmem:[%s8518_s27 + $0x194] sm:$0xf] %v383_v37 }
  0x64   : > { %386 = vst [vmem:[%s8518_s27 + $0x198] sm:$0xf] %v385_v38  ;;  %388 = vst [vmem:[%s8518_s27 + $0x19c] sm:$0xf] %v387_v39  ;;  %v389_v40 = vld [vmem:[%s8511_s23 + $0x340] sm:$0xf] }
  0x65   : > { %v391_v41 = vld [vmem:[%s8511_s23 + $0x348] sm:$0xf]  ;;  %v393_v42 = vld [vmem:[%s8511_s23 + $0x350] sm:$0xf]  ;;  %390 = vst [vmem:[%s8518_s27 + $0x1a0] sm:$0xf] %v389_v40 }
  0x66   : > { %392 = vst [vmem:[%s8518_s27 + $0x1a4] sm:$0xf] %v391_v41  ;;  %394 = vst [vmem:[%s8518_s27 + $0x1a8] sm:$0xf] %v393_v42  ;;  %v395_v43 = vld [vmem:[%s8511_s23 + $0x358] sm:$0xf] }
  0x67   : > { %v397_v44 = vld [vmem:[%s8511_s23 + $0x360] sm:$0xf]  ;;  %v399_v45 = vld [vmem:[%s8511_s23 + $0x368] sm:$0xf]  ;;  %396 = vst [vmem:[%s8518_s27 + $0x1ac] sm:$0xf] %v395_v43 }
  0x68   : > { %398 = vst [vmem:[%s8518_s27 + $0x1b0] sm:$0xf] %v397_v44  ;;  %400 = vst [vmem:[%s8518_s27 + $0x1b4] sm:$0xf] %v399_v45  ;;  %v401_v46 = vld [vmem:[%s8511_s23 + $0x370] sm:$0xf] }
  0x69   : > { %v403_v47 = vld [vmem:[%s8511_s23 + $0x378] sm:$0xf]  ;;  %v405_v48 = vld [vmem:[%s8511_s23 + $0x380] sm:$0xf]  ;;  %402 = vst [vmem:[%s8518_s27 + $0x1b8] sm:$0xf] %v401_v46 }
  0x6a   : > { %404 = vst [vmem:[%s8518_s27 + $0x1bc] sm:$0xf] %v403_v47  ;;  %406 = vst [vmem:[%s8518_s27 + $0x1c0] sm:$0xf] %v405_v48  ;;  %v407_v49 = vld [vmem:[%s8511_s23 + $0x388] sm:$0xf] }
  0x6b   : > { %v409_v50 = vld [vmem:[%s8511_s23 + $0x390] sm:$0xf]  ;;  %v411_v51 = vld [vmem:[%s8511_s23 + $0x398] sm:$0xf]  ;;  %408 = vst [vmem:[%s8518_s27 + $0x1c4] sm:$0xf] %v407_v49 }
  0x6c   : > { %410 = vst [vmem:[%s8518_s27 + $0x1c8] sm:$0xf] %v409_v50  ;;  %412 = vst [vmem:[%s8518_s27 + $0x1cc] sm:$0xf] %v411_v51  ;;  %v413_v52 = vld [vmem:[%s8511_s23 + $0x3a0] sm:$0xf] }
  0x6d   : > { %v415_v53 = vld [vmem:[%s8511_s23 + $0x3a8] sm:$0xf]  ;;  %v417_v54 = vld [vmem:[%s8511_s23 + $0x3b0] sm:$0xf]  ;;  %414 = vst [vmem:[%s8518_s27 + $0x1d0] sm:$0xf] %v413_v52 }
  0x6e   : > { %416 = vst [vmem:[%s8518_s27 + $0x1d4] sm:$0xf] %v415_v53  ;;  %418 = vst [vmem:[%s8518_s27 + $0x1d8] sm:$0xf] %v417_v54  ;;  %v419_v55 = vld [vmem:[%s8511_s23 + $0x3b8] sm:$0xf] }
  0x6f   : > { %v421_v56 = vld [vmem:[%s8511_s23 + $0x3c0] sm:$0xf]  ;;  %v423_v57 = vld [vmem:[%s8511_s23 + $0x3c8] sm:$0xf]  ;;  %420 = vst [vmem:[%s8518_s27 + $0x1dc] sm:$0xf] %v419_v55 }
  0x70   : > { %422 = vst [vmem:[%s8518_s27 + $0x1e0] sm:$0xf] %v421_v56  ;;  %424 = vst [vmem:[%s8518_s27 + $0x1e4] sm:$0xf] %v423_v57  ;;  %v425_v58 = vld [vmem:[%s8511_s23 + $0x3d0] sm:$0xf] }
  0x71   : > { %v427_v59 = vld [vmem:[%s8511_s23 + $0x3d8] sm:$0xf]  ;;  %v429_v60 = vld [vmem:[%s8511_s23 + $0x3e0] sm:$0xf]  ;;  %426 = vst [vmem:[%s8518_s27 + $0x1e8] sm:$0xf] %v425_v58 }
  0x72   : > { %428 = vst [vmem:[%s8518_s27 + $0x1ec] sm:$0xf] %v427_v59  ;;  %430 = vst [vmem:[%s8518_s27 + $0x1f0] sm:$0xf] %v429_v60  ;;  %v431_v61 = vld [vmem:[%s8511_s23 + $0x3e8] sm:$0xf] }
  0x73   : > { %v433_v62 = vld [vmem:[%s8511_s23 + $0x3f0] sm:$0xf]  ;;  %v435_v63 = vld [vmem:[%s8511_s23 + $0x3f8] sm:$0xf]  ;;  %432 = vst [vmem:[%s8518_s27 + $0x1f4] sm:$0xf] %v431_v61 }
  0x74   : > { %434 = vst [vmem:[%s8518_s27 + $0x1f8] sm:$0xf] %v433_v62  ;;  %436 = vst [vmem:[%s8518_s27 + $0x1fc] sm:$0xf] %v435_v63  ;;  %v437_v0 = vld [vmem:[%s8511_s23 + $0x400] sm:$0xf] }
  0x75   : > { %v439_v1 = vld [vmem:[%s8511_s23 + $0x408] sm:$0xf]  ;;  %v441_v2 = vld [vmem:[%s8511_s23 + $0x410] sm:$0xf]  ;;  %438 = vst [vmem:[%s8518_s27 + $0x200] sm:$0xf] %v437_v0 }
  0x76   : > { %440 = vst [vmem:[%s8518_s27 + $0x204] sm:$0xf] %v439_v1  ;;  %442 = vst [vmem:[%s8518_s27 + $0x208] sm:$0xf] %v441_v2  ;;  %v443_v3 = vld [vmem:[%s8511_s23 + $0x418] sm:$0xf] }
  0x77   : > { %v445_v4 = vld [vmem:[%s8511_s23 + $0x420] sm:$0xf]  ;;  %v447_v5 = vld [vmem:[%s8511_s23 + $0x428] sm:$0xf]  ;;  %444 = vst [vmem:[%s8518_s27 + $0x20c] sm:$0xf] %v443_v3 }
  0x78   : > { %446 = vst [vmem:[%s8518_s27 + $0x210] sm:$0xf] %v445_v4  ;;  %448 = vst [vmem:[%s8518_s27 + $0x214] sm:$0xf] %v447_v5  ;;  %v449_v6 = vld [vmem:[%s8511_s23 + $0x430] sm:$0xf] }
  0x79   : > { %v451_v7 = vld [vmem:[%s8511_s23 + $0x438] sm:$0xf]  ;;  %v453_v8 = vld [vmem:[%s8511_s23 + $0x440] sm:$0xf]  ;;  %450 = vst [vmem:[%s8518_s27 + $0x218] sm:$0xf] %v449_v6 }
  0x7a   : > { %452 = vst [vmem:[%s8518_s27 + $0x21c] sm:$0xf] %v451_v7  ;;  %454 = vst [vmem:[%s8518_s27 + $0x220] sm:$0xf] %v453_v8  ;;  %v455_v9 = vld [vmem:[%s8511_s23 + $0x448] sm:$0xf] }
  0x7b   : > { %v457_v10 = vld [vmem:[%s8511_s23 + $0x450] sm:$0xf]  ;;  %v459_v11 = vld [vmem:[%s8511_s23 + $0x458] sm:$0xf]  ;;  %456 = vst [vmem:[%s8518_s27 + $0x224] sm:$0xf] %v455_v9 }
  0x7c   : > { %458 = vst [vmem:[%s8518_s27 + $0x228] sm:$0xf] %v457_v10  ;;  %460 = vst [vmem:[%s8518_s27 + $0x22c] sm:$0xf] %v459_v11  ;;  %v461_v12 = vld [vmem:[%s8511_s23 + $0x460] sm:$0xf] }
  0x7d   : > { %v463_v13 = vld [vmem:[%s8511_s23 + $0x468] sm:$0xf]  ;;  %v465_v14 = vld [vmem:[%s8511_s23 + $0x470] sm:$0xf]  ;;  %462 = vst [vmem:[%s8518_s27 + $0x230] sm:$0xf] %v461_v12 }
  0x7e   : > { %464 = vst [vmem:[%s8518_s27 + $0x234] sm:$0xf] %v463_v13  ;;  %466 = vst [vmem:[%s8518_s27 + $0x238] sm:$0xf] %v465_v14  ;;  %v467_v15 = vld [vmem:[%s8511_s23 + $0x478] sm:$0xf] }
  0x7f   : > { %v469_v16 = vld [vmem:[%s8511_s23 + $0x480] sm:$0xf]  ;;  %v471_v17 = vld [vmem:[%s8511_s23 + $0x488] sm:$0xf]  ;;  %468 = vst [vmem:[%s8518_s27 + $0x23c] sm:$0xf] %v467_v15 }
  0x80   : > { %470 = vst [vmem:[%s8518_s27 + $0x240] sm:$0xf] %v469_v16  ;;  %472 = vst [vmem:[%s8518_s27 + $0x244] sm:$0xf] %v471_v17  ;;  %v473_v18 = vld [vmem:[%s8511_s23 + $0x490] sm:$0xf] }
  0x81   : > { %v475_v19 = vld [vmem:[%s8511_s23 + $0x498] sm:$0xf]  ;;  %v477_v20 = vld [vmem:[%s8511_s23 + $0x4a0] sm:$0xf]  ;;  %474 = vst [vmem:[%s8518_s27 + $0x248] sm:$0xf] %v473_v18 }
  0x82   : > { %476 = vst [vmem:[%s8518_s27 + $0x24c] sm:$0xf] %v475_v19  ;;  %478 = vst [vmem:[%s8518_s27 + $0x250] sm:$0xf] %v477_v20  ;;  %v479_v21 = vld [vmem:[%s8511_s23 + $0x4a8] sm:$0xf] }
  0x83   : > { %v481_v22 = vld [vmem:[%s8511_s23 + $0x4b0] sm:$0xf]  ;;  %v483_v23 = vld [vmem:[%s8511_s23 + $0x4b8] sm:$0xf]  ;;  %480 = vst [vmem:[%s8518_s27 + $0x254] sm:$0xf] %v479_v21 }
  0x84   : > { %482 = vst [vmem:[%s8518_s27 + $0x258] sm:$0xf] %v481_v22  ;;  %484 = vst [vmem:[%s8518_s27 + $0x25c] sm:$0xf] %v483_v23  ;;  %v485_v24 = vld [vmem:[%s8511_s23 + $0x4c0] sm:$0xf] }
  0x85   : > { %v487_v25 = vld [vmem:[%s8511_s23 + $0x4c8] sm:$0xf]  ;;  %v489_v26 = vld [vmem:[%s8511_s23 + $0x4d0] sm:$0xf]  ;;  %486 = vst [vmem:[%s8518_s27 + $0x260] sm:$0xf] %v485_v24 }
  0x86   : > { %488 = vst [vmem:[%s8518_s27 + $0x264] sm:$0xf] %v487_v25  ;;  %490 = vst [vmem:[%s8518_s27 + $0x268] sm:$0xf] %v489_v26  ;;  %v491_v27 = vld [vmem:[%s8511_s23 + $0x4d8] sm:$0xf] }
  0x87   : > { %v493_v28 = vld [vmem:[%s8511_s23 + $0x4e0] sm:$0xf]  ;;  %v495_v29 = vld [vmem:[%s8511_s23 + $0x4e8] sm:$0xf]  ;;  %492 = vst [vmem:[%s8518_s27 + $0x26c] sm:$0xf] %v491_v27 }
  0x88   : > { %494 = vst [vmem:[%s8518_s27 + $0x270] sm:$0xf] %v493_v28  ;;  %496 = vst [vmem:[%s8518_s27 + $0x274] sm:$0xf] %v495_v29  ;;  %v497_v30 = vld [vmem:[%s8511_s23 + $0x4f0] sm:$0xf] }
  0x89   : > { %v499_v31 = vld [vmem:[%s8511_s23 + $0x4f8] sm:$0xf]  ;;  %v501_v32 = vld [vmem:[%s8511_s23 + $0x500] sm:$0xf]  ;;  %498 = vst [vmem:[%s8518_s27 + $0x278] sm:$0xf] %v497_v30 }
  0x8a   : > { %500 = vst [vmem:[%s8518_s27 + $0x27c] sm:$0xf] %v499_v31  ;;  %502 = vst [vmem:[%s8518_s27 + $0x280] sm:$0xf] %v501_v32  ;;  %v503_v33 = vld [vmem:[%s8511_s23 + $0x508] sm:$0xf] }
  0x8b   : > { %v505_v34 = vld [vmem:[%s8511_s23 + $0x510] sm:$0xf]  ;;  %v507_v35 = vld [vmem:[%s8511_s23 + $0x518] sm:$0xf]  ;;  %504 = vst [vmem:[%s8518_s27 + $0x284] sm:$0xf] %v503_v33 }
  0x8c   : > { %506 = vst [vmem:[%s8518_s27 + $0x288] sm:$0xf] %v505_v34  ;;  %508 = vst [vmem:[%s8518_s27 + $0x28c] sm:$0xf] %v507_v35  ;;  %v509_v36 = vld [vmem:[%s8511_s23 + $0x520] sm:$0xf] }
  0x8d   : > { %v511_v37 = vld [vmem:[%s8511_s23 + $0x528] sm:$0xf]  ;;  %v513_v38 = vld [vmem:[%s8511_s23 + $0x530] sm:$0xf]  ;;  %510 = vst [vmem:[%s8518_s27 + $0x290] sm:$0xf] %v509_v36 }
  0x8e   : > { %512 = vst [vmem:[%s8518_s27 + $0x294] sm:$0xf] %v511_v37  ;;  %514 = vst [vmem:[%s8518_s27 + $0x298] sm:$0xf] %v513_v38  ;;  %v515_v39 = vld [vmem:[%s8511_s23 + $0x538] sm:$0xf] }
  0x8f   : > { %v517_v40 = vld [vmem:[%s8511_s23 + $0x540] sm:$0xf]  ;;  %v519_v41 = vld [vmem:[%s8511_s23 + $0x548] sm:$0xf]  ;;  %516 = vst [vmem:[%s8518_s27 + $0x29c] sm:$0xf] %v515_v39 }
  0x90   : > { %518 = vst [vmem:[%s8518_s27 + $0x2a0] sm:$0xf] %v517_v40  ;;  %520 = vst [vmem:[%s8518_s27 + $0x2a4] sm:$0xf] %v519_v41  ;;  %v521_v42 = vld [vmem:[%s8511_s23 + $0x550] sm:$0xf] }
  0x91   : > { %v523_v43 = vld [vmem:[%s8511_s23 + $0x558] sm:$0xf]  ;;  %v525_v44 = vld [vmem:[%s8511_s23 + $0x560] sm:$0xf]  ;;  %522 = vst [vmem:[%s8518_s27 + $0x2a8] sm:$0xf] %v521_v42 }
  0x92   : > { %524 = vst [vmem:[%s8518_s27 + $0x2ac] sm:$0xf] %v523_v43  ;;  %526 = vst [vmem:[%s8518_s27 + $0x2b0] sm:$0xf] %v525_v44  ;;  %v527_v45 = vld [vmem:[%s8511_s23 + $0x568] sm:$0xf] }
  0x93   : > { %v529_v46 = vld [vmem:[%s8511_s23 + $0x570] sm:$0xf]  ;;  %v531_v47 = vld [vmem:[%s8511_s23 + $0x578] sm:$0xf]  ;;  %528 = vst [vmem:[%s8518_s27 + $0x2b4] sm:$0xf] %v527_v45 }
  0x94   : > { %530 = vst [vmem:[%s8518_s27 + $0x2b8] sm:$0xf] %v529_v46  ;;  %532 = vst [vmem:[%s8518_s27 + $0x2bc] sm:$0xf] %v531_v47  ;;  %v533_v48 = vld [vmem:[%s8511_s23 + $0x580] sm:$0xf] }
  0x95   : > { %v535_v49 = vld [vmem:[%s8511_s23 + $0x588] sm:$0xf]  ;;  %v537_v50 = vld [vmem:[%s8511_s23 + $0x590] sm:$0xf]  ;;  %534 = vst [vmem:[%s8518_s27 + $0x2c0] sm:$0xf] %v533_v48 }
  0x96   : > { %536 = vst [vmem:[%s8518_s27 + $0x2c4] sm:$0xf] %v535_v49  ;;  %538 = vst [vmem:[%s8518_s27 + $0x2c8] sm:$0xf] %v537_v50  ;;  %v539_v51 = vld [vmem:[%s8511_s23 + $0x598] sm:$0xf] }
  0x97   : > { %v541_v52 = vld [vmem:[%s8511_s23 + $0x5a0] sm:$0xf]  ;;  %v543_v53 = vld [vmem:[%s8511_s23 + $0x5a8] sm:$0xf]  ;;  %540 = vst [vmem:[%s8518_s27 + $0x2cc] sm:$0xf] %v539_v51 }
  0x98   : > { %542 = vst [vmem:[%s8518_s27 + $0x2d0] sm:$0xf] %v541_v52  ;;  %544 = vst [vmem:[%s8518_s27 + $0x2d4] sm:$0xf] %v543_v53  ;;  %v545_v54 = vld [vmem:[%s8511_s23 + $0x5b0] sm:$0xf] }
  0x99   : > { %v547_v55 = vld [vmem:[%s8511_s23 + $0x5b8] sm:$0xf]  ;;  %v549_v56 = vld [vmem:[%s8511_s23 + $0x5c0] sm:$0xf]  ;;  %546 = vst [vmem:[%s8518_s27 + $0x2d8] sm:$0xf] %v545_v54 }
  0x9a   : > { %548 = vst [vmem:[%s8518_s27 + $0x2dc] sm:$0xf] %v547_v55  ;;  %550 = vst [vmem:[%s8518_s27 + $0x2e0] sm:$0xf] %v549_v56  ;;  %v551_v57 = vld [vmem:[%s8511_s23 + $0x5c8] sm:$0xf] }
  0x9b   : > { %v553_v58 = vld [vmem:[%s8511_s23 + $0x5d0] sm:$0xf]  ;;  %v555_v59 = vld [vmem:[%s8511_s23 + $0x5d8] sm:$0xf]  ;;  %552 = vst [vmem:[%s8518_s27 + $0x2e4] sm:$0xf] %v551_v57 }
  0x9c   : > { %554 = vst [vmem:[%s8518_s27 + $0x2e8] sm:$0xf] %v553_v58  ;;  %556 = vst [vmem:[%s8518_s27 + $0x2ec] sm:$0xf] %v555_v59  ;;  %v557_v60 = vld [vmem:[%s8511_s23 + $0x5e0] sm:$0xf] }
  0x9d   : > { %v559_v61 = vld [vmem:[%s8511_s23 + $0x5e8] sm:$0xf]  ;;  %v561_v62 = vld [vmem:[%s8511_s23 + $0x5f0] sm:$0xf]  ;;  %558 = vst [vmem:[%s8518_s27 + $0x2f0] sm:$0xf] %v557_v60 }
  0x9e   : > { %560 = vst [vmem:[%s8518_s27 + $0x2f4] sm:$0xf] %v559_v61  ;;  %562 = vst [vmem:[%s8518_s27 + $0x2f8] sm:$0xf] %v561_v62  ;;  %v563_v63 = vld [vmem:[%s8511_s23 + $0x5f8] sm:$0xf] }
  0x9f   : > { %v565_v0 = vld [vmem:[%s8511_s23 + $0x600] sm:$0xf]  ;;  %v567_v1 = vld [vmem:[%s8511_s23 + $0x608] sm:$0xf]  ;;  %564 = vst [vmem:[%s8518_s27 + $0x2fc] sm:$0xf] %v563_v63 }
  0xa0   : > { %566 = vst [vmem:[%s8518_s27 + $0x300] sm:$0xf] %v565_v0  ;;  %568 = vst [vmem:[%s8518_s27 + $0x304] sm:$0xf] %v567_v1  ;;  %v569_v2 = vld [vmem:[%s8511_s23 + $0x610] sm:$0xf] }
  0xa1   : > { %v571_v3 = vld [vmem:[%s8511_s23 + $0x618] sm:$0xf]  ;;  %v573_v4 = vld [vmem:[%s8511_s23 + $0x620] sm:$0xf]  ;;  %570 = vst [vmem:[%s8518_s27 + $0x308] sm:$0xf] %v569_v2 }
  0xa2   : > { %572 = vst [vmem:[%s8518_s27 + $0x30c] sm:$0xf] %v571_v3  ;;  %574 = vst [vmem:[%s8518_s27 + $0x310] sm:$0xf] %v573_v4  ;;  %v575_v5 = vld [vmem:[%s8511_s23 + $0x628] sm:$0xf] }
  0xa3   : > { %v577_v6 = vld [vmem:[%s8511_s23 + $0x630] sm:$0xf]  ;;  %v579_v7 = vld [vmem:[%s8511_s23 + $0x638] sm:$0xf]  ;;  %576 = vst [vmem:[%s8518_s27 + $0x314] sm:$0xf] %v575_v5 }
  0xa4   : > { %578 = vst [vmem:[%s8518_s27 + $0x318] sm:$0xf] %v577_v6  ;;  %580 = vst [vmem:[%s8518_s27 + $0x31c] sm:$0xf] %v579_v7  ;;  %v581_v8 = vld [vmem:[%s8511_s23 + $0x640] sm:$0xf] }
  0xa5   : > { %v583_v9 = vld [vmem:[%s8511_s23 + $0x648] sm:$0xf]  ;;  %v585_v10 = vld [vmem:[%s8511_s23 + $0x650] sm:$0xf]  ;;  %582 = vst [vmem:[%s8518_s27 + $0x320] sm:$0xf] %v581_v8 }
  0xa6   : > { %584 = vst [vmem:[%s8518_s27 + $0x324] sm:$0xf] %v583_v9  ;;  %586 = vst [vmem:[%s8518_s27 + $0x328] sm:$0xf] %v585_v10  ;;  %v587_v11 = vld [vmem:[%s8511_s23 + $0x658] sm:$0xf] }
  0xa7   : > { %v589_v12 = vld [vmem:[%s8511_s23 + $0x660] sm:$0xf]  ;;  %v591_v13 = vld [vmem:[%s8511_s23 + $0x668] sm:$0xf]  ;;  %588 = vst [vmem:[%s8518_s27 + $0x32c] sm:$0xf] %v587_v11 }
  0xa8   : > { %590 = vst [vmem:[%s8518_s27 + $0x330] sm:$0xf] %v589_v12  ;;  %592 = vst [vmem:[%s8518_s27 + $0x334] sm:$0xf] %v591_v13  ;;  %v593_v14 = vld [vmem:[%s8511_s23 + $0x670] sm:$0xf] }
  0xa9   : > { %v595_v15 = vld [vmem:[%s8511_s23 + $0x678] sm:$0xf]  ;;  %v597_v16 = vld [vmem:[%s8511_s23 + $0x680] sm:$0xf]  ;;  %594 = vst [vmem:[%s8518_s27 + $0x338] sm:$0xf] %v593_v14 }
  0xaa   : > { %596 = vst [vmem:[%s8518_s27 + $0x33c] sm:$0xf] %v595_v15  ;;  %598 = vst [vmem:[%s8518_s27 + $0x340] sm:$0xf] %v597_v16  ;;  %v599_v17 = vld [vmem:[%s8511_s23 + $0x688] sm:$0xf] }
  0xab   : > { %v601_v18 = vld [vmem:[%s8511_s23 + $0x690] sm:$0xf]  ;;  %v603_v19 = vld [vmem:[%s8511_s23 + $0x698] sm:$0xf]  ;;  %600 = vst [vmem:[%s8518_s27 + $0x344] sm:$0xf] %v599_v17 }
  0xac   : > { %602 = vst [vmem:[%s8518_s27 + $0x348] sm:$0xf] %v601_v18  ;;  %604 = vst [vmem:[%s8518_s27 + $0x34c] sm:$0xf] %v603_v19  ;;  %v605_v20 = vld [vmem:[%s8511_s23 + $0x6a0] sm:$0xf] }
  0xad   : > { %v607_v21 = vld [vmem:[%s8511_s23 + $0x6a8] sm:$0xf]  ;;  %v609_v22 = vld [vmem:[%s8511_s23 + $0x6b0] sm:$0xf]  ;;  %606 = vst [vmem:[%s8518_s27 + $0x350] sm:$0xf] %v605_v20 }
  0xae   : > { %608 = vst [vmem:[%s8518_s27 + $0x354] sm:$0xf] %v607_v21  ;;  %610 = vst [vmem:[%s8518_s27 + $0x358] sm:$0xf] %v609_v22  ;;  %v611_v23 = vld [vmem:[%s8511_s23 + $0x6b8] sm:$0xf] }
  0xaf   : > { %v613_v24 = vld [vmem:[%s8511_s23 + $0x6c0] sm:$0xf]  ;;  %v615_v25 = vld [vmem:[%s8511_s23 + $0x6c8] sm:$0xf]  ;;  %612 = vst [vmem:[%s8518_s27 + $0x35c] sm:$0xf] %v611_v23 }
  0xb0   : > { %614 = vst [vmem:[%s8518_s27 + $0x360] sm:$0xf] %v613_v24  ;;  %616 = vst [vmem:[%s8518_s27 + $0x364] sm:$0xf] %v615_v25  ;;  %v617_v26 = vld [vmem:[%s8511_s23 + $0x6d0] sm:$0xf] }
  0xb1   : > { %v619_v27 = vld [vmem:[%s8511_s23 + $0x6d8] sm:$0xf]  ;;  %v621_v28 = vld [vmem:[%s8511_s23 + $0x6e0] sm:$0xf]  ;;  %618 = vst [vmem:[%s8518_s27 + $0x368] sm:$0xf] %v617_v26 }
  0xb2   : > { %620 = vst [vmem:[%s8518_s27 + $0x36c] sm:$0xf] %v619_v27  ;;  %622 = vst [vmem:[%s8518_s27 + $0x370] sm:$0xf] %v621_v28  ;;  %v623_v29 = vld [vmem:[%s8511_s23 + $0x6e8] sm:$0xf] }
  0xb3   : > { %v625_v30 = vld [vmem:[%s8511_s23 + $0x6f0] sm:$0xf]  ;;  %v627_v31 = vld [vmem:[%s8511_s23 + $0x6f8] sm:$0xf]  ;;  %624 = vst [vmem:[%s8518_s27 + $0x374] sm:$0xf] %v623_v29 }
  0xb4   : > { %626 = vst [vmem:[%s8518_s27 + $0x378] sm:$0xf] %v625_v30  ;;  %628 = vst [vmem:[%s8518_s27 + $0x37c] sm:$0xf] %v627_v31  ;;  %v629_v32 = vld [vmem:[%s8511_s23 + $0x700] sm:$0xf] }
  0xb5   : > { %v631_v33 = vld [vmem:[%s8511_s23 + $0x708] sm:$0xf]  ;;  %v633_v34 = vld [vmem:[%s8511_s23 + $0x710] sm:$0xf]  ;;  %630 = vst [vmem:[%s8518_s27 + $0x380] sm:$0xf] %v629_v32 }
  0xb6   : > { %632 = vst [vmem:[%s8518_s27 + $0x384] sm:$0xf] %v631_v33  ;;  %634 = vst [vmem:[%s8518_s27 + $0x388] sm:$0xf] %v633_v34  ;;  %v635_v35 = vld [vmem:[%s8511_s23 + $0x718] sm:$0xf] }
  0xb7   : > { %v637_v36 = vld [vmem:[%s8511_s23 + $0x720] sm:$0xf]  ;;  %v639_v37 = vld [vmem:[%s8511_s23 + $0x728] sm:$0xf]  ;;  %636 = vst [vmem:[%s8518_s27 + $0x38c] sm:$0xf] %v635_v35 }
  0xb8   : > { %638 = vst [vmem:[%s8518_s27 + $0x390] sm:$0xf] %v637_v36  ;;  %640 = vst [vmem:[%s8518_s27 + $0x394] sm:$0xf] %v639_v37  ;;  %v641_v38 = vld [vmem:[%s8511_s23 + $0x730] sm:$0xf] }
  0xb9   : > { %v643_v39 = vld [vmem:[%s8511_s23 + $0x738] sm:$0xf]  ;;  %v645_v40 = vld [vmem:[%s8511_s23 + $0x740] sm:$0xf]  ;;  %642 = vst [vmem:[%s8518_s27 + $0x398] sm:$0xf] %v641_v38 }
  0xba   : > { %644 = vst [vmem:[%s8518_s27 + $0x39c] sm:$0xf] %v643_v39  ;;  %646 = vst [vmem:[%s8518_s27 + $0x3a0] sm:$0xf] %v645_v40  ;;  %v647_v41 = vld [vmem:[%s8511_s23 + $0x748] sm:$0xf] }
  0xbb   : > { %v649_v42 = vld [vmem:[%s8511_s23 + $0x750] sm:$0xf]  ;;  %v651_v43 = vld [vmem:[%s8511_s23 + $0x758] sm:$0xf]  ;;  %648 = vst [vmem:[%s8518_s27 + $0x3a4] sm:$0xf] %v647_v41 }
  0xbc   : > { %650 = vst [vmem:[%s8518_s27 + $0x3a8] sm:$0xf] %v649_v42  ;;  %652 = vst [vmem:[%s8518_s27 + $0x3ac] sm:$0xf] %v651_v43  ;;  %v653_v44 = vld [vmem:[%s8511_s23 + $0x760] sm:$0xf] }
  0xbd   : > { %v655_v45 = vld [vmem:[%s8511_s23 + $0x768] sm:$0xf]  ;;  %v657_v46 = vld [vmem:[%s8511_s23 + $0x770] sm:$0xf]  ;;  %654 = vst [vmem:[%s8518_s27 + $0x3b0] sm:$0xf] %v653_v44 }
  0xbe   : > { %656 = vst [vmem:[%s8518_s27 + $0x3b4] sm:$0xf] %v655_v45  ;;  %658 = vst [vmem:[%s8518_s27 + $0x3b8] sm:$0xf] %v657_v46  ;;  %v659_v47 = vld [vmem:[%s8511_s23 + $0x778] sm:$0xf] }
  0xbf   : > { %v661_v48 = vld [vmem:[%s8511_s23 + $0x780] sm:$0xf]  ;;  %v663_v49 = vld [vmem:[%s8511_s23 + $0x788] sm:$0xf]  ;;  %660 = vst [vmem:[%s8518_s27 + $0x3bc] sm:$0xf] %v659_v47 }
  0xc0   : > { %662 = vst [vmem:[%s8518_s27 + $0x3c0] sm:$0xf] %v661_v48  ;;  %664 = vst [vmem:[%s8518_s27 + $0x3c4] sm:$0xf] %v663_v49  ;;  %v665_v50 = vld [vmem:[%s8511_s23 + $0x790] sm:$0xf] }
  0xc1   : > { %v667_v51 = vld [vmem:[%s8511_s23 + $0x798] sm:$0xf]  ;;  %v669_v52 = vld [vmem:[%s8511_s23 + $0x7a0] sm:$0xf]  ;;  %666 = vst [vmem:[%s8518_s27 + $0x3c8] sm:$0xf] %v665_v50 }
  0xc2   : > { %668 = vst [vmem:[%s8518_s27 + $0x3cc] sm:$0xf] %v667_v51  ;;  %670 = vst [vmem:[%s8518_s27 + $0x3d0] sm:$0xf] %v669_v52  ;;  %v671_v53 = vld [vmem:[%s8511_s23 + $0x7a8] sm:$0xf] }
  0xc3   : > { %v673_v54 = vld [vmem:[%s8511_s23 + $0x7b0] sm:$0xf]  ;;  %v675_v55 = vld [vmem:[%s8511_s23 + $0x7b8] sm:$0xf]  ;;  %672 = vst [vmem:[%s8518_s27 + $0x3d4] sm:$0xf] %v671_v53 }
  0xc4   : > { %674 = vst [vmem:[%s8518_s27 + $0x3d8] sm:$0xf] %v673_v54  ;;  %676 = vst [vmem:[%s8518_s27 + $0x3dc] sm:$0xf] %v675_v55  ;;  %v677_v56 = vld [vmem:[%s8511_s23 + $0x7c0] sm:$0xf] }
  0xc5   : > { %v679_v57 = vld [vmem:[%s8511_s23 + $0x7c8] sm:$0xf]  ;;  %v681_v58 = vld [vmem:[%s8511_s23 + $0x7d0] sm:$0xf]  ;;  %678 = vst [vmem:[%s8518_s27 + $0x3e0] sm:$0xf] %v677_v56 }
  0xc6   : > { %680 = vst [vmem:[%s8518_s27 + $0x3e4] sm:$0xf] %v679_v57  ;;  %682 = vst [vmem:[%s8518_s27 + $0x3e8] sm:$0xf] %v681_v58  ;;  %v683_v59 = vld [vmem:[%s8511_s23 + $0x7d8] sm:$0xf] }
  0xc7   : > { %v685_v60 = vld [vmem:[%s8511_s23 + $0x7e0] sm:$0xf]  ;;  %v687_v61 = vld [vmem:[%s8511_s23 + $0x7e8] sm:$0xf]  ;;  %684 = vst [vmem:[%s8518_s27 + $0x3ec] sm:$0xf] %v683_v59 }
  0xc8   : > { %686 = vst [vmem:[%s8518_s27 + $0x3f0] sm:$0xf] %v685_v60  ;;  %688 = vst [vmem:[%s8518_s27 + $0x3f4] sm:$0xf] %v687_v61  ;;  %v689_v62 = vld [vmem:[%s8511_s23 + $0x7f0] sm:$0xf] }
  0xc9   : > { %v691_v63 = vld [vmem:[%s8511_s23 + $0x7f8] sm:$0xf]  ;;  %v693_v0 = vld [vmem:[%s8511_s23 + $0x800] sm:$0xf]  ;;  %690 = vst [vmem:[%s8518_s27 + $0x3f8] sm:$0xf] %v689_v62 }
  0xca   : > { %692 = vst [vmem:[%s8518_s27 + $0x3fc] sm:$0xf] %v691_v63  ;;  %694 = vst [vmem:[%s8518_s27 + $0x400] sm:$0xf] %v693_v0  ;;  %v695_v1 = vld [vmem:[%s8511_s23 + $0x808] sm:$0xf] }
  0xcb   : > { %v697_v2 = vld [vmem:[%s8511_s23 + $0x810] sm:$0xf]  ;;  %v699_v3 = vld [vmem:[%s8511_s23 + $0x818] sm:$0xf]  ;;  %696 = vst [vmem:[%s8518_s27 + $0x404] sm:$0xf] %v695_v1 }
  0xcc   : > { %698 = vst [vmem:[%s8518_s27 + $0x408] sm:$0xf] %v697_v2  ;;  %700 = vst [vmem:[%s8518_s27 + $0x40c] sm:$0xf] %v699_v3  ;;  %v701_v4 = vld [vmem:[%s8511_s23 + $0x820] sm:$0xf] }
  0xcd   : > { %v703_v5 = vld [vmem:[%s8511_s23 + $0x828] sm:$0xf]  ;;  %v705_v6 = vld [vmem:[%s8511_s23 + $0x830] sm:$0xf]  ;;  %702 = vst [vmem:[%s8518_s27 + $0x410] sm:$0xf] %v701_v4 }
  0xce   : > { %704 = vst [vmem:[%s8518_s27 + $0x414] sm:$0xf] %v703_v5  ;;  %706 = vst [vmem:[%s8518_s27 + $0x418] sm:$0xf] %v705_v6  ;;  %v707_v7 = vld [vmem:[%s8511_s23 + $0x838] sm:$0xf] }
  0xcf   : > { %v709_v8 = vld [vmem:[%s8511_s23 + $0x840] sm:$0xf]  ;;  %v711_v9 = vld [vmem:[%s8511_s23 + $0x848] sm:$0xf]  ;;  %708 = vst [vmem:[%s8518_s27 + $0x41c] sm:$0xf] %v707_v7 }
  0xd0   : > { %710 = vst [vmem:[%s8518_s27 + $0x420] sm:$0xf] %v709_v8  ;;  %712 = vst [vmem:[%s8518_s27 + $0x424] sm:$0xf] %v711_v9  ;;  %v713_v10 = vld [vmem:[%s8511_s23 + $0x850] sm:$0xf] }
  0xd1   : > { %v715_v11 = vld [vmem:[%s8511_s23 + $0x858] sm:$0xf]  ;;  %v717_v12 = vld [vmem:[%s8511_s23 + $0x860] sm:$0xf]  ;;  %714 = vst [vmem:[%s8518_s27 + $0x428] sm:$0xf] %v713_v10 }
  0xd2   : > { %716 = vst [vmem:[%s8518_s27 + $0x42c] sm:$0xf] %v715_v11  ;;  %718 = vst [vmem:[%s8518_s27 + $0x430] sm:$0xf] %v717_v12  ;;  %v719_v13 = vld [vmem:[%s8511_s23 + $0x868] sm:$0xf] }
  0xd3   : > { %v721_v14 = vld [vmem:[%s8511_s23 + $0x870] sm:$0xf]  ;;  %v723_v15 = vld [vmem:[%s8511_s23 + $0x878] sm:$0xf]  ;;  %720 = vst [vmem:[%s8518_s27 + $0x434] sm:$0xf] %v719_v13 }
  0xd4   : > { %722 = vst [vmem:[%s8518_s27 + $0x438] sm:$0xf] %v721_v14  ;;  %724 = vst [vmem:[%s8518_s27 + $0x43c] sm:$0xf] %v723_v15  ;;  %v725_v16 = vld [vmem:[%s8511_s23 + $0x880] sm:$0xf] }
  0xd5   : > { %v727_v17 = vld [vmem:[%s8511_s23 + $0x888] sm:$0xf]  ;;  %v729_v18 = vld [vmem:[%s8511_s23 + $0x890] sm:$0xf]  ;;  %726 = vst [vmem:[%s8518_s27 + $0x440] sm:$0xf] %v725_v16 }
  0xd6   : > { %728 = vst [vmem:[%s8518_s27 + $0x444] sm:$0xf] %v727_v17  ;;  %730 = vst [vmem:[%s8518_s27 + $0x448] sm:$0xf] %v729_v18  ;;  %v731_v19 = vld [vmem:[%s8511_s23 + $0x898] sm:$0xf] }
  0xd7   : > { %v733_v20 = vld [vmem:[%s8511_s23 + $0x8a0] sm:$0xf]  ;;  %v735_v21 = vld [vmem:[%s8511_s23 + $0x8a8] sm:$0xf]  ;;  %732 = vst [vmem:[%s8518_s27 + $0x44c] sm:$0xf] %v731_v19 }
  0xd8   : > { %734 = vst [vmem:[%s8518_s27 + $0x450] sm:$0xf] %v733_v20  ;;  %736 = vst [vmem:[%s8518_s27 + $0x454] sm:$0xf] %v735_v21  ;;  %v737_v22 = vld [vmem:[%s8511_s23 + $0x8b0] sm:$0xf] }
  0xd9   : > { %v739_v23 = vld [vmem:[%s8511_s23 + $0x8b8] sm:$0xf]  ;;  %v741_v24 = vld [vmem:[%s8511_s23 + $0x8c0] sm:$0xf]  ;;  %738 = vst [vmem:[%s8518_s27 + $0x458] sm:$0xf] %v737_v22 }
  0xda   : > { %740 = vst [vmem:[%s8518_s27 + $0x45c] sm:$0xf] %v739_v23  ;;  %742 = vst [vmem:[%s8518_s27 + $0x460] sm:$0xf] %v741_v24  ;;  %v743_v25 = vld [vmem:[%s8511_s23 + $0x8c8] sm:$0xf] }
  0xdb   : > { %v745_v26 = vld [vmem:[%s8511_s23 + $0x8d0] sm:$0xf]  ;;  %v747_v27 = vld [vmem:[%s8511_s23 + $0x8d8] sm:$0xf]  ;;  %744 = vst [vmem:[%s8518_s27 + $0x464] sm:$0xf] %v743_v25 }
  0xdc   : > { %746 = vst [vmem:[%s8518_s27 + $0x468] sm:$0xf] %v745_v26  ;;  %748 = vst [vmem:[%s8518_s27 + $0x46c] sm:$0xf] %v747_v27  ;;  %v749_v28 = vld [vmem:[%s8511_s23 + $0x8e0] sm:$0xf] }
  0xdd   : > { %v751_v29 = vld [vmem:[%s8511_s23 + $0x8e8] sm:$0xf]  ;;  %v753_v30 = vld [vmem:[%s8511_s23 + $0x8f0] sm:$0xf]  ;;  %750 = vst [vmem:[%s8518_s27 + $0x470] sm:$0xf] %v749_v28 }
  0xde   : > { %752 = vst [vmem:[%s8518_s27 + $0x474] sm:$0xf] %v751_v29  ;;  %754 = vst [vmem:[%s8518_s27 + $0x478] sm:$0xf] %v753_v30  ;;  %v755_v31 = vld [vmem:[%s8511_s23 + $0x8f8] sm:$0xf] }
  0xdf   : > { %756 = vst [vmem:[%s8518_s27 + $0x47c] sm:$0xf] %v755_v31 }
  0xe0 PF: > { %p6623_p0 = scmp.ge.s32.totalorder %s8386_s21, 1  ;;  %p1360_p1 = scmp.lt.s32.totalorder %s8386_s21, 5 }
  0xe2   : > { %p1361_p2 = pnand %p6623_p0, %p1360_p1 }
  0xe4   : > { %1364 = sbr.rel (%p1361_p2) target bundleno = 1393 (0x571), region = 69 }
  0xeb   : > { %s1367_s28 = sand.u32 1, %s8362_s15   ;;  %v11210_v32 = vmov 0   ;;  %p1398_p3 = scmp.lt.s32.totalorder %s8374_s18, 1  ;;  %vm2116_vm0 = vsmask.f32 7424  ;;  %vm2927_vm1 = vcmask 1046528  }
  0xec   : > { %1837 = vmatprep.subr.bf16.mxu1 %v11210_v32  ;;  %4457 = vmatprep.subr.bf16.mxu0 %v11210_v32  ;;  %s7909_s29 = smul.u32 1152, %s1367_s28  ;;  %p1403_p4 = scmp.lt.s32.totalorder %s8370_s17, 1 }
  0xed   : > { %s1399_s15 = scalar_select %p1398_p3, %s8374_s18, 1 }
  0xee   : > { %s9096_s4 = scalar_lea.vmem [#allocation2], %s7909_s29  ;;  %s1395_s28 = sand.u32 1, %s8354_s13  }
  0xef   : > { %v8002_v33 = vld [vmem:[%s9096_s4] sm:$0xff]   ;;  %v8004_v35 = vld [vmem:[%s9096_s4 + $0x8] sm:$0xff]   ;;  %v8006_v37 = vld [vmem:[%s9096_s4 + $0x10] sm:$0xff]   ;;  %s7910_s5 = smul.u32 456, %s1399_s15  ;;  %s6624_s29 = sshll.u32 %s1395_s28, 8 }
  0xf0   : > { %v8003_v34 = vld [vmem:[%s9096_s4 + $0x200] sm:$0xff]   ;;  %1838 = vmatpush1.bf16.msra.mxu1 %v8002_v33  ;;  %v8005_v36 = vld [vmem:[%s9096_s4 + $0x208] sm:$0xff]   ;;  %v8007_v38 = vld [vmem:[%s9096_s4 + $0x210] sm:$0xff]   ;;  %s1404_s22 = scalar_select %p1403_p4, %s8370_s17, 1 }
  0xf1   : > { %4458 = vmatpush1.bf16.msra.mxu0 %v8003_v34  ;;  %1839 = vmatprep.subr.bf16.mxu1 %v11210_v32  ;;  %v8008_v39 = vld [vmem:[%s9096_s4 + $0x18] sm:$0xff]   ;;  %v8010_v41 = vld [vmem:[%s9096_s4 + $0x20] sm:$0xff]   ;;  %v8012_v43 = vld [vmem:[%s9096_s4 + $0x28] sm:$0xff]   ;;  %s9134_s11 = scalar_lea.vmem %s11200_s0, %s7910_s5  ;;  %s7136_s15 = sshll.u32 %s8374_s18, 6 }
  0xf2   : > { %4459 = vmatprep.subr.bf16.mxu0 %v11210_v32  ;;  %v8009_v40 = vld [vmem:[%s9096_s4 + $0x218] sm:$0xff]   ;;  %v8011_v42 = vld [vmem:[%s9096_s4 + $0x220] sm:$0xff]   ;;  %v8013_v44 = vld [vmem:[%s9096_s4 + $0x228] sm:$0xff]   ;;  %s1405_s27 = scalar_lea.vmem %s11202_s2, %s1404_s22  ;;  %s6513_s5 = sadd.s32 %s8370_s17, %s7136_s15 }
  0xf3   : > { %v8014_v45 = vld [vmem:[%s9096_s4 + $0x30] sm:$0xff]   ;;  %v8016_v47 = vld [vmem:[%s9096_s4 + $0x38] sm:$0xff]   ;;  %v8018_v49 = vld [vmem:[%s9096_s4 + $0x40] sm:$0xff]   ;;  %s7137_s9 = sshll.u32 %s6513_s5, 7  ;;  %s11142_s22 = scalar_lea.sflag [#allocation4], %s1395_s28 }
  0xf4   : > { %1840 = vmatpush1.bf16.msra.mxu1 %v8004_v35  ;;  %v8015_v46 = vld [vmem:[%s9096_s4 + $0x230] sm:$0xff]   ;;  %v8017_v48 = vld [vmem:[%s9096_s4 + $0x238] sm:$0xff]   ;;  %v8019_v50 = vld [vmem:[%s9096_s4 + $0x240] sm:$0xff]   ;;  %s11135_s17 = scalar_lea.hbm %s11203_s3, %s7137_s9  ;;  %s8389_s23 = smov [#allocation3]  }
  0xf5   : > { %4460 = vmatpush1.bf16.msra.mxu0 %v8005_v36  ;;  %1841 = vmatprep.subr.bf16.mxu1 %v11210_v32  ;;  %v8034_v51 = vld [vmem:[%s9134_s11 + $0x4] ss:$8 sps:$4 sm:$0xff]   ;;  %v9141_v52 = vld [vmem:[%s9134_s11 + $0x18] sm:$0xff]  ;;  %v9151_v56 = vld [vmem:[%s9134_s11 + $0x30] sm:$0xff] }
  0xf6   : > { %4461 = vmatprep.subr.bf16.mxu0 %v11210_v32  ;;  %v9144_v53 = vld [vmem:[%s9134_s11 + $0x20] sm:$0xff]  ;;  %v9147_v54 = vld [vmem:[%s9134_s11 + $0x28] sm:$0xff]  ;;  %1869 = vmatprep.mubr.bf16.mxu1 %v8034_v51  ;;  %v8022_v63 = vld [vmem:[%s9096_s4 + $0x50] sm:$0xff]  }
  0xf7   : > { %v8020_v55 = vld [vmem:[%s9096_s4 + $0x48] sm:$0xff]   ;;  %v9155_v57 = vcombine.high %v9141_v52, %v9144_v53  ;;  %v9161_v59 = vcombine.high %v9147_v54, %v9151_v56  ;;  %v8023_v1 = vld [vmem:[%s9096_s4 + $0x250] sm:$0xff]   ;;  %v8024_v4 = vld [vmem:[%s9096_s4 + $0x58] sm:$0xff]   ;;  %v9181_v9 = vcombine.low %v9141_v52, %v9144_v53  ;;  %v9195_v14 = vcombine.low %v9147_v54, %v9151_v56 }
  0xf8   : > { %1842 = vmatpush1.bf16.msra.mxu1 %v8006_v37  ;;  %v8021_v58 = vld [vmem:[%s9096_s4 + $0x248] sm:$0xff]   ;;  %v8025_v6 = vld [vmem:[%s9096_s4 + $0x258] sm:$0xff]   ;;  %v8026_v7 = vld [vmem:[%s9096_s4 + $0x60] sm:$0xff]  }
  0xf9   : > { %4462 = vmatpush1.bf16.msra.mxu0 %v8007_v38  ;;  %1843 = vmatprep.subr.bf16.mxu1 %v11210_v32  ;;  %11374 = vst [vmem:[#allocation6_spill] sm:$0xff] %v9155_v57  ;;  %11375 = vst [vmem:[#allocation7_spill] sm:$0xff] %v9161_v59  ;;  %v3934_v60 = vshrl.u32 %v9155_v57, 16  ;;  %v3936_v61 = vshll.u32 %v9155_v57, 16  ;;  %v3941_v62 = vshll.u32 %v9161_v59, 16  ;;  %v8027_v8 = vld [vmem:[%s9096_s4 + $0x260] sm:$0xff]  }
  0xfa   : > { %4463 = vmatprep.subr.bf16.mxu0 %v11210_v32  ;;  %11376 = vst [vmem:[#allocation8_spill] sm:$0xff] %v9181_v9  ;;  %v8028_v10 = vld [vmem:[%s9096_s4 + $0x68] sm:$0xff]   ;;  %v9186_v11 = vld [vmem:[%s9134_s11 + $0x38] sm:$0xff]  ;;  %v9189_v12 = vld [vmem:[%s9134_s11 + $0x40] sm:$0xff]  ;;  %v3924_v15 = vshll.u32 %v9181_v9, 16  ;;  %v3922_v19 = vshrl.u32 %v9181_v9, 16 }
  0xfb   : > { %v3938_v0 = vrot.slane %v3936_v61, 1  ;;  %v3943_v2 = vrot.slane %v3941_v62, 1  ;;  %v8029_v13 = vld [vmem:[%s9096_s4 + $0x268] sm:$0xff]   ;;  %11377 = vst [vmem:[#allocation9_spill] sm:$0xff] %v9195_v14  ;;  %v9201_v16 = vcombine.high %v9186_v11, %v9189_v12  ;;  %v8030_v17 = vld [vmem:[%s9096_s4 + $0x70] sm:$0xff]   ;;  %v3929_v21 = vshll.u32 %v9195_v14, 16 }
  0xfc   : > { %1844 = vmatpush1.bf16.msra.mxu1 %v8008_v39  ;;  %v8031_v18 = vld [vmem:[%s9096_s4 + $0x270] sm:$0xff]   ;;  %v3926_v20 = vrot.slane %v3924_v15, 1  ;;  %v3953_v22 = vshrl.u32 %v9161_v59, 16  ;;  %v9211_v23 = vld [vmem:[%s9134_s11 + $0x48] sm:$0xff]  ;;  %v8032_v26 = vld [vmem:[%s9096_s4 + $0x78] sm:$0xff]   ;;  %v9222_v30 = vcombine.low %v9186_v11, %v9189_v12 }
  0xfd   : > { %4464 = vmatpush1.bf16.msra.mxu0 %v8009_v40  ;;  %1845 = vmatprep.subr.bf16.mxu1 %v11210_v32  ;;  %v3939_v3 = vor.u32 %v3938_v0, %v3934_v60  ;;  %11378 = vst [vmem:[#allocation10_spill] sm:$0xff] %v9201_v16  ;;  %v3957_v24 = vshll.u32 %v9201_v16, 16  ;;  %v9215_v25 = vld [vmem:[%s9134_s11 + $0x50] sm:$0xff]  ;;  %v8033_v27 = vld [vmem:[%s9096_s4 + $0x278] sm:$0xff]   ;;  %v3931_v29 = vrot.slane %v3929_v21, 1  ;;  %v8041_v37 = vld [vmem:[%s9096_s4 + $0x80] sm:$0xff]  }
  0xfe   : > { %4465 = vmatprep.subr.bf16.mxu0 %v11210_v32  ;;  %v3927_v28 = vor.u32 %v3926_v20, %v3922_v19  ;;  %11379 = vst [vmem:[#allocation11_spill] sm:$0xff] %v9222_v30  ;;  %v1409_v31 = vld [vmem:[%s9134_s11 + $0x10] sm:$0xff]  ;;  %v9228_v33 = vcombine.high %v9211_v23, %v9215_v25  ;;  %v8038_v34 = vld [vmem:[%s9134_s11] ss:$8 sps:$4 sm:$0xff]   ;;  %v3955_v35 = vor.u32 %v3953_v22, %v3943_v2  ;;  %v8054_v15 = vld [vmem:[%s9096_s4 + $0x298] sm:$0xff]  }
  0xff   : > { %v3944_v5 = vsel %vm2116_vm0, %v3939_v3, %v3943_v2  ;;  %v3959_v36 = vrot.slane %v3957_v24, 1  ;;  %v8042_v39 = vld [vmem:[%s9096_s4 + $0x280] sm:$0xff]   ;;  %v9236_v40 = vcombine.high %v1409_v31, %v9141_v52  ;;  %v8047_v51 = vld [vmem:[%s9096_s4 + $0x288] sm:$0xff]   ;;  %v9263_v62 = vcombine.low %v1409_v31, %v9141_v52  ;;  %v8066_v21 = vld [vmem:[%s9096_s4 + $0x98] sm:$0xff]  }
 0x100   : > { %1846 = vmatpush1.bf16.msra.mxu1 %v8010_v41  ;;  %4489 = vmatprep.mubr.bf16.mxu0 %v3944_v5  ;;  %11380 = vst [vmem:[#allocation12_spill] sm:$0xff] %v9228_v33  ;;  %v3932_v38 = vsel %vm2116_vm0, %v3927_v28, %v3931_v29  ;;  %v3945_v41 = vshrl.u32 %v9195_v14, 16  ;;  %v3961_v2 = vshrl.u32 %v9222_v30, 16  ;;  %v3985_v52 = vshrl.u32 %v9228_v33, 16 }
 0x101   : > { %4466 = vmatpush1.bf16.msra.mxu0 %v8011_v42  ;;  %1847 = vmatprep.subr.bf16.mxu1 %v11210_v32  ;;  %11381 = vst [vmem:[#allocation13_spill] sm:$0xff] %v9236_v40  ;;  %v3949_v42 = vshll.u32 %v9222_v30, 16  ;;  %11384 = vst [vmem:[#allocation16_spill] sm:$0xff] %v9263_v62  ;;  %v9301_v22 = vcombine.low %v9144_v53, %v9147_v54  ;;  %v9306_v24 = vcombine.high %v9151_v56, %v9186_v11 }
 0x102   : > { %4467 = vmatprep.subr.bf16.mxu0 %v11210_v32 }
 0x103   : > { %11388 = vst [vmem:[#allocation20_spill] sm:$0xff] %v9301_v22  ;;  %11389 = vst [vmem:[#allocation21_spill] sm:$0xff] %v9306_v24 }
 0x104   : > { %1848 = vmatpush1.bf16.msra.mxu1 %v8012_v43  ;;  %v3969_v43 = vshrl.u32 %v9201_v16, 16 }
 0x105   : > { %4468 = vmatpush1.bf16.msra.mxu0 %v8013_v44  ;;  %1849 = vmatprep.subr.bf16.mxu1 %v11210_v32  ;;  %v3973_v44 = vshll.u32 %v9228_v33, 16 }
 0x106   : > { %4469 = vmatprep.subr.bf16.mxu0 %v11210_v32 }
 0x107   : > { %v3975_v60 = vrot.slane %v3973_v44, 1 }
 0x108   : > { %1850 = vmatpush1.bf16.msra.mxu1 %v8014_v45  ;;  %v9244_v45 = vld [vmem:[%s9134_s11 + $0x58] sm:$0xff] }
 0x109   : > { %4470 = vmatpush1.bf16.msra.mxu0 %v8015_v46  ;;  %1851 = vmatprep.subr.bf16.mxu1 %v11210_v32  ;;  %v3960_v46 = vsel %vm2116_vm0, %v3955_v35, %v3959_v36 }
 0x10a   : > { %4471 = vmatprep.subr.bf16.mxu0 %v11210_v32 }
 0x10c   : > { %1852 = vmatpush1.bf16.msra.mxu1 %v8016_v47  ;;  %v9248_v47 = vld [vmem:[%s9134_s11 + $0x60] sm:$0xff] }
 0x10d   : > { %4472 = vmatpush1.bf16.msra.mxu0 %v8017_v48  ;;  %1853 = vmatprep.subr.bf16.mxu1 %v11210_v32  ;;  %v8048_v48 = vld [vmem:[%s9096_s4 + $0x88] sm:$0xff]   ;;  %v9260_v61 = vcombine.high %v9244_v45, %v9248_v47 }
 0x10e   : > { %4473 = vmatprep.subr.bf16.mxu0 %v11210_v32 }
 0x10f   : > { %11383 = vst [vmem:[#allocation15_spill] sm:$0xff] %v9260_v61  ;;  %v3989_v5 = vshll.u32 %v9260_v61, 16  ;;  %v4001_v35 = vshrl.u32 %v9260_v61, 16 }
 0x110   : > { %1854 = vmatpush1.bf16.msra.mxu1 %v8018_v49  ;;  %v3947_v49 = vor.u32 %v3945_v41, %v3931_v29 }
 0x111   : > { %4474 = vmatpush1.bf16.msra.mxu0 %v8019_v50  ;;  %1855 = vmatprep.subr.bf16.mxu1 %v11210_v32  ;;  %v3951_v50 = vrot.slane %v3949_v42, 1  ;;  %v3991_v19 = vrot.slane %v3989_v5, 1 }
 0x112   : > { %4475 = vmatprep.subr.bf16.mxu0 %v11210_v32 }
 0x113   : > { %v3952_v0 = vsel %vm2116_vm0, %v3947_v49, %v3951_v50  ;;  %v4003_v49 = vor.u32 %v4001_v35, %v3991_v19  ;;  %v9389_v35 = vcombine.low %v9189_v12, %v9211_v23 }
 0x114   : > { %1856 = vmatpush1.bf16.msra.mxu1 %v8020_v55  ;;  %v9255_v55 = vcombine.low %v9211_v23, %v9215_v25 }
 0x115   : > { %4476 = vmatpush1.bf16.msra.mxu0 %v8021_v58  ;;  %1857 = vmatprep.subr.bf16.mxu1 %v11210_v32  ;;  %v3971_v58 = vor.u32 %v3969_v43, %v3959_v36  ;;  %11396 = vst [vmem:[#allocation28_spill] sm:$0xff] %v9389_v35 }
 0x116   : > { %4477 = vmatprep.subr.bf16.mxu0 %v11210_v32  ;;  %11382 = vst [vmem:[#allocation14_spill] sm:$0xff] %v9255_v55  ;;  %v3965_v3 = vshll.u32 %v9255_v55, 16  ;;  %v3977_v29 = vshrl.u32 %v9255_v55, 16 }
 0x118   : > { %1858 = vmatpush1.bf16.msra.mxu1 %v8022_v63  ;;  %v9268_v63 = vcombine.high %v9144_v53, %v9147_v54  ;;  %v8060_v54 = vld [vmem:[%s9096_s4 + $0x2a0] sm:$0xff]  }
 0x119   : > { %4478 = vmatpush1.bf16.msra.mxu0 %v8023_v1  ;;  %1859 = vmatprep.subr.bf16.mxu1 %v11210_v32  ;;  %v8051_v1 = vld [vmem:[%s9096_s4 + $0x290] sm:$0xff]  }
 0x11a   : > { %4479 = vmatprep.subr.bf16.mxu0 %v11210_v32  ;;  %11385 = vst [vmem:[#allocation17_spill] sm:$0xff] %v9268_v63 }
 0x11c   : > { %1860 = vmatpush1.bf16.msra.mxu1 %v8024_v4  ;;  %v3976_v4 = vsel %vm2116_vm0, %v3971_v58, %v3975_v60  ;;  %v9350_v58 = vcombine.low %v9151_v56, %v9186_v11 }
 0x11d   : > { %4480 = vmatpush1.bf16.msra.mxu0 %v8025_v6  ;;  %1861 = vmatprep.subr.bf16.mxu1 %v11210_v32  ;;  %v8059_v6 = vld [vmem:[%s9096_s4 + $0x90] sm:$0xff]  }
 0x11e   : > { %4481 = vmatprep.subr.bf16.mxu0 %v11210_v32  ;;  %11393 = vst [vmem:[#allocation25_spill] sm:$0xff] %v9350_v58 }
 0x120   : > { %1862 = vmatpush1.bf16.msra.mxu1 %v8026_v7  ;;  %v9282_v7 = vld [vmem:[%s9134_s11 + $0x68] sm:$0xff] }
 0x121   : > { %4482 = vmatpush1.bf16.msra.mxu0 %v8027_v8  ;;  %1863 = vmatprep.subr.bf16.mxu1 %v11210_v32  ;;  %v9285_v8 = vld [vmem:[%s9134_s11 + $0x70] sm:$0xff] }
 0x122   : > { %4483 = vmatprep.subr.bf16.mxu0 %v11210_v32  ;;  %v9296_v20 = vcombine.high %v9282_v7, %v9285_v8  ;;  %v9320_v31 = vcombine.low %v9282_v7, %v9285_v8 }
 0x124   : > { %1864 = vmatpush1.bf16.msra.mxu1 %v8028_v10  ;;  %v3963_v10 = vor.u32 %v3961_v2, %v3951_v50  ;;  %11387 = vst [vmem:[#allocation19_spill] sm:$0xff] %v9296_v20  ;;  %11390 = vst [vmem:[#allocation22_spill] sm:$0xff] %v9320_v31  ;;  %v4005_v36 = vshll.u32 %v9296_v20, 16  ;;  %v3997_v44 = vshll.u32 %v9320_v31, 16  ;;  %v4017_v5 = vshrl.u32 %v9296_v20, 16 }
 0x125   : > { %4484 = vmatpush1.bf16.msra.mxu0 %v8029_v13  ;;  %1865 = vmatprep.subr.bf16.mxu1 %v11210_v32  ;;  %v3967_v13 = vrot.slane %v3965_v3, 1  ;;  %v8095_v3 = vld [vmem:[%s9096_s4 + $0xb0] sm:$0xff]  }
 0x126   : > { %4485 = vmatprep.subr.bf16.mxu0 %v11210_v32  ;;  %v4007_v50 = vrot.slane %v4005_v36, 1  ;;  %v8078_v36 = vld [vmem:[%s9096_s4 + $0x2c0] sm:$0xff]  }
 0x127   : > { %v3968_v28 = vsel %vm2116_vm0, %v3963_v10, %v3967_v13  ;;  %v3979_v42 = vor.u32 %v3977_v29, %v3967_v13  ;;  %v8072_v10 = vld [vmem:[%s9096_s4 + $0x2b8] sm:$0xff]  }
 0x128   : > { %1866 = vmatpush1.bf16.msra.mxu1 %v8030_v17  ;;  %v9291_v17 = vcombine.low %v9244_v45, %v9248_v47  ;;  %v4008_v11 = vsel %vm2116_vm0, %v4003_v49, %v4007_v50  ;;  %v8083_v49 = vld [vmem:[%s9096_s4 + $0x2c8] sm:$0xff]  }
 0x129   : > { %4486 = vmatpush1.bf16.msra.mxu0 %v8031_v18  ;;  %1867 = vmatprep.subr.bf16.mxu1 %v11210_v32  ;;  %v3987_v18 = vor.u32 %v3985_v52, %v3975_v60 }
 0x12a   : > { %4487 = vmatprep.subr.bf16.mxu0 %v11210_v32  ;;  %11386 = vst [vmem:[#allocation18_spill] sm:$0xff] %v9291_v17  ;;  %v3981_v53 = vshll.u32 %v9291_v17, 16 }
 0x12c   : > { %1868 = vmatpush1.bf16.msra.mxu1 %v8032_v26  ;;  %v9309_v26 = vld [vmem:[%s9134_s11 + $0x78] sm:$0xff]  ;;  %v3983_v43 = vrot.slane %v3981_v53, 1 }
 0x12d   : > { %4488 = vmatpush1.bf16.msra.mxu0 %v8033_v27  ;;  %2653 = vmatprep.subr.bf16.mxu1 %v11210_v32  ;;  %v9312_v27 = vld [vmem:[%s9134_s11 + $0x80] sm:$0xff] }
 0x12e   : > { %4973 = vmatprep.subr.bf16.mxu0 %v11210_v32  ;;  %v9337_v41 = vcombine.low %v9309_v26, %v9312_v27  ;;  %v3984_v52 = vsel %vm2116_vm0, %v3979_v42, %v3983_v43 }
 0x12f   : > { %1870 = vmatmul.mubr.bf16.vlgmr.msra.gmra.mrb[0].mxu1 %v8038_v34  ;;  %v3992_v34 = vsel %vm2116_vm0, %v3987_v18, %v3991_v19 }
 0x130   : > { %4490 = vmatmul.mubr.bf16.vlgmr.msra.gmra.mrb[0].mxu0 %v3932_v38  ;;  %2654 = vmatpush1.bf16.msra.mxu1 %v8041_v37  ;;  %v8077_v37 = vld [vmem:[%s9096_s4 + $0xa0] sm:$0xff]   ;;  %v9330_v38 = vcombine.high %v9309_v26, %v9312_v27  ;;  %11392 = vst [vmem:[#allocation24_spill] sm:$0xff] %v9337_v41  ;;  %v4013_v2 = vshll.u32 %v9337_v41, 16 }
 0x131   : > { %4974 = vmatpush1.bf16.msra.mxu0 %v8042_v39  ;;  %1877 = vmatprep.mubr.bf16.mxu1 %v9236_v40  ;;  %v8065_v39 = vld [vmem:[%s9096_s4 + $0x2a8] sm:$0xff]  }
 0x132   : > { %4497 = vmatprep.mubr.bf16.mxu0 %v3960_v46  ;;  %4975 = vmatprep.subr.bf16.mxu0 %v11210_v32  ;;  %11391 = vst [vmem:[#allocation23_spill] sm:$0xff] %v9330_v38  ;;  %v9341_v46 = vld [vmem:[%s9134_s11 + $0x88] sm:$0xff]  ;;  %v4021_v60 = vshll.u32 %v9330_v38, 16  ;;  %v9375_v18 = vrot.slane %v4013_v2, 1  ;;  %v4033_v19 = vshrl.u32 %v9330_v38, 16  ;;  %v9420_v2 = vld [vmem:[%s9134_s11 + $0xb0] sm:$0xff] }
 0x133   : > { %2655 = vmatprep.subr.bf16.mxu1 %v11210_v32 }
 0x134   : > { %2656 = vmatpush1.bf16.msra.mxu1 %v8048_v48  ;;  %v9344_v48 = vld [vmem:[%s9134_s11 + $0x90] sm:$0xff]  ;;  %v4023_v13 = vrot.slane %v4021_v60, 1 }
 0x135   : > { %4976 = vmatpush1.bf16.msra.mxu0 %v8047_v51  ;;  %2657 = vmatprep.subr.bf16.mxu1 %v11210_v32  ;;  %v8084_v51 = vld [vmem:[%s9096_s4 + $0xa8] sm:$0xff]   ;;  %v9365_v56 = vcombine.high %v9341_v46, %v9344_v48 }
 0x136   : > { %4977 = vmatprep.subr.bf16.mxu0 %v11210_v32 }
 0x137   : > { %1878 = vmatmul.mubr.bf16.gmra.mrb[4].mxu1 %v9263_v62  ;;  %11395 = vst [vmem:[#allocation27_spill] sm:$0xff] %v9365_v56  ;;  %v4037_v53 = vshll.u32 %v9365_v56, 16 }
 0x138   : > { %4498 = vmatmul.mubr.bf16.gmra.mrb[4].mxu0 %v3952_v0  ;;  %1884 = vmatprep.mubr.bf16.mxu1 %v9268_v63  ;;  %v8069_v0 = vld [vmem:[%s9096_s4 + $0x2b0] sm:$0xff]  }
 0x139   : > { %4504 = vmatprep.mubr.bf16.mxu0 %v3976_v4  ;;  %4978 = vmatpush1.bf16.msra.mxu0 %v8051_v1  ;;  %v9357_v1 = vcombine.high %v9189_v12, %v9211_v23  ;;  %v3993_v4 = vshrl.u32 %v9291_v17, 16  ;;  %v4025_v12 = vshrl.u32 %v9337_v41, 16  ;;  %v8111_v23 = vld [vmem:[%s9096_s4 + $0xc0] sm:$0xff]  }
 0x13a   : > { %4979 = vmatprep.subr.bf16.mxu0 %v11210_v32  ;;  %2658 = vmatpush1.bf16.msra.mxu1 %v8059_v6  ;;  %v3999_v6 = vrot.slane %v3997_v44, 1 }
 0x13b   : > { %2659 = vmatprep.subr.bf16.mxu1 %v11210_v32  ;;  %11394 = vst [vmem:[#allocation26_spill] sm:$0xff] %v9357_v1  ;;  %v3995_v29 = vor.u32 %v3993_v4, %v3983_v43  ;;  %v4035_v4 = vor.u32 %v4033_v19, %v4023_v13 }
 0x13d   : > { %4980 = vmatpush1.bf16.msra.mxu0 %v8054_v15  ;;  %v4009_v15 = vshrl.u32 %v9320_v31, 16  ;;  %v4000_v43 = vsel %vm2116_vm0, %v3995_v29, %v3999_v6 }
 0x13e   : > { %4981 = vmatprep.subr.bf16.mxu0 %v11210_v32  ;;  %2660 = vmatpush1.bf16.msra.mxu1 %v8066_v21  ;;  %v9379_v21 = vld [vmem:[%s9134_s11 + $0x98] sm:$0xff] }
 0x13f   : > { %1885 = vmatmul.mubr.bf16.gmra.mrb[8].mxu1 %v9301_v22  ;;  %2661 = vmatprep.subr.bf16.mxu1 %v11210_v32 }
 0x140   : > { %4505 = vmatmul.mubr.bf16.gmra.mrb[8].mxu0 %v3968_v28  ;;  %1891 = vmatprep.mubr.bf16.mxu1 %v9306_v24  ;;  %v9382_v28 = vld [vmem:[%s9134_s11 + $0xa0] sm:$0xff] }
 0x141   : > { %4511 = vmatprep.mubr.bf16.mxu0 %v3992_v34  ;;  %4982 = vmatpush1.bf16.msra.mxu0 %v8060_v54  ;;  %v8102_v54 = vld [vmem:[%s9096_s4 + $0xb8] sm:$0xff]   ;;  %v4019_v34 = vor.u32 %v4017_v5, %v4007_v50  ;;  %v9403_v42 = vcombine.high %v9379_v21, %v9382_v28  ;;  %v4039_v50 = vrot.slane %v4037_v53, 1  ;;  %v8087_v5 = vld [vmem:[%s9096_s4 + $0x2d0] sm:$0xff]   ;;  %v9436_v29 = vcombine.low %v9379_v21, %v9382_v28 }
 0x142   : > { %4983 = vmatprep.subr.bf16.mxu0 %v11210_v32  ;;  %2662 = vmatpush1.bf16.msra.mxu1 %v8077_v37  ;;  %v9395_v37 = vcombine.high %v9215_v25, %v9244_v45 }
 0x143   : > { %2663 = vmatprep.subr.bf16.mxu1 %v11210_v32  ;;  %11399 = vst [vmem:[#allocation31_spill] sm:$0xff] %v9403_v42  ;;  %v4024_v44 = vsel %vm2116_vm0, %v4019_v34, %v4023_v13  ;;  %v4053_v60 = vshll.u32 %v9403_v42, 16  ;;  %11402 = vst [vmem:[#allocation34_spill] sm:$0xff] %v9436_v29  ;;  %v4049_v13 = vshrl.u32 %v9365_v56, 16  ;;  %v4045_v34 = vshll.u32 %v9436_v29, 16 }
 0x144   : > { %11397 = vst [vmem:[#allocation29_spill] sm:$0xff] %v9395_v37 }
 0x145   : > { %4984 = vmatpush1.bf16.msra.mxu0 %v8065_v39  ;;  %v9399_v39 = vcombine.low %v9341_v46, %v9344_v48  ;;  %v4055_v53 = vrot.slane %v4053_v60, 1  ;;  %v8096_v60 = vld [vmem:[%s9096_s4 + $0x2e0] sm:$0xff]  }
 0x146   : > { %4985 = vmatprep.subr.bf16.mxu0 %v11210_v32  ;;  %2664 = vmatpush1.bf16.msra.mxu1 %v8084_v51 }
 0x147   : > { %1892 = vmatmul.mubr.bf16.gmra.mrb[12].mxu1 %v9350_v58  ;;  %2665 = vmatprep.subr.bf16.mxu1 %v11210_v32  ;;  %11398 = vst [vmem:[#allocation30_spill] sm:$0xff] %v9399_v39  ;;  %v4029_v51 = vshll.u32 %v9399_v39, 16 }
 0x148   : > { %4512 = vmatmul.mubr.bf16.gmra.mrb[12].mxu0 %v3984_v52  ;;  %1899 = vmatprep.mubr.bf16.mxu1 %v9357_v1  ;;  %v4011_v52 = vor.u32 %v4009_v15, %v3999_v6  ;;  %v4040_v15 = vsel %vm2116_vm0, %v4035_v4, %v4039_v50 }
 0x149   : > { %4519 = vmatprep.mubr.bf16.mxu0 %v4008_v11  ;;  %4986 = vmatpush1.bf16.msra.mxu0 %v8069_v0  ;;  %v9417_v0 = vld [vmem:[%s9134_s11 + $0xa8] sm:$0xff]  ;;  %v9426_v11 = vcombine.low %v9215_v25, %v9244_v45  ;;  %v8121_v45 = vld [vmem:[%s9096_s4 + $0xd0] sm:$0xff]   ;;  %v4031_v19 = vrot.slane %v4029_v51, 1  ;;  %v9460_v51 = vcombine.low %v9248_v47, %v9282_v7 }
 0x14a   : > { %4987 = vmatprep.subr.bf16.mxu0 %v11210_v32  ;;  %2666 = vmatpush1.bf16.msra.mxu1 %v8095_v3  ;;  %v8115_v3 = vld [vmem:[%s9096_s4 + $0xc8] sm:$0xff]   ;;  %v4016_v6 = vsel %vm2116_vm0, %v4011_v52, %v9375_v18  ;;  %v9443_v25 = vcombine.high %v9417_v0, %v9420_v2 }
 0x14b   : > { %2667 = vmatprep.subr.bf16.mxu1 %v11210_v32  ;;  %11400 = vst [vmem:[#allocation32_spill] sm:$0xff] %v9426_v11  ;;  %11404 = vst [vmem:[#allocation36_spill] sm:$0xff] %v9460_v51 }
 0x14c   : > { %11403 = vst [vmem:[#allocation35_spill] sm:$0xff] %v9443_v25 }
 0x14d   : > { %4988 = vmatpush1.bf16.msra.mxu0 %v8072_v10  ;;  %v9432_v10 = vcombine.high %v9248_v47, %v9282_v7  ;;  %v4065_v47 = vshrl.u32 %v9403_v42, 16  ;;  %v8131_v7 = vld [vmem:[%s9096_s4 + $0xe0] sm:$0xff]  }
 0x14e   : > { %4989 = vmatprep.subr.bf16.mxu0 %v11210_v32  ;;  %2668 = vmatpush1.bf16.msra.mxu1 %v8102_v54  ;;  %v4041_v54 = vshrl.u32 %v9399_v39, 16 }
 0x14f   : > { %1900 = vmatmul.mubr.bf16.gmra.mrb[16].mxu1 %v9389_v35  ;;  %2669 = vmatprep.subr.bf16.mxu1 %v11210_v32  ;;  %11401 = vst [vmem:[#allocation33_spill] sm:$0xff] %v9432_v10  ;;  %v9591_v35 = vcombine.low %v9344_v48, %v9379_v21 }
 0x150   : > { %4520 = vmatmul.mubr.bf16.gmra.mrb[16].mxu0 %v4000_v43  ;;  %1906 = vmatprep.mubr.bf16.mxu1 %v9395_v37  ;;  %v4027_v43 = vor.u32 %v4025_v12, %v9375_v18  ;;  %v9470_v18 = vcombine.low %v9417_v0, %v9420_v2  ;;  %v9473_v12 = vld [vmem:[%s9134_s11 + $0xb8] sm:$0xff] }
 0x151   : > { %4526 = vmatprep.mubr.bf16.mxu0 %v4024_v44  ;;  %4990 = vmatpush1.bf16.msra.mxu0 %v8078_v36  ;;  %v8090_v36 = vld [vmem:[%s9096_s4 + $0x2d8] sm:$0xff]   ;;  %11420 = vst [vmem:[#allocation51_spill] sm:$0xff] %v9591_v35 }
 0x152   : > { %4991 = vmatprep.subr.bf16.mxu0 %v11210_v32  ;;  %2670 = vmatpush1.bf16.msra.mxu1 %v8111_v23  ;;  %v4069_v23 = vshll.u32 %v9443_v25, 16  ;;  %v8125_v44 = vld [vmem:[%s9096_s4 + $0xd8] sm:$0xff]   ;;  %11406 = vst [vmem:[#allocation38_spill] sm:$0xff] %v9470_v18  ;;  %v4032_v52 = vsel %vm2116_vm0, %v4027_v43, %v4031_v19 }
 0x153   : > { %2671 = vmatprep.subr.bf16.mxu1 %v11210_v32 }
 0x155   : > { %4992 = vmatpush1.bf16.msra.mxu0 %v8083_v49  ;;  %v4051_v49 = vor.u32 %v4049_v13, %v4039_v50  ;;  %v9476_v50 = vld [vmem:[%s9134_s11 + $0xc0] sm:$0xff]  ;;  %v4057_v13 = vshrl.u32 %v9436_v29, 16 }
 0x156   : > { %4993 = vmatprep.subr.bf16.mxu0 %v11210_v32  ;;  %2672 = vmatpush1.bf16.msra.mxu1 %v8115_v3  ;;  %v9466_v3 = vcombine.high %v9285_v8, %v9309_v26  ;;  %v9491_v43 = vcombine.high %v9473_v12, %v9476_v50 }
 0x157   : > { %1907 = vmatmul.mubr.bf16.gmra.mrb[20].mxu1 %v9426_v11  ;;  %2673 = vmatprep.subr.bf16.mxu1 %v11210_v32  ;;  %v4056_v4 = vsel %vm2116_vm0, %v4051_v49, %v4055_v53  ;;  %v9498_v49 = vcombine.low %v9285_v8, %v9309_v26  ;;  %v9518_v8 = vld [vmem:[%s9134_s11 + $0xf0] sm:$0xff]  ;;  %v9578_v11 = vld [vmem:[%s9134_s11 + $0x100] sm:$0xff] }
 0x158   : > { %4527 = vmatmul.mubr.bf16.gmra.mrb[20].mxu0 %v4016_v6  ;;  %1913 = vmatprep.mubr.bf16.mxu1 %v9432_v10  ;;  %11405 = vst [vmem:[#allocation37_spill] sm:$0xff] %v9466_v3  ;;  %v4071_v6 = vrot.slane %v4069_v23, 1  ;;  %11407 = vst [vmem:[#allocation39_spill] sm:$0xff] %v9491_v43  ;;  %v4067_v23 = vor.u32 %v4065_v47, %v4055_v53  ;;  %v4085_v47 = vshll.u32 %v9491_v43, 16  ;;  %v8141_v26 = vld [vmem:[%s9096_s4 + $0xf0] sm:$0xff]  }
 0x159   : > { %4533 = vmatprep.mubr.bf16.mxu0 %v4040_v15  ;;  %4994 = vmatpush1.bf16.msra.mxu0 %v8087_v5  ;;  %v4047_v5 = vrot.slane %v4045_v34, 1  ;;  %v8101_v15 = vld [vmem:[%s9096_s4 + $0x2e8] sm:$0xff]   ;;  %11408 = vst [vmem:[#allocation40_spill] sm:$0xff] %v9498_v49  ;;  %v9543_v10 = vcombine.low %v9312_v27, %v9341_v46 }
 0x15a   : > { %4995 = vmatprep.subr.bf16.mxu0 %v11210_v32  ;;  %2674 = vmatpush1.bf16.msra.mxu1 %v8121_v45  ;;  %v4061_v45 = vshll.u32 %v9470_v18, 16  ;;  %v8135_v34 = vld [vmem:[%s9096_s4 + $0xe8] sm:$0xff]  }
 0x15b   : > { %2675 = vmatprep.subr.bf16.mxu1 %v11210_v32  ;;  %11414 = vst [vmem:[#allocation45_spill] sm:$0xff] %v9543_v10 }
 0x15d   : > { %4996 = vmatpush1.bf16.msra.mxu0 %v8090_v36  ;;  %v4043_v36 = vor.u32 %v4041_v54, %v4031_v19  ;;  %v8105_v19 = vld [vmem:[%s9096_s4 + $0x2f0] sm:$0xff]   ;;  %v9504_v54 = vcombine.high %v9312_v27, %v9341_v46  ;;  %v9560_v27 = vld [vmem:[%s9134_s11 + $0xe0] sm:$0xff] }
 0x15e   : > { %4997 = vmatprep.subr.bf16.mxu0 %v11210_v32  ;;  %2676 = vmatpush1.bf16.msra.mxu1 %v8125_v44  ;;  %v4081_v44 = vshrl.u32 %v9443_v25, 16 }
 0x15f   : > { %1914 = vmatmul.mubr.bf16.gmra.mrb[24].mxu1 %v9460_v51  ;;  %2677 = vmatprep.subr.bf16.mxu1 %v11210_v32  ;;  %11409 = vst [vmem:[#allocation41_spill] sm:$0xff] %v9504_v54  ;;  %v4048_v53 = vsel %vm2116_vm0, %v4043_v36, %v4047_v5  ;;  %v9526_v36 = vcombine.low %v9473_v12, %v9476_v50 }
 0x160   : > { %4534 = vmatmul.mubr.bf16.gmra.mrb[24].mxu0 %v4032_v52  ;;  %1921 = vmatprep.mubr.bf16.mxu1 %v9466_v3  ;;  %v9507_v52 = vld [vmem:[%s9134_s11 + $0xc8] sm:$0xff]  ;;  %v8108_v3 = vld [vmem:[%s9096_s4 + $0x2f8] sm:$0xff]   ;;  %v4083_v51 = vor.u32 %v4081_v44, %v4071_v6 }
 0x161   : > { %4541 = vmatprep.mubr.bf16.mxu0 %v4056_v4  ;;  %4998 = vmatpush1.bf16.msra.mxu0 %v8096_v60  ;;  %v9510_v60 = vld [vmem:[%s9134_s11 + $0xd0] sm:$0xff]  ;;  %v4072_v4 = vsel %vm2116_vm0, %v4067_v23, %v4071_v6  ;;  %11410 = vst [vmem:[#allocation42_spill] sm:$0xff] %v9526_v36  ;;  %v4059_v23 = vor.u32 %v4057_v13, %v4047_v5  ;;  %v4073_v5 = vshrl.u32 %v9470_v18, 16  ;;  %v4077_v13 = vshll.u32 %v9526_v36, 16  ;;  %v9557_v44 = vld [vmem:[%s9134_s11 + $0xd8] sm:$0xff] }
 0x162   : > { %4999 = vmatprep.subr.bf16.mxu0 %v11210_v32  ;;  %2678 = vmatpush1.bf16.msra.mxu1 %v8131_v7  ;;  %v9515_v7 = vld [vmem:[%s9134_s11 + $0xe8] sm:$0xff]  ;;  %v9554_v6 = vcombine.high %v9344_v48, %v9379_v21  ;;  %v9609_v48 = vld [vmem:[%s9134_s11 + $0x110] sm:$0xff] }
 0x163   : > { %2679 = vmatprep.subr.bf16.mxu1 %v11210_v32 }
 0x164   : > { %11416 = vst [vmem:[#allocation47_spill] sm:$0xff] %v9554_v6 }
 0x165   : > { %5000 = vmatpush1.bf16.msra.mxu0 %v8101_v15  ;;  %v9532_v15 = vcombine.high %v9515_v7, %v9518_v8 }
 0x166   : > { %5001 = vmatprep.subr.bf16.mxu0 %v11210_v32  ;;  %2680 = vmatpush1.bf16.msra.mxu1 %v8135_v34  ;;  %v4063_v34 = vrot.slane %v4061_v45, 1  ;;  %v9550_v45 = vcombine.low %v9515_v7, %v9518_v8 }
 0x167   : > { %1922 = vmatmul.mubr.bf16.gmra.mrb[28].mxu1 %v9498_v49  ;;  %2681 = vmatprep.subr.bf16.mxu1 %v11210_v32  ;;  %11411 = vst [vmem:[#allocation43_spill] sm:$0xff] %v9532_v15  ;;  %v9536_v49 = vcombine.high %v9507_v52, %v9510_v60  ;;  %v4087_v32 = vrot.slane %v4085_v47, 1 }
 0x168   : > { %4542 = vmatmul.mubr.bf16.gmra.mrb[28].mxu0 %v4048_v53  ;;  %1928 = vmatprep.mubr.bf16.mxu1 %v9504_v54  ;;  %v11413_v53 = vmov 0   ;;  %v8145_v54 = vld [vmem:[%s9096_s4 + $0xf8] sm:$0xff]   ;;  %11415 = vst [vmem:[#allocation46_spill] sm:$0xff] %v9550_v45  ;;  %v4064_v46 = vsel %vm2116_vm0, %v4059_v23, %v4063_v34 }
 0x169   : > { %4548 = vmatprep.mubr.bf16.mxu0 %v4072_v4  ;;  %11412 = vst [vmem:[#allocation44_spill] sm:$0xff] %v9536_v49  ;;  %5002 = vmatpush1.bf16.msra.mxu0 %v8105_v19  ;;  %v4097_v19 = vshrl.u32 %v9491_v43, 16  ;;  %v4101_v47 = vshll.u32 %v9536_v49, 16  ;;  %v9570_v4 = vcombine.low %v9507_v52, %v9510_v60  ;;  %v9575_v23 = vld [vmem:[%s9134_s11 + $0xf8] sm:$0xff] }
 0x16a   : > { %5003 = vmatprep.subr.bf16.mxu0 %v11413_v53  ;;  %2682 = vmatpush1.bf16.msra.mxu1 %v8141_v26  ;;  %v4088_v26 = vsel %vm2116_vm0, %v4083_v51, %v4087_v32  ;;  %v4075_v51 = vor.u32 %v4073_v5, %v4063_v34  ;;  %v4113_v34 = vshrl.u32 %v9536_v49, 16  ;;  %v9597_v5 = vcombine.low %v9575_v23, %v9578_v11 }
 0x16b   : > { %2683 = vmatprep.subr.bf16.mxu1 %v11413_v53  ;;  %11417 = vst [vmem:[#allocation48_spill] sm:$0xff] %v9570_v4  ;;  %v4103_v37 = vrot.slane %v4101_v47, 1  ;;  %v9606_v47 = vld [vmem:[%s9134_s11 + $0x108] sm:$0xff] }
 0x16c   : > { %11421 = vst [vmem:[#allocation52_spill] sm:$0xff] %v9597_v5  ;;  %v9616_v1 = vcombine.high %v9606_v47, %v9609_v48  ;;  %v9620_v5 = vcombine.low %v9557_v44, %v9560_v27 }
 0x16d   : > { %5004 = vmatpush1.bf16.msra.mxu0 %v8108_v3  ;;  %v4079_v3 = vrot.slane %v4077_v13, 1  ;;  %v9601_v13 = vcombine.high %v9382_v28, %v9417_v0  ;;  %v4115_v24 = vor.u32 %v4113_v34, %v4103_v37  ;;  %v9643_v34 = vld [vmem:[%s9134_s11 + $0x120] sm:$0xff] }
 0x16e   : > { %5361 = vmatprep.subr.bf16.mxu0 %v11413_v53  ;;  %2684 = vmatpush1.bf16.msra.mxu1 %v8145_v54  ;;  %v9582_v54 = vcombine.high %v9557_v44, %v9560_v27  ;;  %11423 = vst [vmem:[#allocation54_spill] sm:$0xff] %v9616_v1  ;;  %11424 = vst [vmem:[#allocation55_spill] sm:$0xff] %v9620_v5 }
 0x16f   : > { %1929 = vmatmul.mubr.bf16.gmra.mrb[32].mxu1 %v9543_v10  ;;  %3170 = vmatprep.subr.bf16.mxu1 %v11413_v53  ;;  %v9586_v10 = vcombine.high %v9575_v23, %v9578_v11  ;;  %11422 = vst [vmem:[#allocation53_spill] sm:$0xff] %v9601_v13 }
 0x170   : > { %4549 = vmatmul.mubr.bf16.gmra.mrb[32].mxu0 %v4064_v46  ;;  %1935 = vmatprep.mubr.bf16.mxu1 %v9554_v6  ;;  %11418 = vst [vmem:[#allocation49_spill] sm:$0xff] %v9582_v54  ;;  %v4099_v46 = vor.u32 %v4097_v19, %v4087_v32  ;;  %v4089_v6 = vshrl.u32 %v9526_v36, 16  ;;  %v4080_v32 = vsel %vm2116_vm0, %v4075_v51, %v4079_v3  ;;  %v4117_v19 = vshll.u32 %v9582_v54, 16 }
 0x171   : > { %4555 = vmatprep.mubr.bf16.mxu0 %v4088_v26  ;;  %11419 = vst [vmem:[#allocation50_spill] sm:$0xff] %v9586_v10  ;;  %v4093_v26 = vshll.u32 %v9570_v4, 16 }
 0x172   : > { %v4104_v21 = vsel %vm2116_vm0, %v4099_v46, %v4103_v37  ;;  %v4091_v51 = vor.u32 %v4089_v6, %v4079_v3  ;;  %v9622_v46 = vrot.slane %v4117_v19, 1  ;;  %v9635_v6 = vcombine.high %v9420_v2, %v9473_v12 }
 0x173   : > { %v4095_v58 = vrot.slane %v4093_v26, 1  ;;  %v4109_v37 = vshll.u32 %v9620_v5, 16  ;;  %v9640_v26 = vld [vmem:[%s9134_s11 + $0x118] sm:$0xff] }
 0x174   : > { %11425 = vst [vmem:[#allocation56_spill] sm:$0xff] %v9622_v46 }
 0x175   : > { %v4096_v3 = vsel %vm2116_vm0, %v4091_v51, %v4095_v58  ;;  %v4734_v51 = vrot.slane %v9155_v57, 1 }
 0x177   : > { %1936 = vmatmul.mubr.bf16.gmra.mrb[36].mxu1 %v9591_v35  ;;  %v9631_v35 = vcombine.low %v9606_v47, %v9609_v48 }
 0x178   : > { %4556 = vmatmul.mubr.bf16.gmra.mrb[36].mxu0 %v4080_v32  ;;  %1943 = vmatprep.mubr.bf16.mxu1 %v9601_v13  ;;  %v9626_v32 = vcombine.low %v9382_v28, %v9417_v0  ;;  %v4105_v13 = vshrl.u32 %v9570_v4, 16  ;;  %v4120_v28 = vsel %vm2116_vm0, %v4115_v24, %v9622_v46  ;;  %v9651_v0 = vcombine.high %v9640_v26, %v9643_v34 }
 0x179   : > { %4563 = vmatprep.mubr.bf16.mxu0 %v4104_v21  ;;  %11426 = vst [vmem:[#allocation57_spill] sm:$0xff] %v9631_v35  ;;  %v9653_v21 = vrot.slane %v4109_v37, 1  ;;  %v4735_v35 = vrot.slane %v9161_v59, 1  ;;  %v9659_v24 = vcombine.low %v9420_v2, %v9473_v12  ;;  %v4731_v2 = vrot.slane %v9181_v9, 1 }
 0x17a   : > { %11427 = vst [vmem:[#allocation58_spill] sm:$0xff] %v9651_v0  ;;  %v4107_v19 = vor.u32 %v4105_v13, %v4095_v58  ;;  %v4732_v12 = vrot.slane %v9195_v14, 1  ;;  %v4739_v37 = vrot.slane %v9201_v16, 1  ;;  %v9679_v46 = vcombine.low %v9476_v50, %v9507_v52 }
 0x17b   : > { %11428 = vst [vmem:[#allocation59_spill] sm:$0xff] %v9653_v21  ;;  %v4736_v13 = vsel %vm2927_vm1, %v4734_v51, %v4735_v35  ;;  %v2137_v16 = vshll.u32 %v9236_v40, 16  ;;  %v4777_v9 = vrot.slane %v9620_v5, 1  ;;  %v8151_v5 = vld [vmem:[%s9096_s4 + $0x100] sm:$0xff]  }
 0x17c   : > { %v4112_v58 = vsel %vm2116_vm0, %v4107_v19, %v9653_v21  ;;  %v9683_v19 = vcombine.high %v9510_v60, %v9557_v44  ;;  %v4733_v51 = vsel %vm2927_vm1, %v4731_v2, %v4732_v12  ;;  %v4743_v21 = vrot.slane %v9228_v33, 1 }
 0x17d   : > { %v9696_v2 = vcombine.low %v9510_v60, %v9557_v44  ;;  %v4741_v60 = vrot.slane %v9255_v55, 1  ;;  %v8127_v44 = vld [vmem:[%s9096_s4 + $0x318] sm:$0xff]   ;;  %v8256_v55 = vld [vmem:[%s9134_s11 + $0x4] ss:$8 sps:$4 sm:$0xff]  }
 0x17e   : > { %v2132_v33 = vshll.u32 %v8256_v55, 16 }
 0x17f   : > { %1944 = vmatmul.mubr.bf16.gmra.mrb[40].mxu1 %v9626_v32 }
 0x180   : > { %4564 = vmatmul.mubr.bf16.gmra.mrb[40].mxu0 %v4096_v3  ;;  %1950 = vmatprep.mubr.bf16.mxu1 %v9635_v6  ;;  %v9663_v3 = vcombine.low %v9640_v26, %v9643_v34 }
 0x181   : > { %4570 = vmatprep.mubr.bf16.mxu0 %v4120_v28  ;;  %v9667_v28 = vcombine.high %v9476_v50, %v9507_v52  ;;  %v4737_v50 = vrot.slane %v9222_v30, 1  ;;  %v8117_v52 = vld [vmem:[%s9096_s4 + $0x308] sm:$0xff]   ;;  %v4779_v30 = vrot.slane %v9582_v54, 1 }
 0x182   : > { %11429 = vst [vmem:[#allocation60_spill] sm:$0xff] %v9663_v3  ;;  %v8257_v54 = vld [vmem:[%s9134_s11] ss:$8 sps:$4 sm:$0xff]  }
 0x183   : > { %v2120_v59 = vshll.u32 %v8257_v54, 16 }
 0x187   : > { %1951 = vmatmul.mubr.bf16.gmra.mrb[44].mxu1 %v9659_v24 }
 0x188   : > { %4571 = vmatmul.mubr.bf16.gmra.mrb[44].mxu0 %v4112_v58  ;;  %1957 = vmatprep.mubr.bf16.mxu1 %v9667_v28  ;;  %v8112_v58 = vld [vmem:[%s9096_s4 + $0x300] sm:$0xff]  }
 0x189   : > { %5005 = vmatprep.mubr.bf16.mxu0 %v4736_v13  ;;  %v4740_v13 = vsel %vm2927_vm1, %v4735_v35, %v4739_v37  ;;  %v9700_v35 = vcombine.high %v9560_v27, %v9515_v7 }
 0x18f   : > { %1958 = vmatmul.mubr.bf16.gmra.mrb[48].mxu1 %v9679_v46 }
 0x190   : > { %5006 = vmatmul.mubr.bf16.vlgmr.msra.gmra.mrb[0].mxu0 %v4733_v51  ;;  %1965 = vmatprep.mubr.bf16.mxu1 %v9683_v19  ;;  %v4738_v51 = vsel %vm2927_vm1, %v4732_v12, %v4737_v50  ;;  %v4747_v12 = vrot.slane %v9260_v61, 1  ;;  %v9879_v61 = vld [vmem:[%s9134_s11 + $0x178] sm:$0xff] }
 0x191   : > { %5362 = vmatpush1.bf16.msra.mxu0 %v8112_v58  ;;  %5013 = vmatprep.mubr.bf16.mxu0 %v4740_v13  ;;  %v8122_v58 = vld [vmem:[%s9096_s4 + $0x310] sm:$0xff]   ;;  %v4744_v13 = vsel %vm2927_vm1, %v4739_v37, %v4743_v21  ;;  %v9714_v37 = vcombine.low %v9560_v27, %v9515_v7  ;;  %v4745_v7 = vrot.slane %v9291_v17, 1  ;;  %v8137_v27 = vld [vmem:[%s9096_s4 + $0x328] sm:$0xff]  }
 0x192   : > { %5363 = vmatprep.subr.bf16.mxu0 %v11413_v53  ;;  %v9859_v17 = vld [vmem:[%s9134_s11 + $0x168] sm:$0xff] }
 0x195   : > { %5364 = vmatpush1.bf16.msra.mxu0 %v8117_v52  ;;  %v9718_v52 = vcombine.high %v9518_v8, %v9575_v23 }
 0x196   : > { %5365 = vmatprep.subr.bf16.mxu0 %v11413_v53 }
 0x197   : > { %1966 = vmatmul.mubr.bf16.gmra.mrb[52].mxu1 %v9696_v2 }
 0x198   : > { %5014 = vmatmul.mubr.bf16.gmra.mrb[4].mxu0 %v4738_v51  ;;  %1972 = vmatprep.mubr.bf16.mxu1 %v9700_v35  ;;  %v4742_v51 = vsel %vm2927_vm1, %v4737_v50, %v4741_v60  ;;  %v4751_v50 = vrot.slane %v9296_v20, 1  ;;  %v9836_v20 = vld [vmem:[%s9134_s11 + $0x158] sm:$0xff] }
 0x199   : > { %5020 = vmatprep.mubr.bf16.mxu0 %v4744_v13  ;;  %5366 = vmatpush1.bf16.msra.mxu0 %v8122_v58  ;;  %v8132_v13 = vld [vmem:[%s9096_s4 + $0x320] sm:$0xff]   ;;  %v4748_v58 = vsel %vm2927_vm1, %v4743_v21, %v4747_v12  ;;  %v9732_v21 = vcombine.low %v9518_v8, %v9575_v23  ;;  %v4749_v8 = vrot.slane %v9320_v31, 1  ;;  %v8147_v23 = vld [vmem:[%s9096_s4 + $0x338] sm:$0xff]   ;;  %v9833_v31 = vld [vmem:[%s9134_s11 + $0x150] sm:$0xff] }
 0x19a   : > { %5367 = vmatprep.subr.bf16.mxu0 %v11413_v53 }
 0x19d   : > { %5368 = vmatpush1.bf16.msra.mxu0 %v8127_v44  ;;  %v9736_v44 = vcombine.high %v9578_v11, %v9606_v47 }
 0x19e   : > { %5369 = vmatprep.subr.bf16.mxu0 %v11413_v53 }
 0x19f   : > { %1973 = vmatmul.mubr.bf16.gmra.mrb[56].mxu1 %v9714_v37 }
 0x1a0   : > { %5021 = vmatmul.mubr.bf16.gmra.mrb[8].mxu0 %v4742_v51  ;;  %1979 = vmatprep.mubr.bf16.mxu1 %v9718_v52  ;;  %v4746_v51 = vsel %vm2927_vm1, %v4741_v60, %v4745_v7  ;;  %v4755_v60 = vrot.slane %v9330_v38, 1  ;;  %v9812_v38 = vld [vmem:[%s9134_s11 + $0x148] sm:$0xff] }
 0x1a1   : > { %5027 = vmatprep.mubr.bf16.mxu0 %v4748_v58  ;;  %5370 = vmatpush1.bf16.msra.mxu0 %v8132_v13  ;;  %v8142_v58 = vld [vmem:[%s9096_s4 + $0x330] sm:$0xff]   ;;  %v4752_v13 = vsel %vm2927_vm1, %v4747_v12, %v4751_v50  ;;  %v9750_v12 = vcombine.low %v9578_v11, %v9606_v47  ;;  %v4753_v11 = vrot.slane %v9337_v41, 1  ;;  %v9764_v47 = vld [vmem:[%s9134_s11 + $0x128] sm:$0xff] }
 0x1a2   : > { %5371 = vmatprep.subr.bf16.mxu0 %v11413_v53 }
 0x1a5   : > { %5372 = vmatpush1.bf16.msra.mxu0 %v8137_v27  ;;  %v9754_v27 = vcombine.high %v9609_v48, %v9640_v26 }
 0x1a6   : > { %5373 = vmatprep.subr.bf16.mxu0 %v11413_v53 }
 0x1a7   : > { %1980 = vmatmul.mubr.bf16.gmra.mrb[60].mxu1 %v9732_v21 }
 0x1a8   : > { %5028 = vmatmul.mubr.bf16.gmra.mrb[12].mxu0 %v4746_v51  ;;  %1987 = vmatprep.mubr.bf16.mxu1 %v9736_v44  ;;  %v4750_v51 = vsel %vm2927_vm1, %v4745_v7, %v4749_v8  ;;  %v8157_v7 = vld [vmem:[%s9096_s4 + $0x348] sm:$0xff]  }
 0x1a9   : > { %5035 = vmatprep.mubr.bf16.mxu0 %v4752_v13  ;;  %5374 = vmatpush1.bf16.msra.mxu0 %v8142_v58  ;;  %v8152_v13 = vld [vmem:[%s9096_s4 + $0x340] sm:$0xff]   ;;  %v4756_v58 = vsel %vm2927_vm1, %v4751_v50, %v4755_v60  ;;  %v9771_v50 = vcombine.low %v9609_v48, %v9640_v26  ;;  %v4757_v48 = vrot.slane %v9399_v39, 1  ;;  %v9785_v26 = vld [vmem:[%s9134_s11 + $0x130] sm:$0xff] }
 0x1aa   : > { %5375 = vmatprep.subr.bf16.mxu0 %v11413_v53 }
 0x1ad   : > { %5376 = vmatpush1.bf16.msra.mxu0 %v8147_v23  ;;  %v4759_v23 = vrot.slane %v9365_v56, 1  ;;  %v9788_v56 = vld [vmem:[%s9134_s11 + $0x138] sm:$0xff] }
 0x1ae   : > { %5377 = vmatprep.subr.bf16.mxu0 %v11413_v53 }
 0x1af   : > { %1988 = vmatmul.mubr.bf16.gmra.mrb[64].mxu1 %v9750_v12  ;;  %v4760_v41 = vsel %vm2927_vm1, %v4755_v60, %v4759_v23  ;;  %v4763_v60 = vrot.slane %v9403_v42, 1  ;;  %v9809_v42 = vld [vmem:[%s9134_s11 + $0x140] sm:$0xff] }
 0x1b0   : > { %5036 = vmatmul.mubr.bf16.gmra.mrb[16].mxu0 %v4750_v51  ;;  %1994 = vmatprep.mubr.bf16.mxu1 %v9754_v27  ;;  %v9775_v51 = vcombine.high %v9643_v34, %v9764_v47 }
 0x1b1   : > { %5042 = vmatprep.mubr.bf16.mxu0 %v4756_v58  ;;  %5378 = vmatpush1.bf16.msra.mxu0 %v8152_v13  ;;  %v4754_v58 = vsel %vm2927_vm1, %v4749_v8, %v4753_v11  ;;  %v8162_v13 = vld [vmem:[%s9096_s4 + $0x350] sm:$0xff]   ;;  %v8167_v8 = vld [vmem:[%s9096_s4 + $0x358] sm:$0xff]   ;;  %v4764_v39 = vsel %vm2927_vm1, %v4759_v23, %v4763_v60  ;;  %v4767_v23 = vrot.slane %v9443_v25, 1  ;;  %v4765_v25 = vrot.slane %v9470_v18, 1 }
 0x1b2   : > { %5379 = vmatprep.subr.bf16.mxu0 %v11413_v53 }
 0x1b5   : > { %5380 = vmatpush1.bf16.msra.mxu0 %v8157_v7  ;;  %v9795_v7 = vcombine.low %v9643_v34, %v9764_v47  ;;  %v4761_v34 = vrot.slane %v9436_v29, 1  ;;  %v4768_v29 = vsel %vm2927_vm1, %v4763_v60, %v4767_v23  ;;  %v4771_v60 = vrot.slane %v9491_v43, 1  ;;  %v9856_v43 = vld [vmem:[%s9134_s11 + $0x160] sm:$0xff] }
 0x1b6   : > { %5381 = vmatprep.subr.bf16.mxu0 %v11413_v53 }
 0x1b7   : > { %1995 = vmatmul.mubr.bf16.gmra.mrb[68].mxu1 %v9771_v50  ;;  %v4772_v18 = vsel %vm2927_vm1, %v4767_v23, %v4771_v60  ;;  %v9864_v23 = vcombine.low %v9833_v31, %v9836_v20 }
 0x1b8   : > { %5043 = vmatmul.mubr.bf16.gmra.mrb[20].mxu0 %v4754_v58  ;;  %2001 = vmatprep.mubr.bf16.mxu1 %v9775_v51  ;;  %v4758_v58 = vsel %vm2927_vm1, %v4753_v11, %v4757_v48  ;;  %v8177_v11 = vld [vmem:[%s9096_s4 + $0x368] sm:$0xff]  }
 0x1b9   : > { %5049 = vmatprep.mubr.bf16.mxu0 %v4760_v41  ;;  %5382 = vmatpush1.bf16.msra.mxu0 %v8162_v13  ;;  %v9799_v41 = vcombine.high %v9785_v26, %v9788_v56  ;;  %v8172_v13 = vld [vmem:[%s9096_s4 + $0x360] sm:$0xff]   ;;  %11430 = vst [vmem:[#allocation61_spill] sm:$0xff] %v9864_v23 }
 0x1ba   : > { %5383 = vmatprep.subr.bf16.mxu0 %v11413_v53 }
 0x1bd   : > { %5384 = vmatpush1.bf16.msra.mxu0 %v8167_v8  ;;  %v9819_v8 = vcombine.low %v9785_v26, %v9788_v56 }
 0x1be   : > { %5385 = vmatprep.subr.bf16.mxu0 %v11413_v53 }
 0x1bf   : > { %2002 = vmatmul.mubr.bf16.gmra.mrb[72].mxu1 %v9795_v7 }
 0x1c0   : > { %5050 = vmatmul.mubr.bf16.gmra.mrb[24].mxu0 %v4758_v58  ;;  %2009 = vmatprep.mubr.bf16.mxu1 %v9799_v41  ;;  %v4762_v58 = vsel %vm2927_vm1, %v4757_v48, %v4761_v34  ;;  %v8187_v48 = vld [vmem:[%s9096_s4 + $0x378] sm:$0xff]  }
 0x1c1   : > { %5057 = vmatprep.mubr.bf16.mxu0 %v4764_v39  ;;  %5386 = vmatpush1.bf16.msra.mxu0 %v8172_v13  ;;  %v9823_v39 = vcombine.high %v9809_v42, %v9812_v38  ;;  %v8182_v13 = vld [vmem:[%s9096_s4 + $0x370] sm:$0xff]  }
 0x1c2   : > { %5387 = vmatprep.subr.bf16.mxu0 %v11413_v53 }
 0x1c5   : > { %5388 = vmatpush1.bf16.msra.mxu0 %v8177_v11  ;;  %v9843_v11 = vcombine.low %v9809_v42, %v9812_v38 }
 0x1c6   : > { %5389 = vmatprep.subr.bf16.mxu0 %v11413_v53 }
 0x1c7   : > { %2010 = vmatmul.mubr.bf16.gmra.mrb[76].mxu1 %v9819_v8 }
 0x1c8   : > { %5058 = vmatmul.mubr.bf16.gmra.mrb[28].mxu0 %v4762_v58  ;;  %2016 = vmatprep.mubr.bf16.mxu1 %v9823_v39  ;;  %v4766_v58 = vsel %vm2927_vm1, %v4761_v34, %v4765_v25  ;;  %v4775_v34 = vrot.slane %v9536_v49, 1  ;;  %v4773_v49 = vrot.slane %v9570_v4, 1  ;;  %v2134_v4 = vrot.slane %v2132_v33, 1 }
 0x1c9   : > { %5064 = vmatprep.mubr.bf16.mxu0 %v4768_v29  ;;  %5390 = vmatpush1.bf16.msra.mxu0 %v8182_v13  ;;  %v9847_v29 = vcombine.high %v9833_v31, %v9836_v20  ;;  %v4769_v13 = vrot.slane %v9526_v36, 1  ;;  %v9876_v36 = vld [vmem:[%s9134_s11 + $0x170] sm:$0xff] }
 0x1ca   : > { %5391 = vmatprep.subr.bf16.mxu0 %v11413_v53  ;;  %v4780_v14 = vsel %vm2927_vm1, %v4775_v34, %v4779_v30  ;;  %v9901_v33 = vcombine.low %v9876_v36, %v9879_v61 }
 0x1cc   : > { %11434 = vst [vmem:[#allocation65_spill] sm:$0xff] %v9901_v33 }
 0x1cd   : > { %5392 = vmatpush1.bf16.msra.mxu0 %v8187_v48  ;;  %v9868_v48 = vcombine.high %v9856_v43, %v9859_v17 }
 0x1ce   : > { %5802 = vmatprep.subr.bf16.mxu0 %v11413_v53 }
 0x1cf   : > { %2017 = vmatmul.mubr.bf16.gmra.mrb[80].mxu1 %v9843_v11  ;;  %11431 = vst [vmem:[#allocation62_spill] sm:$0xff] %v9868_v48 }
 0x1d0   : > { %5065 = vmatmul.mubr.bf16.gmra.mrb[32].mxu0 %v4766_v58  ;;  %2023 = vmatprep.mubr.bf16.mxu1 %v9847_v29  ;;  %v4770_v58 = vsel %vm2927_vm1, %v4765_v25, %v4769_v13  ;;  %v9885_v25 = vcombine.low %v9856_v43, %v9859_v17 }
 0x1d1   : > { %5071 = vmatprep.mubr.bf16.mxu0 %v4772_v18  ;;  %v4776_v18 = vsel %vm2927_vm1, %v4771_v60, %v4775_v34  ;;  %v9889_v60 = vcombine.high %v9876_v36, %v9879_v61  ;;  %v2122_v34 = vrot.slane %v2120_v59, 1  ;;  %v4781_v59 = vrot.slane %v9550_v45, 1 }
 0x1d2   : > { %11432 = vst [vmem:[#allocation63_spill] sm:$0xff] %v9885_v25 }
 0x1d3   : > { %11433 = vst [vmem:[#allocation64_spill] sm:$0xff] %v9889_v60 }
 0x1d7   : > { %2024 = vmatmul.mubr.bf16.gmra.mrb[84].mxu1 %v9864_v23  ;;  %v2145_v23 = vshll.u32 %v9301_v22, 16 }
 0x1d8   : > { %5072 = vmatmul.mubr.bf16.gmra.mrb[36].mxu0 %v4770_v58  ;;  %2031 = vmatprep.mubr.bf16.mxu1 %v9868_v48  ;;  %v4774_v58 = vsel %vm2927_vm1, %v4769_v13, %v4773_v49  ;;  %v2139_v48 = vrot.slane %v2137_v16, 1  ;;  %v4783_v13 = vrot.slane %v9532_v15, 1  ;;  %v2153_v16 = vshll.u32 %v9268_v63, 16 }
 0x1d9   : > { %5079 = vmatprep.mubr.bf16.mxu0 %v4776_v18  ;;  %v2130_v18 = vshrl.u32 %v8256_v55, 16  ;;  %v2118_v55 = vshrl.u32 %v8257_v54, 16 }
 0x1db   : > { %v2135_v57 = vor.u32 %v2134_v4, %v2130_v18  ;;  %v2149_v4 = vshrl.u32 %v9236_v40, 16  ;;  %v2123_v18 = vor.u32 %v2122_v34, %v2118_v55  ;;  %v2141_v40 = vshrl.u32 %v9263_v62, 16 }
 0x1dd   : > { %v2151_v15 = vor.u32 %v2149_v4, %v2139_v48  ;;  %v2147_v4 = vrot.slane %v2145_v23, 1 }
 0x1df   : > { %2032 = vmatmul.mubr.bf16.gmra.mrb[88].mxu1 %v9885_v25  ;;  %v2125_v25 = vshll.u32 %v9263_v62, 16  ;;  %v10104_v62 = vld [vmem:[%s9134_s11 + $0x188] sm:$0xff] }
 0x1e0   : > { %5080 = vmatmul.mubr.bf16.gmra.mrb[40].mxu0 %v4774_v58  ;;  %2038 = vmatprep.mubr.bf16.mxu1 %v9889_v60  ;;  %v4778_v58 = vsel %vm2927_vm1, %v4773_v49, %v4777_v9  ;;  %v2140_v60 = vsel %vm2116_vm0, %v2135_v57, %v2139_v48  ;;  %v2155_v49 = vrot.slane %v2153_v16, 1  ;;  %v4787_v57 = vrot.slane %v9586_v10, 1  ;;  %v8155_v16 = vld [vmem:[%s9096_s4 + $0x108] sm:$0xff]  }
 0x1e1   : > { %5086 = vmatprep.mubr.bf16.mxu0 %v4780_v14  ;;  %v4784_v14 = vsel %vm2927_vm1, %v4779_v30, %v4783_v13  ;;  %v2127_v54 = vrot.slane %v2125_v25, 1  ;;  %v11435_v25 = vld [vmem:[#allocation21_spill] sm:$0xff] }
 0x1e2   : > { %v2169_v55 = vshll.u32 %v11435_v25, 16  ;;  %v2156_v34 = vsel %vm2116_vm0, %v2151_v15, %v2155_v49  ;;  %v4788_v48 = vsel %vm2927_vm1, %v4783_v13, %v4787_v57  ;;  %v2157_v13 = vshrl.u32 %v9301_v22, 16 }
 0x1e3   : > { %v2128_v30 = vsel %vm2116_vm0, %v2123_v18, %v2127_v54  ;;  %v11436_v18 = vld [vmem:[#allocation52_spill] sm:$0xff] }
 0x1e4   : > { %v4785_v10 = vrot.slane %v11436_v18, 1  ;;  %v2171_v45 = vrot.slane %v2169_v55, 1  ;;  %v4795_v18 = vrot.slane %v9651_v0, 1 }
 0x1e6   : > { %v4786_v23 = vsel %vm2927_vm1, %v4781_v59, %v4785_v10 }
 0x1e7   : > { %2039 = vmatmul.mubr.bf16.gmra.mrb[92].mxu1 %v9901_v33  ;;  %v10107_v33 = vld [vmem:[%s9134_s11 + $0x190] sm:$0xff] }
 0x1e8   : > { %5087 = vmatmul.mubr.bf16.gmra.mrb[44].mxu0 %v4778_v58  ;;  %2685 = vmatprep.mubr.bf16.mxu1 %v2140_v60  ;;  %v4782_v58 = vsel %vm2927_vm1, %v4777_v9, %v4781_v59  ;;  %v2165_v60 = vshrl.u32 %v9268_v63, 16  ;;  %v4791_v63 = vrot.slane %v9616_v1, 1  ;;  %v8165_v1 = vld [vmem:[%s9096_s4 + $0x118] sm:$0xff]   ;;  %11474 = vst [vmem:[#allocation73_spill] sm:$0xff] %v10107_v33 }
 0x1e9   : > { %5093 = vmatprep.mubr.bf16.mxu0 %v4784_v14  ;;  %v2143_v14 = vor.u32 %v2141_v40, %v2127_v54 }
 0x1ea   : > { %v2167_v9 = vor.u32 %v2165_v60, %v2155_v49  ;;  %v11438_v49 = vld [vmem:[#allocation26_spill] sm:$0xff]  ;;  %v8161_v60 = vld [vmem:[%s9096_s4 + $0x110] sm:$0xff]   ;;  %v4792_v55 = vsel %vm2927_vm1, %v4787_v57, %v4791_v63 }
 0x1eb   : > { %v2148_v15 = vsel %vm2116_vm0, %v2143_v14, %v2147_v4  ;;  %v11439_v14 = vld [vmem:[#allocation57_spill] sm:$0xff] }
 0x1ec   : > { %v2172_v54 = vsel %vm2116_vm0, %v2167_v9, %v2171_v45  ;;  %v4789_v59 = vrot.slane %v11439_v14, 1 }
 0x1ef   : > { %2686 = vmatmul.mubr.bf16.vlgmr.msra.gmra.mrb[0].mxu1 %v2128_v30  ;;  %v2181_v30 = vshrl.u32 %v11435_v25, 16 }
 0x1f0   : > { %5094 = vmatmul.mubr.bf16.gmra.mrb[48].mxu0 %v4782_v58  ;;  %3171 = vmatpush1.bf16.msra.mxu1 %v8151_v5  ;;  %v11437_v5 = vld [vmem:[#allocation25_spill] sm:$0xff]  ;;  %v2185_v58 = vshll.u32 %v11438_v49, 16 }
 0x1f1   : > { %2693 = vmatprep.mubr.bf16.mxu1 %v2156_v34  ;;  %5101 = vmatprep.mubr.bf16.mxu0 %v4788_v48  ;;  %v2161_v40 = vshll.u32 %v11437_v5, 16  ;;  %v2159_v34 = vor.u32 %v2157_v13, %v2147_v4  ;;  %v2173_v57 = vshrl.u32 %v11437_v5, 16  ;;  %v4790_v4 = vsel %vm2927_vm1, %v4785_v10, %v4789_v59 }
 0x1f2   : > { %3172 = vmatprep.subr.bf16.mxu1 %v11413_v53  ;;  %v2187_v9 = vrot.slane %v2185_v58, 1  ;;  %v4796_v58 = vsel %vm2927_vm1, %v4791_v63, %v4795_v18  ;;  %v8175_v63 = vld [vmem:[%s9096_s4 + $0x128] sm:$0xff]  }
 0x1f3   : > { %v2163_v48 = vrot.slane %v2161_v40, 1  ;;  %v11442_v40 = vld [vmem:[#allocation29_spill] sm:$0xff] }
 0x1f4   : > { %3173 = vmatpush1.bf16.msra.mxu1 %v8155_v16  ;;  %v2183_v16 = vor.u32 %v2181_v30, %v2171_v45  ;;  %v2197_v45 = vshrl.u32 %v11438_v49, 16  ;;  %v8171_v30 = vld [vmem:[%s9096_s4 + $0x120] sm:$0xff]  }
 0x1f5   : > { %3174 = vmatprep.subr.bf16.mxu1 %v11413_v53  ;;  %v2164_v22 = vsel %vm2116_vm0, %v2159_v34, %v2163_v48  ;;  %v2175_v10 = vor.u32 %v2173_v57, %v2163_v48  ;;  %v4793_v34 = vrot.slane %v9663_v3, 1  ;;  %v9967_v57 = vcombine.low %v9764_v47, %v9785_v26 }
 0x1f6   : > { %v9944_v13 = vsel %vm2116_vm0, %v2183_v16, %v2187_v9 }
 0x1f7   : > { %2694 = vmatmul.mubr.bf16.gmra.mrb[4].mxu1 %v2148_v15  ;;  %v11440_v15 = vld [vmem:[#allocation28_spill] sm:$0xff]  ;;  %11441 = vst [vmem:[#allocation21_spill] sm:$0xff] %v9944_v13 }
 0x1f8   : > { %5102 = vmatmul.mubr.bf16.gmra.mrb[52].mxu0 %v4786_v23  ;;  %2700 = vmatprep.mubr.bf16.mxu1 %v2172_v54  ;;  %v2177_v23 = vshll.u32 %v11440_v15, 16  ;;  %v2201_v54 = vshll.u32 %v11442_v40, 16  ;;  %11446 = vst [vmem:[#allocation28_spill] sm:$0xff] %v9967_v57 }
 0x1f9   : > { %5108 = vmatprep.mubr.bf16.mxu0 %v4792_v55  ;;  %3175 = vmatpush1.bf16.msra.mxu1 %v8161_v60  ;;  %v9952_v60 = vcombine.high %v9764_v47, %v9785_v26 }
 0x1fa   : > { %3176 = vmatprep.subr.bf16.mxu1 %v11413_v53  ;;  %v2179_v55 = vrot.slane %v2177_v23, 1  ;;  %v2203_v16 = vrot.slane %v2201_v54, 1  ;;  %v11448_v54 = vld [vmem:[#allocation33_spill] sm:$0xff] }
 0x1fb   : > { %11443 = vst [vmem:[#allocation25_spill] sm:$0xff] %v9952_v60  ;;  %v4799_v0 = vrot.slane %v9952_v60, 1  ;;  %v9979_v60 = vcombine.high %v9788_v56, %v9809_v42 }
 0x1fc   : > { %v9961_v14 = vsel %vm2116_vm0, %v2175_v10, %v2179_v55 }
 0x1fd   : > { %3177 = vmatpush1.bf16.msra.mxu1 %v8165_v1  ;;  %v2199_v1 = vor.u32 %v2197_v45, %v2187_v9  ;;  %11444 = vst [vmem:[#allocation26_spill] sm:$0xff] %v9961_v14  ;;  %v4794_v9 = vsel %vm2927_vm1, %v4789_v59, %v4793_v34  ;;  %v2213_v45 = vshrl.u32 %v11442_v40, 16  ;;  %v4800_v10 = vsel %vm2927_vm1, %v4795_v18, %v4799_v0  ;;  %v8185_v18 = vld [vmem:[%s9096_s4 + $0x138] sm:$0xff]  }
 0x1fe   : > { %3178 = vmatprep.subr.bf16.mxu1 %v11413_v53  ;;  %v4797_v59 = vrot.slane %v9967_v57, 1  ;;  %v4803_v3 = vrot.slane %v9979_v60, 1 }
 0x1ff   : > { %2701 = vmatmul.mubr.bf16.gmra.mrb[8].mxu1 %v2164_v22  ;;  %v2189_v22 = vshrl.u32 %v11440_v15, 16  ;;  %v9971_v23 = vsel %vm2116_vm0, %v2199_v1, %v2203_v16  ;;  %v2215_v1 = vor.u32 %v2213_v45, %v2203_v16  ;;  %v9999_v16 = vcombine.low %v9788_v56, %v9809_v42 }
 0x200   : > { %5109 = vmatmul.mubr.bf16.gmra.mrb[56].mxu0 %v4790_v4  ;;  %2707 = vmatprep.mubr.bf16.mxu1 %v9944_v13  ;;  %v11445_v4 = vld [vmem:[#allocation32_spill] sm:$0xff]  ;;  %11447 = vst [vmem:[#allocation29_spill] sm:$0xff] %v9971_v23  ;;  %v2229_v45 = vshrl.u32 %v11448_v54, 16 }
 0x201   : > { %5115 = vmatprep.mubr.bf16.mxu0 %v4796_v58  ;;  %3179 = vmatpush1.bf16.msra.mxu1 %v8171_v30  ;;  %v2193_v48 = vshll.u32 %v11445_v4, 16  ;;  %v2217_v30 = vshll.u32 %v11448_v54, 16  ;;  %v8181_v58 = vld [vmem:[%s9096_s4 + $0x130] sm:$0xff]   ;;  %11449 = vst [vmem:[#allocation32_spill] sm:$0xff] %v9979_v60  ;;  %v2191_v47 = vor.u32 %v2189_v22, %v2179_v55  ;;  %v2205_v55 = vshrl.u32 %v11445_v4, 16  ;;  %11453 = vst [vmem:[#allocation66_spill] sm:$0xff] %v9999_v16 }
 0x202   : > { %3180 = vmatprep.subr.bf16.mxu1 %v11413_v53  ;;  %v11451_v22 = vld [vmem:[#allocation36_spill] sm:$0xff]  ;;  %v10007_v60 = vcombine.high %v9812_v38, %v9833_v31 }
 0x203   : > { %v2195_v26 = vrot.slane %v2193_v48, 1  ;;  %v2209_v48 = vshll.u32 %v11451_v22, 16 }
 0x205   : > { %3181 = vmatpush1.bf16.msra.mxu1 %v8175_v63  ;;  %v2219_v63 = vrot.slane %v2217_v30, 1  ;;  %v9989_v13 = vsel %vm2116_vm0, %v2191_v47, %v2195_v26  ;;  %v11454_v30 = vld [vmem:[#allocation37_spill] sm:$0xff]  ;;  %v8189_v47 = vld [vmem:[%s9096_s4 + $0x140] sm:$0xff]   ;;  %v2207_v56 = vor.u32 %v2205_v55, %v2195_v26  ;;  %v2211_v42 = vrot.slane %v2209_v48, 1 }
 0x206   : > { %3182 = vmatprep.subr.bf16.mxu1 %v11413_v53  ;;  %11450 = vst [vmem:[#allocation33_spill] sm:$0xff] %v9989_v13  ;;  %11455 = vst [vmem:[#allocation37_spill] sm:$0xff] %v10007_v60  ;;  %v10023_v55 = vcombine.low %v9812_v38, %v9833_v31 }
 0x207   : > { %2708 = vmatmul.mubr.bf16.gmra.mrb[12].mxu1 %v9961_v14  ;;  %v10017_v14 = vsel %vm2116_vm0, %v2207_v56, %v2211_v42 }
 0x208   : > { %5116 = vmatmul.mubr.bf16.gmra.mrb[60].mxu0 %v4794_v9  ;;  %2715 = vmatprep.mubr.bf16.mxu1 %v9971_v23  ;;  %v4798_v9 = vsel %vm2927_vm1, %v4793_v34, %v4797_v59  ;;  %v4804_v34 = vsel %vm2927_vm1, %v4799_v0, %v4803_v3  ;;  %v8191_v0 = vld [vmem:[%s9096_s4 + $0x148] sm:$0xff]   ;;  %v4807_v23 = vrot.slane %v10007_v60, 1  ;;  %11456 = vst [vmem:[#allocation67_spill] sm:$0xff] %v10017_v14 }
 0x209   : > { %5123 = vmatprep.mubr.bf16.mxu0 %v4800_v10  ;;  %3183 = vmatpush1.bf16.msra.mxu1 %v8181_v58  ;;  %v9995_v10 = vsel %vm2116_vm0, %v2215_v1, %v2219_v63  ;;  %v2233_v58 = vshll.u32 %v11454_v30, 16  ;;  %v4801_v1 = vrot.slane %v9999_v16, 1  ;;  %v10035_v60 = vcombine.high %v9836_v20, %v9856_v43 }
 0x20a   : > { %3184 = vmatprep.subr.bf16.mxu1 %v11413_v53  ;;  %11452 = vst [vmem:[#allocation36_spill] sm:$0xff] %v9995_v10  ;;  %v4808_v56 = vsel %vm2927_vm1, %v4803_v3, %v4807_v23  ;;  %v8195_v3 = vld [vmem:[%s9096_s4 + $0x158] sm:$0xff]  }
 0x20b   : > { %v2235_v57 = vrot.slane %v2233_v58, 1  ;;  %v11460_v58 = vld [vmem:[#allocation41_spill] sm:$0xff]  ;;  %v4811_v16 = vrot.slane %v10035_v60, 1 }
 0x20c   : > { %11461 = vst [vmem:[#allocation41_spill] sm:$0xff] %v10035_v60  ;;  %v10063_v60 = vcombine.high %v9859_v17, %v9876_v36 }
 0x20d   : > { %3185 = vmatpush1.bf16.msra.mxu1 %v8185_v18  ;;  %v2231_v18 = vor.u32 %v2229_v45, %v2219_v63  ;;  %v4802_v63 = vsel %vm2927_vm1, %v4797_v59, %v4801_v1  ;;  %v2245_v45 = vshrl.u32 %v11454_v30, 16  ;;  %v4805_v59 = vrot.slane %v10023_v55, 1 }
 0x20e   : > { %3186 = vmatprep.subr.bf16.mxu1 %v11413_v53 }
 0x20f   : > { %2716 = vmatmul.mubr.bf16.gmra.mrb[16].mxu1 %v9989_v13  ;;  %v10027_v48 = vsel %vm2116_vm0, %v2231_v18, %v2235_v57  ;;  %v2247_v18 = vor.u32 %v2245_v45, %v2235_v57  ;;  %v10055_v57 = vcombine.low %v9836_v20, %v9856_v43  ;;  %v2261_v45 = vshrl.u32 %v11460_v58, 16 }
 0x210   : > { %5124 = vmatmul.mubr.bf16.gmra.mrb[64].mxu0 %v4798_v9  ;;  %2722 = vmatprep.mubr.bf16.mxu1 %v9995_v10  ;;  %v2221_v9 = vshrl.u32 %v11451_v22, 16  ;;  %v11457_v10 = vld [vmem:[#allocation40_spill] sm:$0xff]  ;;  %11459 = vst [vmem:[#allocation68_spill] sm:$0xff] %v10027_v48 }
 0x211   : > { %5130 = vmatprep.mubr.bf16.mxu0 %v4804_v34  ;;  %3187 = vmatpush1.bf16.msra.mxu1 %v8189_v47  ;;  %v2225_v26 = vshll.u32 %v11457_v10, 16  ;;  %11458 = vst [vmem:[#allocation40_spill] sm:$0xff] %v10023_v55  ;;  %v2249_v47 = vshll.u32 %v11460_v58, 16  ;;  %v8193_v34 = vld [vmem:[%s9096_s4 + $0x150] sm:$0xff]   ;;  %11465 = vst [vmem:[#allocation70_spill] sm:$0xff] %v10055_v57  ;;  %v8199_v55 = vld [vmem:[%s9096_s4 + $0x168] sm:$0xff]  }
 0x212   : > { %3188 = vmatprep.subr.bf16.mxu1 %v11413_v53  ;;  %v2223_v31 = vor.u32 %v2221_v9, %v2211_v42  ;;  %v2237_v42 = vshrl.u32 %v11457_v10, 16  ;;  %v11463_v9 = vld [vmem:[#allocation45_spill] sm:$0xff] }
 0x213   : > { %v2227_v38 = vrot.slane %v2225_v26, 1  ;;  %v2241_v26 = vshll.u32 %v11463_v9, 16 }
 0x215   : > { %3189 = vmatpush1.bf16.msra.mxu1 %v8191_v0  ;;  %v2251_v0 = vrot.slane %v2249_v47, 1  ;;  %v10045_v13 = vsel %vm2116_vm0, %v2223_v31, %v2227_v38  ;;  %v11466_v47 = vld [vmem:[#allocation47_spill] sm:$0xff]  ;;  %v8197_v31 = vld [vmem:[%s9096_s4 + $0x160] sm:$0xff]   ;;  %v2239_v20 = vor.u32 %v2237_v42, %v2227_v38  ;;  %v2243_v43 = vrot.slane %v2241_v26, 1 }
 0x216   : > { %3190 = vmatprep.subr.bf16.mxu1 %v11413_v53  ;;  %11462 = vst [vmem:[#allocation69_spill] sm:$0xff] %v10045_v13  ;;  %11467 = vst [vmem:[#allocation47_spill] sm:$0xff] %v10063_v60  ;;  %v2253_v38 = vshrl.u32 %v11463_v9, 16  ;;  %v11469_v42 = vld [vmem:[#allocation51_spill] sm:$0xff] }
 0x217   : > { %2723 = vmatmul.mubr.bf16.gmra.mrb[20].mxu1 %v10017_v14  ;;  %v10073_v14 = vld [vmem:[%s9134_s11 + $0x180] sm:$0xff]  ;;  %v2257_v26 = vshll.u32 %v11469_v42, 16 }
 0x218   : > { %5131 = vmatmul.mubr.bf16.gmra.mrb[68].mxu0 %v4802_v63  ;;  %2729 = vmatprep.mubr.bf16.mxu1 %v10027_v48  ;;  %v4806_v63 = vsel %vm2927_vm1, %v4801_v1, %v4805_v59  ;;  %v4812_v1 = vsel %vm2927_vm1, %v4807_v23, %v4811_v16  ;;  %v4815_v48 = vrot.slane %v10063_v60, 1 }
 0x219   : > { %5137 = vmatprep.mubr.bf16.mxu0 %v4808_v56  ;;  %3191 = vmatpush1.bf16.msra.mxu1 %v8193_v34  ;;  %v10051_v56 = vsel %vm2116_vm0, %v2247_v18, %v2251_v0  ;;  %v2265_v34 = vshll.u32 %v11466_v47, 16  ;;  %v4809_v18 = vrot.slane %v10055_v57, 1 }
 0x21a   : > { %3192 = vmatprep.subr.bf16.mxu1 %v11413_v53  ;;  %11464 = vst [vmem:[#allocation45_spill] sm:$0xff] %v10051_v56  ;;  %v4816_v57 = vsel %vm2927_vm1, %v4811_v16, %v4815_v48 }
 0x21b   : > { %v2267_v23 = vrot.slane %v2265_v34, 1 }
 0x21d   : > { %3193 = vmatpush1.bf16.msra.mxu1 %v8195_v3  ;;  %v2263_v3 = vor.u32 %v2261_v45, %v2251_v0  ;;  %v10082_v0 = vcombine.low %v9859_v17, %v9876_v36  ;;  %v4810_v45 = vsel %vm2927_vm1, %v4805_v59, %v4809_v18  ;;  %v2255_v17 = vor.u32 %v2253_v38, %v2243_v43 }
 0x21e   : > { %3194 = vmatprep.subr.bf16.mxu1 %v11413_v53  ;;  %v2259_v36 = vrot.slane %v2257_v26, 1  ;;  %v2269_v38 = vshrl.u32 %v11469_v42, 16 }
 0x21f   : > { %2730 = vmatmul.mubr.bf16.gmra.mrb[24].mxu1 %v10045_v13  ;;  %11470 = vst [vmem:[#allocation51_spill] sm:$0xff] %v10082_v0  ;;  %v10086_v34 = vsel %vm2116_vm0, %v2263_v3, %v2267_v23  ;;  %v8203_v3 = vld [vmem:[%s9096_s4 + $0x178] sm:$0xff]  }
 0x220   : > { %5138 = vmatmul.mubr.bf16.gmra.mrb[72].mxu0 %v4806_v63  ;;  %2737 = vmatprep.mubr.bf16.mxu1 %v10051_v56  ;;  %v10076_v63 = vsel %vm2116_vm0, %v2239_v20, %v2243_v43  ;;  %11471 = vst [vmem:[#allocation72_spill] sm:$0xff] %v10086_v34  ;;  %v8201_v20 = vld [vmem:[%s9096_s4 + $0x170] sm:$0xff]   ;;  %v10094_v56 = vcombine.high %v9879_v61, %v10073_v14 }
 0x221   : > { %5145 = vmatprep.mubr.bf16.mxu0 %v4812_v1  ;;  %3195 = vmatpush1.bf16.msra.mxu1 %v8197_v31  ;;  %11468 = vst [vmem:[#allocation71_spill] sm:$0xff] %v10076_v63  ;;  %v2277_v31 = vshrl.u32 %v11466_v47, 16  ;;  %v11472_v1 = vld [vmem:[#allocation53_spill] sm:$0xff] }
 0x222   : > { %3196 = vmatprep.subr.bf16.mxu1 %v11413_v53  ;;  %v2281_v60 = vshll.u32 %v11472_v1, 16  ;;  %11473 = vst [vmem:[#allocation53_spill] sm:$0xff] %v10094_v56  ;;  %v4819_v13 = vrot.slane %v10094_v56, 1  ;;  %v2293_v26 = vshrl.u32 %v11472_v1, 16 }
 0x223   : > { %v2279_v59 = vor.u32 %v2277_v31, %v2267_v23  ;;  %v10120_v23 = vcombine.low %v9879_v61, %v10073_v14  ;;  %v2297_v31 = vshll.u32 %v9635_v6, 16  ;;  %v2271_v61 = vor.u32 %v2269_v38, %v2259_v36 }
 0x224   : > { %v2283_v16 = vrot.slane %v2281_v60, 1 }
 0x225   : > { %3197 = vmatpush1.bf16.msra.mxu1 %v8199_v55  ;;  %v4813_v55 = vrot.slane %v10082_v0, 1  ;;  %11477 = vst [vmem:[#allocation76_spill] sm:$0xff] %v10120_v23  ;;  %v10135_v0 = vld [vmem:[%s9134_s11 + $0x198] sm:$0xff] }
 0x226   : > { %3198 = vmatprep.subr.bf16.mxu1 %v11413_v53  ;;  %v10116_v60 = vsel %vm2116_vm0, %v2279_v59, %v2283_v16  ;;  %v4817_v59 = vrot.slane %v10120_v23, 1  ;;  %v2295_v56 = vor.u32 %v2293_v26, %v2283_v16  ;;  %v2313_v26 = vshll.u32 %v9667_v28, 16 }
 0x227   : > { %2738 = vmatmul.mubr.bf16.gmra.mrb[28].mxu1 %v10076_v63  ;;  %v4814_v43 = vsel %vm2927_vm1, %v4809_v18, %v4813_v55  ;;  %11476 = vst [vmem:[#allocation75_spill] sm:$0xff] %v10116_v60  ;;  %v10127_v18 = vcombine.high %v10104_v62, %v10107_v33  ;;  %v2285_v63 = vshrl.u32 %v9626_v32, 16 }
 0x228   : > { %5146 = vmatmul.mubr.bf16.gmra.mrb[76].mxu0 %v4810_v45  ;;  %2744 = vmatprep.mubr.bf16.mxu1 %v10086_v34  ;;  %v10110_v45 = vsel %vm2116_vm0, %v2255_v17, %v2259_v36  ;;  %v10144_v36 = vcombine.low %v10104_v62, %v10107_v33  ;;  %v4818_v38 = vsel %vm2927_vm1, %v4813_v55, %v4817_v59  ;;  %v2315_v23 = vrot.slane %v2313_v26, 1 }
 0x229   : > { %5152 = vmatprep.mubr.bf16.mxu0 %v4816_v57  ;;  %3199 = vmatpush1.bf16.msra.mxu1 %v8201_v20  ;;  %11475 = vst [vmem:[#allocation74_spill] sm:$0xff] %v10110_v45  ;;  %v2273_v57 = vshll.u32 %v9626_v32, 16  ;;  %v4820_v20 = vsel %vm2927_vm1, %v4815_v48, %v4819_v13  ;;  %11478 = vst [vmem:[#allocation77_spill] sm:$0xff] %v10127_v18  ;;  %v4823_v48 = vrot.slane %v10127_v18, 1  ;;  %v2301_v33 = vshrl.u32 %v9659_v24, 16 }
 0x22a   : > { %3200 = vmatprep.subr.bf16.mxu1 %v11413_v53  ;;  %11479 = vst [vmem:[#allocation78_spill] sm:$0xff] %v10144_v36 }
 0x22b   : > { %v2275_v17 = vrot.slane %v2273_v57, 1  ;;  %v2309_v57 = vshrl.u32 %v9635_v6, 16 }
 0x22d   : > { %3201 = vmatpush1.bf16.msra.mxu1 %v8203_v3  ;;  %v2299_v3 = vrot.slane %v2297_v31, 1  ;;  %v10138_v34 = vsel %vm2116_vm0, %v2271_v61, %v2275_v17  ;;  %v4824_v31 = vsel %vm2927_vm1, %v4819_v13, %v4823_v48  ;;  %v2287_v61 = vor.u32 %v2285_v63, %v2275_v17 }
 0x22e   : > { %3642 = vmatprep.subr.bf16.mxu1 %v11413_v53  ;;  %v10172_v63 = vcombine.low %v10135_v0, %v10135_v0  ;;  %v2325_v17 = vshrl.u32 %v9667_v28, 16 }
 0x22f   : > { %2745 = vmatmul.mubr.bf16.gmra.mrb[32].mxu1 %v10110_v45  ;;  %v10148_v16 = vsel %vm2116_vm0, %v2295_v56, %v2299_v3  ;;  %v4821_v56 = vrot.slane %v10144_v36, 1  ;;  %v2311_v18 = vor.u32 %v2309_v57, %v2299_v3  ;;  %v2329_v3 = vshll.u32 %v9683_v19, 16 }
 0x230   : > { %5153 = vmatmul.mubr.bf16.gmra.mrb[80].mxu0 %v4814_v43  ;;  %2751 = vmatprep.mubr.bf16.mxu1 %v10116_v60  ;;  %v2289_v43 = vshll.u32 %v9659_v24, 16  ;;  %11480 = vst [vmem:[#allocation79_spill] sm:$0xff] %v10148_v16  ;;  %11483 = vst [vmem:[#allocation82_spill] sm:$0xff] %v10172_v63  ;;  %v2327_v26 = vor.u32 %v2325_v17, %v2315_v23  ;;  %v2321_v36 = vshll.u32 %v9696_v2, 16 }
 0x231   : > { %5159 = vmatprep.mubr.bf16.mxu0 %v4820_v20  ;;  %v10155_v20 = vcombine.high %v10135_v0, %v10135_v0  ;;  %v4822_v45 = vsel %vm2927_vm1, %v4817_v59, %v4821_v56 }
 0x232   : > { %v2291_v55 = vrot.slane %v2289_v43, 1 }
 0x233   : > { %11481 = vst [vmem:[#allocation80_spill] sm:$0xff] %v10155_v20  ;;  %v4827_v60 = vrot.slane %v10155_v20, 1  ;;  %v2317_v20 = vshrl.u32 %v9679_v46, 16 }
 0x234   : > { %v10162_v13 = vsel %vm2116_vm0, %v2287_v61, %v2291_v55  ;;  %v2303_v59 = vor.u32 %v2301_v33, %v2291_v55  ;;  %v2341_v33 = vshrl.u32 %v9683_v19, 16  ;;  %v2323_v55 = vrot.slane %v2321_v36, 1 }
 0x235   : > { %v4828_v43 = vsel %vm2927_vm1, %v4823_v48, %v4827_v60  ;;  %v2345_v48 = vshll.u32 %v9700_v35, 16  ;;  %v2361_v36 = vshll.u32 %v9718_v52, 16 }
 0x237   : > { %2752 = vmatmul.mubr.bf16.gmra.mrb[36].mxu1 %v10138_v34  ;;  %v2347_v17 = vrot.slane %v2345_v48, 1 }
 0x238   : > { %5160 = vmatmul.mubr.bf16.gmra.mrb[84].mxu0 %v4818_v38  ;;  %2759 = vmatprep.mubr.bf16.mxu1 %v10148_v16  ;;  %v2305_v38 = vshll.u32 %v9679_v46, 16  ;;  %v10168_v16 = vsel %vm2116_vm0, %v2311_v18, %v2315_v23  ;;  %v4825_v18 = vrot.slane %v10172_v63, 1 }
 0x239   : > { %5167 = vmatprep.mubr.bf16.mxu0 %v4824_v31  ;;  %11482 = vst [vmem:[#allocation81_spill] sm:$0xff] %v10168_v16  ;;  %v2331_v31 = vrot.slane %v2329_v3, 1  ;;  %v2333_v3 = vshrl.u32 %v9696_v2, 16 }
 0x23a   : > { %v2307_v57 = vrot.slane %v2305_v38, 1  ;;  %v4826_v60 = vsel %vm2927_vm1, %v4821_v56, %v4825_v18 }
 0x23b   : > { %v2343_v38 = vor.u32 %v2341_v33, %v2331_v31  ;;  %v8192_v33 = vld [vmem:[%s9096_s4 + $0x388] sm:$0xff]  }
 0x23c   : > { %v10181_v61 = vsel %vm2116_vm0, %v2303_v59, %v2307_v57  ;;  %v2319_v23 = vor.u32 %v2317_v20, %v2307_v57  ;;  %v8190_v59 = vld [vmem:[%s9096_s4 + $0x380] sm:$0xff]   ;;  %v2335_v20 = vor.u32 %v2333_v3, %v2323_v55  ;;  %v8194_v3 = vld [vmem:[%s9096_s4 + $0x390] sm:$0xff]  }
 0x23d   : > { %11484 = vst [vmem:[#allocation83_spill] sm:$0xff] %v10181_v61  ;;  %v10201_v18 = vsel %vm2116_vm0, %v2343_v38, %v2347_v17  ;;  %v2353_v38 = vshll.u32 %v9732_v21, 16 }
 0x23e   : > { %v10195_v56 = vsel %vm2116_vm0, %v2319_v23, %v2323_v55  ;;  %11487 = vst [vmem:[#allocation86_spill] sm:$0xff] %v10201_v18  ;;  %v2349_v23 = vshrl.u32 %v9714_v37, 16  ;;  %v2373_v55 = vshrl.u32 %v9718_v52, 16 }
 0x23f   : > { %2760 = vmatmul.mubr.bf16.gmra.mrb[40].mxu1 %v10162_v13  ;;  %11486 = vst [vmem:[#allocation85_spill] sm:$0xff] %v10195_v56 }
 0x240   : > { %5168 = vmatmul.mubr.bf16.gmra.mrb[88].mxu0 %v4822_v45  ;;  %2766 = vmatprep.mubr.bf16.mxu1 %v10168_v16  ;;  %v10187_v45 = vsel %vm2116_vm0, %v2327_v26, %v2331_v31  ;;  %v2357_v26 = vshrl.u32 %v9700_v35, 16 }
 0x241   : > { %5174 = vmatprep.mubr.bf16.mxu0 %v4828_v43  ;;  %11485 = vst [vmem:[#allocation84_spill] sm:$0xff] %v10187_v45  ;;  %v2337_v43 = vshll.u32 %v9714_v37, 16 }
 0x242   : > { %v2359_v31 = vor.u32 %v2357_v26, %v2347_v17  ;;  %v2377_v17 = vshll.u32 %v9736_v44, 16 }
 0x243   : > { %v2339_v57 = vrot.slane %v2337_v43, 1 }
 0x245   : > { %v10212_v48 = vsel %vm2116_vm0, %v2335_v20, %v2339_v57  ;;  %v2351_v43 = vor.u32 %v2349_v23, %v2339_v57  ;;  %v8196_v20 = vld [vmem:[%s9096_s4 + $0x398] sm:$0xff]   ;;  %v2389_v57 = vshrl.u32 %v9736_v44, 16  ;;  %v8198_v23 = vld [vmem:[%s9096_s4 + $0x3a0] sm:$0xff]  }
 0x246   : > { %11488 = vst [vmem:[#allocation87_spill] sm:$0xff] %v10212_v48 }
 0x247   : > { %2767 = vmatmul.mubr.bf16.gmra.mrb[44].mxu1 %v10181_v61 }
 0x248   : > { %5175 = vmatmul.mubr.bf16.gmra.mrb[92].mxu0 %v4826_v60  ;;  %2773 = vmatprep.mubr.bf16.mxu1 %v10187_v45  ;;  %v2363_v60 = vrot.slane %v2361_v36, 1  ;;  %v2379_v36 = vrot.slane %v2377_v17, 1 }
 0x249   : > { %5393 = vmatprep.mubr.bf16.mxu0 %v11435_v25 }
 0x24a   : > { %v10217_v63 = vsel %vm2116_vm0, %v2359_v31, %v2363_v60  ;;  %v2375_v26 = vor.u32 %v2373_v55, %v2363_v60  ;;  %v2393_v60 = vshll.u32 %v9754_v27, 16  ;;  %v2391_v17 = vor.u32 %v2389_v57, %v2379_v36 }
 0x24b   : > { %11489 = vst [vmem:[#allocation88_spill] sm:$0xff] %v10217_v63 }
 0x24f   : > { %2774 = vmatmul.mubr.bf16.gmra.mrb[48].mxu1 %v10195_v56 }
 0x250   : > { %5394 = vmatmul.mubr.bf16.vlgmr.msra.gmra.mrb[0].mxu0 %v11437_v5  ;;  %2781 = vmatprep.mubr.bf16.mxu1 %v10201_v18 }
 0x251   : > { %5803 = vmatpush1.bf16.msra.mxu0 %v8190_v59  ;;  %5401 = vmatprep.mubr.bf16.mxu0 %v11438_v49  ;;  %v2355_v59 = vrot.slane %v2353_v38, 1 }
 0x252   : > { %5804 = vmatprep.subr.bf16.mxu0 %v11413_v53 }
 0x253   : > { %v10230_v31 = vsel %vm2116_vm0, %v2351_v43, %v2355_v59  ;;  %v8200_v43 = vld [vmem:[%s9096_s4 + $0x3a8] sm:$0xff]  }
 0x254   : > { %11490 = vst [vmem:[#allocation89_spill] sm:$0xff] %v10230_v31 }
 0x255   : > { %5805 = vmatpush1.bf16.msra.mxu0 %v8192_v33  ;;  %v2365_v33 = vshrl.u32 %v9732_v21, 16 }
 0x256   : > { %5806 = vmatprep.subr.bf16.mxu0 %v11413_v53 }
 0x257   : > { %2782 = vmatmul.mubr.bf16.gmra.mrb[52].mxu1 %v10212_v48  ;;  %v2369_v48 = vshll.u32 %v9750_v12, 16  ;;  %v2367_v38 = vor.u32 %v2365_v33, %v2355_v59  ;;  %v2409_v59 = vshll.u32 %v9775_v51, 16 }
 0x258   : > { %5402 = vmatmul.mubr.bf16.gmra.mrb[4].mxu0 %v11440_v15  ;;  %2788 = vmatprep.mubr.bf16.mxu1 %v10217_v63  ;;  %v10235_v63 = vsel %vm2116_vm0, %v2375_v26, %v2379_v36  ;;  %v8202_v36 = vld [vmem:[%s9096_s4 + $0x3b0] sm:$0xff]  }
 0x259   : > { %5408 = vmatprep.mubr.bf16.mxu0 %v11442_v40  ;;  %5807 = vmatpush1.bf16.msra.mxu0 %v8194_v3  ;;  %11491 = vst [vmem:[#allocation90_spill] sm:$0xff] %v10235_v63  ;;  %v2371_v55 = vrot.slane %v2369_v48, 1  ;;  %v2395_v3 = vrot.slane %v2393_v60, 1  ;;  %v2405_v48 = vshrl.u32 %v9754_v27, 16 }
 0x25a   : > { %5808 = vmatprep.subr.bf16.mxu0 %v11413_v53 }
 0x25b   : > { %v10248_v26 = vsel %vm2116_vm0, %v2367_v38, %v2371_v55  ;;  %v2407_v60 = vor.u32 %v2405_v48, %v2395_v3  ;;  %v8205_v38 = vld [vmem:[%s9096_s4 + $0x3b8] sm:$0xff]  }
 0x25c   : > { %11492 = vst [vmem:[#allocation91_spill] sm:$0xff] %v10248_v26 }
 0x25d   : > { %5809 = vmatpush1.bf16.msra.mxu0 %v8196_v20  ;;  %v2381_v20 = vshrl.u32 %v9750_v12, 16 }
 0x25e   : > { %5810 = vmatprep.subr.bf16.mxu0 %v11413_v53 }
 0x25f   : > { %2789 = vmatmul.mubr.bf16.gmra.mrb[56].mxu1 %v10230_v31  ;;  %v2385_v31 = vshll.u32 %v9771_v50, 16  ;;  %v2383_v33 = vor.u32 %v2381_v20, %v2371_v55  ;;  %v2425_v55 = vshll.u32 %v9799_v41, 16 }
 0x260   : > { %5409 = vmatmul.mubr.bf16.gmra.mrb[8].mxu0 %v11445_v4  ;;  %2795 = vmatprep.mubr.bf16.mxu1 %v10235_v63  ;;  %v10253_v63 = vsel %vm2116_vm0, %v2391_v17, %v2395_v3  ;;  %v8208_v3 = vld [vmem:[%s9096_s4 + $0x3c0] sm:$0xff]  }
 0x261   : > { %5415 = vmatprep.mubr.bf16.mxu0 %v11448_v54  ;;  %5811 = vmatpush1.bf16.msra.mxu0 %v8198_v23  ;;  %11493 = vst [vmem:[#allocation92_spill] sm:$0xff] %v10253_v63  ;;  %v2387_v57 = vrot.slane %v2385_v31, 1  ;;  %v2411_v23 = vrot.slane %v2409_v59, 1  ;;  %v2421_v31 = vshrl.u32 %v9775_v51, 16 }
 0x262   : > { %5812 = vmatprep.subr.bf16.mxu0 %v11413_v53 }
 0x263   : > { %v10266_v17 = vsel %vm2116_vm0, %v2383_v33, %v2387_v57  ;;  %v2423_v59 = vor.u32 %v2421_v31, %v2411_v23  ;;  %v8210_v33 = vld [vmem:[%s9096_s4 + $0x3c8] sm:$0xff]  }
 0x264   : > { %11494 = vst [vmem:[#allocation93_spill] sm:$0xff] %v10266_v17 }
 0x265   : > { %5813 = vmatpush1.bf16.msra.mxu0 %v8200_v43  ;;  %v2397_v43 = vshrl.u32 %v9771_v50, 16 }
 0x266   : > { %5814 = vmatprep.subr.bf16.mxu0 %v11413_v53 }
 0x267   : > { %2796 = vmatmul.mubr.bf16.gmra.mrb[60].mxu1 %v10248_v26  ;;  %v2401_v26 = vshll.u32 %v9795_v7, 16  ;;  %v2399_v20 = vor.u32 %v2397_v43, %v2387_v57  ;;  %v2441_v57 = vshll.u32 %v9823_v39, 16 }
 0x268   : > { %5416 = vmatmul.mubr.bf16.gmra.mrb[12].mxu0 %v11451_v22  ;;  %2803 = vmatprep.mubr.bf16.mxu1 %v10253_v63  ;;  %v10271_v63 = vsel %vm2116_vm0, %v2407_v60, %v2411_v23  ;;  %v8212_v23 = vld [vmem:[%s9096_s4 + $0x3d0] sm:$0xff]  }
 0x269   : > { %5423 = vmatprep.mubr.bf16.mxu0 %v11454_v30  ;;  %5815 = vmatpush1.bf16.msra.mxu0 %v8202_v36  ;;  %11495 = vst [vmem:[#allocation94_spill] sm:$0xff] %v10271_v63  ;;  %v2403_v48 = vrot.slane %v2401_v26, 1  ;;  %v2427_v36 = vrot.slane %v2425_v55, 1  ;;  %v2437_v26 = vshrl.u32 %v9799_v41, 16 }
 0x26a   : > { %5816 = vmatprep.subr.bf16.mxu0 %v11413_v53 }
 0x26b   : > { %v10284_v60 = vsel %vm2116_vm0, %v2399_v20, %v2403_v48  ;;  %v2439_v55 = vor.u32 %v2437_v26, %v2427_v36  ;;  %v8214_v20 = vld [vmem:[%s9096_s4 + $0x3d8] sm:$0xff]  }
 0x26c   : > { %11496 = vst [vmem:[#allocation95_spill] sm:$0xff] %v10284_v60 }
 0x26d   : > { %5817 = vmatpush1.bf16.msra.mxu0 %v8205_v38  ;;  %v2413_v38 = vshrl.u32 %v9795_v7, 16 }
 0x26e   : > { %5818 = vmatprep.subr.bf16.mxu0 %v11413_v53 }
 0x26f   : > { %2804 = vmatmul.mubr.bf16.gmra.mrb[64].mxu1 %v10266_v17  ;;  %v2417_v17 = vshll.u32 %v9819_v8, 16  ;;  %v2415_v43 = vor.u32 %v2413_v38, %v2403_v48  ;;  %v2457_v48 = vshll.u32 %v9847_v29, 16 }
 0x270   : > { %5424 = vmatmul.mubr.bf16.gmra.mrb[16].mxu0 %v11457_v10  ;;  %2810 = vmatprep.mubr.bf16.mxu1 %v10271_v63  ;;  %v10289_v63 = vsel %vm2116_vm0, %v2423_v59, %v2427_v36  ;;  %v8216_v36 = vld [vmem:[%s9096_s4 + $0x3e0] sm:$0xff]  }
 0x271   : > { %5430 = vmatprep.mubr.bf16.mxu0 %v11460_v58  ;;  %5819 = vmatpush1.bf16.msra.mxu0 %v8208_v3  ;;  %11497 = vst [vmem:[#allocation96_spill] sm:$0xff] %v10289_v63  ;;  %v2419_v31 = vrot.slane %v2417_v17, 1  ;;  %v2443_v3 = vrot.slane %v2441_v57, 1  ;;  %v2453_v17 = vshrl.u32 %v9823_v39, 16 }
 0x272   : > { %5820 = vmatprep.subr.bf16.mxu0 %v11413_v53 }
 0x273   : > { %v10302_v59 = vsel %vm2116_vm0, %v2415_v43, %v2419_v31  ;;  %v2455_v57 = vor.u32 %v2453_v17, %v2443_v3  ;;  %v8218_v43 = vld [vmem:[%s9096_s4 + $0x3e8] sm:$0xff]  }
 0x274   : > { %11498 = vst [vmem:[#allocation97_spill] sm:$0xff] %v10302_v59 }
 0x275   : > { %5821 = vmatpush1.bf16.msra.mxu0 %v8210_v33  ;;  %v2429_v33 = vshrl.u32 %v9819_v8, 16 }
 0x276   : > { %5822 = vmatprep.subr.bf16.mxu0 %v11413_v53 }
 0x277   : > { %2811 = vmatmul.mubr.bf16.gmra.mrb[68].mxu1 %v10284_v60  ;;  %v2433_v60 = vshll.u32 %v9843_v11, 16  ;;  %v2431_v38 = vor.u32 %v2429_v33, %v2419_v31  ;;  %v11503_v31 = vld [vmem:[#allocation62_spill] sm:$0xff]  ;;  %v8222_v33 = vld [vmem:[%s9096_s4 + $0x3f0] sm:$0xff]  }
 0x278   : > { %5431 = vmatmul.mubr.bf16.gmra.mrb[20].mxu0 %v11463_v9  ;;  %2817 = vmatprep.mubr.bf16.mxu1 %v10289_v63  ;;  %v10307_v63 = vsel %vm2116_vm0, %v2439_v55, %v2443_v3  ;;  %v2473_v3 = vshll.u32 %v11503_v31, 16 }
 0x279   : > { %5437 = vmatprep.mubr.bf16.mxu0 %v11466_v47  ;;  %5823 = vmatpush1.bf16.msra.mxu0 %v8212_v23  ;;  %11499 = vst [vmem:[#allocation98_spill] sm:$0xff] %v10307_v63  ;;  %v2435_v26 = vrot.slane %v2433_v60, 1  ;;  %v2459_v23 = vrot.slane %v2457_v48, 1  ;;  %v2469_v60 = vshrl.u32 %v9847_v29, 16 }
 0x27a   : > { %5824 = vmatprep.subr.bf16.mxu0 %v11413_v53 }
 0x27b   : > { %v10320_v55 = vsel %vm2116_vm0, %v2431_v38, %v2435_v26  ;;  %v2475_v38 = vrot.slane %v2473_v3, 1 }
 0x27c   : > { %11500 = vst [vmem:[#allocation99_spill] sm:$0xff] %v10320_v55 }
 0x27d   : > { %5825 = vmatpush1.bf16.msra.mxu0 %v8214_v20  ;;  %v2445_v20 = vshrl.u32 %v9843_v11, 16 }
 0x27e   : > { %5826 = vmatprep.subr.bf16.mxu0 %v11413_v53 }
 0x27f   : > { %2818 = vmatmul.mubr.bf16.gmra.mrb[72].mxu1 %v10302_v59  ;;  %v11501_v59 = vld [vmem:[#allocation61_spill] sm:$0xff]  ;;  %v2447_v17 = vor.u32 %v2445_v20, %v2435_v26  ;;  %v11507_v26 = vld [vmem:[#allocation64_spill] sm:$0xff] }
 0x280   : > { %5438 = vmatmul.mubr.bf16.gmra.mrb[24].mxu0 %v11469_v42  ;;  %2825 = vmatprep.mubr.bf16.mxu1 %v10307_v63  ;;  %v2449_v18 = vshll.u32 %v11501_v59, 16  ;;  %v10325_v63 = vsel %vm2116_vm0, %v2455_v57, %v2459_v23  ;;  %v8228_v57 = vld [vmem:[%s9096_s4 + $0x3f8] sm:$0xff]   ;;  %v2461_v56 = vshrl.u32 %v11501_v59, 16  ;;  %v2489_v20 = vshll.u32 %v11507_v26, 16 }
 0x281   : > { %5445 = vmatprep.mubr.bf16.mxu0 %v11472_v1  ;;  %5827 = vmatpush1.bf16.msra.mxu0 %v8216_v36  ;;  %11502 = vst [vmem:[#allocation61_spill] sm:$0xff] %v10325_v63  ;;  %v2471_v36 = vor.u32 %v2469_v60, %v2459_v23 }
 0x282   : > { %5828 = vmatprep.subr.bf16.mxu0 %v11413_v53  ;;  %v2451_v48 = vrot.slane %v2449_v18, 1  ;;  %v2485_v18 = vshrl.u32 %v11503_v31, 16 }
 0x283   : > { %v10343_v61 = vsel %vm2116_vm0, %v2471_v36, %v2475_v38 }
 0x284   : > { %v2463_v23 = vor.u32 %v2461_v56, %v2451_v48  ;;  %v2487_v3 = vor.u32 %v2485_v18, %v2475_v38  ;;  %v10371_v18 = vcombine.low %v10073_v14, %v10073_v14 }
 0x285   : > { %5829 = vmatpush1.bf16.msra.mxu0 %v8218_v43  ;;  %v10338_v43 = vsel %vm2116_vm0, %v2447_v17, %v2451_v48  ;;  %v10354_v17 = vcombine.high %v10073_v14, %v10073_v14 }
 0x286   : > { %5830 = vmatprep.subr.bf16.mxu0 %v11413_v53  ;;  %11504 = vst [vmem:[#allocation62_spill] sm:$0xff] %v10338_v43 }
 0x287   : > { %2826 = vmatmul.mubr.bf16.gmra.mrb[76].mxu1 %v10320_v55  ;;  %v11505_v55 = vld [vmem:[#allocation63_spill] sm:$0xff]  ;;  %v2505_v56 = vshll.u32 %v10354_v17, 16 }
 0x288   : > { %5446 = vmatmul.mubr.bf16.gmra.mrb[28].mxu0 %v9626_v32  ;;  %2832 = vmatprep.mubr.bf16.mxu1 %v10325_v63  ;;  %v2465_v45 = vshll.u32 %v11505_v55, 16  ;;  %11506 = vst [vmem:[#allocation63_spill] sm:$0xff] %v10343_v61 }
 0x289   : > { %5452 = vmatprep.mubr.bf16.mxu0 %v9635_v6  ;;  %5831 = vmatpush1.bf16.msra.mxu0 %v8222_v33  ;;  %v2491_v33 = vrot.slane %v2489_v20, 1 }
 0x28a   : > { %5832 = vmatprep.subr.bf16.mxu0 %v11413_v53  ;;  %v2467_v60 = vrot.slane %v2465_v45, 1  ;;  %v2501_v45 = vshrl.u32 %v11507_v26, 16 }
 0x28b   : > { %v10362_v16 = vsel %vm2116_vm0, %v2487_v3, %v2491_v33 }
 0x28c   : > { %v10357_v36 = vsel %vm2116_vm0, %v2463_v23, %v2467_v60  ;;  %v10374_v20 = vor.u32 %v2501_v45, %v2491_v33  ;;  %v2507_v23 = vrot.slane %v2505_v56, 1  ;;  %v11513_v56 = vld [vmem:[#allocation13_spill] sm:$0xff] }
 0x28d   : > { %5833 = vmatpush1.bf16.msra.mxu0 %v8228_v57  ;;  %11508 = vst [vmem:[#allocation64_spill] sm:$0xff] %v10357_v36  ;;  %v2477_v57 = vshrl.u32 %v11505_v55, 16 }
 0x28e   : > { %6196 = vmatprep.subr.bf16.mxu0 %v11413_v53  ;;  %11511 = vst [vmem:[#allocation100_spill] sm:$0xff] %v10374_v20 }
 0x28f   : > { %2833 = vmatmul.mubr.bf16.gmra.mrb[80].mxu1 %v10338_v43  ;;  %v11509_v43 = vld [vmem:[#allocation65_spill] sm:$0xff]  ;;  %v2479_v48 = vor.u32 %v2477_v57, %v2467_v60  ;;  %v8258_v57 = vld [vmem:[%s9134_s11 + $0x4] ss:$8 sps:$4 sm:$0xff]  }
 0x290   : > { %5453 = vmatmul.mubr.bf16.gmra.mrb[32].mxu0 %v9659_v24  ;;  %2839 = vmatprep.mubr.bf16.mxu1 %v10343_v61  ;;  %v2481_v63 = vshll.u32 %v11509_v43, 16  ;;  %11510 = vst [vmem:[#allocation65_spill] sm:$0xff] %v10362_v16  ;;  %v2497_v61 = vshll.u32 %v10371_v18, 16  ;;  %v2931_v45 = vrot.slane %v8258_v57, 1 }
 0x291   : > { %5459 = vmatprep.mubr.bf16.mxu0 %v9667_v28 }
 0x292   : > { %v2483_v38 = vrot.slane %v2481_v63, 1  ;;  %v2508_v63 = vsel %vm2116_vm0, %v10374_v20, %v2507_v23  ;;  %v2499_v33 = vrot.slane %v2497_v61, 1  ;;  %v11514_v61 = vld [vmem:[#allocation16_spill] sm:$0xff]  ;;  %v8207_v20 = vld [vmem:[%s9096_s4 + $0x180] sm:$0xff]  }
 0x294   : > { %v10377_v3 = vsel %vm2116_vm0, %v2479_v48, %v2483_v38  ;;  %v2932_v48 = vrot.slane %v11513_v56, 1 }
 0x295   : > { %11512 = vst [vmem:[#allocation101_spill] sm:$0xff] %v10377_v3 }
 0x296   : > { %v2933_v23 = vsel %vm2927_vm1, %v2931_v45, %v2932_v48 }
 0x297   : > { %2840 = vmatmul.mubr.bf16.gmra.mrb[84].mxu1 %v10357_v36  ;;  %v2493_v36 = vshrl.u32 %v11509_v43, 16 }
 0x298   : > { %5460 = vmatmul.mubr.bf16.gmra.mrb[36].mxu0 %v9679_v46  ;;  %2847 = vmatprep.mubr.bf16.mxu1 %v10362_v16 }
 0x299   : > { %5467 = vmatprep.mubr.bf16.mxu0 %v9683_v19  ;;  %v10385_v60 = vor.u32 %v2493_v36, %v2483_v38  ;;  %v8259_v36 = vld [vmem:[%s9134_s11] ss:$8 sps:$4 sm:$0xff]  }
 0x29a   : > { %v2928_v38 = vrot.slane %v8259_v36, 1  ;;  %v2940_v36 = vrot.slane %v11435_v25, 1  ;;  %v2944_v25 = vrot.slane %v11438_v49, 1  ;;  %v2948_v49 = vrot.slane %v11442_v40, 1 }
 0x29b   : > { %v2500_v16 = vsel %vm2116_vm0, %v10385_v60, %v2499_v33  ;;  %v2952_v40 = vrot.slane %v11448_v54, 1  ;;  %v2956_v54 = vrot.slane %v11454_v30, 1  ;;  %v2960_v30 = vrot.slane %v11460_v58, 1 }
 0x29c   : > { %v2964_v58 = vrot.slane %v11466_v47, 1  ;;  %v2968_v47 = vrot.slane %v11472_v1, 1  ;;  %v2972_v1 = vrot.slane %v9635_v6, 1 }
 0x29f   : > { %2848 = vmatmul.mubr.bf16.gmra.mrb[88].mxu1 %v10377_v3  ;;  %v11515_v3 = vld [vmem:[#allocation17_spill] sm:$0xff] }
 0x2a0   : > { %5468 = vmatmul.mubr.bf16.gmra.mrb[40].mxu0 %v9696_v2  ;;  %2854 = vmatprep.mubr.bf16.mxu1 %v2508_v63  ;;  %v2929_v63 = vrot.slane %v11514_v61, 1  ;;  %v2936_v57 = vrot.slane %v11515_v3, 1  ;;  %v8213_v61 = vld [vmem:[%s9096_s4 + $0x198] sm:$0xff]  }
 0x2a1   : > { %5474 = vmatprep.mubr.bf16.mxu0 %v9700_v35 }
 0x2a2   : > { %v2930_v56 = vsel %vm2927_vm1, %v2928_v38, %v2929_v63  ;;  %v2937_v33 = vsel %vm2927_vm1, %v2932_v48, %v2936_v57  ;;  %v2941_v48 = vsel %vm2927_vm1, %v2936_v57, %v2940_v36  ;;  %v2938_v38 = vrot.slane %v11437_v5, 1 }
 0x2a3   : > { %v10419_v57 = vsel %vm2927_vm1, %v2940_v36, %v2944_v25  ;;  %v2942_v5 = vrot.slane %v11440_v15, 1  ;;  %v2946_v15 = vrot.slane %v11445_v4, 1  ;;  %v8225_v36 = vld [vmem:[%s9096_s4 + $0x1b8] sm:$0xff]   ;;  %v2950_v4 = vrot.slane %v11451_v22, 1 }
 0x2a4   : > { %v2954_v22 = vrot.slane %v11457_v10, 1  ;;  %v2958_v10 = vrot.slane %v11463_v9, 1  ;;  %v2962_v9 = vrot.slane %v11469_v42, 1  ;;  %v2966_v42 = vrot.slane %v9626_v32, 1 }
 0x2a5   : > { %v2970_v32 = vrot.slane %v9659_v24, 1  ;;  %v2974_v24 = vrot.slane %v9679_v46, 1  ;;  %v2978_v46 = vrot.slane %v9696_v2, 1  ;;  %v2982_v2 = vrot.slane %v9714_v37, 1 }
 0x2a7   : > { %2855 = vmatmul.mubr.bf16.gmra.mrb[92].mxu1 %v2500_v16  ;;  %v11516_v16 = vld [vmem:[#allocation20_spill] sm:$0xff]  ;;  %v10548_v6 = vsel %vm2927_vm1, %v2966_v42, %v2970_v32 }
 0x2a8   : > { %5475 = vmatmul.mubr.bf16.gmra.mrb[44].mxu0 %v9714_v37  ;;  %3202 = vmatprep.mubr.bf16.mxu1 %v2933_v23  ;;  %v2934_v45 = vrot.slane %v11516_v16, 1  ;;  %v8209_v23 = vld [vmem:[%s9096_s4 + $0x188] sm:$0xff]   ;;  %v10431_v16 = vsel %vm2927_vm1, %v2938_v38, %v2942_v5  ;;  %v11524_v37 = vld [vmem:[#allocation33_spill] sm:$0xff] }
 0x2a9   : > { %5481 = vmatprep.mubr.bf16.mxu0 %v9718_v52 }
 0x2aa   : > { %v2935_v3 = vsel %vm2927_vm1, %v2929_v63, %v2934_v45  ;;  %v2939_v63 = vsel %vm2927_vm1, %v2934_v45, %v2938_v38  ;;  %v10434_v45 = vsel %vm2927_vm1, %v2944_v25, %v2948_v49  ;;  %v8232_v38 = vld [vmem:[%s9096_s4 + $0x1c8] sm:$0xff]   ;;  %v10463_v25 = vsel %vm2927_vm1, %v2946_v15, %v2950_v4 }
 0x2af   : > { %3203 = vmatmul.mubr.bf16.vlgmr.msra.gmra.mrb[0].mxu1 %v2930_v56  ;;  %v8215_v56 = vld [vmem:[%s9096_s4 + $0x1a0] sm:$0xff]  }
 0x2b0   : > { %5482 = vmatmul.mubr.bf16.gmra.mrb[48].mxu0 %v9732_v21  ;;  %3643 = vmatpush1.bf16.msra.mxu1 %v8207_v20  ;;  %v8211_v20 = vld [vmem:[%s9096_s4 + $0x190] sm:$0xff]  }
 0x2b1   : > { %3210 = vmatprep.mubr.bf16.mxu1 %v2937_v33  ;;  %5489 = vmatprep.mubr.bf16.mxu0 %v9736_v44  ;;  %v8217_v33 = vld [vmem:[%s9096_s4 + $0x1a8] sm:$0xff]  }
 0x2b2   : > { %3644 = vmatprep.subr.bf16.mxu1 %v11413_v53 }
 0x2b4   : > { %3645 = vmatpush1.bf16.msra.mxu1 %v8209_v23  ;;  %v8221_v23 = vld [vmem:[%s9096_s4 + $0x1b0] sm:$0xff]  }
 0x2b5   : > { %3646 = vmatprep.subr.bf16.mxu1 %v11413_v53 }
 0x2b7   : > { %3211 = vmatmul.mubr.bf16.gmra.mrb[4].mxu1 %v2935_v3  ;;  %v10447_v3 = vsel %vm2927_vm1, %v2942_v5, %v2946_v15  ;;  %v10479_v5 = vsel %vm2927_vm1, %v2950_v4, %v2954_v22  ;;  %v10495_v15 = vsel %vm2927_vm1, %v2954_v22, %v2958_v10  ;;  %v10511_v4 = vsel %vm2927_vm1, %v2958_v10, %v2962_v9 }
 0x2b8   : > { %5490 = vmatmul.mubr.bf16.gmra.mrb[52].mxu0 %v9750_v12  ;;  %3217 = vmatprep.mubr.bf16.mxu1 %v2941_v48  ;;  %v10450_v48 = vsel %vm2927_vm1, %v2948_v49, %v2952_v40  ;;  %v10482_v49 = vsel %vm2927_vm1, %v2956_v54, %v2960_v30  ;;  %v10532_v22 = vcombine.low %v10073_v14, %v10104_v62 }
 0x2b9   : > { %5496 = vmatprep.mubr.bf16.mxu0 %v9754_v27  ;;  %3647 = vmatpush1.bf16.msra.mxu1 %v8211_v20  ;;  %v8230_v20 = vld [vmem:[%s9096_s4 + $0x1c0] sm:$0xff]  }
 0x2ba   : > { %3648 = vmatprep.subr.bf16.mxu1 %v11413_v53  ;;  %11517 = vst [vmem:[#allocation13_spill] sm:$0xff] %v10532_v22 }
 0x2bd   : > { %3649 = vmatpush1.bf16.msra.mxu1 %v8213_v61  ;;  %v10466_v61 = vsel %vm2927_vm1, %v2952_v40, %v2956_v54  ;;  %v10498_v40 = vsel %vm2927_vm1, %v2960_v30, %v2964_v58  ;;  %v10514_v54 = vsel %vm2927_vm1, %v2964_v58, %v2968_v47  ;;  %v10535_v30 = vsel %vm2927_vm1, %v2968_v47, %v2972_v1  ;;  %v10558_v58 = vld [vmem:[%s9134_s11 + $0x1a4] ss:$8 sps:$4 sm:$0xff]  }
 0x2be   : > { %3650 = vmatprep.subr.bf16.mxu1 %v11413_v53  ;;  %11520 = vst [vmem:[#allocation17_spill] sm:$0xff] %v10558_v58  ;;  %v10582_v47 = vsel %vm2927_vm1, %v2974_v24, %v2978_v46 }
 0x2bf   : > { %3218 = vmatmul.mubr.bf16.gmra.mrb[8].mxu1 %v2939_v63  ;;  %v8234_v63 = vld [vmem:[%s9096_s4 + $0x1d0] sm:$0xff]  }
 0x2c0   : > { %5497 = vmatmul.mubr.bf16.gmra.mrb[56].mxu0 %v9771_v50  ;;  %3224 = vmatprep.mubr.bf16.mxu1 %v10419_v57 }
 0x2c1   : > { %5503 = vmatprep.mubr.bf16.mxu0 %v9775_v51  ;;  %3651 = vmatpush1.bf16.msra.mxu1 %v8215_v56  ;;  %v8236_v56 = vld [vmem:[%s9096_s4 + $0x1d8] sm:$0xff]  }
 0x2c2   : > { %3652 = vmatprep.subr.bf16.mxu1 %v11413_v53 }
 0x2c5   : > { %3653 = vmatpush1.bf16.msra.mxu1 %v8217_v33  ;;  %v8238_v33 = vld [vmem:[%s9096_s4 + $0x1e0] sm:$0xff]  }
 0x2c6   : > { %3654 = vmatprep.subr.bf16.mxu1 %v11413_v53 }
 0x2c7   : > { %3225 = vmatmul.mubr.bf16.gmra.mrb[12].mxu1 %v10431_v16 }
 0x2c8   : > { %5504 = vmatmul.mubr.bf16.gmra.mrb[60].mxu0 %v9795_v7  ;;  %3232 = vmatprep.mubr.bf16.mxu1 %v10434_v45 }
 0x2c9   : > { %5511 = vmatprep.mubr.bf16.mxu0 %v9799_v41  ;;  %3655 = vmatpush1.bf16.msra.mxu1 %v8221_v23  ;;  %v8240_v23 = vld [vmem:[%s9096_s4 + $0x1e8] sm:$0xff]  }
 0x2ca   : > { %3656 = vmatprep.subr.bf16.mxu1 %v11413_v53 }
 0x2cd   : > { %3657 = vmatpush1.bf16.msra.mxu1 %v8225_v36  ;;  %v8242_v36 = vld [vmem:[%s9096_s4 + $0x1f0] sm:$0xff]  }
 0x2ce   : > { %3658 = vmatprep.subr.bf16.mxu1 %v11413_v53 }
 0x2cf   : > { %3233 = vmatmul.mubr.bf16.gmra.mrb[16].mxu1 %v10447_v3 }
 0x2d0   : > { %5512 = vmatmul.mubr.bf16.gmra.mrb[64].mxu0 %v9819_v8  ;;  %3239 = vmatprep.mubr.bf16.mxu1 %v10450_v48 }
 0x2d1   : > { %5518 = vmatprep.mubr.bf16.mxu0 %v9823_v39  ;;  %3659 = vmatpush1.bf16.msra.mxu1 %v8230_v20  ;;  %v8244_v20 = vld [vmem:[%s9096_s4 + $0x1f8] sm:$0xff]  }
 0x2d2   : > { %3660 = vmatprep.subr.bf16.mxu1 %v11413_v53 }
 0x2d5   : > { %3661 = vmatpush1.bf16.msra.mxu1 %v8232_v38  ;;  %v10518_v38 = vcombine.high %v10073_v14, %v10104_v62  ;;  %v2976_v62 = vrot.slane %v9667_v28, 1  ;;  %v2980_v28 = vrot.slane %v9683_v19, 1  ;;  %v2984_v19 = vrot.slane %v9700_v35, 1 }
 0x2d6   : > { %3662 = vmatprep.subr.bf16.mxu1 %v11413_v53  ;;  %v2988_v35 = vrot.slane %v9718_v52, 1  ;;  %v2986_v52 = vrot.slane %v9732_v21, 1  ;;  %v11526_v21 = vld [vmem:[#allocation67_spill] sm:$0xff] }
 0x2d7   : > { %3240 = vmatmul.mubr.bf16.gmra.mrb[20].mxu1 %v10463_v25  ;;  %v10555_v10 = vsel %vm2927_vm1, %v2972_v1, %v2976_v62  ;;  %v11522_v1 = vld [vmem:[#allocation26_spill] sm:$0xff] }
 0x2d8   : > { %5519 = vmatmul.mubr.bf16.gmra.mrb[68].mxu0 %v9843_v11  ;;  %3246 = vmatprep.mubr.bf16.mxu1 %v10466_v61 }
 0x2d9   : > { %5525 = vmatprep.mubr.bf16.mxu0 %v9847_v29  ;;  %3663 = vmatpush1.bf16.msra.mxu1 %v8234_v63  ;;  %v10528_v63 = vsel %vm2927_vm1, %v2962_v9, %v2966_v42  ;;  %v11521_v9 = vld [vmem:[#allocation21_spill] sm:$0xff]  ;;  %v10586_v42 = vsel %vm2927_vm1, %v2980_v28, %v2984_v19 }
 0x2da   : > { %3664 = vmatprep.subr.bf16.mxu1 %v11413_v53 }
 0x2dd   : > { %3665 = vmatpush1.bf16.msra.mxu1 %v8236_v56  ;;  %v11518_v56 = vld [vmem:[#allocation73_spill] sm:$0xff] }
 0x2de   : > { %3666 = vmatprep.subr.bf16.mxu1 %v11413_v53  ;;  %v10552_v14 = vcombine.low %v11518_v56, %v10135_v0 }
 0x2df   : > { %3247 = vmatmul.mubr.bf16.gmra.mrb[24].mxu1 %v10479_v5 }
 0x2e0   : > { %5526 = vmatmul.mubr.bf16.gmra.mrb[72].mxu0 %v11501_v59  ;;  %3254 = vmatprep.mubr.bf16.mxu1 %v10482_v49 }
 0x2e1   : > { %5533 = vmatprep.mubr.bf16.mxu0 %v11503_v31  ;;  %3667 = vmatpush1.bf16.msra.mxu1 %v8238_v33  ;;  %v10539_v33 = vcombine.high %v11518_v56, %v10135_v0  ;;  %v10567_v0 = vsel %vm2927_vm1, %v2970_v32, %v2974_v24  ;;  %v11523_v56 = vld [vmem:[#allocation29_spill] sm:$0xff]  ;;  %v8233_v32 = vld [vmem:[%s9096_s4 + $0x408] sm:$0xff]   ;;  %v10600_v24 = vsel %vm2927_vm1, %v2984_v19, %v2988_v35 }
 0x2e2   : > { %3668 = vmatprep.subr.bf16.mxu1 %v11413_v53  ;;  %v8237_v19 = vld [vmem:[%s9096_s4 + $0x418] sm:$0xff]  }
 0x2e3   : > { %11519 = vst [vmem:[#allocation16_spill] sm:$0xff] %v10539_v33 }
 0x2e5   : > { %3669 = vmatpush1.bf16.msra.mxu1 %v8240_v23  ;;  %v10570_v23 = vld [vmem:[%s9134_s11 + $0x1a0] ss:$8 sps:$4 sm:$0xff]  }
 0x2e6   : > { %3670 = vmatprep.subr.bf16.mxu1 %v11413_v53 }
 0x2e7   : > { %3255 = vmatmul.mubr.bf16.gmra.mrb[28].mxu1 %v10495_v15 }
 0x2e8   : > { %5534 = vmatmul.mubr.bf16.gmra.mrb[76].mxu0 %v11505_v55  ;;  %3261 = vmatprep.mubr.bf16.mxu1 %v10498_v40 }
 0x2e9   : > { %5540 = vmatprep.mubr.bf16.mxu0 %v11507_v26  ;;  %3671 = vmatpush1.bf16.msra.mxu1 %v8242_v36  ;;  %v10573_v36 = vsel %vm2927_vm1, %v2976_v62, %v2980_v28  ;;  %v10597_v62 = vsel %vm2927_vm1, %v2978_v46, %v2982_v2  ;;  %v8235_v28 = vld [vmem:[%s9096_s4 + $0x410] sm:$0xff]   ;;  %v2992_v46 = vrot.slane %v9736_v44, 1  ;;  %v2990_v44 = vrot.slane %v9750_v12, 1  ;;  %v11528_v12 = vld [vmem:[#allocation69_spill] sm:$0xff] }
 0x2ea   : > { %3672 = vmatprep.subr.bf16.mxu1 %v11413_v53 }
 0x2ed   : > { %3673 = vmatpush1.bf16.msra.mxu1 %v8244_v20  ;;  %v8231_v20 = vld [vmem:[%s9096_s4 + $0x400] sm:$0xff]  }
 0x2ee   : > { %7140 = vmatprep.subr.bf16.mxu1 %v11413_v53 }
 0x2ef   : > { %3262 = vmatmul.mubr.bf16.gmra.mrb[32].mxu1 %v10511_v4 }
 0x2f0   : > { %5541 = vmatmul.mubr.bf16.gmra.mrb[80].mxu0 %v11509_v43  ;;  %3268 = vmatprep.mubr.bf16.mxu1 %v10514_v54 }
 0x2f1   : > { %5547 = vmatprep.mubr.bf16.mxu0 %v10518_v38 }
 0x2f7   : > { %3269 = vmatmul.mubr.bf16.gmra.mrb[36].mxu1 %v10528_v63 }
 0x2f8   : > { %5548 = vmatmul.mubr.bf16.gmra.mrb[84].mxu0 %v10532_v22  ;;  %3276 = vmatprep.mubr.bf16.mxu1 %v10535_v30 }
 0x2f9   : > { %5555 = vmatprep.mubr.bf16.mxu0 %v10539_v33 }
 0x2ff   : > { %3277 = vmatmul.mubr.bf16.gmra.mrb[40].mxu1 %v10548_v6 }
 0x300   : > { %5556 = vmatmul.mubr.bf16.gmra.mrb[88].mxu0 %v10552_v14  ;;  %3283 = vmatprep.mubr.bf16.mxu1 %v10555_v10 }
 0x301   : > { %5562 = vmatprep.mubr.bf16.mxu0 %v10558_v58 }
 0x307   : > { %3284 = vmatmul.mubr.bf16.gmra.mrb[44].mxu1 %v10567_v0 }
 0x308   : > { %5563 = vmatmul.mubr.bf16.gmra.mrb[92].mxu0 %v10570_v23  ;;  %3290 = vmatprep.mubr.bf16.mxu1 %v10573_v36 }
 0x309   : > { %5834 = vmatprep.mubr.bf16.mxu0 %v11521_v9  ;;  %v11525_v9 = vld [vmem:[#allocation36_spill] sm:$0xff] }
 0x30f   : > { %3291 = vmatmul.mubr.bf16.gmra.mrb[48].mxu1 %v10582_v47 }
 0x310   : > { %5835 = vmatmul.mubr.bf16.vlgmr.msra.gmra.mrb[0].mxu0 %v11522_v1  ;;  %3298 = vmatprep.mubr.bf16.mxu1 %v10586_v42  ;;  %v10616_v1 = vsel %vm2927_vm1, %v2988_v35, %v2992_v46  ;;  %v8241_v35 = vld [vmem:[%s9096_s4 + $0x428] sm:$0xff]  }
 0x311   : > { %6197 = vmatpush1.bf16.msra.mxu0 %v8231_v20  ;;  %5842 = vmatprep.mubr.bf16.mxu0 %v11523_v56  ;;  %v10613_v20 = vsel %vm2927_vm1, %v2982_v2, %v2986_v52  ;;  %v8239_v56 = vld [vmem:[%s9096_s4 + $0x420] sm:$0xff]   ;;  %v2996_v2 = vrot.slane %v9754_v27, 1  ;;  %v2994_v27 = vrot.slane %v9771_v50, 1  ;;  %v11530_v50 = vld [vmem:[#allocation71_spill] sm:$0xff] }
 0x312   : > { %6198 = vmatprep.subr.bf16.mxu0 %v11413_v53 }
 0x315   : > { %6199 = vmatpush1.bf16.msra.mxu0 %v8233_v32  ;;  %v11527_v32 = vld [vmem:[#allocation68_spill] sm:$0xff] }
 0x316   : > { %6200 = vmatprep.subr.bf16.mxu0 %v11413_v53 }
 0x317   : > { %3299 = vmatmul.mubr.bf16.gmra.mrb[52].mxu1 %v10597_v62 }
 0x318   : > { %5843 = vmatmul.mubr.bf16.gmra.mrb[4].mxu0 %v11524_v37  ;;  %3305 = vmatprep.mubr.bf16.mxu1 %v10600_v24  ;;  %v10632_v37 = vsel %vm2927_vm1, %v2992_v46, %v2996_v2  ;;  %v8245_v46 = vld [vmem:[%s9096_s4 + $0x438] sm:$0xff]  }
 0x319   : > { %5849 = vmatprep.mubr.bf16.mxu0 %v11525_v9  ;;  %6201 = vmatpush1.bf16.msra.mxu0 %v8235_v28  ;;  %v10629_v28 = vsel %vm2927_vm1, %v2986_v52, %v2990_v44  ;;  %v8243_v9 = vld [vmem:[%s9096_s4 + $0x430] sm:$0xff]   ;;  %v3000_v52 = vrot.slane %v9775_v51, 1  ;;  %v2998_v51 = vrot.slane %v9795_v7, 1  ;;  %v11532_v7 = vld [vmem:[#allocation74_spill] sm:$0xff] }
 0x31a   : > { %6202 = vmatprep.subr.bf16.mxu0 %v11413_v53 }
 0x31d   : > { %6203 = vmatpush1.bf16.msra.mxu0 %v8237_v19  ;;  %v11529_v19 = vld [vmem:[#allocation45_spill] sm:$0xff] }
 0x31e   : > { %6204 = vmatprep.subr.bf16.mxu0 %v11413_v53 }
 0x31f   : > { %3306 = vmatmul.mubr.bf16.gmra.mrb[56].mxu1 %v10613_v20 }
 0x320   : > { %5850 = vmatmul.mubr.bf16.gmra.mrb[8].mxu0 %v11526_v21  ;;  %3312 = vmatprep.mubr.bf16.mxu1 %v10616_v1  ;;  %v10648_v21 = vsel %vm2927_vm1, %v2996_v2, %v3000_v52  ;;  %v8247_v2 = vld [vmem:[%s9096_s4 + $0x448] sm:$0xff]  }
 0x321   : > { %5856 = vmatprep.mubr.bf16.mxu0 %v11527_v32  ;;  %6205 = vmatpush1.bf16.msra.mxu0 %v8239_v56  ;;  %v10645_v56 = vsel %vm2927_vm1, %v2990_v44, %v2994_v27  ;;  %v8246_v32 = vld [vmem:[%s9096_s4 + $0x440] sm:$0xff]   ;;  %v3004_v44 = vrot.slane %v9799_v41, 1  ;;  %v3002_v41 = vrot.slane %v9819_v8, 1  ;;  %v3006_v8 = vrot.slane %v9843_v11, 1 }
 0x322   : > { %6206 = vmatprep.subr.bf16.mxu0 %v11413_v53  ;;  %v3010_v11 = vrot.slane %v11501_v59, 1  ;;  %v3014_v59 = vrot.slane %v11505_v55, 1  ;;  %v10733_v55 = vrot.slane %v11509_v43, 1  ;;  %v3022_v43 = vrot.slane %v10371_v18, 1  ;;  %v11549_v18 = vld [vmem:[#allocation7_spill] sm:$0xff] }
 0x324   : > { %11539 = vst [vmem:[#allocation20_spill] sm:$0xff] %v10733_v55 }
 0x325   : > { %6207 = vmatpush1.bf16.msra.mxu0 %v8241_v35  ;;  %v11531_v35 = vld [vmem:[#allocation72_spill] sm:$0xff] }
 0x326   : > { %6208 = vmatprep.subr.bf16.mxu0 %v11413_v53 }
 0x327   : > { %3313 = vmatmul.mubr.bf16.gmra.mrb[60].mxu1 %v10629_v28 }
 0x328   : > { %5857 = vmatmul.mubr.bf16.gmra.mrb[12].mxu0 %v11528_v12  ;;  %3320 = vmatprep.mubr.bf16.mxu1 %v10632_v37  ;;  %v10664_v12 = vsel %vm2927_vm1, %v3000_v52, %v3004_v44  ;;  %v8249_v52 = vld [vmem:[%s9096_s4 + $0x458] sm:$0xff]  }
 0x329   : > { %5864 = vmatprep.mubr.bf16.mxu0 %v11529_v19  ;;  %6209 = vmatpush1.bf16.msra.mxu0 %v8243_v9  ;;  %v10661_v9 = vsel %vm2927_vm1, %v2994_v27, %v2998_v51  ;;  %v8248_v19 = vld [vmem:[%s9096_s4 + $0x450] sm:$0xff]   ;;  %v3008_v27 = vrot.slane %v9823_v39, 1  ;;  %v11534_v39 = vld [vmem:[#allocation79_spill] sm:$0xff] }
 0x32a   : > { %6210 = vmatprep.subr.bf16.mxu0 %v11413_v53 }
 0x32d   : > { %6211 = vmatpush1.bf16.msra.mxu0 %v8245_v46  ;;  %v11533_v46 = vld [vmem:[#allocation75_spill] sm:$0xff] }
 0x32e   : > { %6212 = vmatprep.subr.bf16.mxu0 %v11413_v53 }
 0x32f   : > { %3321 = vmatmul.mubr.bf16.gmra.mrb[64].mxu1 %v10645_v56 }
 0x330   : > { %5865 = vmatmul.mubr.bf16.gmra.mrb[16].mxu0 %v11530_v50  ;;  %3327 = vmatprep.mubr.bf16.mxu1 %v10648_v21  ;;  %v10680_v50 = vsel %vm2927_vm1, %v3004_v44, %v3008_v27  ;;  %v8251_v44 = vld [vmem:[%s9096_s4 + $0x468] sm:$0xff]  }
 0x331   : > { %5871 = vmatprep.mubr.bf16.mxu0 %v11531_v35  ;;  %6213 = vmatpush1.bf16.msra.mxu0 %v8246_v32  ;;  %v10677_v32 = vsel %vm2927_vm1, %v2998_v51, %v3002_v41  ;;  %v8250_v35 = vld [vmem:[%s9096_s4 + $0x460] sm:$0xff]   ;;  %v3012_v51 = vrot.slane %v9847_v29, 1  ;;  %v11535_v29 = vld [vmem:[#allocation81_spill] sm:$0xff] }
 0x332   : > { %6214 = vmatprep.subr.bf16.mxu0 %v11413_v53 }
 0x335   : > { %6215 = vmatpush1.bf16.msra.mxu0 %v8247_v2  ;;  %v10693_v2 = vsel %vm2927_vm1, %v3002_v41, %v3006_v8  ;;  %v8254_v41 = vld [vmem:[%s9096_s4 + $0x478] sm:$0xff]  }
 0x336   : > { %6216 = vmatprep.subr.bf16.mxu0 %v11413_v53 }
 0x337   : > { %3328 = vmatmul.mubr.bf16.gmra.mrb[68].mxu1 %v10661_v9 }
 0x338   : > { %5872 = vmatmul.mubr.bf16.gmra.mrb[20].mxu0 %v11532_v7  ;;  %3334 = vmatprep.mubr.bf16.mxu1 %v10664_v12  ;;  %v3016_v7 = vrot.slane %v11503_v31, 1  ;;  %v11537_v31 = vld [vmem:[#allocation84_spill] sm:$0xff] }
 0x339   : > { %5878 = vmatprep.mubr.bf16.mxu0 %v11533_v46  ;;  %6217 = vmatpush1.bf16.msra.mxu0 %v8248_v19  ;;  %v10696_v19 = vsel %vm2927_vm1, %v3008_v27, %v3012_v51  ;;  %v10709_v46 = vsel %vm2927_vm1, %v3006_v8, %v3010_v11 }
 0x33a   : > { %6218 = vmatprep.subr.bf16.mxu0 %v11413_v53  ;;  %v10712_v27 = vsel %vm2927_vm1, %v3012_v51, %v3016_v7  ;;  %v11540_v51 = vld [vmem:[#allocation86_spill] sm:$0xff] }
 0x33d   : > { %6219 = vmatpush1.bf16.msra.mxu0 %v8249_v52  ;;  %v10720_v52 = vrot.slane %v11507_v26, 1  ;;  %v3024_v26 = vrot.slane %v10354_v17, 1  ;;  %v3023_v17 = vsel %vm2927_vm1, %v10733_v55, %v3022_v43  ;;  %v11553_v43 = vld [vmem:[#allocation10_spill] sm:$0xff] }
 0x33e   : > { %6220 = vmatprep.subr.bf16.mxu0 %v11413_v53 }
 0x33f   : > { %3335 = vmatmul.mubr.bf16.gmra.mrb[72].mxu1 %v10677_v32  ;;  %v10727_v8 = vsel %vm2927_vm1, %v3016_v7, %v10720_v52  ;;  %v11544_v7 = vld [vmem:[#allocation89_spill] sm:$0xff] }
 0x340   : > { %5879 = vmatmul.mubr.bf16.gmra.mrb[24].mxu0 %v10138_v34  ;;  %3342 = vmatprep.mubr.bf16.mxu1 %v10680_v50  ;;  %v8252_v34 = vld [vmem:[%s9096_s4 + $0x470] sm:$0xff]  }
 0x341   : > { %5886 = vmatprep.mubr.bf16.mxu0 %v11534_v39  ;;  %6221 = vmatpush1.bf16.msra.mxu0 %v8250_v35  ;;  %v10723_v35 = vsel %vm2927_vm1, %v3010_v11, %v3014_v59  ;;  %v11538_v39 = vld [vmem:[#allocation85_spill] sm:$0xff]  ;;  %v11542_v11 = vld [vmem:[#allocation87_spill] sm:$0xff] }
 0x342   : > { %6222 = vmatprep.subr.bf16.mxu0 %v11413_v53 }
 0x345   : > { %6223 = vmatpush1.bf16.msra.mxu0 %v8251_v44  ;;  %v10739_v44 = vsel %vm2927_vm1, %v3014_v59, %v10733_v55  ;;  %v11547_v59 = vld [vmem:[#allocation8_spill] sm:$0xff]  ;;  %v8275_v55 = vld [vmem:[%s9096_s4 + $0x278] sm:$0xff]  }
 0x346   : > { %6224 = vmatprep.subr.bf16.mxu0 %v11413_v53  ;;  %11541 = vst [vmem:[#allocation73_spill] sm:$0xff] %v10739_v44 }
 0x347   : > { %3343 = vmatmul.mubr.bf16.gmra.mrb[76].mxu1 %v10693_v2 }
 0x348   : > { %5887 = vmatmul.mubr.bf16.gmra.mrb[28].mxu0 %v10162_v13  ;;  %3349 = vmatprep.mubr.bf16.mxu1 %v10696_v19  ;;  %v11536_v13 = vld [vmem:[#allocation83_spill] sm:$0xff] }
 0x349   : > { %5893 = vmatprep.mubr.bf16.mxu0 %v11535_v29  ;;  %6225 = vmatpush1.bf16.msra.mxu0 %v8252_v34  ;;  %v3025_v34 = vsel %vm2927_vm1, %v10720_v52, %v3024_v26  ;;  %v11543_v29 = vld [vmem:[#allocation88_spill] sm:$0xff]  ;;  %v8261_v26 = vld [vmem:[%s9096_s4 + $0x208] sm:$0xff]  }
 0x34a   : > { %6226 = vmatprep.subr.bf16.mxu0 %v11413_v53 }
 0x34d   : > { %6227 = vmatpush1.bf16.msra.mxu0 %v8254_v41  ;;  %v11545_v41 = vld [vmem:[#allocation6_spill] sm:$0xff] }
 0x34f   : > { %3350 = vmatmul.mubr.bf16.gmra.mrb[80].mxu1 %v10709_v46 }
 0x350   : > { %5894 = vmatmul.mubr.bf16.gmra.mrb[32].mxu0 %v11536_v13  ;;  %3356 = vmatprep.mubr.bf16.mxu1 %v10712_v27  ;;  %v11546_v13 = vld [vmem:[#allocation90_spill] sm:$0xff] }
 0x351   : > { %5900 = vmatprep.mubr.bf16.mxu0 %v11537_v31  ;;  %v11548_v31 = vld [vmem:[#allocation91_spill] sm:$0xff] }
 0x357   : > { %3357 = vmatmul.mubr.bf16.gmra.mrb[84].mxu1 %v10723_v35 }
 0x358   : > { %5901 = vmatmul.mubr.bf16.gmra.mrb[36].mxu0 %v11538_v39  ;;  %3364 = vmatprep.mubr.bf16.mxu1 %v10727_v8  ;;  %v8260_v39 = vld [vmem:[%s9096_s4 + $0x200] sm:$0xff]  }
 0x359   : > { %5908 = vmatprep.mubr.bf16.mxu0 %v11540_v51  ;;  %v11550_v51 = vld [vmem:[#allocation92_spill] sm:$0xff] }
 0x35f   : > { %3365 = vmatmul.mubr.bf16.gmra.mrb[88].mxu1 %v10739_v44 }
 0x360   : > { %5909 = vmatmul.mubr.bf16.gmra.mrb[40].mxu0 %v11542_v11  ;;  %3371 = vmatprep.mubr.bf16.mxu1 %v3025_v34  ;;  %v11551_v34 = vld [vmem:[#allocation9_spill] sm:$0xff] }
 0x361   : > { %5915 = vmatprep.mubr.bf16.mxu0 %v11543_v29  ;;  %v11552_v11 = vld [vmem:[#allocation93_spill] sm:$0xff]  ;;  %v11554_v29 = vld [vmem:[#allocation94_spill] sm:$0xff] }
 0x367   : > { %3372 = vmatmul.mubr.bf16.gmra.mrb[92].mxu1 %v3023_v17  ;;  %v8262_v17 = vld [vmem:[%s9096_s4 + $0x210] sm:$0xff]  }
 0x368   : > { %5916 = vmatmul.mubr.bf16.gmra.mrb[44].mxu0 %v11544_v7  ;;  %3674 = vmatprep.mubr.bf16.mxu1 %v11545_v41  ;;  %v8263_v7 = vld [vmem:[%s9096_s4 + $0x218] sm:$0xff]   ;;  %v11555_v41 = vld [vmem:[#allocation11_spill] sm:$0xff] }
 0x369   : > { %5922 = vmatprep.mubr.bf16.mxu0 %v11546_v13  ;;  %v11556_v13 = vld [vmem:[#allocation95_spill] sm:$0xff] }
 0x36f   : > { %3675 = vmatmul.mubr.bf16.vlgmr.msra.gmra.mrb[0].mxu1 %v11547_v59  ;;  %v11557_v59 = vld [vmem:[#allocation12_spill] sm:$0xff] }
 0x370   : > { %5923 = vmatmul.mubr.bf16.gmra.mrb[48].mxu0 %v11548_v31  ;;  %7156 = vmatpush1.bf16.msra.mxu1 %v8260_v39  ;;  %v11558_v31 = vld [vmem:[#allocation96_spill] sm:$0xff]  ;;  %v8264_v39 = vld [vmem:[%s9096_s4 + $0x220] sm:$0xff]  }
 0x371   : > { %3682 = vmatprep.mubr.bf16.mxu1 %v11549_v18  ;;  %5930 = vmatprep.mubr.bf16.mxu0 %v11550_v51  ;;  %v8265_v18 = vld [vmem:[%s9096_s4 + $0x228] sm:$0xff]   ;;  %v11559_v51 = vld [vmem:[#allocation14_spill] sm:$0xff] }
 0x372   : > { %7141 = vmatprep.subr.bf16.mxu1 %v11413_v53 }
 0x374   : > { %7157 = vmatpush1.bf16.msra.mxu1 %v8261_v26  ;;  %v11560_v26 = vld [vmem:[#allocation97_spill] sm:$0xff] }
 0x375   : > { %7142 = vmatprep.subr.bf16.mxu1 %v11413_v53 }
 0x377   : > { %3683 = vmatmul.mubr.bf16.gmra.mrb[4].mxu1 %v11551_v34  ;;  %v11561_v34 = vld [vmem:[#allocation15_spill] sm:$0xff] }
 0x378   : > { %5931 = vmatmul.mubr.bf16.gmra.mrb[52].mxu0 %v11552_v11  ;;  %3689 = vmatprep.mubr.bf16.mxu1 %v11553_v43  ;;  %v11562_v11 = vld [vmem:[#allocation98_spill] sm:$0xff]  ;;  %v8266_v43 = vld [vmem:[%s9096_s4 + $0x230] sm:$0xff]  }
 0x379   : > { %5937 = vmatprep.mubr.bf16.mxu0 %v11554_v29  ;;  %7158 = vmatpush1.bf16.msra.mxu1 %v8262_v17  ;;  %v8267_v29 = vld [vmem:[%s9096_s4 + $0x238] sm:$0xff]   ;;  %v11563_v17 = vld [vmem:[#allocation18_spill] sm:$0xff] }
 0x37a   : > { %7143 = vmatprep.subr.bf16.mxu1 %v11413_v53 }
 0x37d   : > { %7159 = vmatpush1.bf16.msra.mxu1 %v8263_v7  ;;  %v11564_v7 = vld [vmem:[#allocation99_spill] sm:$0xff] }
 0x37e   : > { %7144 = vmatprep.subr.bf16.mxu1 %v11413_v53 }
 0x37f   : > { %3690 = vmatmul.mubr.bf16.gmra.mrb[8].mxu1 %v11555_v41  ;;  %v11565_v41 = vld [vmem:[#allocation19_spill] sm:$0xff] }
 0x380   : > { %5938 = vmatmul.mubr.bf16.gmra.mrb[56].mxu0 %v11556_v13  ;;  %3696 = vmatprep.mubr.bf16.mxu1 %v11557_v59  ;;  %v11566_v13 = vld [vmem:[#allocation61_spill] sm:$0xff]  ;;  %v8268_v59 = vld [vmem:[%s9096_s4 + $0x240] sm:$0xff]  }
 0x381   : > { %5944 = vmatprep.mubr.bf16.mxu0 %v11558_v31  ;;  %7160 = vmatpush1.bf16.msra.mxu1 %v8264_v39  ;;  %v8269_v31 = vld [vmem:[%s9096_s4 + $0x248] sm:$0xff]   ;;  %v11567_v39 = vld [vmem:[#allocation22_spill] sm:$0xff] }
 0x382   : > { %7145 = vmatprep.subr.bf16.mxu1 %v11413_v53 }
 0x385   : > { %7161 = vmatpush1.bf16.msra.mxu1 %v8265_v18  ;;  %v11568_v18 = vld [vmem:[#allocation62_spill] sm:$0xff] }
 0x386   : > { %7146 = vmatprep.subr.bf16.mxu1 %v11413_v53 }
 0x387   : > { %3697 = vmatmul.mubr.bf16.gmra.mrb[12].mxu1 %v11559_v51  ;;  %v11569_v51 = vld [vmem:[#allocation23_spill] sm:$0xff] }
 0x388   : > { %5945 = vmatmul.mubr.bf16.gmra.mrb[60].mxu0 %v11560_v26  ;;  %3704 = vmatprep.mubr.bf16.mxu1 %v11561_v34  ;;  %v11570_v26 = vld [vmem:[#allocation63_spill] sm:$0xff]  ;;  %v8270_v34 = vld [vmem:[%s9096_s4 + $0x250] sm:$0xff]  }
 0x389   : > { %5952 = vmatprep.mubr.bf16.mxu0 %v11562_v11  ;;  %7162 = vmatpush1.bf16.msra.mxu1 %v8266_v43  ;;  %v8271_v11 = vld [vmem:[%s9096_s4 + $0x258] sm:$0xff]   ;;  %v5646_v43 = vshll.u32 %v10518_v38, 16 }
 0x38a   : > { %7147 = vmatprep.subr.bf16.mxu1 %v11413_v53 }
 0x38d   : > { %7163 = vmatpush1.bf16.msra.mxu1 %v8267_v29  ;;  %v11571_v29 = vld [vmem:[#allocation24_spill] sm:$0xff] }
 0x38e   : > { %7148 = vmatprep.subr.bf16.mxu1 %v11413_v53 }
 0x38f   : > { %3705 = vmatmul.mubr.bf16.gmra.mrb[16].mxu1 %v11563_v17  ;;  %v11572_v17 = vld [vmem:[#allocation64_spill] sm:$0xff] }
 0x390   : > { %5953 = vmatmul.mubr.bf16.gmra.mrb[64].mxu0 %v11564_v7  ;;  %3711 = vmatprep.mubr.bf16.mxu1 %v11565_v41  ;;  %v11573_v7 = vld [vmem:[#allocation27_spill] sm:$0xff]  ;;  %v11574_v41 = vld [vmem:[#allocation65_spill] sm:$0xff] }
 0x391   : > { %5959 = vmatprep.mubr.bf16.mxu0 %v11566_v13  ;;  %7164 = vmatpush1.bf16.msra.mxu1 %v8268_v59  ;;  %v8272_v13 = vld [vmem:[%s9096_s4 + $0x260] sm:$0xff]   ;;  %v5648_v59 = vrot.slane %v5646_v43, 1  ;;  %v11578_v43 = vld [vmem:[#allocation31_spill] sm:$0xff] }
 0x392   : > { %7149 = vmatprep.subr.bf16.mxu1 %v11413_v53 }
 0x395   : > { %7165 = vmatpush1.bf16.msra.mxu1 %v8269_v31  ;;  %v5641_v31 = vshll.u32 %v10532_v22, 16 }
 0x396   : > { %7150 = vmatprep.subr.bf16.mxu1 %v11413_v53 }
 0x397   : > { %3712 = vmatmul.mubr.bf16.gmra.mrb[20].mxu1 %v11567_v39  ;;  %v8273_v39 = vld [vmem:[%s9096_s4 + $0x268] sm:$0xff]  }
 0x398   : > { %5960 = vmatmul.mubr.bf16.gmra.mrb[68].mxu0 %v11568_v18  ;;  %3718 = vmatprep.mubr.bf16.mxu1 %v11569_v51  ;;  %v11575_v18 = vld [vmem:[#allocation100_spill] sm:$0xff] }
 0x399   : > { %5966 = vmatprep.mubr.bf16.mxu0 %v11570_v26  ;;  %7166 = vmatpush1.bf16.msra.mxu1 %v8270_v34  ;;  %v5649_v51 = vsel %vm2116_vm0, %v11575_v18, %v5648_v59  ;;  %v5658_v26 = vshrl.u32 %v10518_v38, 16  ;;  %v5662_v34 = vshll.u32 %v10539_v33, 16  ;;  %v5650_v18 = vshrl.u32 %v10532_v22, 16 }
 0x39a   : > { %7151 = vmatprep.subr.bf16.mxu1 %v11413_v53 }
 0x39d   : > { %7167 = vmatpush1.bf16.msra.mxu1 %v8271_v11  ;;  %v11576_v11 = vld [vmem:[#allocation30_spill] sm:$0xff] }
 0x39e   : > { %7152 = vmatprep.subr.bf16.mxu1 %v11413_v53 }
 0x39f   : > { %3719 = vmatmul.mubr.bf16.gmra.mrb[24].mxu1 %v11571_v29  ;;  %v11577_v29 = vld [vmem:[#allocation101_spill] sm:$0xff] }
 0x3a0   : > { %5967 = vmatmul.mubr.bf16.gmra.mrb[72].mxu0 %v11572_v17  ;;  %3726 = vmatprep.mubr.bf16.mxu1 %v11573_v7  ;;  %v5643_v17 = vrot.slane %v5641_v31, 1  ;;  %v8274_v7 = vld [vmem:[%s9096_s4 + $0x270] sm:$0xff]   ;;  %v5678_v31 = vshll.u32 %v10558_v58, 16  ;;  %s11052_s4 = scalar_lea.vmem [#allocation3], %s6624_s29 }
 0x3a1   : > { %5974 = vmatprep.mubr.bf16.mxu0 %v11574_v41  ;;  %7168 = vmatpush1.bf16.msra.mxu1 %v8272_v13  ;;  %v5660_v41 = vor.u32 %v5658_v26, %v5648_v59  ;;  %v5664_v13 = vrot.slane %v5662_v34, 1  ;;  %v1461_v59 = vld [vmem:[%s9134_s11 + $0x1b0] sm:$0xff]  ;;  %s6516_s10 = sshll.u32 %s11052_s4, 4  ;;  %s11137_s10 = int_to_ptr.vmem [resolvable:$true] %s6516_s10 }
 0x3a2   : > { %7153 = vmatprep.subr.bf16.mxu1 %v11413_v53  ;;  %v10830_v22 = vcombine.high %v1461_v59, %v1461_v59  ;;  %s8276_s26 = scalar_lea.vmem %s11137_s10, 4096 }
 0x3a3   : > { %p8277_p5 = scmp.ne.s32.totalorder %s11137_s10, %s8276_s26 }
 0x3a4   : > { %11581 = vst [vmem:[#allocation21_spill] sm:$0xff] %v10830_v22 }
 0x3a5   : > { %7169 = vmatpush1.bf16.msra.mxu1 %v8273_v39  ;;  %v5644_v39 = vsel %vm2116_vm0, %v10385_v60, %v5643_v17  ;;  %v5652_v60 = vor.u32 %v5650_v18, %v5643_v17  ;;  %v11583_v17 = vld [vmem:[#allocation39_spill] sm:$0xff]  ;;  %p8278_p6 = pnand %p8277_p5, %p8492_p10 }
 0x3a6   : > { %7154 = vmatprep.subr.bf16.mxu1 %v11413_v53 }
 0x3a7   : > { %3727 = vmatmul.mubr.bf16.gmra.mrb[28].mxu1 %v11576_v11  ;;  %v5654_v11 = vshll.u32 %v10552_v14, 16  ;;  %p8279_p7 = pneg %p8278_p6 }
 0x3a8   : > { %5975 = vmatmul.mubr.bf16.gmra.mrb[76].mxu0 %v11577_v29  ;;  %3733 = vmatprep.mubr.bf16.mxu1 %v11578_v43  ;;  %v5665_v29 = vsel %vm2116_vm0, %v5660_v41, %v5664_v13  ;;  %v11579_v43 = vld [vmem:[#allocation34_spill] sm:$0xff]  ;;  %v5666_v41 = vshrl.u32 %v10552_v14, 16 }
 0x3a9   : > { %5981 = vmatprep.mubr.bf16.mxu0 %v5649_v51  ;;  %7170 = vmatpush1.bf16.msra.mxu1 %v8274_v7  ;;  %v5674_v51 = vshrl.u32 %v10539_v33, 16  ;;  %v5656_v26 = vrot.slane %v5654_v11, 1  ;;  %v5680_v7 = vrot.slane %v5678_v31, 1  ;;  %v5670_v33 = vshll.u32 %v10570_v23, 16 }
 0x3aa   : > { %7155 = vmatprep.subr.bf16.mxu1 %v11413_v53  ;;  %v11580_v53 = vld [vmem:[#allocation35_spill] sm:$0xff]  ;;  %v10840_v11 = vcombine.low %v1461_v59, %v1461_v59 }
 0x3ab   : > { %v5676_v34 = vor.u32 %v5674_v51, %v5664_v13  ;;  %v5668_v13 = vor.u32 %v5666_v41, %v5656_v26  ;;  %v5672_v18 = vrot.slane %v5670_v33, 1  ;;  %v11588_v41 = vld [vmem:[#allocation55_spill] sm:$0xff] }
 0x3ad   : > { %7171 = vmatpush1.bf16.msra.mxu1 %v8275_v55  ;;  %v5657_v55 = vsel %vm2116_vm0, %v5652_v60, %v5656_v26  ;;  %v5681_v44 = vsel %vm2116_vm0, %v5676_v34, %v5680_v7  ;;  %v5673_v31 = vsel %vm2116_vm0, %v5668_v13, %v5672_v18  ;;  %v5682_v60 = vshrl.u32 %v10570_v23, 16  ;;  %v11586_v26 = vld [vmem:[#allocation48_spill] sm:$0xff] }
 0x3ae   : > { %v5686_v34 = vshll.u32 %v10840_v11, 16 }
 0x3af   : > { %3734 = vmatmul.mubr.bf16.gmra.mrb[32].mxu1 %v11579_v43  ;;  %v5690_v43 = vshrl.u32 %v10558_v58, 16  ;;  %v11584_v58 = vld [vmem:[#allocation42_spill] sm:$0xff] }
 0x3b0   : > { %5982 = vmatmul.mubr.bf16.gmra.mrb[80].mxu0 %v5644_v39  ;;  %3740 = vmatprep.mubr.bf16.mxu1 %v11580_v53  ;;  %v5694_v39 = vshll.u32 %v10830_v22, 16  ;;  %v11582_v53 = vld [vmem:[#allocation38_spill] sm:$0xff]  ;;  %v5688_v33 = vrot.slane %v5686_v34, 1 }
 0x3b1   : > { %5988 = vmatprep.mubr.bf16.mxu0 %v5665_v29  ;;  %v5692_v29 = vor.u32 %v5690_v43, %v5680_v7  ;;  %v11587_v7 = vld [vmem:[#allocation49_spill] sm:$0xff]  ;;  %v11591_v43 = vld [vmem:[#allocation50_spill] sm:$0xff] }
 0x3b2   : > { %v5696_v51 = vrot.slane %v5694_v39, 1  ;;  %v11592_v39 = vld [vmem:[#allocation52_spill] sm:$0xff] }
 0x3b4   : > { %v5697_v22 = vsel %vm2116_vm0, %v5692_v29, %v5696_v51  ;;  %v4149_v51 = vshll.u32 %v11591_v43, 16 }
 0x3b7   : > { %3741 = vmatmul.mubr.bf16.gmra.mrb[36].mxu1 %v11582_v53  ;;  %v11608_v53 = vld [vmem:[#allocation76_spill] sm:$0xff] }
 0x3b8   : > { %5989 = vmatmul.mubr.bf16.gmra.mrb[84].mxu0 %v5657_v55  ;;  %3748 = vmatprep.mubr.bf16.mxu1 %v11583_v17  ;;  %v11585_v55 = vld [vmem:[#allocation44_spill] sm:$0xff] }
 0x3b9   : > { %5996 = vmatprep.mubr.bf16.mxu0 %v5681_v44  ;;  %v5684_v44 = vor.u32 %v5682_v60, %v5672_v18 }
 0x3bb   : > { %v5689_v59 = vsel %vm2116_vm0, %v5684_v44, %v5688_v33 }
 0x3bf   : > { %3749 = vmatmul.mubr.bf16.gmra.mrb[40].mxu1 %v11584_v58  ;;  %v11589_v58 = vld [vmem:[#allocation43_spill] sm:$0xff] }
 0x3c0   : > { %5997 = vmatmul.mubr.bf16.gmra.mrb[88].mxu0 %v5673_v31  ;;  %3755 = vmatprep.mubr.bf16.mxu1 %v11585_v55  ;;  %v4145_v29 = vshrl.u32 %v11589_v58, 16  ;;  %v11611_v31 = vld [vmem:[#allocation78_spill] sm:$0xff]  ;;  %v4151_v55 = vrot.slane %v4149_v51, 1 }
 0x3c1   : > { %6003 = vmatprep.mubr.bf16.mxu0 %v5697_v22  ;;  %v11590_v22 = vld [vmem:[#allocation46_spill] sm:$0xff] }
 0x3c2   : > { %v4125_v18 = vshll.u32 %v11590_v22, 16  ;;  %v4137_v33 = vshrl.u32 %v11590_v22, 16 }
 0x3c7   : > { %3756 = vmatmul.mubr.bf16.gmra.mrb[44].mxu1 %v11586_v26 }
 0x3c8   : > { %6004 = vmatmul.mubr.bf16.gmra.mrb[92].mxu0 %v5689_v59  ;;  %3762 = vmatprep.mubr.bf16.mxu1 %v11587_v7  ;;  %v4141_v59 = vshll.u32 %v11592_v39, 16 }
 0x3c9   : > { %6228 = vmatprep.mubr.bf16.mxu0 %v10419_v57  ;;  %v11593_v57 = vld [vmem:[#allocation54_spill] sm:$0xff] }
 0x3cf   : > { %3763 = vmatmul.mubr.bf16.gmra.mrb[48].mxu1 %v11588_v41 }
 0x3d0   : > { %6229 = vmatmul.mubr.bf16.vlgmr.msra.gmra.mrb[0].mxu0 %v10431_v16  ;;  %3770 = vmatprep.mubr.bf16.mxu1 %v11589_v58  ;;  %v11594_v16 = vld [vmem:[#allocation57_spill] sm:$0xff] }
 0x3d1   : > { %6236 = vmatprep.mubr.bf16.mxu0 %v10434_v45  ;;  %v11595_v45 = vld [vmem:[#allocation58_spill] sm:$0xff] }
 0x3d2   : > { %v4193_v51 = vshrl.u32 %v11595_v45, 16 }
 0x3d7   : > { %3771 = vmatmul.mubr.bf16.gmra.mrb[52].mxu1 %v11590_v22 }
 0x3d8   : > { %6237 = vmatmul.mubr.bf16.gmra.mrb[4].mxu0 %v10447_v3  ;;  %3777 = vmatprep.mubr.bf16.mxu1 %v11591_v43  ;;  %v11596_v3 = vld [vmem:[#allocation60_spill] sm:$0xff] }
 0x3d9   : > { %6243 = vmatprep.mubr.bf16.mxu0 %v10450_v48  ;;  %v11597_v48 = vld [vmem:[#allocation25_spill] sm:$0xff] }
 0x3df   : > { %3778 = vmatmul.mubr.bf16.gmra.mrb[56].mxu1 %v11592_v39 }
 0x3e0   : > { %6244 = vmatmul.mubr.bf16.gmra.mrb[8].mxu0 %v10463_v25  ;;  %3784 = vmatprep.mubr.bf16.mxu1 %v11593_v57  ;;  %v11598_v25 = vld [vmem:[#allocation28_spill] sm:$0xff] }
 0x3e1   : > { %6250 = vmatprep.mubr.bf16.mxu0 %v10466_v61  ;;  %v11599_v61 = vld [vmem:[#allocation32_spill] sm:$0xff] }
 0x3e7   : > { %3785 = vmatmul.mubr.bf16.gmra.mrb[60].mxu1 %v11594_v16 }
 0x3e8   : > { %6251 = vmatmul.mubr.bf16.gmra.mrb[12].mxu0 %v10479_v5  ;;  %3792 = vmatprep.mubr.bf16.mxu1 %v11595_v45  ;;  %v11600_v5 = vld [vmem:[#allocation66_spill] sm:$0xff] }
 0x3e9   : > { %6258 = vmatprep.mubr.bf16.mxu0 %v10482_v49  ;;  %v11601_v49 = vld [vmem:[#allocation37_spill] sm:$0xff] }
 0x3ef   : > { %3793 = vmatmul.mubr.bf16.gmra.mrb[64].mxu1 %v11596_v3 }
 0x3f0   : > { %6259 = vmatmul.mubr.bf16.gmra.mrb[16].mxu0 %v10495_v15  ;;  %3799 = vmatprep.mubr.bf16.mxu1 %v11597_v48  ;;  %v11602_v15 = vld [vmem:[#allocation40_spill] sm:$0xff] }
 0x3f1   : > { %6265 = vmatprep.mubr.bf16.mxu0 %v10498_v40  ;;  %v11603_v40 = vld [vmem:[#allocation41_spill] sm:$0xff] }
 0x3f7   : > { %3800 = vmatmul.mubr.bf16.gmra.mrb[68].mxu1 %v11598_v25 }
 0x3f8   : > { %6266 = vmatmul.mubr.bf16.gmra.mrb[20].mxu0 %v10511_v4  ;;  %3806 = vmatprep.mubr.bf16.mxu1 %v11599_v61  ;;  %v11604_v4 = vld [vmem:[#allocation70_spill] sm:$0xff] }
 0x3f9   : > { %6272 = vmatprep.mubr.bf16.mxu0 %v10514_v54  ;;  %v11605_v54 = vld [vmem:[#allocation47_spill] sm:$0xff] }
 0x3ff   : > { %3807 = vmatmul.mubr.bf16.gmra.mrb[72].mxu1 %v11600_v5 }
 0x400   : > { %6273 = vmatmul.mubr.bf16.gmra.mrb[24].mxu0 %v10528_v63  ;;  %3814 = vmatprep.mubr.bf16.mxu1 %v11601_v49  ;;  %v11606_v63 = vld [vmem:[#allocation51_spill] sm:$0xff] }
 0x401   : > { %6280 = vmatprep.mubr.bf16.mxu0 %v10535_v30  ;;  %v11607_v30 = vld [vmem:[#allocation53_spill] sm:$0xff] }
 0x407   : > { %3815 = vmatmul.mubr.bf16.gmra.mrb[76].mxu1 %v11602_v15 }
 0x408   : > { %6281 = vmatmul.mubr.bf16.gmra.mrb[28].mxu0 %v10548_v6  ;;  %3821 = vmatprep.mubr.bf16.mxu1 %v11603_v40  ;;  %v4129_v6 = vshrl.u32 %v11587_v7, 16  ;;  %v4161_v7 = vshrl.u32 %v11591_v43, 16 }
 0x409   : > { %6287 = vmatprep.mubr.bf16.mxu0 %v10555_v10  ;;  %v4133_v10 = vshll.u32 %v11589_v58, 16 }
 0x40a   : > { %v4163_v58 = vor.u32 %v4161_v7, %v4151_v55 }
 0x40b   : > { %v4135_v13 = vrot.slane %v4133_v10, 1  ;;  %v4153_v10 = vshrl.u32 %v11592_v39, 16 }
 0x40d   : > { %v4147_v34 = vor.u32 %v4145_v29, %v4135_v13  ;;  %v4173_v29 = vshll.u32 %v11596_v3, 16 }
 0x40f   : > { %3822 = vmatmul.mubr.bf16.gmra.mrb[80].mxu1 %v11604_v4  ;;  %v4152_v26 = vsel %vm2116_vm0, %v4147_v34, %v4151_v55 }
 0x410   : > { %6288 = vmatmul.mubr.bf16.gmra.mrb[32].mxu0 %v10567_v0  ;;  %3828 = vmatprep.mubr.bf16.mxu1 %v11605_v54  ;;  %v11609_v0 = vld [vmem:[#allocation77_spill] sm:$0xff] }
 0x411   : > { %6294 = vmatprep.mubr.bf16.mxu0 %v10573_v36  ;;  %v11610_v36 = vld [vmem:[#allocation56_spill] sm:$0xff] }
 0x412   : > { %v4131_v17 = vor.u32 %v4129_v6, %v11610_v36  ;;  %v4157_v36 = vshll.u32 %v11594_v16, 16 }
 0x417   : > { %3829 = vmatmul.mubr.bf16.gmra.mrb[84].mxu1 %v11606_v63 }
 0x418   : > { %6295 = vmatmul.mubr.bf16.gmra.mrb[36].mxu0 %v10582_v47  ;;  %3836 = vmatprep.mubr.bf16.mxu1 %v11607_v30  ;;  %v4121_v47 = vshrl.u32 %v11588_v41, 16  ;;  %v4165_v41 = vshll.u32 %v11593_v57, 16 }
 0x419   : > { %6302 = vmatprep.mubr.bf16.mxu0 %v10586_v42  ;;  %v4136_v42 = vsel %vm2116_vm0, %v4131_v17, %v4135_v13  ;;  %v4177_v17 = vshrl.u32 %v11593_v57, 16  ;;  %v4181_v13 = vshll.u32 %v11595_v45, 16  ;;  %v4185_v45 = vshrl.u32 %v11596_v3, 16 }
 0x41a   : > { %v4167_v6 = vrot.slane %v4165_v41, 1 }
 0x41c   : > { %v4168_v43 = vsel %vm2116_vm0, %v4163_v58, %v4167_v6 }
 0x41f   : > { %3837 = vmatmul.mubr.bf16.gmra.mrb[88].mxu1 %v11608_v53 }
 0x420   : > { %6303 = vmatmul.mubr.bf16.gmra.mrb[40].mxu0 %v10597_v62  ;;  %3843 = vmatprep.mubr.bf16.mxu1 %v11609_v0  ;;  %v11612_v62 = vld [vmem:[#allocation59_spill] sm:$0xff] }
 0x421   : > { %6309 = vmatprep.mubr.bf16.mxu0 %v10600_v24  ;;  %v4123_v60 = vor.u32 %v4121_v47, %v11612_v62  ;;  %v4127_v24 = vrot.slane %v4125_v18, 1  ;;  %v4179_v47 = vor.u32 %v4177_v17, %v4167_v6  ;;  %v4183_v18 = vrot.slane %v4181_v13, 1 }
 0x422   : > { %v4197_v62 = vshll.u32 %v11597_v48, 16  ;;  %v4229_v17 = vshll.u32 %v11601_v49, 16 }
 0x423   : > { %v4128_v44 = vsel %vm2116_vm0, %v4123_v60, %v4127_v24  ;;  %v4184_v57 = vsel %vm2116_vm0, %v4179_v47, %v4183_v18  ;;  %v4195_v60 = vor.u32 %v4193_v51, %v4183_v18  ;;  %v4245_v51 = vshll.u32 %v11603_v40, 16 }
 0x427   : > { %3844 = vmatmul.mubr.bf16.gmra.mrb[92].mxu1 %v11611_v31 }
 0x428   : > { %6310 = vmatmul.mubr.bf16.gmra.mrb[44].mxu0 %v10613_v20  ;;  %4577 = vmatprep.mubr.bf16.mxu1 %v4136_v42  ;;  %v4139_v20 = vor.u32 %v4137_v33, %v4127_v24  ;;  %v4169_v42 = vshrl.u32 %v11594_v16, 16  ;;  %v4199_v24 = vrot.slane %v4197_v62, 1  ;;  %v4189_v33 = vshll.u32 %v11598_v25, 16 }
 0x429   : > { %6316 = vmatprep.mubr.bf16.mxu0 %v10616_v1  ;;  %v4143_v1 = vrot.slane %v4141_v59, 1 }
 0x42a   : > { %v4191_v41 = vrot.slane %v4189_v33, 1  ;;  %v4257_v33 = vshrl.u32 %v11603_v40, 16 }
 0x42b   : > { %v4144_v22 = vsel %vm2116_vm0, %v4139_v20, %v4143_v1 }
 0x42f   : > { %4578 = vmatmul.mubr.bf16.vlgmr.msra.gmra.mrb[48].mxu1 %v4128_v44 }
 0x430   : > { %6317 = vmatmul.mubr.bf16.gmra.mrb[48].mxu0 %v10629_v28  ;;  %4585 = vmatprep.mubr.bf16.mxu1 %v4152_v26  ;;  %v4155_v28 = vor.u32 %v4153_v10, %v4143_v1  ;;  %v4209_v26 = vshrl.u32 %v11597_v48, 16  ;;  %v4201_v48 = vshrl.u32 %v11598_v25, 16  ;;  %v4205_v10 = vshll.u32 %v11600_v5, 16 }
 0x431   : > { %6324 = vmatprep.mubr.bf16.mxu0 %v10632_v37  ;;  %v4159_v37 = vrot.slane %v4157_v36, 1 }
 0x432   : > { %v4211_v20 = vor.u32 %v4209_v26, %v4199_v24  ;;  %v4207_v13 = vrot.slane %v4205_v10, 1 }
 0x433   : > { %v4160_v39 = vsel %vm2116_vm0, %v4155_v28, %v4159_v37 }
 0x437   : > { %4586 = vmatmul.mubr.bf16.gmra.mrb[52].mxu1 %v4144_v22 }
 0x438   : > { %6325 = vmatmul.mubr.bf16.gmra.mrb[52].mxu0 %v10645_v56  ;;  %4592 = vmatprep.mubr.bf16.mxu1 %v4168_v43  ;;  %v4171_v56 = vor.u32 %v4169_v42, %v4159_v37  ;;  %v4225_v43 = vshrl.u32 %v11599_v61, 16  ;;  %v4231_v37 = vrot.slane %v4229_v17, 1  ;;  %v4221_v42 = vshll.u32 %v11602_v15, 16 }
 0x439   : > { %6331 = vmatprep.mubr.bf16.mxu0 %v10648_v21  ;;  %v4175_v21 = vrot.slane %v4173_v29, 1 }
 0x43a   : > { %v4223_v62 = vrot.slane %v4221_v42, 1 }
 0x43b   : > { %v4176_v44 = vsel %vm2116_vm0, %v4171_v56, %v4175_v21  ;;  %v4187_v7 = vor.u32 %v4185_v45, %v4175_v21  ;;  %v4247_v21 = vrot.slane %v4245_v51, 1 }
 0x43d   : > { %v4192_v22 = vsel %vm2116_vm0, %v4187_v7, %v4191_v41  ;;  %v4259_v26 = vor.u32 %v4257_v33, %v4247_v21  ;;  %v6078_v7 = vrot.slane %v10518_v38, 1  ;;  %v11613_v38 = vld [vmem:[#allocation73_spill] sm:$0xff]  ;;  %v4285_v33 = vshll.u32 %v11611_v31, 16 }
 0x43f   : > { %4593 = vmatmul.mubr.bf16.gmra.mrb[56].mxu1 %v4160_v39 }
 0x440   : > { %6332 = vmatmul.mubr.bf16.gmra.mrb[56].mxu0 %v10661_v9  ;;  %4599 = vmatprep.mubr.bf16.mxu1 %v4184_v57  ;;  %v4200_v9 = vsel %vm2116_vm0, %v4195_v60, %v4199_v24  ;;  %v4241_v57 = vshrl.u32 %v11601_v49, 16  ;;  %v4233_v49 = vshrl.u32 %v11602_v15, 16 }
 0x441   : > { %6338 = vmatprep.mubr.bf16.mxu0 %v10664_v12  ;;  %v4213_v12 = vshll.u32 %v11599_v61, 16  ;;  %v4217_v61 = vshrl.u32 %v11600_v5, 16 }
 0x442   : > { %v10932_v34 = vpop.f32.mrb[0].mxu1  ;;  %v4243_v56 = vor.u32 %v4241_v57, %v4231_v37  ;;  %v4293_v57 = vshll.u32 %v11609_v0, 16 }
 0x443   : > { %v3678_v16 = vpop.f32.mrb[1].mxu1  ;;  %v4215_v1 = vrot.slane %v4213_v12, 1 }
 0x444   : > { %v10934_v55 = vpop.f32.mrb[2].mxu1 }
 0x445   : > { %v3681_v59 = vpop.f32.mrb[3].mxu1  ;;  %v4227_v28 = vor.u32 %v4225_v43, %v4215_v1 }
 0x446   : > { %v4235_v59 = vor.u32 %v4233_v49, %v4223_v62 }
 0x447   : > { %4600 = vmatmul.mubr.bf16.gmra.mrb[60].mxu1 %v4176_v44  ;;  %v4237_v44 = vshll.u32 %v11604_v4, 16 }
 0x448   : > { %6339 = vmatmul.mubr.bf16.gmra.mrb[60].mxu0 %v10677_v32  ;;  %4607 = vmatprep.mubr.bf16.mxu1 %v4200_v9  ;;  %v4216_v32 = vsel %vm2116_vm0, %v4211_v20, %v4215_v1  ;;  %v4249_v1 = vshrl.u32 %v11604_v4, 16  ;;  %v11614_v4 = vld [vmem:[#allocation13_spill] sm:$0xff] }
 0x449   : > { %6346 = vmatprep.mubr.bf16.mxu0 %v10680_v50  ;;  %v4203_v50 = vor.u32 %v4201_v48, %v4191_v41  ;;  %v4239_v9 = vrot.slane %v4237_v44, 1  ;;  %v6079_v48 = vsel %vm2927_vm1, %v10720_v52, %v6078_v7  ;;  %v4265_v52 = vshrl.u32 %v11606_v63, 16 }
 0x44a   : > { %v3684_v3 = vpop.f32.mrb[4].mxu1 }
 0x44b   : > { %v3685_v58 = vpop.f32.mrb[5].mxu1  ;;  %v4208_v39 = vsel %vm2116_vm0, %v4203_v50, %v4207_v13  ;;  %v4240_v40 = vsel %vm2116_vm0, %v4235_v59, %v4239_v9  ;;  %v4253_v3 = vshll.u32 %v11606_v63, 16  ;;  %v4251_v10 = vor.u32 %v4249_v1, %v4239_v9 }
 0x44c   : > { %v10944_v6 = vpop.f32.mrb[6].mxu1  ;;  %v6080_v63 = vrot.slane %v10552_v14, 1  ;;  %v4305_v9 = vshrl.u32 %v11609_v0, 16 }
 0x44d   : > { %v3688_v36 = vpop.f32.mrb[7].mxu1 }
 0x44e   : > { %v4255_v36 = vrot.slane %v4253_v3, 1 }
 0x44f   : > { %4608 = vmatmul.mubr.bf16.gmra.mrb[64].mxu1 %v4192_v22  ;;  %v4273_v22 = vshrl.u32 %v11605_v54, 16 }
 0x450   : > { %6347 = vmatmul.mubr.bf16.gmra.mrb[64].mxu0 %v10693_v2  ;;  %4614 = vmatprep.mubr.bf16.mxu1 %v4216_v32  ;;  %v4232_v2 = vsel %vm2116_vm0, %v4227_v28, %v4231_v37  ;;  %v6076_v32 = vrot.slane %v11614_v4, 1 }
 0x451   : > { %6353 = vmatprep.mubr.bf16.mxu0 %v10696_v19  ;;  %v4219_v19 = vor.u32 %v4217_v61, %v4207_v13  ;;  %v11615_v13 = vld [vmem:[#allocation16_spill] sm:$0xff] }
 0x452   : > { %v10954_v25 = vpop.f32.mrb[8].mxu1  ;;  %v11616_v61 = vld [vmem:[#allocation20_spill] sm:$0xff]  ;;  %v6081_v59 = vsel %vm2927_vm1, %v6076_v32, %v6080_v63 }
 0x453   : > { %v3693_v47 = vpop.f32.mrb[9].mxu1  ;;  %v4224_v16 = vsel %vm2116_vm0, %v4219_v19, %v4223_v62  ;;  %v6077_v42 = vsel %vm2927_vm1, %v11616_v61, %v6076_v32  ;;  %v4267_v19 = vor.u32 %v4265_v52, %v4255_v36 }
 0x454   : > { %v3694_v18 = vpop.f32.mrb[10].mxu1  ;;  %v4256_v47 = vsel %vm2116_vm0, %v4251_v10, %v4255_v36 }
 0x455   : > { %v3695_v29 = vpop.f32.mrb[11].mxu1  ;;  %v4269_v18 = vshll.u32 %v11608_v53, 16 }
 0x457   : > { %4615 = vmatmul.mubr.bf16.gmra.mrb[68].mxu1 %v4208_v39  ;;  %v4271_v62 = vrot.slane %v4269_v18, 1 }
 0x458   : > { %6354 = vmatmul.mubr.bf16.gmra.mrb[68].mxu0 %v10709_v46  ;;  %4621 = vmatprep.mubr.bf16.mxu1 %v4232_v2  ;;  %v4248_v46 = vsel %vm2116_vm0, %v4243_v56, %v4247_v21  ;;  %v4289_v2 = vshrl.u32 %v11607_v30, 16  ;;  %v4295_v21 = vrot.slane %v4293_v57, 1 }
 0x459   : > { %6360 = vmatprep.mubr.bf16.mxu0 %v10712_v27  ;;  %v4261_v27 = vshll.u32 %v11605_v54, 16  ;;  %v6082_v54 = vrot.slane %v11615_v13, 1  ;;  %v6088_v13 = vrot.slane %v10840_v11, 1 }
 0x45a   : > { %v10964_v5 = vpop.f32.mrb[12].mxu1 }
 0x45b   : > { %v3700_v60 = vpop.f32.mrb[13].mxu1  ;;  %v4263_v12 = vrot.slane %v4261_v27, 1  ;;  %v6083_v51 = vsel %vm2927_vm1, %v6078_v7, %v6082_v54 }
 0x45c   : > { %v10966_v24 = vpop.f32.mrb[14].mxu1 }
 0x45d   : > { %v3703_v45 = vpop.f32.mrb[15].mxu1  ;;  %v4264_v58 = vsel %vm2116_vm0, %v4259_v26, %v4263_v12  ;;  %v4275_v43 = vor.u32 %v4273_v22, %v4263_v12  ;;  %v11618_v26 = vld [vmem:[#allocation80_spill] sm:$0xff] }
 0x45e   : > { %v4272_v45 = vsel %vm2116_vm0, %v4267_v19, %v4271_v62  ;;  %v4309_v12 = vshll.u32 %v11618_v26, 16 }
 0x45f   : > { %4622 = vmatmul.mubr.bf16.gmra.mrb[72].mxu1 %v4224_v16  ;;  %v11617_v16 = vld [vmem:[#allocation17_spill] sm:$0xff] }
 0x460   : > { %6361 = vmatmul.mubr.bf16.gmra.mrb[72].mxu0 %v10723_v35  ;;  %4629 = vmatprep.mubr.bf16.mxu1 %v4248_v46  ;;  %v6086_v49 = vrot.slane %v11617_v16, 1  ;;  %v4281_v46 = vshrl.u32 %v11608_v53, 16  ;;  %v6084_v53 = vrot.slane %v10570_v23, 1  ;;  %v4311_v1 = vrot.slane %v4309_v12, 1 }
 0x461   : > { %6368 = vmatprep.mubr.bf16.mxu0 %v10727_v8  ;;  %v4277_v8 = vshll.u32 %v11607_v30, 16 }
 0x462   : > { %v3706_v15 = vpop.f32.mrb[16].mxu1  ;;  %v4283_v7 = vor.u32 %v4281_v46, %v4271_v62  ;;  %v6085_v4 = vsel %vm2927_vm1, %v6080_v63, %v6084_v53  ;;  %v6089_v52 = vsel %vm2927_vm1, %v6084_v53, %v6088_v13 }
 0x463   : > { %v3707_v41 = vpop.f32.mrb[17].mxu1  ;;  %v4279_v17 = vrot.slane %v4277_v8, 1  ;;  %v6087_v15 = vsel %vm2927_vm1, %v6082_v54, %v6086_v49 }
 0x464   : > { %v10977_v20 = vpop.f32.mrb[18].mxu1  ;;  %v4287_v41 = vrot.slane %v4285_v33, 1 }
 0x465   : > { %v3710_v35 = vpop.f32.mrb[19].mxu1  ;;  %v4280_v29 = vsel %vm2116_vm0, %v4275_v43, %v4279_v17  ;;  %v4291_v56 = vor.u32 %v4289_v2, %v4279_v17 }
 0x466   : > { %v11619_v35 = vld [vmem:[#allocation21_spill] sm:$0xff]  ;;  %v4288_v0 = vsel %vm2116_vm0, %v4283_v7, %v4287_v41 }
 0x467   : > { %4630 = vmatmul.mubr.bf16.gmra.mrb[76].mxu1 %v4240_v40  ;;  %v4296_v14 = vsel %vm2116_vm0, %v4291_v56, %v4295_v21  ;;  %v4307_v40 = vor.u32 %v4305_v9, %v4295_v21  ;;  %v11043_v56 = vld [vmem:[%s1405_s27] ss:$0 sm:$0xff]  ;;  %s8280_s27 = sshll.u32 %s8389_s23, 4  ;;  %s8281_s27 = int_to_ptr.vmem [resolvable:$false] %s8280_s27 }
 0x468   : > { %6369 = vmatmul.mubr.bf16.gmra.mrb[76].mxu0 %v11613_v38  ;;  %4636 = vmatprep.mubr.bf16.mxu1 %v4264_v58  ;;  %v6090_v58 = vrot.slane %v11619_v35, 1  ;;  %v11620_v38 = vld [vmem:[#allocation82_spill] sm:$0xff]  ;;  %v7172_v21 = vadd.f32 %v11043_v56, %v10932_v34  ;;  %v7176_v9 = vadd.f32 %v11043_v56, %v10944_v6  ;;  %v7180_v6 = vadd.f32 %v11043_v56, %v10964_v5  ;;  %s8282_s29 = scalar_lea.vmem %s8281_s27, 8192  ;;  %p8283_p8 = scmp.lt.s32.totalorder %s11137_s10, %s8281_s27 }
 0x469   : > { %6375 = vmatprep.mubr.bf16.mxu0 %v6079_v48  ;;  %v4297_v48 = vshrl.u32 %v11611_v31, 16  ;;  %v4301_v10 = vshll.u32 %v11620_v38, 16  ;;  %v4312_v32 = vsel %vm2116_vm0, %v4307_v40, %v4311_v1  ;;  %p8284_p9 = scmp.lt.s32.totalorder %s8282_s29, %s8276_s26 }
 0x46a   : > { %v10989_v50 = vpop.f32.mrb[20].mxu1  ;;  %v6091_v23 = vsel %vm2927_vm1, %v6086_v49, %v6090_v58  ;;  %v7174_v49 = vadd.f32 %v11043_v56, %v10934_v55 }
 0x46b   : > { %v3715_v28 = vpop.f32.mrb[21].mxu1  ;;  %v4299_v43 = vor.u32 %v4297_v48, %v4287_v41  ;;  %v4303_v17 = vrot.slane %v4301_v10, 1  ;;  %v7178_v41 = vadd.f32 %v11043_v56, %v10954_v25  ;;  %p8285_p11 = por %p8284_p9, %p8283_p8 }
 0x46c   : > { %v3716_v37 = vpop.f32.mrb[22].mxu1 }
 0x46d   : > { %v3717_v39 = vpop.f32.mrb[23].mxu1  ;;  %v4304_v37 = vsel %vm2116_vm0, %v4299_v43, %v4303_v17  ;;  %v7184_v43 = vadd.f32 %v11043_v56, %v10977_v20  ;;  %p8286_p13 = pnand %p8285_p11, %p8279_p7 }
 0x46f   : > { %4637 = vmatmul.mubr.bf16.gmra.mrb[80].mxu1 %v4256_v47 }
 0x470   : > { %6376 = vmatmul.mubr.bf16.gmra.mrb[80].mxu0 %v6077_v42  ;;  %4643 = vmatprep.mubr.bf16.mxu1 %v4280_v29 }
 0x471   : > { %6382 = vmatprep.mubr.bf16.mxu0 %v6083_v51 }
 0x472   : > { %v11002_v60 = vpop.f32.mrb[24].mxu1 }
 0x473   : > { %v3722_v44 = vpop.f32.mrb[25].mxu1  ;;  %v7188_v20 = vadd.f32 %v11043_v56, %v11002_v60 }
 0x474   : > { %v11005_v30 = vpop.f32.mrb[26].mxu1 }
 0x475   : > { %v3725_v27 = vpop.f32.mrb[27].mxu1 }
 0x477   : > { %4644 = vmatmul.mubr.bf16.gmra.mrb[84].mxu1 %v4272_v45 }
 0x478   : > { %6383 = vmatmul.mubr.bf16.gmra.mrb[84].mxu0 %v6081_v59  ;;  %4651 = vmatprep.mubr.bf16.mxu1 %v4296_v14 }
 0x479   : > { %6390 = vmatprep.mubr.bf16.mxu0 %v6087_v15 }
 0x47a   : > { %v3728_v3 = vpop.f32.mrb[28].mxu1 }
 0x47b   : > { %v3729_v22 = vpop.f32.mrb[29].mxu1 }
 0x47c   : > { %v11017_v8 = vpop.f32.mrb[30].mxu1 }
 0x47d   : > { %v3732_v36 = vpop.f32.mrb[31].mxu1 }
 0x47f   : > { %4652 = vmatmul.mubr.bf16.gmra.mrb[88].mxu1 %v4288_v0  ;;  %v7182_v0 = vadd.f32 %v11043_v56, %v10966_v24 }
 0x480   : > { %6391 = vmatmul.mubr.bf16.gmra.mrb[88].mxu0 %v6085_v4  ;;  %4658 = vmatprep.mubr.bf16.mxu1 %v4312_v32 }
 0x481   : > { %6397 = vmatprep.mubr.bf16.mxu0 %v6091_v23 }
 0x482   : > { %v11026_v54 = vpop.f32.mrb[32].mxu1 }
 0x483   : > { %v3737_v31 = vpop.f32.mrb[33].mxu1 }
 0x484   : > { %v3738_v28 = vpop.f32.mrb[34].mxu1 }
 0x485   : > { %v3739_v47 = vpop.f32.mrb[35].mxu1  ;;  %v7186_v28 = vadd.f32 %v11043_v56, %v10989_v50 }
 0x487   : > { %4659 = vmatmul.mubr.bf16.gmra.mrb[92].mxu1 %v4304_v37 }
 0x488   : > { %6398 = vmatmul.mubr.bf16.gmra.mrb[92].mxu0 %v6089_v52 }
 0x48a   : > { %v11030_v18 = vpop.f32.mrb[36].mxu1 }
 0x48b   : > { %v3744_v39 = vpop.f32.mrb[37].mxu1 }
 0x48c   : > { %v11032_v61 = vpop.f32.mrb[38].mxu1 }
 0x48d   : > { %v3747_v11 = vpop.f32.mrb[39].mxu1 }
 0x492   : > { %v3750_v42 = vpop.f32.mrb[40].mxu1 }
 0x493   : > { %v3751_v29 = vpop.f32.mrb[41].mxu1 }
 0x494   : > { %v11035_v2 = vpop.f32.mrb[42].mxu1 }
 0x495   : > { %v3754_v57 = vpop.f32.mrb[43].mxu1 }
 0x496   : > { %v7190_v57 = vadd.f32 %v11043_v56, %v11005_v30 }
 0x49a   : > { %v11038_v51 = vpop.f32.mrb[44].mxu1 }
 0x49b   : > { %v3759_v19 = vpop.f32.mrb[45].mxu1 }
 0x49c   : > { %v3760_v62 = vpop.f32.mrb[46].mxu1 }
 0x49d   : > { %v3761_v63 = vpop.f32.mrb[47].mxu1 }
 0x4a3   : > { %v6230_v16 = vpop.f32.mrb[0].mxu0 }
 0x4a4   : > { %v7173_v44 = vadd.f32 %v7172_v21, %v6230_v16  ;;  %v6232_v45 = vpop.f32.mrb[1].mxu0 }
 0x4a5   : > { %v6233_v46 = vpop.f32.mrb[2].mxu0  ;;  %v7192_v45 = vadd.f32 %v11043_v56, %v11017_v8  ;;  %v7196_v8 = vadd.f32 %v11043_v56, %v11030_v18 }
 0x4a6   : > { %v6437_v33 = vmax.f32 %v7173_v44, 0.0  ;;  %v7175_v27 = vadd.f32 %v7174_v49, %v6233_v46  ;;  %v6235_v59 = vpop.f32.mrb[3].mxu0 }
 0x4a7   : > { %v7194_v59 = vadd.f32 %v11043_v56, %v11026_v54 }
 0x4a8   : > { %6469 = vst [vmem:[%s11052_s4] sm:$0xff] %v6437_v33  ;;  %v6438_v14 = vmax.f32 %v7175_v27, 0.0 }
 0x4aa   : > { %6470 = vst [vmem:[%s11052_s4 + $0x8] sm:$0xff] %v6438_v14 }
 0x4ab   : > { %v6238_v34 = vpop.f32.mrb[4].mxu0 }
 0x4ac   : > { %v6239_v55 = vpop.f32.mrb[5].mxu0 }
 0x4ad   : > { %v6240_v26 = vpop.f32.mrb[6].mxu0 }
 0x4ae   : > { %v7177_v12 = vadd.f32 %v7176_v9, %v6240_v26  ;;  %v6242_v15 = vpop.f32.mrb[7].mxu0 }
 0x4b0   : > { %v6439_v7 = vmax.f32 %v7177_v12, 0.0 }
 0x4b2   : > { %6471 = vst [vmem:[%s11052_s4 + $0x10] sm:$0xff] %v6439_v7  ;;  %v7198_v7 = vadd.f32 %v11043_v56, %v11032_v61 }
 0x4b3   : > { %v6245_v53 = vpop.f32.mrb[8].mxu0 }
 0x4b4   : > { %v7179_v40 = vadd.f32 %v7178_v41, %v6245_v53  ;;  %v6247_v1 = vpop.f32.mrb[9].mxu0 }
 0x4b5   : > { %v6248_v3 = vpop.f32.mrb[10].mxu0 }
 0x4b6   : > { %v6440_v35 = vmax.f32 %v7179_v40, 0.0  ;;  %v6249_v58 = vpop.f32.mrb[11].mxu0 }
 0x4b8   : > { %6472 = vst [vmem:[%s11052_s4 + $0x18] sm:$0xff] %v6440_v35 }
 0x4bb   : > { %v6252_v22 = vpop.f32.mrb[12].mxu0 }
 0x4bc   : > { %v7181_v48 = vadd.f32 %v7180_v6, %v6252_v22  ;;  %v6254_v38 = vpop.f32.mrb[13].mxu0  ;;  %v7200_v6 = vadd.f32 %v11043_v56, %v11035_v2 }
 0x4bd   : > { %v6255_v25 = vpop.f32.mrb[14].mxu0  ;;  %v7202_v38 = vadd.f32 %v11043_v56, %v11038_v51 }
 0x4be   : > { %v6441_v10 = vmax.f32 %v7181_v48, 0.0  ;;  %v7183_v36 = vadd.f32 %v7182_v0, %v6255_v25  ;;  %v6257_v4 = vpop.f32.mrb[15].mxu0 }
 0x4c0   : > { %6473 = vst [vmem:[%s11052_s4 + $0x20] sm:$0xff] %v6441_v10  ;;  %v6442_v32 = vmax.f32 %v7183_v36, 0.0 }
 0x4c2   : > { %6474 = vst [vmem:[%s11052_s4 + $0x28] sm:$0xff] %v6442_v32 }
 0x4c3   : > { %v6260_v23 = vpop.f32.mrb[16].mxu0 }
 0x4c4   : > { %v6261_v5 = vpop.f32.mrb[17].mxu0 }
 0x4c5   : > { %v6262_v17 = vpop.f32.mrb[18].mxu0 }
 0x4c6   : > { %v7185_v13 = vadd.f32 %v7184_v43, %v6262_v17  ;;  %v6264_v31 = vpop.f32.mrb[19].mxu0 }
 0x4c8   : > { %v6443_v24 = vmax.f32 %v7185_v13, 0.0 }
 0x4ca   : > { %6475 = vst [vmem:[%s11052_s4 + $0x30] sm:$0xff] %v6443_v24 }
 0x4cb   : > { %v6267_v37 = vpop.f32.mrb[20].mxu0 }
 0x4cc   : > { %v7187_v47 = vadd.f32 %v7186_v28, %v6267_v37  ;;  %v6269_v52 = vpop.f32.mrb[21].mxu0 }
 0x4cd   : > { %v6270_v39 = vpop.f32.mrb[22].mxu0 }
 0x4ce   : > { %v6444_v11 = vmax.f32 %v7187_v47, 0.0  ;;  %v6271_v42 = vpop.f32.mrb[23].mxu0 }
 0x4d0   : > { %6476 = vst [vmem:[%s11052_s4 + $0x38] sm:$0xff] %v6444_v11 }
 0x4d3   : > { %v6274_v29 = vpop.f32.mrb[24].mxu0 }
 0x4d4   : > { %v7189_v19 = vadd.f32 %v7188_v20, %v6274_v29  ;;  %v6276_v62 = vpop.f32.mrb[25].mxu0 }
 0x4d5   : > { %v6277_v50 = vpop.f32.mrb[26].mxu0 }
 0x4d6   : > { %v6445_v63 = vmax.f32 %v7189_v19, 0.0  ;;  %v7191_v21 = vadd.f32 %v7190_v57, %v6277_v50  ;;  %v6279_v16 = vpop.f32.mrb[27].mxu0 }
 0x4d8   : > { %6477 = vst [vmem:[%s11052_s4 + $0x40] sm:$0xff] %v6445_v63  ;;  %v6446_v49 = vmax.f32 %v7191_v21, 0.0 }
 0x4da   : > { %6478 = vst [vmem:[%s11052_s4 + $0x48] sm:$0xff] %v6446_v49 }
 0x4db   : > { %v6282_v44 = vpop.f32.mrb[28].mxu0 }
 0x4dc   : > { %v6283_v60 = vpop.f32.mrb[29].mxu0 }
 0x4dd   : > { %v6284_v46 = vpop.f32.mrb[30].mxu0 }
 0x4de   : > { %v7193_v33 = vadd.f32 %v7192_v45, %v6284_v46  ;;  %v6286_v27 = vpop.f32.mrb[31].mxu0 }
 0x4e0   : > { %v6447_v30 = vmax.f32 %v7193_v33, 0.0 }
 0x4e2   : > { %6479 = vst [vmem:[%s11052_s4 + $0x50] sm:$0xff] %v6447_v30 }
 0x4e3   : > { %v6289_v14 = vpop.f32.mrb[32].mxu0 }
 0x4e4   : > { %v7195_v34 = vadd.f32 %v7194_v59, %v6289_v14  ;;  %v6291_v9 = vpop.f32.mrb[33].mxu0 }
 0x4e5   : > { %v6292_v55 = vpop.f32.mrb[34].mxu0 }
 0x4e6   : > { %v6448_v26 = vmax.f32 %v7195_v34, 0.0  ;;  %v6293_v12 = vpop.f32.mrb[35].mxu0 }
 0x4e8   : > { %6480 = vst [vmem:[%s11052_s4 + $0x58] sm:$0xff] %v6448_v26 }
 0x4eb   : > { %v6296_v15 = vpop.f32.mrb[36].mxu0 }
 0x4ec   : > { %v7197_v41 = vadd.f32 %v7196_v8, %v6296_v15  ;;  %v6298_v53 = vpop.f32.mrb[37].mxu0 }
 0x4ed   : > { %v6299_v54 = vpop.f32.mrb[38].mxu0 }
 0x4ee   : > { %v6449_v40 = vmax.f32 %v7197_v41, 0.0  ;;  %v7199_v1 = vadd.f32 %v7198_v7, %v6299_v54  ;;  %v6301_v3 = vpop.f32.mrb[39].mxu0 }
 0x4f0   : > { %6481 = vst [vmem:[%s11052_s4 + $0x60] sm:$0xff] %v6449_v40  ;;  %v6450_v35 = vmax.f32 %v7199_v1, 0.0 }
 0x4f2   : > { %6482 = vst [vmem:[%s11052_s4 + $0x68] sm:$0xff] %v6450_v35 }
 0x4f3   : > { %v6304_v58 = vpop.f32.mrb[40].mxu0 }
 0x4f4   : > { %v6305_v18 = vpop.f32.mrb[41].mxu0 }
 0x4f5   : > { %v6306_v22 = vpop.f32.mrb[42].mxu0 }
 0x4f6   : > { %v7201_v0 = vadd.f32 %v7200_v6, %v6306_v22  ;;  %v6308_v48 = vpop.f32.mrb[43].mxu0 }
 0x4f8   : > { %v6451_v61 = vmax.f32 %v7201_v0, 0.0 }
 0x4fa   : > { %6483 = vst [vmem:[%s11052_s4 + $0x70] sm:$0xff] %v6451_v61 }
 0x4fb   : > { %v6311_v25 = vpop.f32.mrb[44].mxu0 }
 0x4fc   : > { %v7203_v10 = vadd.f32 %v7202_v38, %v6311_v25  ;;  %v6313_v36 = vpop.f32.mrb[45].mxu0 }
 0x4fd   : > { %v6314_v4 = vpop.f32.mrb[46].mxu0 }
 0x4fe   : > { %v6452_v32 = vmax.f32 %v7203_v10, 0.0  ;;  %v6315_v23 = vpop.f32.mrb[47].mxu0 }
 0x500   : > { %6484 = vst [vmem:[%s11052_s4 + $0x78] sm:$0xff] %v6452_v32 }
 0x502   : > { %v4579_v43 = vpop.f32.mrb[48].mxu1 }
 0x503   : > { %v7204_v2 = vadd.f32 %v11043_v56, %v4579_v43  ;;  %v6318_v5 = vpop.f32.mrb[48].mxu0  ;;  %v4581_v17 = vpop.f32.mrb[49].mxu1 }
 0x504   : > { %v6320_v13 = vpop.f32.mrb[49].mxu0  ;;  %v4582_v31 = vpop.f32.mrb[50].mxu1 }
 0x505   : > { %v7205_v24 = vadd.f32 %v7204_v2, %v6318_v5  ;;  %v7206_v51 = vadd.f32 %v11043_v56, %v4582_v31  ;;  %v6321_v28 = vpop.f32.mrb[50].mxu0  ;;  %v4584_v37 = vpop.f32.mrb[51].mxu1 }
 0x506   : > { %v6323_v47 = vpop.f32.mrb[51].mxu0 }
 0x507   : > { %v6453_v52 = vmax.f32 %v7205_v24, 0.0  ;;  %v7207_v39 = vadd.f32 %v7206_v51, %v6321_v28 }
 0x509   : > { %6485 = vst [vmem:[%s11052_s4 + $0x80] sm:$0xff] %v6453_v52  ;;  %v6454_v11 = vmax.f32 %v7207_v39, 0.0 }
 0x50a   : > { %v4587_v42 = vpop.f32.mrb[52].mxu1 }
 0x50b   : > { %6486 = vst [vmem:[%s11052_s4 + $0x88] sm:$0xff] %v6454_v11  ;;  %v6326_v20 = vpop.f32.mrb[52].mxu0  ;;  %v4588_v29 = vpop.f32.mrb[53].mxu1 }
 0x50c   : > { %v6327_v57 = vpop.f32.mrb[53].mxu0  ;;  %v4589_v19 = vpop.f32.mrb[54].mxu1 }
 0x50d   : > { %v7208_v62 = vadd.f32 %v11043_v56, %v4589_v19  ;;  %v6328_v50 = vpop.f32.mrb[54].mxu0  ;;  %v4591_v63 = vpop.f32.mrb[55].mxu1 }
 0x50e   : > { %v6330_v21 = vpop.f32.mrb[55].mxu0 }
 0x50f   : > { %v7209_v16 = vadd.f32 %v7208_v62, %v6328_v50 }
 0x511   : > { %v6455_v49 = vmax.f32 %v7209_v16, 0.0 }
 0x512   : > { %v4594_v44 = vpop.f32.mrb[56].mxu1 }
 0x513   : > { %6487 = vst [vmem:[%s11052_s4 + $0x90] sm:$0xff] %v6455_v49  ;;  %v7210_v45 = vadd.f32 %v11043_v56, %v4594_v44  ;;  %v6333_v60 = vpop.f32.mrb[56].mxu0  ;;  %v4596_v46 = vpop.f32.mrb[57].mxu1 }
 0x514   : > { %v6335_v33 = vpop.f32.mrb[57].mxu0  ;;  %v4597_v27 = vpop.f32.mrb[58].mxu1 }
 0x515   : > { %v7211_v30 = vadd.f32 %v7210_v45, %v6333_v60  ;;  %v6336_v59 = vpop.f32.mrb[58].mxu0  ;;  %v4598_v14 = vpop.f32.mrb[59].mxu1 }
 0x516   : > { %v6337_v34 = vpop.f32.mrb[59].mxu0 }
 0x517   : > { %v6456_v9 = vmax.f32 %v7211_v30, 0.0 }
 0x519   : > { %6488 = vst [vmem:[%s11052_s4 + $0x98] sm:$0xff] %v6456_v9 }
 0x51a   : > { %v4601_v55 = vpop.f32.mrb[60].mxu1 }
 0x51b   : > { %v7212_v26 = vadd.f32 %v11043_v56, %v4601_v55  ;;  %v6340_v12 = vpop.f32.mrb[60].mxu0  ;;  %v4603_v8 = vpop.f32.mrb[61].mxu1 }
 0x51c   : > { %v6342_v15 = vpop.f32.mrb[61].mxu0  ;;  %v4604_v7 = vpop.f32.mrb[62].mxu1 }
 0x51d   : > { %v7213_v41 = vadd.f32 %v7212_v26, %v6340_v12  ;;  %v7214_v53 = vadd.f32 %v11043_v56, %v4604_v7  ;;  %v6343_v54 = vpop.f32.mrb[62].mxu0  ;;  %v4606_v40 = vpop.f32.mrb[63].mxu1 }
 0x51e   : > { %v6345_v1 = vpop.f32.mrb[63].mxu0 }
 0x51f   : > { %v6457_v3 = vmax.f32 %v7213_v41, 0.0  ;;  %v7215_v35 = vadd.f32 %v7214_v53, %v6343_v54 }
 0x521   : > { %6489 = vst [vmem:[%s11052_s4 + $0xa0] sm:$0xff] %v6457_v3  ;;  %v6458_v58 = vmax.f32 %v7215_v35, 0.0 }
 0x522   : > { %v4609_v6 = vpop.f32.mrb[64].mxu1 }
 0x523   : > { %6490 = vst [vmem:[%s11052_s4 + $0xa8] sm:$0xff] %v6458_v58  ;;  %v6348_v18 = vpop.f32.mrb[64].mxu0  ;;  %v4610_v22 = vpop.f32.mrb[65].mxu1 }
 0x524   : > { %v6349_v0 = vpop.f32.mrb[65].mxu0  ;;  %v4611_v48 = vpop.f32.mrb[66].mxu1 }
 0x525   : > { %v7216_v61 = vadd.f32 %v11043_v56, %v4611_v48  ;;  %v6350_v38 = vpop.f32.mrb[66].mxu0  ;;  %v4613_v25 = vpop.f32.mrb[67].mxu1 }
 0x526   : > { %v6352_v10 = vpop.f32.mrb[67].mxu0 }
 0x527   : > { %v7217_v36 = vadd.f32 %v7216_v61, %v6350_v38 }
 0x529   : > { %v6459_v4 = vmax.f32 %v7217_v36, 0.0 }
 0x52a   : > { %v4616_v32 = vpop.f32.mrb[68].mxu1 }
 0x52b   : > { %6491 = vst [vmem:[%s11052_s4 + $0xb0] sm:$0xff] %v6459_v4  ;;  %v7218_v23 = vadd.f32 %v11043_v56, %v4616_v32  ;;  %v6355_v43 = vpop.f32.mrb[68].mxu0  ;;  %v4618_v2 = vpop.f32.mrb[69].mxu1 }
 0x52c   : > { %v6357_v5 = vpop.f32.mrb[69].mxu0  ;;  %v4619_v17 = vpop.f32.mrb[70].mxu1 }
 0x52d   : > { %v7219_v13 = vadd.f32 %v7218_v23, %v6355_v43  ;;  %v6358_v31 = vpop.f32.mrb[70].mxu0  ;;  %v4620_v24 = vpop.f32.mrb[71].mxu1 }
 0x52e   : > { %v6359_v51 = vpop.f32.mrb[71].mxu0 }
 0x52f   : > { %v6460_v28 = vmax.f32 %v7219_v13, 0.0 }
 0x531   : > { %6492 = vst [vmem:[%s11052_s4 + $0xb8] sm:$0xff] %v6460_v28 }
 0x532   : > { %v4623_v37 = vpop.f32.mrb[72].mxu1 }
 0x533   : > { %v7220_v47 = vadd.f32 %v11043_v56, %v4623_v37  ;;  %v6362_v52 = vpop.f32.mrb[72].mxu0  ;;  %v4625_v39 = vpop.f32.mrb[73].mxu1 }
 0x534   : > { %v6364_v11 = vpop.f32.mrb[73].mxu0  ;;  %v4626_v42 = vpop.f32.mrb[74].mxu1 }
 0x535   : > { %v7221_v20 = vadd.f32 %v7220_v47, %v6362_v52  ;;  %v7222_v29 = vadd.f32 %v11043_v56, %v4626_v42  ;;  %v6365_v57 = vpop.f32.mrb[74].mxu0  ;;  %v4628_v19 = vpop.f32.mrb[75].mxu1 }
 0x536   : > { %v6367_v62 = vpop.f32.mrb[75].mxu0 }
 0x537   : > { %v6461_v50 = vmax.f32 %v7221_v20, 0.0  ;;  %v7223_v63 = vadd.f32 %v7222_v29, %v6365_v57 }
 0x539   : > { %6493 = vst [vmem:[%s11052_s4 + $0xc0] sm:$0xff] %v6461_v50  ;;  %v6462_v21 = vmax.f32 %v7223_v63, 0.0 }
 0x53a   : > { %v4631_v16 = vpop.f32.mrb[76].mxu1 }
 0x53b   : > { %6494 = vst [vmem:[%s11052_s4 + $0xc8] sm:$0xff] %v6462_v21  ;;  %v6370_v49 = vpop.f32.mrb[76].mxu0  ;;  %v4632_v44 = vpop.f32.mrb[77].mxu1 }
 0x53c   : > { %v6371_v45 = vpop.f32.mrb[77].mxu0  ;;  %v4633_v60 = vpop.f32.mrb[78].mxu1 }
 0x53d   : > { %v7224_v46 = vadd.f32 %v11043_v56, %v4633_v60  ;;  %v6372_v33 = vpop.f32.mrb[78].mxu0  ;;  %v4635_v27 = vpop.f32.mrb[79].mxu1 }
 0x53e   : > { %v6374_v30 = vpop.f32.mrb[79].mxu0 }
 0x53f   : > { %v7225_v59 = vadd.f32 %v7224_v46, %v6372_v33 }
 0x541   : > { %v6463_v14 = vmax.f32 %v7225_v59, 0.0 }
 0x542   : > { %v4638_v34 = vpop.f32.mrb[80].mxu1 }
 0x543   : > { %6495 = vst [vmem:[%s11052_s4 + $0xd0] sm:$0xff] %v6463_v14  ;;  %v7226_v9 = vadd.f32 %v11043_v56, %v4638_v34  ;;  %v6377_v55 = vpop.f32.mrb[80].mxu0  ;;  %v4640_v26 = vpop.f32.mrb[81].mxu1 }
 0x544   : > { %v6379_v12 = vpop.f32.mrb[81].mxu0  ;;  %v4641_v8 = vpop.f32.mrb[82].mxu1 }
 0x545   : > { %v7227_v15 = vadd.f32 %v7226_v9, %v6377_v55  ;;  %v6380_v7 = vpop.f32.mrb[82].mxu0  ;;  %v4642_v41 = vpop.f32.mrb[83].mxu1 }
 0x546   : > { %v6381_v53 = vpop.f32.mrb[83].mxu0 }
 0x547   : > { %v6464_v54 = vmax.f32 %v7227_v15, 0.0 }
 0x549   : > { %6496 = vst [vmem:[%s11052_s4 + $0xd8] sm:$0xff] %v6464_v54 }
 0x54a   : > { %v4645_v40 = vpop.f32.mrb[84].mxu1 }
 0x54b   : > { %v7228_v1 = vadd.f32 %v11043_v56, %v4645_v40  ;;  %v6384_v3 = vpop.f32.mrb[84].mxu0  ;;  %v4647_v35 = vpop.f32.mrb[85].mxu1 }
 0x54c   : > { %v6386_v58 = vpop.f32.mrb[85].mxu0  ;;  %v4648_v6 = vpop.f32.mrb[86].mxu1 }
 0x54d   : > { %v7229_v18 = vadd.f32 %v7228_v1, %v6384_v3  ;;  %v7230_v22 = vadd.f32 %v11043_v56, %v4648_v6  ;;  %v6387_v0 = vpop.f32.mrb[86].mxu0  ;;  %v4650_v48 = vpop.f32.mrb[87].mxu1 }
 0x54e   : > { %v6389_v61 = vpop.f32.mrb[87].mxu0 }
 0x54f   : > { %v6465_v38 = vmax.f32 %v7229_v18, 0.0  ;;  %v7231_v25 = vadd.f32 %v7230_v22, %v6387_v0 }
 0x551   : > { %6497 = vst [vmem:[%s11052_s4 + $0xe0] sm:$0xff] %v6465_v38  ;;  %v6466_v10 = vmax.f32 %v7231_v25, 0.0 }
 0x552   : > { %v4653_v36 = vpop.f32.mrb[88].mxu1 }
 0x553   : > { %6498 = vst [vmem:[%s11052_s4 + $0xe8] sm:$0xff] %v6466_v10  ;;  %v6392_v4 = vpop.f32.mrb[88].mxu0  ;;  %v4654_v32 = vpop.f32.mrb[89].mxu1 }
 0x554   : > { %v6393_v23 = vpop.f32.mrb[89].mxu0  ;;  %v4655_v43 = vpop.f32.mrb[90].mxu1 }
 0x555   : > { %v7232_v2 = vadd.f32 %v11043_v56, %v4655_v43  ;;  %v6394_v5 = vpop.f32.mrb[90].mxu0  ;;  %v4657_v17 = vpop.f32.mrb[91].mxu1 }
 0x556   : > { %v6396_v13 = vpop.f32.mrb[91].mxu0 }
 0x557   : > { %v7233_v31 = vadd.f32 %v7232_v2, %v6394_v5 }
 0x559   : > { %v6467_v24 = vmax.f32 %v7233_v31, 0.0 }
 0x55a   : > { %v4660_v51 = vpop.f32.mrb[92].mxu1 }
 0x55b   : > { %6499 = vst [vmem:[%s11052_s4 + $0xf0] sm:$0xff] %v6467_v24  ;;  %v7234_v28 = vadd.f32 %v11043_v56, %v4660_v51  ;;  %v6399_v37 = vpop.f32.mrb[92].mxu0  ;;  %v4662_v47 = vpop.f32.mrb[93].mxu1 }
 0x55c   : > { %v6401_v52 = vpop.f32.mrb[93].mxu0  ;;  %v4663_v39 = vpop.f32.mrb[94].mxu1 }
 0x55d   : > { %v7235_v11 = vadd.f32 %v7234_v28, %v6399_v37  ;;  %v6402_v42 = vpop.f32.mrb[94].mxu0  ;;  %v4664_v20 = vpop.f32.mrb[95].mxu1 }
 0x55e   : > { %v6403_v29 = vpop.f32.mrb[95].mxu0 }
 0x55f   : > { %v6468_v56 = vmax.f32 %v7235_v11, 0.0 }
 0x561   : > { %6500 = vst [vmem:[%s11052_s4 + $0xf8] sm:$0xff] %v6468_v56 }
 0x562   : > { %8289 = shalt.err (!%p8286_p13)
}
 0x563   : > { %s8290_s28 = scalar_lea.hbm %s11135_s17, 4096  ;;  %s8294_s5 = scalar_lea.hbm %s11203_s3, 16384 }
 0x564   : > { %p8291_p0 = scmp.ne.s32.totalorder %s11135_s17, %s8290_s28  ;;  %p8295_p3 = scmp.lt.u32.totalorder %s11135_s17, %s11203_s3 }
 0x565   : > { %p8296_p4 = scmp.lt.u32.totalorder %s8294_s5, %s8290_s28  ;;  %p8298_p6 = scmp.lt.u32.totalorder %s8290_s28, %s11135_s17 }
 0x566   : > { %p8292_p1 = pnand %p8291_p0, %p8492_p10 }
 0x567   : > { %p8297_p5 = por %p8296_p4, %p8295_p3 }
 0x568   : > { %p8293_p2 = pneg %p8292_p1 }
 0x569   : > { %p8299_p7 = por %p8298_p6, %p8297_p5 }
 0x56b   : > { %p8300_p8 = pnand %p8299_p7, %p8293_p2 }
 0x56d   : > { %8303 = shalt.err (!%p8300_p8)
}
 0x56e   : > { %s8390_s11 = smov 128   ;;  %s8391_s26 = smov 256  }
 0x56f   : > { %s8392_s23 = smov 8  }
 0x570   : > { %7911 = dma.vmem_to_hbm [thread:$0]  (%p8492_p10), %s11137_s10, 4096, %s11135_s17, %s11142_s22, %s8390_s11, %s8391_s26, %s8392_s23  }
 0x571 PF: > { %p7917_p9 = scmp.ge.s32.totalorder %s8386_s21, 2  ;;  %s6531_s27 = sand.u32 1, %s8350_s12  }
 0x572   : > { %s6532_s29 = scalar_lea.sflag [#allocation4], %s6531_s27 }
 0x573   : > { %p7914_p11 = pnand %p7917_p9, %p8499_p12 }
 0x575   : > { %8345 = dma.done.wait (!%p7914_p11), %s6532_s29, 4096  }
 0x576   : > { %8347 = vsyncadd (!%p7914_p11), %s6532_s29, 4294963200  ;;  %s16_s21 = sadd.s32 1, %s8386_s21   ;;  %s11621_s12 = smov %s8354_s13 }
 0x577   : > { %p13_p13 = scmp.ge.s32.totalorder %s16_s21, 6   ;;  %s11622_s13 = smov %s8358_s14 }
 0x578   : > { %s11623_s14 = smov %s8497_s7  ;;  %s11624_s15 = smov %s8366_s16 }
 0x579   : > { %s11625_s16 = smov %s8486_s30  ;;  %s11626_s17 = smov %s8378_s19 }
 0x57a   : > { %s11627_s18 = smov %s8382_s20  ;;  %s11628_s19 = smov %s11631_s24 }
 0x57b   : > { %s11629_s20 = smov %s11635_s25  ;;  %15 = sbr.rel (!%p13_p13) target bundleno = 6 (0x6), region = 127 }
 0x582   :  { %6537 = vsyncpa [#allocation4], 1 }
 0x583   :  { %6539 = vsyncpa [#allocation4 + $0x1], 1 }

</bundles_post_ra>
